<compile_context>
chip_gen: v5e
topology: v5e:2x2
jax: 0.10.0
libtpu: 0.0.40
codegen_flags: <defaults>
</compile_context>

<pallas_src>
import functools
import math

import numpy as np

import jax
import jax.numpy as jnp
from jax import lax
from jax.experimental import pallas as pl
from jax.experimental.pallas import tpu as pltpu


_VMEM_LIMIT = 32 * 1024 * 1024  # safe on v5e / v6e / v7x


# ---------------------------------------------------------------------------
# Shared helper: one conv row's im2col slab (W, kw*Cin).
# ---------------------------------------------------------------------------
def _im2col_row(x_ref, row, W, kw):
    # x_ref: (1, Hp, Wp, Cin) bf16 (height-padded image).
    if kw == 1:  # width taps already folded into channels by the wrapper
        return x_ref[0, row, pl.ds(0, W), :]
    return jnp.concatenate(
        [x_ref[0, row, pl.ds(kx, W), :] for kx in range(kw)], axis=-1)


# ---------------------------------------------------------------------------
# Conv2d (stride 1, 'same') + bias + ReLU
# ---------------------------------------------------------------------------
def _conv_kernel(x_ref, w_ref, b_ref, o_ref, *, kh, kw, relu):
    # o_ref: (1, TH, W, Cout) bf16 ; w_ref: (KH, KW*Cin, Cout) ; b_ref: (1, Cout)
    _, TH, W, cout = o_ref.shape
    row0 = pl.program_id(1) * TH
    bias = b_ref[...]

    def body(r, carry):
        h = row0 + r
        acc = jnp.zeros((W, cout), jnp.float32)
        for ky in range(kh):
            slab = _im2col_row(x_ref, h + ky, W, kw)
            acc = acc + jnp.dot(slab, w_ref[ky],
                                preferred_element_type=jnp.float32)
        acc = acc + bias
        if relu:
            acc = jnp.maximum(acc, 0.0)
        o_ref[0, r] = acc.astype(o_ref.dtype)
        return carry

    lax.fori_loop(0, TH, body, 0)


# ---------------------------------------------------------------------------
# Conv2d + bias + ReLU + fused 2x2 MaxPool (stride 2), slabs shared across the
# two conv rows that feed each pooled output row.
# ---------------------------------------------------------------------------
def _conv_pool_kernel(x_ref, w_ref, b_ref, o_ref, rowbuf, *, kh, kw, relu):
    # o_ref: (1, THp, Wout, Cout) pooled rows ; rowbuf: VMEM (W, Cout) f32
    _, THp, Wout, cout = o_ref.shape
    W = 2 * Wout
    row0 = pl.program_id(1) * THp
    bias = b_ref[...]

    def body(pr, carry):
        h = 2 * (row0 + pr)
        acc0 = jnp.zeros((W, cout), jnp.float32)
        acc1 = jnp.zeros((W, cout), jnp.float32)
        # Input rows h .. h+kh feed BOTH conv rows of this pooled output row:
        # build each im2col slab once, dot it against the two weight planes.
        for j in range(kh + 1):
            slab = _im2col_row(x_ref, h + j, W, kw)
            if j < kh:
                acc0 = acc0 + jnp.dot(slab, w_ref[j],
                                      preferred_element_type=jnp.float32)
            if j >= 1:
                acc1 = acc1 + jnp.dot(slab, w_ref[j - 1],
                                      preferred_element_type=jnp.float32)
        m = jnp.maximum(acc0, acc1) + bias     # H-direction pool (bias commutes)
        if relu:
            m = jnp.maximum(m, 0.0)            # ReLU commutes with max
        rowbuf[...] = m
        pooled = jnp.maximum(rowbuf[pl.ds(0, Wout, 2), :],   # W-direction pool
                             rowbuf[pl.ds(1, Wout, 2), :])
        o_ref[0, pr] = pooled.astype(o_ref.dtype)
        return carry

    lax.fori_loop(0, THp, body, 0)


def _row_block(hout, target=64):
    if hout <= target:
        return hout
    for d in range(target, 0, -1):
        if hout % d == 0:
            return d
    return hout


def conv2d_block(x, w, b, *, relu=True, pool=False, fold_w=False):
    """x: (N, H, W, Cin) bf16; w: (K, K, Cin, Cout) f32; b: (1, Cout) f32."""
    N, H, W, Cin = x.shape
    KH, KW, _, Cout = w.shape
    p = (KH - 1) // 2

    if fold_w:
        # Fold the KW width-taps into channels once in XLA (only used for the
        # 3-channel first layer) -> kernel reads contiguous (W, KW*Cin) slabs.
        xpw = jnp.pad(x, ((0, 0), (0, 0), (p, p), (0, 0)))
        xf = jnp.concatenate([xpw[:, :, kx:kx + W, :] for kx in range(KW)],
                             axis=-1)
        xp = jnp.pad(xf, ((0, 0), (p, p), (0, 0), (0, 0)))
        kw_eff, cin_eff, Wp = 1, KW * Cin, W
    else:
        xp = jnp.pad(x, ((0, 0), (p, p), (p, p), (0, 0)))
        kw_eff, cin_eff, Wp = KW, Cin, W + 2 * p
    Hp = H + 2 * p

    wr = w.reshape(KH, KW * Cin, Cout).astype(jnp.bfloat16)
    b = b.astype(jnp.float32)

    if pool:
        assert H % 2 == 0 and W % 2 == 0
        Hout, Wout = H // 2, W // 2
    else:
        Hout, Wout = H, W

    th = _row_block(Hout)
    n_rb = Hout // th

    kernel = functools.partial(_conv_pool_kernel if pool else _conv_kernel,
                               kh=KH, kw=kw_eff, relu=relu)
    scratch = [pltpu.VMEM((W, Cout), jnp.float32)] if pool else []

    return pl.pallas_call(
        kernel,
        out_shape=jax.ShapeDtypeStruct((N, Hout, Wout, Cout), jnp.bfloat16),
        grid=(N, n_rb),
        in_specs=[
            pl.BlockSpec((1, Hp, Wp, cin_eff), lambda n, i: (n, 0, 0, 0)),
            pl.BlockSpec(wr.shape, lambda n, i: (0, 0, 0)),
            pl.BlockSpec((1, Cout), lambda n, i: (0, 0)),
        ],
        out_specs=pl.BlockSpec((1, th, Wout, Cout), lambda n, i: (n, i, 0, 0)),
        scratch_shapes=scratch,
        compiler_params=pltpu.CompilerParams(
            dimension_semantics=("parallel", "parallel"),
            vmem_limit_bytes=_VMEM_LIMIT),
    )(xp, wr, b)


# ---------------------------------------------------------------------------
# Fused: 1x1 'fuse' conv (30 -> 1) + bias + ReLU + bilinear x4 upsample
# (matches F.interpolate(scale_factor=4, mode='bilinear', align_corners=False))
# ---------------------------------------------------------------------------
def _fuse_upsample_kernel(x_ref, wf_ref, bf_ref, ah_ref, awt_ref, o_ref):
    # x_ref: (1, h, w, 30) bf16; wf_ref: (1, 1, 30) f32; bf_ref: (1, 1) f32
    # ah_ref: (Ho, h) f32; awt_ref: (w, Wo) f32; o_ref: (1, Ho, Wo) f32
    s = jnp.sum(x_ref[0] * wf_ref[...], axis=-1) + bf_ref[...]   # (h, w) 1x1 conv
    s = jnp.maximum(s, 0.0)                                      # ReLU
    t = jnp.dot(ah_ref[...], s, preferred_element_type=jnp.float32)   # (Ho, w)
    o_ref[0] = jnp.dot(t, awt_ref[...], preferred_element_type=jnp.float32)


def _bilinear_matrix(in_size, scale):
    out_size = in_size * scale
    src = (np.arange(out_size, dtype=np.float64) + 0.5) / scale - 0.5
    src = np.clip(src, 0.0, None)
    i0 = np.minimum(np.floor(src).astype(np.int64), in_size - 1)
    i1 = np.minimum(i0 + 1, in_size - 1)
    w1 = src - i0
    w0 = 1.0 - w1
    m = np.zeros((out_size, in_size), np.float32)
    m[np.arange(out_size), i0] += w0
    m[np.arange(out_size), i1] += w1
    return jnp.asarray(m)


def fuse_and_upsample(xc, wf, bf):
    """xc: (N, h, w, 30) bf16; wf: (1, 1, 30, 1); bf: (1, 1) -> (N, 4h, 4w)."""
    N, h, w, C = xc.shape
    Ho, Wo = 4 * h, 4 * w
    ah = _bilinear_matrix(h, 4)          # (Ho, h)
    awt = _bilinear_matrix(w, 4).T       # (w, Wo)
    wf_vec = wf.reshape(1, 1, C).astype(jnp.float32)
    bf = bf.reshape(1, 1).astype(jnp.float32)
    return pl.pallas_call(
        _fuse_upsample_kernel,
        out_shape=jax.ShapeDtypeStruct((N, Ho, Wo), jnp.float32),
        grid=(N,),
        in_specs=[
            pl.BlockSpec((1, h, w, C), lambda n: (n, 0, 0, 0)),
            pl.BlockSpec((1, 1, C), lambda n: (0, 0, 0)),
            pl.BlockSpec((1, 1), lambda n: (0, 0)),
            pl.BlockSpec((Ho, h), lambda n: (0, 0)),
            pl.BlockSpec((w, Wo), lambda n: (0, 0)),
        ],
        out_specs=pl.BlockSpec((1, Ho, Wo), lambda n: (n, 0, 0)),
        compiler_params=pltpu.CompilerParams(
            dimension_semantics=("parallel",),
            vmem_limit_bytes=_VMEM_LIMIT),
    )(xc, wf_vec, bf, ah, awt)


# ---------------------------------------------------------------------------
# MCNN parameters, branch packing & forward
# ---------------------------------------------------------------------------
_BRANCH_CFGS = {
    # (Cin, Cout, kernel_size) per conv layer; pools follow layers 0 and 1.
    "branch1": [(3, 16, 9), (16, 32, 7), (32, 16, 7), (16, 8, 7)],
    "branch2": [(3, 20, 7), (20, 40, 5), (40, 20, 5), (20, 10, 5)],
    "branch3": [(3, 24, 5), (24, 48, 3), (48, 24, 3), (24, 12, 3)],
}
_BRANCH_ORDER = ("branch1", "branch2", "branch3")


def init_params(key):
    params = {}
    for name, cfg in _BRANCH_CFGS.items():
        layers = []
        for (cin, cout, k) in cfg:
            key, kw_, kb = jax.random.split(key, 3)
            fan_in = float(k * k * cin)
            w = jax.random.normal(kw_, (k, k, cin, cout), jnp.float32) / math.sqrt(fan_in)
            b = 0.01 * jax.random.normal(kb, (1, cout), jnp.float32)
            layers.append((w, b))
        params[name] = layers
    key, kw_, kb = jax.random.split(key, 3)
    wf = jax.random.normal(kw_, (1, 1, 30, 1), jnp.float32) / math.sqrt(30.0)
    bf = 0.01 * jax.random.normal(kb, (1, 1), jnp.float32)
    params["fuse"] = (wf, bf)
    return params


def pack_params(params):
    """Pack the three branches into block-diagonal weights per layer.

    A k x k 'same' conv equals the same weights zero-padded to K x K with
    'same' padding (K >= k, both odd), so packed layers reproduce the
    per-branch convs exactly; channel order is branch1|branch2|branch3, i.e.
    the torch.cat order of the reference.
    """
    packed = []
    for l in range(4):
        ks = [_BRANCH_CFGS[b][l][2] for b in _BRANCH_ORDER]
        cins = [_BRANCH_CFGS[b][l][0] for b in _BRANCH_ORDER]
        couts = [_BRANCH_CFGS[b][l][1] for b in _BRANCH_ORDER]
        K = max(ks)
        shared_input = (l == 0)                 # all branches read the RGB image
        cin_tot = cins[0] if shared_input else sum(cins)
        cout_tot = sum(couts)
        W = jnp.zeros((K, K, cin_tot, cout_tot), jnp.float32)
        B = jnp.zeros((1, cout_tot), jnp.float32)
        ci_off, co_off = 0, 0
        for bi, name in enumerate(_BRANCH_ORDER):
            w, bb = params[name][l]
            pad = (K - ks[bi]) // 2
            wp = jnp.pad(w, ((pad, pad), (pad, pad), (0, 0), (0, 0)))
            if shared_input:
                W = W.at[:, :, :, co_off:co_off + couts[bi]].set(wp)
            else:
                W = W.at[:, :, ci_off:ci_off + cins[bi],
                         co_off:co_off + couts[bi]].set(wp)
                ci_off += cins[bi]
            B = B.at[:, co_off:co_off + couts[bi]].set(bb)
            co_off += couts[bi]
        packed.append((W, B))
    return {"convs": packed, "fuse": params["fuse"]}


@jax.jit
def mcnn_forward(im_data, packed):
    """im_data: (N, 3, H, W) NCHW, H and W divisible by 4 -> (N, 1, H, W)."""
    x = jnp.transpose(im_data, (0, 2, 3, 1)).astype(jnp.bfloat16)   # NHWC bf16
    (w1, b1), (w2, b2), (w3, b3), (w4, b4) = packed["convs"]
    x = conv2d_block(x, w1, b1, relu=True, pool=True, fold_w=True)  # (N, H/2, W/2, 60)
    x = conv2d_block(x, w2, b2, relu=True, pool=True)               # (N, H/4, W/4, 120)
    x = conv2d_block(x, w3, b3, relu=True, pool=False)              # (N, H/4, W/4, 60)
    x = conv2d_block(x, w4, b4, relu=True, pool=False)              # (N, H/4, W/4, 30)
    wf, bf = packed["fuse"]
    y = fuse_and_upsample(x, wf, bf)                                # (N, H, W) f32
    return y[:, None, :, :]                                         # NCHW


if __name__ == "__main__":
    key = jax.random.PRNGKey(0)
    k_im, k_par = jax.random.split(key)
    im_data = jax.random.normal(k_im, (2, 3, 16, 16), dtype=jnp.float32)
    params = init_params(k_par)
    packed = pack_params(params)

    out = mcnn_forward(im_data, packed)
    out = jax.block_until_ready(out)

    assert out.shape == (2, 1, 16, 16), out.shape
    assert bool(jnp.all(jnp.isfinite(out)))
    print("KERNEL_OK")
</pallas_src>

<mosaic_0001>
module attributes {stable_mosaic.version = 11 : i64} {
  func.func @_conv_pool_kernel(%arg0: i32, %arg1: i32, %arg2: memref<1x24x16x27xbf16, #tpu.memory_space<vmem>>, %arg3: memref<9x27x60xbf16, #tpu.memory_space<vmem>>, %arg4: memref<1x60xf32, #tpu.memory_space<vmem>>, %arg5: memref<1x8x8x60xbf16, #tpu.memory_space<vmem>>, %arg6: memref<16x60xf32, #tpu.memory_space<vmem>>) attributes {dimension_semantics = [#tpu.dimension_semantics<parallel>, #tpu.dimension_semantics<parallel>], iteration_bounds = array<i64: 2, 1>, scalar_prefetch = 0 : i64, scratch_operands = 1 : i64, tpu.core_type = #tpu.core_type<tc>, window_params = [{transform_indices = @transform_0, window_bounds = array<i64: 1, 24, 16, 27>}, {pipeline_mode = #tpu.pipeline_mode<synchronous>, transform_indices = @transform_1, window_bounds = array<i64: 9, 27, 60>}, {pipeline_mode = #tpu.pipeline_mode<synchronous>, transform_indices = @transform_2, window_bounds = array<i64: 1, 60>}, {transform_indices = @transform_3, window_bounds = array<i64: 1, 8, 8, 60>}]} {
    %c8_i32 = arith.constant 8 : i32
    %0 = arith.muli %arg1, %c8_i32 : i32
    %c0 = arith.constant 0 : index
    %c0_0 = arith.constant 0 : index
    %1 = vector.load %arg4[%c0, %c0_0] : memref<1x60xf32, #tpu.memory_space<vmem>>, vector<1x60xf32>
    %c0_i32 = arith.constant 0 : i32
    %c8_i32_1 = arith.constant 8 : i32
    %2 = arith.addi %c0_i32, %c8_i32_1 : i32
    %c1_i32 = arith.constant 1 : i32
    scf.for %arg7 = %c0_i32 to %2 step %c1_i32  : i32 {
      %3 = arith.addi %0, %arg7 : i32
      %c2_i32 = arith.constant 2 : i32
      %4 = arith.muli %c2_i32, %3 : i32
      %cst = arith.constant 0.000000e+00 : f32
      %5 = vector.broadcast %cst : f32 to vector<16x60xf32>
      %cst_3 = arith.constant 0.000000e+00 : f32
      %6 = vector.broadcast %cst_3 : f32 to vector<16x60xf32>
      %c0_i32_4 = arith.constant 0 : i32
      %7 = arith.addi %4, %c0_i32_4 : i32
      %c0_5 = arith.constant 0 : index
      %8 = arith.index_cast %7 : i32 to index
      %c0_6 = arith.constant 0 : index
      %c0_7 = arith.constant 0 : index
      %9 = vector.load %arg2[%c0_5, %8, %c0_6, %c0_7] : memref<1x24x16x27xbf16, #tpu.memory_space<vmem>>, vector<1x1x16x27xbf16>
      %10 = vector.shape_cast %9 : vector<1x1x16x27xbf16> to vector<16x27xbf16>
      %c0_8 = arith.constant 0 : index
      %c0_9 = arith.constant 0 : index
      %c0_10 = arith.constant 0 : index
      %11 = vector.load %arg3[%c0_8, %c0_9, %c0_10] : memref<9x27x60xbf16, #tpu.memory_space<vmem>>, vector<1x27x60xbf16>
      %12 = vector.shape_cast %11 : vector<1x27x60xbf16> to vector<27x60xbf16>
      %cst_11 = arith.constant dense<0.000000e+00> : vector<16x60xf32>
      %13 = tpu.matmul %10, %12, %cst_11 {dimension_numbers = #tpu.dot_dimension_numbers<[1], [0], [0], [1], [0, 0, 1, 1], [], []>} : vector<16x27xbf16>, vector<27x60xbf16>, vector<16x60xf32> -> vector<16x60xf32>
      %14 = arith.addf %5, %13 : vector<16x60xf32>
      %c1_i32_12 = arith.constant 1 : i32
      %15 = arith.addi %4, %c1_i32_12 : i32
      %c0_13 = arith.constant 0 : index
      %16 = arith.index_cast %15 : i32 to index
      %c0_14 = arith.constant 0 : index
      %c0_15 = arith.constant 0 : index
      %17 = vector.load %arg2[%c0_13, %16, %c0_14, %c0_15] : memref<1x24x16x27xbf16, #tpu.memory_space<vmem>>, vector<1x1x16x27xbf16>
      %18 = vector.shape_cast %17 : vector<1x1x16x27xbf16> to vector<16x27xbf16>
      %c1 = arith.constant 1 : index
      %c0_16 = arith.constant 0 : index
      %c0_17 = arith.constant 0 : index
      %19 = vector.load %arg3[%c1, %c0_16, %c0_17] : memref<9x27x60xbf16, #tpu.memory_space<vmem>>, vector<1x27x60xbf16>
      %20 = vector.shape_cast %19 : vector<1x27x60xbf16> to vector<27x60xbf16>
      %cst_18 = arith.constant dense<0.000000e+00> : vector<16x60xf32>
      %21 = tpu.matmul %18, %20, %cst_18 {dimension_numbers = #tpu.dot_dimension_numbers<[1], [0], [0], [1], [0, 0, 1, 1], [], []>} : vector<16x27xbf16>, vector<27x60xbf16>, vector<16x60xf32> -> vector<16x60xf32>
      %22 = arith.addf %14, %21 : vector<16x60xf32>
      %c0_19 = arith.constant 0 : index
      %c0_20 = arith.constant 0 : index
      %c0_21 = arith.constant 0 : index
      %23 = vector.load %arg3[%c0_19, %c0_20, %c0_21] : memref<9x27x60xbf16, #tpu.memory_space<vmem>>, vector<1x27x60xbf16>
      %24 = vector.shape_cast %23 : vector<1x27x60xbf16> to vector<27x60xbf16>
      %cst_22 = arith.constant dense<0.000000e+00> : vector<16x60xf32>
      %25 = tpu.matmul %18, %24, %cst_22 {dimension_numbers = #tpu.dot_dimension_numbers<[1], [0], [0], [1], [0, 0, 1, 1], [], []>} : vector<16x27xbf16>, vector<27x60xbf16>, vector<16x60xf32> -> vector<16x60xf32>
      %26 = arith.addf %6, %25 : vector<16x60xf32>
      %c2_i32_23 = arith.constant 2 : i32
      %27 = arith.addi %4, %c2_i32_23 : i32
      %c0_24 = arith.constant 0 : index
      %28 = arith.index_cast %27 : i32 to index
      %c0_25 = arith.constant 0 : index
      %c0_26 = arith.constant 0 : index
      %29 = vector.load %arg2[%c0_24, %28, %c0_25, %c0_26] : memref<1x24x16x27xbf16, #tpu.memory_space<vmem>>, vector<1x1x16x27xbf16>
      %30 = vector.shape_cast %29 : vector<1x1x16x27xbf16> to vector<16x27xbf16>
      %c2 = arith.constant 2 : index
      %c0_27 = arith.constant 0 : index
      %c0_28 = arith.constant 0 : index
      %31 = vector.load %arg3[%c2, %c0_27, %c0_28] : memref<9x27x60xbf16, #tpu.memory_space<vmem>>, vector<1x27x60xbf16>
      %32 = vector.shape_cast %31 : vector<1x27x60xbf16> to vector<27x60xbf16>
      %cst_29 = arith.constant dense<0.000000e+00> : vector<16x60xf32>
      %33 = tpu.matmul %30, %32, %cst_29 {dimension_numbers = #tpu.dot_dimension_numbers<[1], [0], [0], [1], [0, 0, 1, 1], [], []>} : vector<16x27xbf16>, vector<27x60xbf16>, vector<16x60xf32> -> vector<16x60xf32>
      %34 = arith.addf %22, %33 : vector<16x60xf32>
      %c1_30 = arith.constant 1 : index
      %c0_31 = arith.constant 0 : index
      %c0_32 = arith.constant 0 : index
      %35 = vector.load %arg3[%c1_30, %c0_31, %c0_32] : memref<9x27x60xbf16, #tpu.memory_space<vmem>>, vector<1x27x60xbf16>
      %36 = vector.shape_cast %35 : vector<1x27x60xbf16> to vector<27x60xbf16>
      %cst_33 = arith.constant dense<0.000000e+00> : vector<16x60xf32>
      %37 = tpu.matmul %30, %36, %cst_33 {dimension_numbers = #tpu.dot_dimension_numbers<[1], [0], [0], [1], [0, 0, 1, 1], [], []>} : vector<16x27xbf16>, vector<27x60xbf16>, vector<16x60xf32> -> vector<16x60xf32>
      %38 = arith.addf %26, %37 : vector<16x60xf32>
      %c3_i32 = arith.constant 3 : i32
      %39 = arith.addi %4, %c3_i32 : i32
      %c0_34 = arith.constant 0 : index
      %40 = arith.index_cast %39 : i32 to index
      %c0_35 = arith.constant 0 : index
      %c0_36 = arith.constant 0 : index
      %41 = vector.load %arg2[%c0_34, %40, %c0_35, %c0_36] : memref<1x24x16x27xbf16, #tpu.memory_space<vmem>>, vector<1x1x16x27xbf16>
      %42 = vector.shape_cast %41 : vector<1x1x16x27xbf16> to vector<16x27xbf16>
      %c3 = arith.constant 3 : index
      %c0_37 = arith.constant 0 : index
      %c0_38 = arith.constant 0 : index
      %43 = vector.load %arg3[%c3, %c0_37, %c0_38] : memref<9x27x60xbf16, #tpu.memory_space<vmem>>, vector<1x27x60xbf16>
      %44 = vector.shape_cast %43 : vector<1x27x60xbf16> to vector<27x60xbf16>
      %cst_39 = arith.constant dense<0.000000e+00> : vector<16x60xf32>
      %45 = tpu.matmul %42, %44, %cst_39 {dimension_numbers = #tpu.dot_dimension_numbers<[1], [0], [0], [1], [0, 0, 1, 1], [], []>} : vector<16x27xbf16>, vector<27x60xbf16>, vector<16x60xf32> -> vector<16x60xf32>
      %46 = arith.addf %34, %45 : vector<16x60xf32>
      %c2_40 = arith.constant 2 : index
      %c0_41 = arith.constant 0 : index
      %c0_42 = arith.constant 0 : index
      %47 = vector.load %arg3[%c2_40, %c0_41, %c0_42] : memref<9x27x60xbf16, #tpu.memory_space<vmem>>, vector<1x27x60xbf16>
      %48 = vector.shape_cast %47 : vector<1x27x60xbf16> to vector<27x60xbf16>
      %cst_43 = arith.constant dense<0.000000e+00> : vector<16x60xf32>
      %49 = tpu.matmul %42, %48, %cst_43 {dimension_numbers = #tpu.dot_dimension_numbers<[1], [0], [0], [1], [0, 0, 1, 1], [], []>} : vector<16x27xbf16>, vector<27x60xbf16>, vector<16x60xf32> -> vector<16x60xf32>
      %50 = arith.addf %38, %49 : vector<16x60xf32>
      %c4_i32 = arith.constant 4 : i32
      %51 = arith.addi %4, %c4_i32 : i32
      %c0_44 = arith.constant 0 : index
      %52 = arith.index_cast %51 : i32 to index
      %c0_45 = arith.constant 0 : index
      %c0_46 = arith.constant 0 : index
      %53 = vector.load %arg2[%c0_44, %52, %c0_45, %c0_46] : memref<1x24x16x27xbf16, #tpu.memory_space<vmem>>, vector<1x1x16x27xbf16>
      %54 = vector.shape_cast %53 : vector<1x1x16x27xbf16> to vector<16x27xbf16>
      %c4 = arith.constant 4 : index
      %c0_47 = arith.constant 0 : index
      %c0_48 = arith.constant 0 : index
      %55 = vector.load %arg3[%c4, %c0_47, %c0_48] : memref<9x27x60xbf16, #tpu.memory_space<vmem>>, vector<1x27x60xbf16>
      %56 = vector.shape_cast %55 : vector<1x27x60xbf16> to vector<27x60xbf16>
      %cst_49 = arith.constant dense<0.000000e+00> : vector<16x60xf32>
      %57 = tpu.matmul %54, %56, %cst_49 {dimension_numbers = #tpu.dot_dimension_numbers<[1], [0], [0], [1], [0, 0, 1, 1], [], []>} : vector<16x27xbf16>, vector<27x60xbf16>, vector<16x60xf32> -> vector<16x60xf32>
      %58 = arith.addf %46, %57 : vector<16x60xf32>
      %c3_50 = arith.constant 3 : index
      %c0_51 = arith.constant 0 : index
      %c0_52 = arith.constant 0 : index
      %59 = vector.load %arg3[%c3_50, %c0_51, %c0_52] : memref<9x27x60xbf16, #tpu.memory_space<vmem>>, vector<1x27x60xbf16>
      %60 = vector.shape_cast %59 : vector<1x27x60xbf16> to vector<27x60xbf16>
      %cst_53 = arith.constant dense<0.000000e+00> : vector<16x60xf32>
      %61 = tpu.matmul %54, %60, %cst_53 {dimension_numbers = #tpu.dot_dimension_numbers<[1], [0], [0], [1], [0, 0, 1, 1], [], []>} : vector<16x27xbf16>, vector<27x60xbf16>, vector<16x60xf32> -> vector<16x60xf32>
      %62 = arith.addf %50, %61 : vector<16x60xf32>
      %c5_i32 = arith.constant 5 : i32
      %63 = arith.addi %4, %c5_i32 : i32
      %c0_54 = arith.constant 0 : index
      %64 = arith.index_cast %63 : i32 to index
      %c0_55 = arith.constant 0 : index
      %c0_56 = arith.constant 0 : index
      %65 = vector.load %arg2[%c0_54, %64, %c0_55, %c0_56] : memref<1x24x16x27xbf16, #tpu.memory_space<vmem>>, vector<1x1x16x27xbf16>
      %66 = vector.shape_cast %65 : vector<1x1x16x27xbf16> to vector<16x27xbf16>
      %c5 = arith.constant 5 : index
      %c0_57 = arith.constant 0 : index
      %c0_58 = arith.constant 0 : index
      %67 = vector.load %arg3[%c5, %c0_57, %c0_58] : memref<9x27x60xbf16, #tpu.memory_space<vmem>>, vector<1x27x60xbf16>
      %68 = vector.shape_cast %67 : vector<1x27x60xbf16> to vector<27x60xbf16>
      %cst_59 = arith.constant dense<0.000000e+00> : vector<16x60xf32>
      %69 = tpu.matmul %66, %68, %cst_59 {dimension_numbers = #tpu.dot_dimension_numbers<[1], [0], [0], [1], [0, 0, 1, 1], [], []>} : vector<16x27xbf16>, vector<27x60xbf16>, vector<16x60xf32> -> vector<16x60xf32>
      %70 = arith.addf %58, %69 : vector<16x60xf32>
      %c4_60 = arith.constant 4 : index
      %c0_61 = arith.constant 0 : index
      %c0_62 = arith.constant 0 : index
      %71 = vector.load %arg3[%c4_60, %c0_61, %c0_62] : memref<9x27x60xbf16, #tpu.memory_space<vmem>>, vector<1x27x60xbf16>
      %72 = vector.shape_cast %71 : vector<1x27x60xbf16> to vector<27x60xbf16>
      %cst_63 = arith.constant dense<0.000000e+00> : vector<16x60xf32>
      %73 = tpu.matmul %66, %72, %cst_63 {dimension_numbers = #tpu.dot_dimension_numbers<[1], [0], [0], [1], [0, 0, 1, 1], [], []>} : vector<16x27xbf16>, vector<27x60xbf16>, vector<16x60xf32> -> vector<16x60xf32>
      %74 = arith.addf %62, %73 : vector<16x60xf32>
      %c6_i32 = arith.constant 6 : i32
      %75 = arith.addi %4, %c6_i32 : i32
      %c0_64 = arith.constant 0 : index
      %76 = arith.index_cast %75 : i32 to index
      %c0_65 = arith.constant 0 : index
      %c0_66 = arith.constant 0 : index
      %77 = vector.load %arg2[%c0_64, %76, %c0_65, %c0_66] : memref<1x24x16x27xbf16, #tpu.memory_space<vmem>>, vector<1x1x16x27xbf16>
      %78 = vector.shape_cast %77 : vector<1x1x16x27xbf16> to vector<16x27xbf16>
      %c6 = arith.constant 6 : index
      %c0_67 = arith.constant 0 : index
      %c0_68 = arith.constant 0 : index
      %79 = vector.load %arg3[%c6, %c0_67, %c0_68] : memref<9x27x60xbf16, #tpu.memory_space<vmem>>, vector<1x27x60xbf16>
      %80 = vector.shape_cast %79 : vector<1x27x60xbf16> to vector<27x60xbf16>
      %cst_69 = arith.constant dense<0.000000e+00> : vector<16x60xf32>
      %81 = tpu.matmul %78, %80, %cst_69 {dimension_numbers = #tpu.dot_dimension_numbers<[1], [0], [0], [1], [0, 0, 1, 1], [], []>} : vector<16x27xbf16>, vector<27x60xbf16>, vector<16x60xf32> -> vector<16x60xf32>
      %82 = arith.addf %70, %81 : vector<16x60xf32>
      %c5_70 = arith.constant 5 : index
      %c0_71 = arith.constant 0 : index
      %c0_72 = arith.constant 0 : index
      %83 = vector.load %arg3[%c5_70, %c0_71, %c0_72] : memref<9x27x60xbf16, #tpu.memory_space<vmem>>, vector<1x27x60xbf16>
      %84 = vector.shape_cast %83 : vector<1x27x60xbf16> to vector<27x60xbf16>
      %cst_73 = arith.constant dense<0.000000e+00> : vector<16x60xf32>
      %85 = tpu.matmul %78, %84, %cst_73 {dimension_numbers = #tpu.dot_dimension_numbers<[1], [0], [0], [1], [0, 0, 1, 1], [], []>} : vector<16x27xbf16>, vector<27x60xbf16>, vector<16x60xf32> -> vector<16x60xf32>
      %86 = arith.addf %74, %85 : vector<16x60xf32>
      %c7_i32 = arith.constant 7 : i32
      %87 = arith.addi %4, %c7_i32 : i32
      %c0_74 = arith.constant 0 : index
      %88 = arith.index_cast %87 : i32 to index
      %c0_75 = arith.constant 0 : index
      %c0_76 = arith.constant 0 : index
      %89 = vector.load %arg2[%c0_74, %88, %c0_75, %c0_76] : memref<1x24x16x27xbf16, #tpu.memory_space<vmem>>, vector<1x1x16x27xbf16>
      %90 = vector.shape_cast %89 : vector<1x1x16x27xbf16> to vector<16x27xbf16>
      %c7 = arith.constant 7 : index
      %c0_77 = arith.constant 0 : index
      %c0_78 = arith.constant 0 : index
      %91 = vector.load %arg3[%c7, %c0_77, %c0_78] : memref<9x27x60xbf16, #tpu.memory_space<vmem>>, vector<1x27x60xbf16>
      %92 = vector.shape_cast %91 : vector<1x27x60xbf16> to vector<27x60xbf16>
      %cst_79 = arith.constant dense<0.000000e+00> : vector<16x60xf32>
      %93 = tpu.matmul %90, %92, %cst_79 {dimension_numbers = #tpu.dot_dimension_numbers<[1], [0], [0], [1], [0, 0, 1, 1], [], []>} : vector<16x27xbf16>, vector<27x60xbf16>, vector<16x60xf32> -> vector<16x60xf32>
      %94 = arith.addf %82, %93 : vector<16x60xf32>
      %c6_80 = arith.constant 6 : index
      %c0_81 = arith.constant 0 : index
      %c0_82 = arith.constant 0 : index
      %95 = vector.load %arg3[%c6_80, %c0_81, %c0_82] : memref<9x27x60xbf16, #tpu.memory_space<vmem>>, vector<1x27x60xbf16>
      %96 = vector.shape_cast %95 : vector<1x27x60xbf16> to vector<27x60xbf16>
      %cst_83 = arith.constant dense<0.000000e+00> : vector<16x60xf32>
      %97 = tpu.matmul %90, %96, %cst_83 {dimension_numbers = #tpu.dot_dimension_numbers<[1], [0], [0], [1], [0, 0, 1, 1], [], []>} : vector<16x27xbf16>, vector<27x60xbf16>, vector<16x60xf32> -> vector<16x60xf32>
      %98 = arith.addf %86, %97 : vector<16x60xf32>
      %c8_i32_84 = arith.constant 8 : i32
      %99 = arith.addi %4, %c8_i32_84 : i32
      %c0_85 = arith.constant 0 : index
      %100 = arith.index_cast %99 : i32 to index
      %c0_86 = arith.constant 0 : index
      %c0_87 = arith.constant 0 : index
      %101 = vector.load %arg2[%c0_85, %100, %c0_86, %c0_87] : memref<1x24x16x27xbf16, #tpu.memory_space<vmem>>, vector<1x1x16x27xbf16>
      %102 = vector.shape_cast %101 : vector<1x1x16x27xbf16> to vector<16x27xbf16>
      %c8 = arith.constant 8 : index
      %c0_88 = arith.constant 0 : index
      %c0_89 = arith.constant 0 : index
      %103 = vector.load %arg3[%c8, %c0_88, %c0_89] : memref<9x27x60xbf16, #tpu.memory_space<vmem>>, vector<1x27x60xbf16>
      %104 = vector.shape_cast %103 : vector<1x27x60xbf16> to vector<27x60xbf16>
      %cst_90 = arith.constant dense<0.000000e+00> : vector<16x60xf32>
      %105 = tpu.matmul %102, %104, %cst_90 {dimension_numbers = #tpu.dot_dimension_numbers<[1], [0], [0], [1], [0, 0, 1, 1], [], []>} : vector<16x27xbf16>, vector<27x60xbf16>, vector<16x60xf32> -> vector<16x60xf32>
      %106 = arith.addf %94, %105 : vector<16x60xf32>
      %c7_91 = arith.constant 7 : index
      %c0_92 = arith.constant 0 : index
      %c0_93 = arith.constant 0 : index
      %107 = vector.load %arg3[%c7_91, %c0_92, %c0_93] : memref<9x27x60xbf16, #tpu.memory_space<vmem>>, vector<1x27x60xbf16>
      %108 = vector.shape_cast %107 : vector<1x27x60xbf16> to vector<27x60xbf16>
      %cst_94 = arith.constant dense<0.000000e+00> : vector<16x60xf32>
      %109 = tpu.matmul %102, %108, %cst_94 {dimension_numbers = #tpu.dot_dimension_numbers<[1], [0], [0], [1], [0, 0, 1, 1], [], []>} : vector<16x27xbf16>, vector<27x60xbf16>, vector<16x60xf32> -> vector<16x60xf32>
      %110 = arith.addf %98, %109 : vector<16x60xf32>
      %c9_i32 = arith.constant 9 : i32
      %111 = arith.addi %4, %c9_i32 : i32
      %c0_95 = arith.constant 0 : index
      %112 = arith.index_cast %111 : i32 to index
      %c0_96 = arith.constant 0 : index
      %c0_97 = arith.constant 0 : index
      %113 = vector.load %arg2[%c0_95, %112, %c0_96, %c0_97] : memref<1x24x16x27xbf16, #tpu.memory_space<vmem>>, vector<1x1x16x27xbf16>
      %114 = vector.shape_cast %113 : vector<1x1x16x27xbf16> to vector<16x27xbf16>
      %c8_98 = arith.constant 8 : index
      %c0_99 = arith.constant 0 : index
      %c0_100 = arith.constant 0 : index
      %115 = vector.load %arg3[%c8_98, %c0_99, %c0_100] : memref<9x27x60xbf16, #tpu.memory_space<vmem>>, vector<1x27x60xbf16>
      %116 = vector.shape_cast %115 : vector<1x27x60xbf16> to vector<27x60xbf16>
      %cst_101 = arith.constant dense<0.000000e+00> : vector<16x60xf32>
      %117 = tpu.matmul %114, %116, %cst_101 {dimension_numbers = #tpu.dot_dimension_numbers<[1], [0], [0], [1], [0, 0, 1, 1], [], []>} : vector<16x27xbf16>, vector<27x60xbf16>, vector<16x60xf32> -> vector<16x60xf32>
      %118 = arith.addf %110, %117 : vector<16x60xf32>
      %119 = arith.maximumf %106, %118 : vector<16x60xf32>
      %120 = vector.broadcast %1 : vector<1x60xf32> to vector<16x60xf32>
      %121 = arith.addf %119, %120 : vector<16x60xf32>
      %cst_102 = arith.constant 0.000000e+00 : f32
      %122 = vector.broadcast %cst_102 : f32 to vector<16x60xf32>
      %123 = arith.maximumf %121, %122 : vector<16x60xf32>
      %c0_103 = arith.constant 0 : index
      %c0_104 = arith.constant 0 : index
      %124 = vector.load %arg6[%c0_103, %c0_104] : memref<16x60xf32, #tpu.memory_space<vmem>>, vector<16x60xf32>
      tpu.vector_store %arg6[%c0_103, %c0_104], %123 {strides = array<i32>} : memref<16x60xf32, #tpu.memory_space<vmem>>, vector<16x60xf32>,
      %c0_105 = arith.constant 0 : index
      %c0_106 = arith.constant 0 : index
      %125 = tpu.strided_load %arg6[%c0_105, %c0_106] {strides = array<i32: 2, 1>} : memref<16x60xf32, #tpu.memory_space<vmem>>, vector<8x60xf32>
      %c1_107 = arith.constant 1 : index
      %c0_108 = arith.constant 0 : index
      %126 = tpu.strided_load %arg6[%c1_107, %c0_108] {strides = array<i32: 2, 1>} : memref<16x60xf32, #tpu.memory_space<vmem>>, vector<8x60xf32>
      %127 = arith.maximumf %125, %126 : vector<8x60xf32>
      %128 = arith.truncf %127 : vector<8x60xf32> to vector<8x60xbf16>
      %c0_109 = arith.constant 0 : index
      %129 = arith.index_cast %arg7 : i32 to index
      %c0_110 = arith.constant 0 : index
      %c0_111 = arith.constant 0 : index
      %130 = vector.load %arg5[%c0_109, %129, %c0_110, %c0_111] : memref<1x8x8x60xbf16, #tpu.memory_space<vmem>>, vector<1x1x8x60xbf16>
      %131 = vector.shape_cast %130 : vector<1x1x8x60xbf16> to vector<8x60xbf16>
      %132 = vector.shape_cast %128 : vector<8x60xbf16> to vector<1x1x8x60xbf16>
      tpu.vector_store %arg5[%c0_109, %129, %c0_110, %c0_111], %132 {strides = array<i32>} : memref<1x8x8x60xbf16, #tpu.memory_space<vmem>>, vector<1x1x8x60xbf16>,
    }
    %c8_i32_2 = arith.constant 8 : i32
    return
  }
  func.func @transform_0(%arg0: i32, %arg1: i32) -> (i32, i32, i32, i32) {
    %c0_i32 = arith.constant 0 : i32
    %c0_i32_0 = arith.constant 0 : i32
    %c0_i32_1 = arith.constant 0 : i32
    %c0_i32_2 = arith.constant 0 : i32
    return %arg0, %c0_i32, %c0_i32_0, %c0_i32_1 : i32, i32, i32, i32
  }
  func.func @transform_1(%arg0: i32, %arg1: i32) -> (i32, i32, i32) {
    %c0_i32 = arith.constant 0 : i32
    %c0_i32_0 = arith.constant 0 : i32
    %c0_i32_1 = arith.constant 0 : i32
    %c0_i32_2 = arith.constant 0 : i32
    return %c0_i32, %c0_i32_0, %c0_i32_1 : i32, i32, i32
  }
  func.func @transform_2(%arg0: i32, %arg1: i32) -> (i32, i32) {
    %c0_i32 = arith.constant 0 : i32
    %c0_i32_0 = arith.constant 0 : i32
    %c0_i32_1 = arith.constant 0 : i32
    return %c0_i32, %c0_i32_0 : i32, i32
  }
  func.func @transform_3(%arg0: i32, %arg1: i32) -> (i32, i32, i32, i32) {
    %c0_i32 = arith.constant 0 : i32
    %c0_i32_0 = arith.constant 0 : i32
    %c0_i32_1 = arith.constant 0 : i32
    return %arg0, %arg1, %c0_i32, %c0_i32_0 : i32, i32, i32, i32
  }
}

module attributes {stable_mosaic.version = 11 : i64} {
  func.func @_conv_pool_kernel(%arg0: i32, %arg1: i32, %arg2: memref<1x14x14x60xbf16, #tpu.memory_space<vmem>>, %arg3: memref<7x420x120xbf16, #tpu.memory_space<vmem>>, %arg4: memref<1x120xf32, #tpu.memory_space<vmem>>, %arg5: memref<1x4x4x120xbf16, #tpu.memory_space<vmem>>, %arg6: memref<8x120xf32, #tpu.memory_space<vmem>>) attributes {dimension_semantics = [#tpu.dimension_semantics<parallel>, #tpu.dimension_semantics<parallel>], iteration_bounds = array<i64: 2, 1>, scalar_prefetch = 0 : i64, scratch_operands = 1 : i64, tpu.core_type = #tpu.core_type<tc>, window_params = [{transform_indices = @transform_0, window_bounds = array<i64: 1, 14, 14, 60>}, {pipeline_mode = #tpu.pipeline_mode<synchronous>, transform_indices = @transform_1, window_bounds = array<i64: 7, 420, 120>}, {pipeline_mode = #tpu.pipeline_mode<synchronous>, transform_indices = @transform_2, window_bounds = array<i64: 1, 120>}, {transform_indices = @transform_3, window_bounds = array<i64: 1, 4, 4, 120>}]} {
    %c4_i32 = arith.constant 4 : i32
    %0 = arith.muli %arg1, %c4_i32 : i32
    %c0 = arith.constant 0 : index
    %c0_0 = arith.constant 0 : index
    %1 = vector.load %arg4[%c0, %c0_0] : memref<1x120xf32, #tpu.memory_space<vmem>>, vector<1x120xf32>
    %c0_i32 = arith.constant 0 : i32
    %c4_i32_1 = arith.constant 4 : i32
    %2 = arith.addi %c0_i32, %c4_i32_1 : i32
    %c1_i32 = arith.constant 1 : i32
    scf.for %arg7 = %c0_i32 to %2 step %c1_i32  : i32 {
      %3 = arith.addi %0, %arg7 : i32
      %c2_i32 = arith.constant 2 : i32
      %4 = arith.muli %c2_i32, %3 : i32
      %cst = arith.constant 0.000000e+00 : f32
      %5 = vector.broadcast %cst : f32 to vector<8x120xf32>
      %cst_3 = arith.constant 0.000000e+00 : f32
      %6 = vector.broadcast %cst_3 : f32 to vector<8x120xf32>
      %c0_i32_4 = arith.constant 0 : i32
      %7 = arith.addi %4, %c0_i32_4 : i32
      %c0_5 = arith.constant 0 : index
      %8 = arith.index_cast %7 : i32 to index
      %c0_6 = arith.constant 0 : index
      %c0_7 = arith.constant 0 : index
      %9 = vector.load %arg2[%c0_5, %8, %c0_6, %c0_7] : memref<1x14x14x60xbf16, #tpu.memory_space<vmem>>, vector<1x1x8x60xbf16>
      %10 = vector.shape_cast %9 : vector<1x1x8x60xbf16> to vector<8x60xbf16>
      %c0_8 = arith.constant 0 : index
      %11 = arith.index_cast %7 : i32 to index
      %c1 = arith.constant 1 : index
      %c0_9 = arith.constant 0 : index
      %12 = vector.load %arg2[%c0_8, %11, %c1, %c0_9] : memref<1x14x14x60xbf16, #tpu.memory_space<vmem>>, vector<1x1x8x60xbf16>
      %13 = vector.shape_cast %12 : vector<1x1x8x60xbf16> to vector<8x60xbf16>
      %c0_10 = arith.constant 0 : index
      %14 = arith.index_cast %7 : i32 to index
      %c2 = arith.constant 2 : index
      %c0_11 = arith.constant 0 : index
      %15 = vector.load %arg2[%c0_10, %14, %c2, %c0_11] : memref<1x14x14x60xbf16, #tpu.memory_space<vmem>>, vector<1x1x8x60xbf16>
      %16 = vector.shape_cast %15 : vector<1x1x8x60xbf16> to vector<8x60xbf16>
      %c0_12 = arith.constant 0 : index
      %17 = arith.index_cast %7 : i32 to index
      %c3 = arith.constant 3 : index
      %c0_13 = arith.constant 0 : index
      %18 = vector.load %arg2[%c0_12, %17, %c3, %c0_13] : memref<1x14x14x60xbf16, #tpu.memory_space<vmem>>, vector<1x1x8x60xbf16>
      %19 = vector.shape_cast %18 : vector<1x1x8x60xbf16> to vector<8x60xbf16>
      %c0_14 = arith.constant 0 : index
      %20 = arith.index_cast %7 : i32 to index
      %c4 = arith.constant 4 : index
      %c0_15 = arith.constant 0 : index
      %21 = vector.load %arg2[%c0_14, %20, %c4, %c0_15] : memref<1x14x14x60xbf16, #tpu.memory_space<vmem>>, vector<1x1x8x60xbf16>
      %22 = vector.shape_cast %21 : vector<1x1x8x60xbf16> to vector<8x60xbf16>
      %c0_16 = arith.constant 0 : index
      %23 = arith.index_cast %7 : i32 to index
      %c5 = arith.constant 5 : index
      %c0_17 = arith.constant 0 : index
      %24 = vector.load %arg2[%c0_16, %23, %c5, %c0_17] : memref<1x14x14x60xbf16, #tpu.memory_space<vmem>>, vector<1x1x8x60xbf16>
      %25 = vector.shape_cast %24 : vector<1x1x8x60xbf16> to vector<8x60xbf16>
      %c0_18 = arith.constant 0 : index
      %26 = arith.index_cast %7 : i32 to index
      %c6 = arith.constant 6 : index
      %c0_19 = arith.constant 0 : index
      %27 = vector.load %arg2[%c0_18, %26, %c6, %c0_19] : memref<1x14x14x60xbf16, #tpu.memory_space<vmem>>, vector<1x1x8x60xbf16>
      %28 = vector.shape_cast %27 : vector<1x1x8x60xbf16> to vector<8x60xbf16>
      %29 = tpu.concatenate %10, %13, %16, %19, %22, %25, %28 in 1 : vector<8x60xbf16>, vector<8x60xbf16>, vector<8x60xbf16>, vector<8x60xbf16>, vector<8x60xbf16>, vector<8x60xbf16>, vector<8x60xbf16> -> vector<8x420xbf16>
      %c0_20 = arith.constant 0 : index
      %c0_21 = arith.constant 0 : index
      %c0_22 = arith.constant 0 : index
      %30 = vector.load %arg3[%c0_20, %c0_21, %c0_22] : memref<7x420x120xbf16, #tpu.memory_space<vmem>>, vector<1x420x120xbf16>
      %31 = vector.shape_cast %30 : vector<1x420x120xbf16> to vector<420x120xbf16>
      %cst_23 = arith.constant dense<0.000000e+00> : vector<8x120xf32>
      %32 = tpu.matmul %29, %31, %cst_23 {dimension_numbers = #tpu.dot_dimension_numbers<[1], [0], [0], [1], [0, 0, 1, 1], [], []>} : vector<8x420xbf16>, vector<420x120xbf16>, vector<8x120xf32> -> vector<8x120xf32>
      %33 = arith.addf %5, %32 : vector<8x120xf32>
      %c1_i32_24 = arith.constant 1 : i32
      %34 = arith.addi %4, %c1_i32_24 : i32
      %c0_25 = arith.constant 0 : index
      %35 = arith.index_cast %34 : i32 to index
      %c0_26 = arith.constant 0 : index
      %c0_27 = arith.constant 0 : index
      %36 = vector.load %arg2[%c0_25, %35, %c0_26, %c0_27] : memref<1x14x14x60xbf16, #tpu.memory_space<vmem>>, vector<1x1x8x60xbf16>
      %37 = vector.shape_cast %36 : vector<1x1x8x60xbf16> to vector<8x60xbf16>
      %c0_28 = arith.constant 0 : index
      %38 = arith.index_cast %34 : i32 to index
      %c1_29 = arith.constant 1 : index
      %c0_30 = arith.constant 0 : index
      %39 = vector.load %arg2[%c0_28, %38, %c1_29, %c0_30] : memref<1x14x14x60xbf16, #tpu.memory_space<vmem>>, vector<1x1x8x60xbf16>
      %40 = vector.shape_cast %39 : vector<1x1x8x60xbf16> to vector<8x60xbf16>
      %c0_31 = arith.constant 0 : index
      %41 = arith.index_cast %34 : i32 to index
      %c2_32 = arith.constant 2 : index
      %c0_33 = arith.constant 0 : index
      %42 = vector.load %arg2[%c0_31, %41, %c2_32, %c0_33] : memref<1x14x14x60xbf16, #tpu.memory_space<vmem>>, vector<1x1x8x60xbf16>
      %43 = vector.shape_cast %42 : vector<1x1x8x60xbf16> to vector<8x60xbf16>
      %c0_34 = arith.constant 0 : index
      %44 = arith.index_cast %34 : i32 to index
      %c3_35 = arith.constant 3 : index
      %c0_36 = arith.constant 0 : index
      %45 = vector.load %arg2[%c0_34, %44, %c3_35, %c0_36] : memref<1x14x14x60xbf16, #tpu.memory_space<vmem>>, vector<1x1x8x60xbf16>
      %46 = vector.shape_cast %45 : vector<1x1x8x60xbf16> to vector<8x60xbf16>
      %c0_37 = arith.constant 0 : index
      %47 = arith.index_cast %34 : i32 to index
      %c4_38 = arith.constant 4 : index
      %c0_39 = arith.constant 0 : index
      %48 = vector.load %arg2[%c0_37, %47, %c4_38, %c0_39] : memref<1x14x14x60xbf16, #tpu.memory_space<vmem>>, vector<1x1x8x60xbf16>
      %49 = vector.shape_cast %48 : vector<1x1x8x60xbf16> to vector<8x60xbf16>
      %c0_40 = arith.constant 0 : index
      %50 = arith.index_cast %34 : i32 to index
      %c5_41 = arith.constant 5 : index
      %c0_42 = arith.constant 0 : index
      %51 = vector.load %arg2[%c0_40, %50, %c5_41, %c0_42] : memref<1x14x14x60xbf16, #tpu.memory_space<vmem>>, vector<1x1x8x60xbf16>
      %52 = vector.shape_cast %51 : vector<1x1x8x60xbf16> to vector<8x60xbf16>
      %c0_43 = arith.constant 0 : index
      %53 = arith.index_cast %34 : i32 to index
      %c6_44 = arith.constant 6 : index
      %c0_45 = arith.constant 0 : index
      %54 = vector.load %arg2[%c0_43, %53, %c6_44, %c0_45] : memref<1x14x14x60xbf16, #tpu.memory_space<vmem>>, vector<1x1x8x60xbf16>
      %55 = vector.shape_cast %54 : vector<1x1x8x60xbf16> to vector<8x60xbf16>
      %56 = tpu.concatenate %37, %40, %43, %46, %49, %52, %55 in 1 : vector<8x60xbf16>, vector<8x60xbf16>, vector<8x60xbf16>, vector<8x60xbf16>, vector<8x60xbf16>, vector<8x60xbf16>, vector<8x60xbf16> -> vector<8x420xbf16>
      %c1_46 = arith.constant 1 : index
      %c0_47 = arith.constant 0 : index
      %c0_48 = arith.constant 0 : index
      %57 = vector.load %arg3[%c1_46, %c0_47, %c0_48] : memref<7x420x120xbf16, #tpu.memory_space<vmem>>, vector<1x420x120xbf16>
      %58 = vector.shape_cast %57 : vector<1x420x120xbf16> to vector<420x120xbf16>
      %cst_49 = arith.constant dense<0.000000e+00> : vector<8x120xf32>
      %59 = tpu.matmul %56, %58, %cst_49 {dimension_numbers = #tpu.dot_dimension_numbers<[1], [0], [0], [1], [0, 0, 1, 1], [], []>} : vector<8x420xbf16>, vector<420x120xbf16>, vector<8x120xf32> -> vector<8x120xf32>
      %60 = arith.addf %33, %59 : vector<8x120xf32>
      %c0_50 = arith.constant 0 : index
      %c0_51 = arith.constant 0 : index
      %c0_52 = arith.constant 0 : index
      %61 = vector.load %arg3[%c0_50, %c0_51, %c0_52] : memref<7x420x120xbf16, #tpu.memory_space<vmem>>, vector<1x420x120xbf16>
      %62 = vector.shape_cast %61 : vector<1x420x120xbf16> to vector<420x120xbf16>
      %cst_53 = arith.constant dense<0.000000e+00> : vector<8x120xf32>
      %63 = tpu.matmul %56, %62, %cst_53 {dimension_numbers = #tpu.dot_dimension_numbers<[1], [0], [0], [1], [0, 0, 1, 1], [], []>} : vector<8x420xbf16>, vector<420x120xbf16>, vector<8x120xf32> -> vector<8x120xf32>
      %64 = arith.addf %6, %63 : vector<8x120xf32>
      %c2_i32_54 = arith.constant 2 : i32
      %65 = arith.addi %4, %c2_i32_54 : i32
      %c0_55 = arith.constant 0 : index
      %66 = arith.index_cast %65 : i32 to index
      %c0_56 = arith.constant 0 : index
      %c0_57 = arith.constant 0 : index
      %67 = vector.load %arg2[%c0_55, %66, %c0_56, %c0_57] : memref<1x14x14x60xbf16, #tpu.memory_space<vmem>>, vector<1x1x8x60xbf16>
      %68 = vector.shape_cast %67 : vector<1x1x8x60xbf16> to vector<8x60xbf16>
      %c0_58 = arith.constant 0 : index
      %69 = arith.index_cast %65 : i32 to index
      %c1_59 = arith.constant 1 : index
      %c0_60 = arith.constant 0 : index
      %70 = vector.load %arg2[%c0_58, %69, %c1_59, %c0_60] : memref<1x14x14x60xbf16, #tpu.memory_space<vmem>>, vector<1x1x8x60xbf16>
      %71 = vector.shape_cast %70 : vector<1x1x8x60xbf16> to vector<8x60xbf16>
      %c0_61 = arith.constant 0 : index
      %72 = arith.index_cast %65 : i32 to index
      %c2_62 = arith.constant 2 : index
      %c0_63 = arith.constant 0 : index
      %73 = vector.load %arg2[%c0_61, %72, %c2_62, %c0_63] : memref<1x14x14x60xbf16, #tpu.memory_space<vmem>>, vector<1x1x8x60xbf16>
      %74 = vector.shape_cast %73 : vector<1x1x8x60xbf16> to vector<8x60xbf16>
      %c0_64 = arith.constant 0 : index
      %75 = arith.index_cast %65 : i32 to index
      %c3_65 = arith.constant 3 : index
      %c0_66 = arith.constant 0 : index
      %76 = vector.load %arg2[%c0_64, %75, %c3_65, %c0_66] : memref<1x14x14x60xbf16, #tpu.memory_space<vmem>>, vector<1x1x8x60xbf16>
      %77 = vector.shape_cast %76 : vector<1x1x8x60xbf16> to vector<8x60xbf16>
      %c0_67 = arith.constant 0 : index
      %78 = arith.index_cast %65 : i32 to index
      %c4_68 = arith.constant 4 : index
      %c0_69 = arith.constant 0 : index
      %79 = vector.load %arg2[%c0_67, %78, %c4_68, %c0_69] : memref<1x14x14x60xbf16, #tpu.memory_space<vmem>>, vector<1x1x8x60xbf16>
      %80 = vector.shape_cast %79 : vector<1x1x8x60xbf16> to vector<8x60xbf16>
      %c0_70 = arith.constant 0 : index
      %81 = arith.index_cast %65 : i32 to index
      %c5_71 = arith.constant 5 : index
      %c0_72 = arith.constant 0 : index
      %82 = vector.load %arg2[%c0_70, %81, %c5_71, %c0_72] : memref<1x14x14x60xbf16, #tpu.memory_space<vmem>>, vector<1x1x8x60xbf16>
      %83 = vector.shape_cast %82 : vector<1x1x8x60xbf16> to vector<8x60xbf16>
      %c0_73 = arith.constant 0 : index
      %84 = arith.index_cast %65 : i32 to index
      %c6_74 = arith.constant 6 : index
      %c0_75 = arith.constant 0 : index
      %85 = vector.load %arg2[%c0_73, %84, %c6_74, %c0_75] : memref<1x14x14x60xbf16, #tpu.memory_space<vmem>>, vector<1x1x8x60xbf16>
      %86 = vector.shape_cast %85 : vector<1x1x8x60xbf16> to vector<8x60xbf16>
      %87 = tpu.concatenate %68, %71, %74, %77, %80, %83, %86 in 1 : vector<8x60xbf16>, vector<8x60xbf16>, vector<8x60xbf16>, vector<8x60xbf16>, vector<8x60xbf16>, vector<8x60xbf16>, vector<8x60xbf16> -> vector<8x420xbf16>
      %c2_76 = arith.constant 2 : index
      %c0_77 = arith.constant 0 : index
      %c0_78 = arith.constant 0 : index
      %88 = vector.load %arg3[%c2_76, %c0_77, %c0_78] : memref<7x420x120xbf16, #tpu.memory_space<vmem>>, vector<1x420x120xbf16>
      %89 = vector.shape_cast %88 : vector<1x420x120xbf16> to vector<420x120xbf16>
      %cst_79 = arith.constant dense<0.000000e+00> : vector<8x120xf32>
      %90 = tpu.matmul %87, %89, %cst_79 {dimension_numbers = #tpu.dot_dimension_numbers<[1], [0], [0], [1], [0, 0, 1, 1], [], []>} : vector<8x420xbf16>, vector<420x120xbf16>, vector<8x120xf32> -> vector<8x120xf32>
      %91 = arith.addf %60, %90 : vector<8x120xf32>
      %c1_80 = arith.constant 1 : index
      %c0_81 = arith.constant 0 : index
      %c0_82 = arith.constant 0 : index
      %92 = vector.load %arg3[%c1_80, %c0_81, %c0_82] : memref<7x420x120xbf16, #tpu.memory_space<vmem>>, vector<1x420x120xbf16>
      %93 = vector.shape_cast %92 : vector<1x420x120xbf16> to vector<420x120xbf16>
      %cst_83 = arith.constant dense<0.000000e+00> : vector<8x120xf32>
      %94 = tpu.matmul %87, %93, %cst_83 {dimension_numbers = #tpu.dot_dimension_numbers<[1], [0], [0], [1], [0, 0, 1, 1], [], []>} : vector<8x420xbf16>, vector<420x120xbf16>, vector<8x120xf32> -> vector<8x120xf32>
      %95 = arith.addf %64, %94 : vector<8x120xf32>
      %c3_i32 = arith.constant 3 : i32
      %96 = arith.addi %4, %c3_i32 : i32
      %c0_84 = arith.constant 0 : index
      %97 = arith.index_cast %96 : i32 to index
      %c0_85 = arith.constant 0 : index
      %c0_86 = arith.constant 0 : index
      %98 = vector.load %arg2[%c0_84, %97, %c0_85, %c0_86] : memref<1x14x14x60xbf16, #tpu.memory_space<vmem>>, vector<1x1x8x60xbf16>
      %99 = vector.shape_cast %98 : vector<1x1x8x60xbf16> to vector<8x60xbf16>
      %c0_87 = arith.constant 0 : index
      %100 = arith.index_cast %96 : i32 to index
      %c1_88 = arith.constant 1 : index
      %c0_89 = arith.constant 0 : index
      %101 = vector.load %arg2[%c0_87, %100, %c1_88, %c0_89] : memref<1x14x14x60xbf16, #tpu.memory_space<vmem>>, vector<1x1x8x60xbf16>
      %102 = vector.shape_cast %101 : vector<1x1x8x60xbf16> to vector<8x60xbf16>
      %c0_90 = arith.constant 0 : index
      %103 = arith.index_cast %96 : i32 to index
      %c2_91 = arith.constant 2 : index
      %c0_92 = arith.constant 0 : index
      %104 = vector.load %arg2[%c0_90, %103, %c2_91, %c0_92] : memref<1x14x14x60xbf16, #tpu.memory_space<vmem>>, vector<1x1x8x60xbf16>
      %105 = vector.shape_cast %104 : vector<1x1x8x60xbf16> to vector<8x60xbf16>
      %c0_93 = arith.constant 0 : index
      %106 = arith.index_cast %96 : i32 to index
      %c3_94 = arith.constant 3 : index
      %c0_95 = arith.constant 0 : index
      %107 = vector.load %arg2[%c0_93, %106, %c3_94, %c0_95] : memref<1x14x14x60xbf16, #tpu.memory_space<vmem>>, vector<1x1x8x60xbf16>
      %108 = vector.shape_cast %107 : vector<1x1x8x60xbf16> to vector<8x60xbf16>
      %c0_96 = arith.constant 0 : index
      %109 = arith.index_cast %96 : i32 to index
      %c4_97 = arith.constant 4 : index
      %c0_98 = arith.constant 0 : index
      %110 = vector.load %arg2[%c0_96, %109, %c4_97, %c0_98] : memref<1x14x14x60xbf16, #tpu.memory_space<vmem>>, vector<1x1x8x60xbf16>
      %111 = vector.shape_cast %110 : vector<1x1x8x60xbf16> to vector<8x60xbf16>
      %c0_99 = arith.constant 0 : index
      %112 = arith.index_cast %96 : i32 to index
      %c5_100 = arith.constant 5 : index
      %c0_101 = arith.constant 0 : index
      %113 = vector.load %arg2[%c0_99, %112, %c5_100, %c0_101] : memref<1x14x14x60xbf16, #tpu.memory_space<vmem>>, vector<1x1x8x60xbf16>
      %114 = vector.shape_cast %113 : vector<1x1x8x60xbf16> to vector<8x60xbf16>
      %c0_102 = arith.constant 0 : index
      %115 = arith.index_cast %96 : i32 to index
      %c6_103 = arith.constant 6 : index
      %c0_104 = arith.constant 0 : index
      %116 = vector.load %arg2[%c0_102, %115, %c6_103, %c0_104] : memref<1x14x14x60xbf16, #tpu.memory_space<vmem>>, vector<1x1x8x60xbf16>
      %117 = vector.shape_cast %116 : vector<1x1x8x60xbf16> to vector<8x60xbf16>
      %118 = tpu.concatenate %99, %102, %105, %108, %111, %114, %117 in 1 : vector<8x60xbf16>, vector<8x60xbf16>, vector<8x60xbf16>, vector<8x60xbf16>, vector<8x60xbf16>, vector<8x60xbf16>, vector<8x60xbf16> -> vector<8x420xbf16>
      %c3_105 = arith.constant 3 : index
      %c0_106 = arith.constant 0 : index
      %c0_107 = arith.constant 0 : index
      %119 = vector.load %arg3[%c3_105, %c0_106, %c0_107] : memref<7x420x120xbf16, #tpu.memory_space<vmem>>, vector<1x420x120xbf16>
      %120 = vector.shape_cast %119 : vector<1x420x120xbf16> to vector<420x120xbf16>
      %cst_108 = arith.constant dense<0.000000e+00> : vector<8x120xf32>
      %121 = tpu.matmul %118, %120, %cst_108 {dimension_numbers = #tpu.dot_dimension_numbers<[1], [0], [0], [1], [0, 0, 1, 1], [], []>} : vector<8x420xbf16>, vector<420x120xbf16>, vector<8x120xf32> -> vector<8x120xf32>
      %122 = arith.addf %91, %121 : vector<8x120xf32>
      %c2_109 = arith.constant 2 : index
      %c0_110 = arith.constant 0 : index
      %c0_111 = arith.constant 0 : index
      %123 = vector.load %arg3[%c2_109, %c0_110, %c0_111] : memref<7x420x120xbf16, #tpu.memory_space<vmem>>, vector<1x420x120xbf16>
      %124 = vector.shape_cast %123 : vector<1x420x120xbf16> to vector<420x120xbf16>
      %cst_112 = arith.constant dense<0.000000e+00> : vector<8x120xf32>
      %125 = tpu.matmul %118, %124, %cst_112 {dimension_numbers = #tpu.dot_dimension_numbers<[1], [0], [0], [1], [0, 0, 1, 1], [], []>} : vector<8x420xbf16>, vector<420x120xbf16>, vector<8x120xf32> -> vector<8x120xf32>
      %126 = arith.addf %95, %125 : vector<8x120xf32>
      %c4_i32_113 = arith.constant 4 : i32
      %127 = arith.addi %4, %c4_i32_113 : i32
      %c0_114 = arith.constant 0 : index
      %128 = arith.index_cast %127 : i32 to index
      %c0_115 = arith.constant 0 : index
      %c0_116 = arith.constant 0 : index
      %129 = vector.load %arg2[%c0_114, %128, %c0_115, %c0_116] : memref<1x14x14x60xbf16, #tpu.memory_space<vmem>>, vector<1x1x8x60xbf16>
      %130 = vector.shape_cast %129 : vector<1x1x8x60xbf16> to vector<8x60xbf16>
      %c0_117 = arith.constant 0 : index
      %131 = arith.index_cast %127 : i32 to index
      %c1_118 = arith.constant 1 : index
      %c0_119 = arith.constant 0 : index
      %132 = vector.load %arg2[%c0_117, %131, %c1_118, %c0_119] : memref<1x14x14x60xbf16, #tpu.memory_space<vmem>>, vector<1x1x8x60xbf16>
      %133 = vector.shape_cast %132 : vector<1x1x8x60xbf16> to vector<8x60xbf16>
      %c0_120 = arith.constant 0 : index
      %134 = arith.index_cast %127 : i32 to index
      %c2_121 = arith.constant 2 : index
      %c0_122 = arith.constant 0 : index
      %135 = vector.load %arg2[%c0_120, %134, %c2_121, %c0_122] : memref<1x14x14x60xbf16, #tpu.memory_space<vmem>>, vector<1x1x8x60xbf16>
      %136 = vector.shape_cast %135 : vector<1x1x8x60xbf16> to vector<8x60xbf16>
      %c0_123 = arith.constant 0 : index
      %137 = arith.index_cast %127 : i32 to index
      %c3_124 = arith.constant 3 : index
      %c0_125 = arith.constant 0 : index
      %138 = vector.load %arg2[%c0_123, %137, %c3_124, %c0_125] : memref<1x14x14x60xbf16, #tpu.memory_space<vmem>>, vector<1x1x8x60xbf16>
      %139 = vector.shape_cast %138 : vector<1x1x8x60xbf16> to vector<8x60xbf16>
      %c0_126 = arith.constant 0 : index
      %140 = arith.index_cast %127 : i32 to index
      %c4_127 = arith.constant 4 : index
      %c0_128 = arith.constant 0 : index
      %141 = vector.load %arg2[%c0_126, %140, %c4_127, %c0_128] : memref<1x14x14x60xbf16, #tpu.memory_space<vmem>>, vector<1x1x8x60xbf16>
      %142 = vector.shape_cast %141 : vector<1x1x8x60xbf16> to vector<8x60xbf16>
      %c0_129 = arith.constant 0 : index
      %143 = arith.index_cast %127 : i32 to index
      %c5_130 = arith.constant 5 : index
      %c0_131 = arith.constant 0 : index
      %144 = vector.load %arg2[%c0_129, %143, %c5_130, %c0_131] : memref<1x14x14x60xbf16, #tpu.memory_space<vmem>>, vector<1x1x8x60xbf16>
      %145 = vector.shape_cast %144 : vector<1x1x8x60xbf16> to vector<8x60xbf16>
      %c0_132 = arith.constant 0 : index
      %146 = arith.index_cast %127 : i32 to index
      %c6_133 = arith.constant 6 : index
      %c0_134 = arith.constant 0 : index
      %147 = vector.load %arg2[%c0_132, %146, %c6_133, %c0_134] : memref<1x14x14x60xbf16, #tpu.memory_space<vmem>>, vector<1x1x8x60xbf16>
      %148 = vector.shape_cast %147 : vector<1x1x8x60xbf16> to vector<8x60xbf16>
      %149 = tpu.concatenate %130, %133, %136, %139, %142, %145, %148 in 1 : vector<8x60xbf16>, vector<8x60xbf16>, vector<8x60xbf16>, vector<8x60xbf16>, vector<8x60xbf16>, vector<8x60xbf16>, vector<8x60xbf16> -> vector<8x420xbf16>
      %c4_135 = arith.constant 4 : index
      %c0_136 = arith.constant 0 : index
      %c0_137 = arith.constant 0 : index
      %150 = vector.load %arg3[%c4_135, %c0_136, %c0_137] : memref<7x420x120xbf16, #tpu.memory_space<vmem>>, vector<1x420x120xbf16>
      %151 = vector.shape_cast %150 : vector<1x420x120xbf16> to vector<420x120xbf16>
      %cst_138 = arith.constant dense<0.000000e+00> : vector<8x120xf32>
      %152 = tpu.matmul %149, %151, %cst_138 {dimension_numbers = #tpu.dot_dimension_numbers<[1], [0], [0], [1], [0, 0, 1, 1], [], []>} : vector<8x420xbf16>, vector<420x120xbf16>, vector<8x120xf32> -> vector<8x120xf32>
      %153 = arith.addf %122, %152 : vector<8x120xf32>
      %c3_139 = arith.constant 3 : index
      %c0_140 = arith.constant 0 : index
      %c0_141 = arith.constant 0 : index
      %154 = vector.load %arg3[%c3_139, %c0_140, %c0_141] : memref<7x420x120xbf16, #tpu.memory_space<vmem>>, vector<1x420x120xbf16>
      %155 = vector.shape_cast %154 : vector<1x420x120xbf16> to vector<420x120xbf16>
      %cst_142 = arith.constant dense<0.000000e+00> : vector<8x120xf32>
      %156 = tpu.matmul %149, %155, %cst_142 {dimension_numbers = #tpu.dot_dimension_numbers<[1], [0], [0], [1], [0, 0, 1, 1], [], []>} : vector<8x420xbf16>, vector<420x120xbf16>, vector<8x120xf32> -> vector<8x120xf32>
      %157 = arith.addf %126, %156 : vector<8x120xf32>
      %c5_i32 = arith.constant 5 : i32
      %158 = arith.addi %4, %c5_i32 : i32
      %c0_143 = arith.constant 0 : index
      %159 = arith.index_cast %158 : i32 to index
      %c0_144 = arith.constant 0 : index
      %c0_145 = arith.constant 0 : index
      %160 = vector.load %arg2[%c0_143, %159, %c0_144, %c0_145] : memref<1x14x14x60xbf16, #tpu.memory_space<vmem>>, vector<1x1x8x60xbf16>
      %161 = vector.shape_cast %160 : vector<1x1x8x60xbf16> to vector<8x60xbf16>
      %c0_146 = arith.constant 0 : index
      %162 = arith.index_cast %158 : i32 to index
      %c1_147 = arith.constant 1 : index
      %c0_148 = arith.constant 0 : index
      %163 = vector.load %arg2[%c0_146, %162, %c1_147, %c0_148] : memref<1x14x14x60xbf16, #tpu.memory_space<vmem>>, vector<1x1x8x60xbf16>
      %164 = vector.shape_cast %163 : vector<1x1x8x60xbf16> to vector<8x60xbf16>
      %c0_149 = arith.constant 0 : index
      %165 = arith.index_cast %158 : i32 to index
      %c2_150 = arith.constant 2 : index
      %c0_151 = arith.constant 0 : index
      %166 = vector.load %arg2[%c0_149, %165, %c2_150, %c0_151] : memref<1x14x14x60xbf16, #tpu.memory_space<vmem>>, vector<1x1x8x60xbf16>
      %167 = vector.shape_cast %166 : vector<1x1x8x60xbf16> to vector<8x60xbf16>
      %c0_152 = arith.constant 0 : index
      %168 = arith.index_cast %158 : i32 to index
      %c3_153 = arith.constant 3 : index
      %c0_154 = arith.constant 0 : index
      %169 = vector.load %arg2[%c0_152, %168, %c3_153, %c0_154] : memref<1x14x14x60xbf16, #tpu.memory_space<vmem>>, vector<1x1x8x60xbf16>
      %170 = vector.shape_cast %169 : vector<1x1x8x60xbf16> to vector<8x60xbf16>
      %c0_155 = arith.constant 0 : index
      %171 = arith.index_cast %158 : i32 to index
      %c4_156 = arith.constant 4 : index
      %c0_157 = arith.constant 0 : index
      %172 = vector.load %arg2[%c0_155, %171, %c4_156, %c0_157] : memref<1x14x14x60xbf16, #tpu.memory_space<vmem>>, vector<1x1x8x60xbf16>
      %173 = vector.shape_cast %172 : vector<1x1x8x60xbf16> to vector<8x60xbf16>
      %c0_158 = arith.constant 0 : index
      %174 = arith.index_cast %158 : i32 to index
      %c5_159 = arith.constant 5 : index
      %c0_160 = arith.constant 0 : index
      %175 = vector.load %arg2[%c0_158, %174, %c5_159, %c0_160] : memref<1x14x14x60xbf16, #tpu.memory_space<vmem>>, vector<1x1x8x60xbf16>
      %176 = vector.shape_cast %175 : vector<1x1x8x60xbf16> to vector<8x60xbf16>
      %c0_161 = arith.constant 0 : index
      %177 = arith.index_cast %158 : i32 to index
      %c6_162 = arith.constant 6 : index
      %c0_163 = arith.constant 0 : index
      %178 = vector.load %arg2[%c0_161, %177, %c6_162, %c0_163] : memref<1x14x14x60xbf16, #tpu.memory_space<vmem>>, vector<1x1x8x60xbf16>
      %179 = vector.shape_cast %178 : vector<1x1x8x60xbf16> to vector<8x60xbf16>
      %180 = tpu.concatenate %161, %164, %167, %170, %173, %176, %179 in 1 : vector<8x60xbf16>, vector<8x60xbf16>, vector<8x60xbf16>, vector<8x60xbf16>, vector<8x60xbf16>, vector<8x60xbf16>, vector<8x60xbf16> -> vector<8x420xbf16>
      %c5_164 = arith.constant 5 : index
      %c0_165 = arith.constant 0 : index
      %c0_166 = arith.constant 0 : index
      %181 = vector.load %arg3[%c5_164, %c0_165, %c0_166] : memref<7x420x120xbf16, #tpu.memory_space<vmem>>, vector<1x420x120xbf16>
      %182 = vector.shape_cast %181 : vector<1x420x120xbf16> to vector<420x120xbf16>
      %cst_167 = arith.constant dense<0.000000e+00> : vector<8x120xf32>
      %183 = tpu.matmul %180, %182, %cst_167 {dimension_numbers = #tpu.dot_dimension_numbers<[1], [0], [0], [1], [0, 0, 1, 1], [], []>} : vector<8x420xbf16>, vector<420x120xbf16>, vector<8x120xf32> -> vector<8x120xf32>
      %184 = arith.addf %153, %183 : vector<8x120xf32>
      %c4_168 = arith.constant 4 : index
      %c0_169 = arith.constant 0 : index
      %c0_170 = arith.constant 0 : index
      %185 = vector.load %arg3[%c4_168, %c0_169, %c0_170] : memref<7x420x120xbf16, #tpu.memory_space<vmem>>, vector<1x420x120xbf16>
      %186 = vector.shape_cast %185 : vector<1x420x120xbf16> to vector<420x120xbf16>
      %cst_171 = arith.constant dense<0.000000e+00> : vector<8x120xf32>
      %187 = tpu.matmul %180, %186, %cst_171 {dimension_numbers = #tpu.dot_dimension_numbers<[1], [0], [0], [1], [0, 0, 1, 1], [], []>} : vector<8x420xbf16>, vector<420x120xbf16>, vector<8x120xf32> -> vector<8x120xf32>
      %188 = arith.addf %157, %187 : vector<8x120xf32>
      %c6_i32 = arith.constant 6 : i32
      %189 = arith.addi %4, %c6_i32 : i32
      %c0_172 = arith.constant 0 : index
      %190 = arith.index_cast %189 : i32 to index
      %c0_173 = arith.constant 0 : index
      %c0_174 = arith.constant 0 : index
      %191 = vector.load %arg2[%c0_172, %190, %c0_173, %c0_174] : memref<1x14x14x60xbf16, #tpu.memory_space<vmem>>, vector<1x1x8x60xbf16>
      %192 = vector.shape_cast %191 : vector<1x1x8x60xbf16> to vector<8x60xbf16>
      %c0_175 = arith.constant 0 : index
      %193 = arith.index_cast %189 : i32 to index
      %c1_176 = arith.constant 1 : index
      %c0_177 = arith.constant 0 : index
      %194 = vector.load %arg2[%c0_175, %193, %c1_176, %c0_177] : memref<1x14x14x60xbf16, #tpu.memory_space<vmem>>, vector<1x1x8x60xbf16>
      %195 = vector.shape_cast %194 : vector<1x1x8x60xbf16> to vector<8x60xbf16>
      %c0_178 = arith.constant 0 : index
      %196 = arith.index_cast %189 : i32 to index
      %c2_179 = arith.constant 2 : index
      %c0_180 = arith.constant 0 : index
      %197 = vector.load %arg2[%c0_178, %196, %c2_179, %c0_180] : memref<1x14x14x60xbf16, #tpu.memory_space<vmem>>, vector<1x1x8x60xbf16>
      %198 = vector.shape_cast %197 : vector<1x1x8x60xbf16> to vector<8x60xbf16>
      %c0_181 = arith.constant 0 : index
      %199 = arith.index_cast %189 : i32 to index
      %c3_182 = arith.constant 3 : index
      %c0_183 = arith.constant 0 : index
      %200 = vector.load %arg2[%c0_181, %199, %c3_182, %c0_183] : memref<1x14x14x60xbf16, #tpu.memory_space<vmem>>, vector<1x1x8x60xbf16>
      %201 = vector.shape_cast %200 : vector<1x1x8x60xbf16> to vector<8x60xbf16>
      %c0_184 = arith.constant 0 : index
      %202 = arith.index_cast %189 : i32 to index
      %c4_185 = arith.constant 4 : index
      %c0_186 = arith.constant 0 : index
      %203 = vector.load %arg2[%c0_184, %202, %c4_185, %c0_186] : memref<1x14x14x60xbf16, #tpu.memory_space<vmem>>, vector<1x1x8x60xbf16>
      %204 = vector.shape_cast %203 : vector<1x1x8x60xbf16> to vector<8x60xbf16>
      %c0_187 = arith.constant 0 : index
      %205 = arith.index_cast %189 : i32 to index
      %c5_188 = arith.constant 5 : index
      %c0_189 = arith.constant 0 : index
      %206 = vector.load %arg2[%c0_187, %205, %c5_188, %c0_189] : memref<1x14x14x60xbf16, #tpu.memory_space<vmem>>, vector<1x1x8x60xbf16>
      %207 = vector.shape_cast %206 : vector<1x1x8x60xbf16> to vector<8x60xbf16>
      %c0_190 = arith.constant 0 : index
      %208 = arith.index_cast %189 : i32 to index
      %c6_191 = arith.constant 6 : index
      %c0_192 = arith.constant 0 : index
      %209 = vector.load %arg2[%c0_190, %208, %c6_191, %c0_192] : memref<1x14x14x60xbf16, #tpu.memory_space<vmem>>, vector<1x1x8x60xbf16>
      %210 = vector.shape_cast %209 : vector<1x1x8x60xbf16> to vector<8x60xbf16>
      %211 = tpu.concatenate %192, %195, %198, %201, %204, %207, %210 in 1 : vector<8x60xbf16>, vector<8x60xbf16>, vector<8x60xbf16>, vector<8x60xbf16>, vector<8x60xbf16>, vector<8x60xbf16>, vector<8x60xbf16> -> vector<8x420xbf16>
      %c6_193 = arith.constant 6 : index
      %c0_194 = arith.constant 0 : index
      %c0_195 = arith.constant 0 : index
      %212 = vector.load %arg3[%c6_193, %c0_194, %c0_195] : memref<7x420x120xbf16, #tpu.memory_space<vmem>>, vector<1x420x120xbf16>
      %213 = vector.shape_cast %212 : vector<1x420x120xbf16> to vector<420x120xbf16>
      %cst_196 = arith.constant dense<0.000000e+00> : vector<8x120xf32>
      %214 = tpu.matmul %211, %213, %cst_196 {dimension_numbers = #tpu.dot_dimension_numbers<[1], [0], [0], [1], [0, 0, 1, 1], [], []>} : vector<8x420xbf16>, vector<420x120xbf16>, vector<8x120xf32> -> vector<8x120xf32>
      %215 = arith.addf %184, %214 : vector<8x120xf32>
      %c5_197 = arith.constant 5 : index
      %c0_198 = arith.constant 0 : index
      %c0_199 = arith.constant 0 : index
      %216 = vector.load %arg3[%c5_197, %c0_198, %c0_199] : memref<7x420x120xbf16, #tpu.memory_space<vmem>>, vector<1x420x120xbf16>
      %217 = vector.shape_cast %216 : vector<1x420x120xbf16> to vector<420x120xbf16>
      %cst_200 = arith.constant dense<0.000000e+00> : vector<8x120xf32>
      %218 = tpu.matmul %211, %217, %cst_200 {dimension_numbers = #tpu.dot_dimension_numbers<[1], [0], [0], [1], [0, 0, 1, 1], [], []>} : vector<8x420xbf16>, vector<420x120xbf16>, vector<8x120xf32> -> vector<8x120xf32>
      %219 = arith.addf %188, %218 : vector<8x120xf32>
      %c7_i32 = arith.constant 7 : i32
      %220 = arith.addi %4, %c7_i32 : i32
      %c0_201 = arith.constant 0 : index
      %221 = arith.index_cast %220 : i32 to index
      %c0_202 = arith.constant 0 : index
      %c0_203 = arith.constant 0 : index
      %222 = vector.load %arg2[%c0_201, %221, %c0_202, %c0_203] : memref<1x14x14x60xbf16, #tpu.memory_space<vmem>>, vector<1x1x8x60xbf16>
      %223 = vector.shape_cast %222 : vector<1x1x8x60xbf16> to vector<8x60xbf16>
      %c0_204 = arith.constant 0 : index
      %224 = arith.index_cast %220 : i32 to index
      %c1_205 = arith.constant 1 : index
      %c0_206 = arith.constant 0 : index
      %225 = vector.load %arg2[%c0_204, %224, %c1_205, %c0_206] : memref<1x14x14x60xbf16, #tpu.memory_space<vmem>>, vector<1x1x8x60xbf16>
      %226 = vector.shape_cast %225 : vector<1x1x8x60xbf16> to vector<8x60xbf16>
      %c0_207 = arith.constant 0 : index
      %227 = arith.index_cast %220 : i32 to index
      %c2_208 = arith.constant 2 : index
      %c0_209 = arith.constant 0 : index
      %228 = vector.load %arg2[%c0_207, %227, %c2_208, %c0_209] : memref<1x14x14x60xbf16, #tpu.memory_space<vmem>>, vector<1x1x8x60xbf16>
      %229 = vector.shape_cast %228 : vector<1x1x8x60xbf16> to vector<8x60xbf16>
      %c0_210 = arith.constant 0 : index
      %230 = arith.index_cast %220 : i32 to index
      %c3_211 = arith.constant 3 : index
      %c0_212 = arith.constant 0 : index
      %231 = vector.load %arg2[%c0_210, %230, %c3_211, %c0_212] : memref<1x14x14x60xbf16, #tpu.memory_space<vmem>>, vector<1x1x8x60xbf16>
      %232 = vector.shape_cast %231 : vector<1x1x8x60xbf16> to vector<8x60xbf16>
      %c0_213 = arith.constant 0 : index
      %233 = arith.index_cast %220 : i32 to index
      %c4_214 = arith.constant 4 : index
      %c0_215 = arith.constant 0 : index
      %234 = vector.load %arg2[%c0_213, %233, %c4_214, %c0_215] : memref<1x14x14x60xbf16, #tpu.memory_space<vmem>>, vector<1x1x8x60xbf16>
      %235 = vector.shape_cast %234 : vector<1x1x8x60xbf16> to vector<8x60xbf16>
      %c0_216 = arith.constant 0 : index
      %236 = arith.index_cast %220 : i32 to index
      %c5_217 = arith.constant 5 : index
      %c0_218 = arith.constant 0 : index
      %237 = vector.load %arg2[%c0_216, %236, %c5_217, %c0_218] : memref<1x14x14x60xbf16, #tpu.memory_space<vmem>>, vector<1x1x8x60xbf16>
      %238 = vector.shape_cast %237 : vector<1x1x8x60xbf16> to vector<8x60xbf16>
      %c0_219 = arith.constant 0 : index
      %239 = arith.index_cast %220 : i32 to index
      %c6_220 = arith.constant 6 : index
      %c0_221 = arith.constant 0 : index
      %240 = vector.load %arg2[%c0_219, %239, %c6_220, %c0_221] : memref<1x14x14x60xbf16, #tpu.memory_space<vmem>>, vector<1x1x8x60xbf16>
      %241 = vector.shape_cast %240 : vector<1x1x8x60xbf16> to vector<8x60xbf16>
      %242 = tpu.concatenate %223, %226, %229, %232, %235, %238, %241 in 1 : vector<8x60xbf16>, vector<8x60xbf16>, vector<8x60xbf16>, vector<8x60xbf16>, vector<8x60xbf16>, vector<8x60xbf16>, vector<8x60xbf16> -> vector<8x420xbf16>
      %c6_222 = arith.constant 6 : index
      %c0_223 = arith.constant 0 : index
      %c0_224 = arith.constant 0 : index
      %243 = vector.load %arg3[%c6_222, %c0_223, %c0_224] : memref<7x420x120xbf16, #tpu.memory_space<vmem>>, vector<1x420x120xbf16>
      %244 = vector.shape_cast %243 : vector<1x420x120xbf16> to vector<420x120xbf16>
      %cst_225 = arith.constant dense<0.000000e+00> : vector<8x120xf32>
      %245 = tpu.matmul %242, %244, %cst_225 {dimension_numbers = #tpu.dot_dimension_numbers<[1], [0], [0], [1], [0, 0, 1, 1], [], []>} : vector<8x420xbf16>, vector<420x120xbf16>, vector<8x120xf32> -> vector<8x120xf32>
      %246 = arith.addf %219, %245 : vector<8x120xf32>
      %247 = arith.maximumf %215, %246 : vector<8x120xf32>
      %248 = vector.broadcast %1 : vector<1x120xf32> to vector<8x120xf32>
      %249 = arith.addf %247, %248 : vector<8x120xf32>
      %cst_226 = arith.constant 0.000000e+00 : f32
      %250 = vector.broadcast %cst_226 : f32 to vector<8x120xf32>
      %251 = arith.maximumf %249, %250 : vector<8x120xf32>
      %c0_227 = arith.constant 0 : index
      %c0_228 = arith.constant 0 : index
      %252 = vector.load %arg6[%c0_227, %c0_228] : memref<8x120xf32, #tpu.memory_space<vmem>>, vector<8x120xf32>
      tpu.vector_store %arg6[%c0_227, %c0_228], %251 {strides = array<i32>} : memref<8x120xf32, #tpu.memory_space<vmem>>, vector<8x120xf32>,
      %c0_229 = arith.constant 0 : index
      %c0_230 = arith.constant 0 : index
      %253 = tpu.strided_load %arg6[%c0_229, %c0_230] {strides = array<i32: 2, 1>} : memref<8x120xf32, #tpu.memory_space<vmem>>, vector<4x120xf32>
      %c1_231 = arith.constant 1 : index
      %c0_232 = arith.constant 0 : index
      %254 = tpu.strided_load %arg6[%c1_231, %c0_232] {strides = array<i32: 2, 1>} : memref<8x120xf32, #tpu.memory_space<vmem>>, vector<4x120xf32>
      %255 = arith.maximumf %253, %254 : vector<4x120xf32>
      %256 = arith.truncf %255 : vector<4x120xf32> to vector<4x120xbf16>
      %c0_233 = arith.constant 0 : index
      %257 = arith.index_cast %arg7 : i32 to index
      %c0_234 = arith.constant 0 : index
      %c0_235 = arith.constant 0 : index
      %258 = vector.load %arg5[%c0_233, %257, %c0_234, %c0_235] : memref<1x4x4x120xbf16, #tpu.memory_space<vmem>>, vector<1x1x4x120xbf16>
      %259 = vector.shape_cast %258 : vector<1x1x4x120xbf16> to vector<4x120xbf16>
      %260 = vector.shape_cast %256 : vector<4x120xbf16> to vector<1x1x4x120xbf16>
      tpu.vector_store %arg5[%c0_233, %257, %c0_234, %c0_235], %260 {strides = array<i32>} : memref<1x4x4x120xbf16, #tpu.memory_space<vmem>>, vector<1x1x4x120xbf16>,
    }
    %c4_i32_2 = arith.constant 4 : i32
    return
  }
  func.func @transform_0(%arg0: i32, %arg1: i32) -> (i32, i32, i32, i32) {
    %c0_i32 = arith.constant 0 : i32
    %c0_i32_0 = arith.constant 0 : i32
    %c0_i32_1 = arith.constant 0 : i32
    %c0_i32_2 = arith.constant 0 : i32
    return %arg0, %c0_i32, %c0_i32_0, %c0_i32_1 : i32, i32, i32, i32
  }
  func.func @transform_1(%arg0: i32, %arg1: i32) -> (i32, i32, i32) {
    %c0_i32 = arith.constant 0 : i32
    %c0_i32_0 = arith.constant 0 : i32
    %c0_i32_1 = arith.constant 0 : i32
    %c0_i32_2 = arith.constant 0 : i32
    return %c0_i32, %c0_i32_0, %c0_i32_1 : i32, i32, i32
  }
  func.func @transform_2(%arg0: i32, %arg1: i32) -> (i32, i32) {
    %c0_i32 = arith.constant 0 : i32
    %c0_i32_0 = arith.constant 0 : i32
    %c0_i32_1 = arith.constant 0 : i32
    return %c0_i32, %c0_i32_0 : i32, i32
  }
  func.func @transform_3(%arg0: i32, %arg1: i32) -> (i32, i32, i32, i32) {
    %c0_i32 = arith.constant 0 : i32
    %c0_i32_0 = arith.constant 0 : i32
    %c0_i32_1 = arith.constant 0 : i32
    return %arg0, %arg1, %c0_i32, %c0_i32_0 : i32, i32, i32, i32
  }
}

module attributes {stable_mosaic.version = 11 : i64} {
  func.func @_conv_kernel(%arg0: i32, %arg1: i32, %arg2: memref<1x10x10x120xbf16, #tpu.memory_space<vmem>>, %arg3: memref<7x840x60xbf16, #tpu.memory_space<vmem>>, %arg4: memref<1x60xf32, #tpu.memory_space<vmem>>, %arg5: memref<1x4x4x60xbf16, #tpu.memory_space<vmem>>) attributes {dimension_semantics = [#tpu.dimension_semantics<parallel>, #tpu.dimension_semantics<parallel>], iteration_bounds = array<i64: 2, 1>, scalar_prefetch = 0 : i64, scratch_operands = 0 : i64, tpu.core_type = #tpu.core_type<tc>, window_params = [{transform_indices = @transform_0, window_bounds = array<i64: 1, 10, 10, 120>}, {pipeline_mode = #tpu.pipeline_mode<synchronous>, transform_indices = @transform_1, window_bounds = array<i64: 7, 840, 60>}, {pipeline_mode = #tpu.pipeline_mode<synchronous>, transform_indices = @transform_2, window_bounds = array<i64: 1, 60>}, {transform_indices = @transform_3, window_bounds = array<i64: 1, 4, 4, 60>}]} {
    %c4_i32 = arith.constant 4 : i32
    %0 = arith.muli %arg1, %c4_i32 : i32
    %c0 = arith.constant 0 : index
    %c0_0 = arith.constant 0 : index
    %1 = vector.load %arg4[%c0, %c0_0] : memref<1x60xf32, #tpu.memory_space<vmem>>, vector<1x60xf32>
    %c0_i32 = arith.constant 0 : i32
    %c4_i32_1 = arith.constant 4 : i32
    %2 = arith.addi %c0_i32, %c4_i32_1 : i32
    %c1_i32 = arith.constant 1 : i32
    scf.for %arg6 = %c0_i32 to %2 step %c1_i32  : i32 {
      %3 = arith.addi %0, %arg6 : i32
      %cst = arith.constant 0.000000e+00 : f32
      %4 = vector.broadcast %cst : f32 to vector<4x60xf32>
      %c0_i32_3 = arith.constant 0 : i32
      %5 = arith.addi %3, %c0_i32_3 : i32
      %c0_4 = arith.constant 0 : index
      %6 = arith.index_cast %5 : i32 to index
      %c0_5 = arith.constant 0 : index
      %c0_6 = arith.constant 0 : index
      %7 = vector.load %arg2[%c0_4, %6, %c0_5, %c0_6] : memref<1x10x10x120xbf16, #tpu.memory_space<vmem>>, vector<1x1x4x120xbf16>
      %8 = vector.shape_cast %7 : vector<1x1x4x120xbf16> to vector<4x120xbf16>
      %c0_7 = arith.constant 0 : index
      %9 = arith.index_cast %5 : i32 to index
      %c1 = arith.constant 1 : index
      %c0_8 = arith.constant 0 : index
      %10 = vector.load %arg2[%c0_7, %9, %c1, %c0_8] : memref<1x10x10x120xbf16, #tpu.memory_space<vmem>>, vector<1x1x4x120xbf16>
      %11 = vector.shape_cast %10 : vector<1x1x4x120xbf16> to vector<4x120xbf16>
      %c0_9 = arith.constant 0 : index
      %12 = arith.index_cast %5 : i32 to index
      %c2 = arith.constant 2 : index
      %c0_10 = arith.constant 0 : index
      %13 = vector.load %arg2[%c0_9, %12, %c2, %c0_10] : memref<1x10x10x120xbf16, #tpu.memory_space<vmem>>, vector<1x1x4x120xbf16>
      %14 = vector.shape_cast %13 : vector<1x1x4x120xbf16> to vector<4x120xbf16>
      %c0_11 = arith.constant 0 : index
      %15 = arith.index_cast %5 : i32 to index
      %c3 = arith.constant 3 : index
      %c0_12 = arith.constant 0 : index
      %16 = vector.load %arg2[%c0_11, %15, %c3, %c0_12] : memref<1x10x10x120xbf16, #tpu.memory_space<vmem>>, vector<1x1x4x120xbf16>
      %17 = vector.shape_cast %16 : vector<1x1x4x120xbf16> to vector<4x120xbf16>
      %c0_13 = arith.constant 0 : index
      %18 = arith.index_cast %5 : i32 to index
      %c4 = arith.constant 4 : index
      %c0_14 = arith.constant 0 : index
      %19 = vector.load %arg2[%c0_13, %18, %c4, %c0_14] : memref<1x10x10x120xbf16, #tpu.memory_space<vmem>>, vector<1x1x4x120xbf16>
      %20 = vector.shape_cast %19 : vector<1x1x4x120xbf16> to vector<4x120xbf16>
      %c0_15 = arith.constant 0 : index
      %21 = arith.index_cast %5 : i32 to index
      %c5 = arith.constant 5 : index
      %c0_16 = arith.constant 0 : index
      %22 = vector.load %arg2[%c0_15, %21, %c5, %c0_16] : memref<1x10x10x120xbf16, #tpu.memory_space<vmem>>, vector<1x1x4x120xbf16>
      %23 = vector.shape_cast %22 : vector<1x1x4x120xbf16> to vector<4x120xbf16>
      %c0_17 = arith.constant 0 : index
      %24 = arith.index_cast %5 : i32 to index
      %c6 = arith.constant 6 : index
      %c0_18 = arith.constant 0 : index
      %25 = vector.load %arg2[%c0_17, %24, %c6, %c0_18] : memref<1x10x10x120xbf16, #tpu.memory_space<vmem>>, vector<1x1x4x120xbf16>
      %26 = vector.shape_cast %25 : vector<1x1x4x120xbf16> to vector<4x120xbf16>
      %27 = tpu.concatenate %8, %11, %14, %17, %20, %23, %26 in 1 : vector<4x120xbf16>, vector<4x120xbf16>, vector<4x120xbf16>, vector<4x120xbf16>, vector<4x120xbf16>, vector<4x120xbf16>, vector<4x120xbf16> -> vector<4x840xbf16>
      %c0_19 = arith.constant 0 : index
      %c0_20 = arith.constant 0 : index
      %c0_21 = arith.constant 0 : index
      %28 = vector.load %arg3[%c0_19, %c0_20, %c0_21] : memref<7x840x60xbf16, #tpu.memory_space<vmem>>, vector<1x840x60xbf16>
      %29 = vector.shape_cast %28 : vector<1x840x60xbf16> to vector<840x60xbf16>
      %cst_22 = arith.constant dense<0.000000e+00> : vector<4x60xf32>
      %30 = tpu.matmul %27, %29, %cst_22 {dimension_numbers = #tpu.dot_dimension_numbers<[1], [0], [0], [1], [0, 0, 1, 1], [], []>} : vector<4x840xbf16>, vector<840x60xbf16>, vector<4x60xf32> -> vector<4x60xf32>
      %31 = arith.addf %4, %30 : vector<4x60xf32>
      %c1_i32_23 = arith.constant 1 : i32
      %32 = arith.addi %3, %c1_i32_23 : i32
      %c0_24 = arith.constant 0 : index
      %33 = arith.index_cast %32 : i32 to index
      %c0_25 = arith.constant 0 : index
      %c0_26 = arith.constant 0 : index
      %34 = vector.load %arg2[%c0_24, %33, %c0_25, %c0_26] : memref<1x10x10x120xbf16, #tpu.memory_space<vmem>>, vector<1x1x4x120xbf16>
      %35 = vector.shape_cast %34 : vector<1x1x4x120xbf16> to vector<4x120xbf16>
      %c0_27 = arith.constant 0 : index
      %36 = arith.index_cast %32 : i32 to index
      %c1_28 = arith.constant 1 : index
      %c0_29 = arith.constant 0 : index
      %37 = vector.load %arg2[%c0_27, %36, %c1_28, %c0_29] : memref<1x10x10x120xbf16, #tpu.memory_space<vmem>>, vector<1x1x4x120xbf16>
      %38 = vector.shape_cast %37 : vector<1x1x4x120xbf16> to vector<4x120xbf16>
      %c0_30 = arith.constant 0 : index
      %39 = arith.index_cast %32 : i32 to index
      %c2_31 = arith.constant 2 : index
      %c0_32 = arith.constant 0 : index
      %40 = vector.load %arg2[%c0_30, %39, %c2_31, %c0_32] : memref<1x10x10x120xbf16, #tpu.memory_space<vmem>>, vector<1x1x4x120xbf16>
      %41 = vector.shape_cast %40 : vector<1x1x4x120xbf16> to vector<4x120xbf16>
      %c0_33 = arith.constant 0 : index
      %42 = arith.index_cast %32 : i32 to index
      %c3_34 = arith.constant 3 : index
      %c0_35 = arith.constant 0 : index
      %43 = vector.load %arg2[%c0_33, %42, %c3_34, %c0_35] : memref<1x10x10x120xbf16, #tpu.memory_space<vmem>>, vector<1x1x4x120xbf16>
      %44 = vector.shape_cast %43 : vector<1x1x4x120xbf16> to vector<4x120xbf16>
      %c0_36 = arith.constant 0 : index
      %45 = arith.index_cast %32 : i32 to index
      %c4_37 = arith.constant 4 : index
      %c0_38 = arith.constant 0 : index
      %46 = vector.load %arg2[%c0_36, %45, %c4_37, %c0_38] : memref<1x10x10x120xbf16, #tpu.memory_space<vmem>>, vector<1x1x4x120xbf16>
      %47 = vector.shape_cast %46 : vector<1x1x4x120xbf16> to vector<4x120xbf16>
      %c0_39 = arith.constant 0 : index
      %48 = arith.index_cast %32 : i32 to index
      %c5_40 = arith.constant 5 : index
      %c0_41 = arith.constant 0 : index
      %49 = vector.load %arg2[%c0_39, %48, %c5_40, %c0_41] : memref<1x10x10x120xbf16, #tpu.memory_space<vmem>>, vector<1x1x4x120xbf16>
      %50 = vector.shape_cast %49 : vector<1x1x4x120xbf16> to vector<4x120xbf16>
      %c0_42 = arith.constant 0 : index
      %51 = arith.index_cast %32 : i32 to index
      %c6_43 = arith.constant 6 : index
      %c0_44 = arith.constant 0 : index
      %52 = vector.load %arg2[%c0_42, %51, %c6_43, %c0_44] : memref<1x10x10x120xbf16, #tpu.memory_space<vmem>>, vector<1x1x4x120xbf16>
      %53 = vector.shape_cast %52 : vector<1x1x4x120xbf16> to vector<4x120xbf16>
      %54 = tpu.concatenate %35, %38, %41, %44, %47, %50, %53 in 1 : vector<4x120xbf16>, vector<4x120xbf16>, vector<4x120xbf16>, vector<4x120xbf16>, vector<4x120xbf16>, vector<4x120xbf16>, vector<4x120xbf16> -> vector<4x840xbf16>
      %c1_45 = arith.constant 1 : index
      %c0_46 = arith.constant 0 : index
      %c0_47 = arith.constant 0 : index
      %55 = vector.load %arg3[%c1_45, %c0_46, %c0_47] : memref<7x840x60xbf16, #tpu.memory_space<vmem>>, vector<1x840x60xbf16>
      %56 = vector.shape_cast %55 : vector<1x840x60xbf16> to vector<840x60xbf16>
      %cst_48 = arith.constant dense<0.000000e+00> : vector<4x60xf32>
      %57 = tpu.matmul %54, %56, %cst_48 {dimension_numbers = #tpu.dot_dimension_numbers<[1], [0], [0], [1], [0, 0, 1, 1], [], []>} : vector<4x840xbf16>, vector<840x60xbf16>, vector<4x60xf32> -> vector<4x60xf32>
      %58 = arith.addf %31, %57 : vector<4x60xf32>
      %c2_i32 = arith.constant 2 : i32
      %59 = arith.addi %3, %c2_i32 : i32
      %c0_49 = arith.constant 0 : index
      %60 = arith.index_cast %59 : i32 to index
      %c0_50 = arith.constant 0 : index
      %c0_51 = arith.constant 0 : index
      %61 = vector.load %arg2[%c0_49, %60, %c0_50, %c0_51] : memref<1x10x10x120xbf16, #tpu.memory_space<vmem>>, vector<1x1x4x120xbf16>
      %62 = vector.shape_cast %61 : vector<1x1x4x120xbf16> to vector<4x120xbf16>
      %c0_52 = arith.constant 0 : index
      %63 = arith.index_cast %59 : i32 to index
      %c1_53 = arith.constant 1 : index
      %c0_54 = arith.constant 0 : index
      %64 = vector.load %arg2[%c0_52, %63, %c1_53, %c0_54] : memref<1x10x10x120xbf16, #tpu.memory_space<vmem>>, vector<1x1x4x120xbf16>
      %65 = vector.shape_cast %64 : vector<1x1x4x120xbf16> to vector<4x120xbf16>
      %c0_55 = arith.constant 0 : index
      %66 = arith.index_cast %59 : i32 to index
      %c2_56 = arith.constant 2 : index
      %c0_57 = arith.constant 0 : index
      %67 = vector.load %arg2[%c0_55, %66, %c2_56, %c0_57] : memref<1x10x10x120xbf16, #tpu.memory_space<vmem>>, vector<1x1x4x120xbf16>
      %68 = vector.shape_cast %67 : vector<1x1x4x120xbf16> to vector<4x120xbf16>
      %c0_58 = arith.constant 0 : index
      %69 = arith.index_cast %59 : i32 to index
      %c3_59 = arith.constant 3 : index
      %c0_60 = arith.constant 0 : index
      %70 = vector.load %arg2[%c0_58, %69, %c3_59, %c0_60] : memref<1x10x10x120xbf16, #tpu.memory_space<vmem>>, vector<1x1x4x120xbf16>
      %71 = vector.shape_cast %70 : vector<1x1x4x120xbf16> to vector<4x120xbf16>
      %c0_61 = arith.constant 0 : index
      %72 = arith.index_cast %59 : i32 to index
      %c4_62 = arith.constant 4 : index
      %c0_63 = arith.constant 0 : index
      %73 = vector.load %arg2[%c0_61, %72, %c4_62, %c0_63] : memref<1x10x10x120xbf16, #tpu.memory_space<vmem>>, vector<1x1x4x120xbf16>
      %74 = vector.shape_cast %73 : vector<1x1x4x120xbf16> to vector<4x120xbf16>
      %c0_64 = arith.constant 0 : index
      %75 = arith.index_cast %59 : i32 to index
      %c5_65 = arith.constant 5 : index
      %c0_66 = arith.constant 0 : index
      %76 = vector.load %arg2[%c0_64, %75, %c5_65, %c0_66] : memref<1x10x10x120xbf16, #tpu.memory_space<vmem>>, vector<1x1x4x120xbf16>
      %77 = vector.shape_cast %76 : vector<1x1x4x120xbf16> to vector<4x120xbf16>
      %c0_67 = arith.constant 0 : index
      %78 = arith.index_cast %59 : i32 to index
      %c6_68 = arith.constant 6 : index
      %c0_69 = arith.constant 0 : index
      %79 = vector.load %arg2[%c0_67, %78, %c6_68, %c0_69] : memref<1x10x10x120xbf16, #tpu.memory_space<vmem>>, vector<1x1x4x120xbf16>
      %80 = vector.shape_cast %79 : vector<1x1x4x120xbf16> to vector<4x120xbf16>
      %81 = tpu.concatenate %62, %65, %68, %71, %74, %77, %80 in 1 : vector<4x120xbf16>, vector<4x120xbf16>, vector<4x120xbf16>, vector<4x120xbf16>, vector<4x120xbf16>, vector<4x120xbf16>, vector<4x120xbf16> -> vector<4x840xbf16>
      %c2_70 = arith.constant 2 : index
      %c0_71 = arith.constant 0 : index
      %c0_72 = arith.constant 0 : index
      %82 = vector.load %arg3[%c2_70, %c0_71, %c0_72] : memref<7x840x60xbf16, #tpu.memory_space<vmem>>, vector<1x840x60xbf16>
      %83 = vector.shape_cast %82 : vector<1x840x60xbf16> to vector<840x60xbf16>
      %cst_73 = arith.constant dense<0.000000e+00> : vector<4x60xf32>
      %84 = tpu.matmul %81, %83, %cst_73 {dimension_numbers = #tpu.dot_dimension_numbers<[1], [0], [0], [1], [0, 0, 1, 1], [], []>} : vector<4x840xbf16>, vector<840x60xbf16>, vector<4x60xf32> -> vector<4x60xf32>
      %85 = arith.addf %58, %84 : vector<4x60xf32>
      %c3_i32 = arith.constant 3 : i32
      %86 = arith.addi %3, %c3_i32 : i32
      %c0_74 = arith.constant 0 : index
      %87 = arith.index_cast %86 : i32 to index
      %c0_75 = arith.constant 0 : index
      %c0_76 = arith.constant 0 : index
      %88 = vector.load %arg2[%c0_74, %87, %c0_75, %c0_76] : memref<1x10x10x120xbf16, #tpu.memory_space<vmem>>, vector<1x1x4x120xbf16>
      %89 = vector.shape_cast %88 : vector<1x1x4x120xbf16> to vector<4x120xbf16>
      %c0_77 = arith.constant 0 : index
      %90 = arith.index_cast %86 : i32 to index
      %c1_78 = arith.constant 1 : index
      %c0_79 = arith.constant 0 : index
      %91 = vector.load %arg2[%c0_77, %90, %c1_78, %c0_79] : memref<1x10x10x120xbf16, #tpu.memory_space<vmem>>, vector<1x1x4x120xbf16>
      %92 = vector.shape_cast %91 : vector<1x1x4x120xbf16> to vector<4x120xbf16>
      %c0_80 = arith.constant 0 : index
      %93 = arith.index_cast %86 : i32 to index
      %c2_81 = arith.constant 2 : index
      %c0_82 = arith.constant 0 : index
      %94 = vector.load %arg2[%c0_80, %93, %c2_81, %c0_82] : memref<1x10x10x120xbf16, #tpu.memory_space<vmem>>, vector<1x1x4x120xbf16>
      %95 = vector.shape_cast %94 : vector<1x1x4x120xbf16> to vector<4x120xbf16>
      %c0_83 = arith.constant 0 : index
      %96 = arith.index_cast %86 : i32 to index
      %c3_84 = arith.constant 3 : index
      %c0_85 = arith.constant 0 : index
      %97 = vector.load %arg2[%c0_83, %96, %c3_84, %c0_85] : memref<1x10x10x120xbf16, #tpu.memory_space<vmem>>, vector<1x1x4x120xbf16>
      %98 = vector.shape_cast %97 : vector<1x1x4x120xbf16> to vector<4x120xbf16>
      %c0_86 = arith.constant 0 : index
      %99 = arith.index_cast %86 : i32 to index
      %c4_87 = arith.constant 4 : index
      %c0_88 = arith.constant 0 : index
      %100 = vector.load %arg2[%c0_86, %99, %c4_87, %c0_88] : memref<1x10x10x120xbf16, #tpu.memory_space<vmem>>, vector<1x1x4x120xbf16>
      %101 = vector.shape_cast %100 : vector<1x1x4x120xbf16> to vector<4x120xbf16>
      %c0_89 = arith.constant 0 : index
      %102 = arith.index_cast %86 : i32 to index
      %c5_90 = arith.constant 5 : index
      %c0_91 = arith.constant 0 : index
      %103 = vector.load %arg2[%c0_89, %102, %c5_90, %c0_91] : memref<1x10x10x120xbf16, #tpu.memory_space<vmem>>, vector<1x1x4x120xbf16>
      %104 = vector.shape_cast %103 : vector<1x1x4x120xbf16> to vector<4x120xbf16>
      %c0_92 = arith.constant 0 : index
      %105 = arith.index_cast %86 : i32 to index
      %c6_93 = arith.constant 6 : index
      %c0_94 = arith.constant 0 : index
      %106 = vector.load %arg2[%c0_92, %105, %c6_93, %c0_94] : memref<1x10x10x120xbf16, #tpu.memory_space<vmem>>, vector<1x1x4x120xbf16>
      %107 = vector.shape_cast %106 : vector<1x1x4x120xbf16> to vector<4x120xbf16>
      %108 = tpu.concatenate %89, %92, %95, %98, %101, %104, %107 in 1 : vector<4x120xbf16>, vector<4x120xbf16>, vector<4x120xbf16>, vector<4x120xbf16>, vector<4x120xbf16>, vector<4x120xbf16>, vector<4x120xbf16> -> vector<4x840xbf16>
      %c3_95 = arith.constant 3 : index
      %c0_96 = arith.constant 0 : index
      %c0_97 = arith.constant 0 : index
      %109 = vector.load %arg3[%c3_95, %c0_96, %c0_97] : memref<7x840x60xbf16, #tpu.memory_space<vmem>>, vector<1x840x60xbf16>
      %110 = vector.shape_cast %109 : vector<1x840x60xbf16> to vector<840x60xbf16>
      %cst_98 = arith.constant dense<0.000000e+00> : vector<4x60xf32>
      %111 = tpu.matmul %108, %110, %cst_98 {dimension_numbers = #tpu.dot_dimension_numbers<[1], [0], [0], [1], [0, 0, 1, 1], [], []>} : vector<4x840xbf16>, vector<840x60xbf16>, vector<4x60xf32> -> vector<4x60xf32>
      %112 = arith.addf %85, %111 : vector<4x60xf32>
      %c4_i32_99 = arith.constant 4 : i32
      %113 = arith.addi %3, %c4_i32_99 : i32
      %c0_100 = arith.constant 0 : index
      %114 = arith.index_cast %113 : i32 to index
      %c0_101 = arith.constant 0 : index
      %c0_102 = arith.constant 0 : index
      %115 = vector.load %arg2[%c0_100, %114, %c0_101, %c0_102] : memref<1x10x10x120xbf16, #tpu.memory_space<vmem>>, vector<1x1x4x120xbf16>
      %116 = vector.shape_cast %115 : vector<1x1x4x120xbf16> to vector<4x120xbf16>
      %c0_103 = arith.constant 0 : index
      %117 = arith.index_cast %113 : i32 to index
      %c1_104 = arith.constant 1 : index
      %c0_105 = arith.constant 0 : index
      %118 = vector.load %arg2[%c0_103, %117, %c1_104, %c0_105] : memref<1x10x10x120xbf16, #tpu.memory_space<vmem>>, vector<1x1x4x120xbf16>
      %119 = vector.shape_cast %118 : vector<1x1x4x120xbf16> to vector<4x120xbf16>
      %c0_106 = arith.constant 0 : index
      %120 = arith.index_cast %113 : i32 to index
      %c2_107 = arith.constant 2 : index
      %c0_108 = arith.constant 0 : index
      %121 = vector.load %arg2[%c0_106, %120, %c2_107, %c0_108] : memref<1x10x10x120xbf16, #tpu.memory_space<vmem>>, vector<1x1x4x120xbf16>
      %122 = vector.shape_cast %121 : vector<1x1x4x120xbf16> to vector<4x120xbf16>
      %c0_109 = arith.constant 0 : index
      %123 = arith.index_cast %113 : i32 to index
      %c3_110 = arith.constant 3 : index
      %c0_111 = arith.constant 0 : index
      %124 = vector.load %arg2[%c0_109, %123, %c3_110, %c0_111] : memref<1x10x10x120xbf16, #tpu.memory_space<vmem>>, vector<1x1x4x120xbf16>
      %125 = vector.shape_cast %124 : vector<1x1x4x120xbf16> to vector<4x120xbf16>
      %c0_112 = arith.constant 0 : index
      %126 = arith.index_cast %113 : i32 to index
      %c4_113 = arith.constant 4 : index
      %c0_114 = arith.constant 0 : index
      %127 = vector.load %arg2[%c0_112, %126, %c4_113, %c0_114] : memref<1x10x10x120xbf16, #tpu.memory_space<vmem>>, vector<1x1x4x120xbf16>
      %128 = vector.shape_cast %127 : vector<1x1x4x120xbf16> to vector<4x120xbf16>
      %c0_115 = arith.constant 0 : index
      %129 = arith.index_cast %113 : i32 to index
      %c5_116 = arith.constant 5 : index
      %c0_117 = arith.constant 0 : index
      %130 = vector.load %arg2[%c0_115, %129, %c5_116, %c0_117] : memref<1x10x10x120xbf16, #tpu.memory_space<vmem>>, vector<1x1x4x120xbf16>
      %131 = vector.shape_cast %130 : vector<1x1x4x120xbf16> to vector<4x120xbf16>
      %c0_118 = arith.constant 0 : index
      %132 = arith.index_cast %113 : i32 to index
      %c6_119 = arith.constant 6 : index
      %c0_120 = arith.constant 0 : index
      %133 = vector.load %arg2[%c0_118, %132, %c6_119, %c0_120] : memref<1x10x10x120xbf16, #tpu.memory_space<vmem>>, vector<1x1x4x120xbf16>
      %134 = vector.shape_cast %133 : vector<1x1x4x120xbf16> to vector<4x120xbf16>
      %135 = tpu.concatenate %116, %119, %122, %125, %128, %131, %134 in 1 : vector<4x120xbf16>, vector<4x120xbf16>, vector<4x120xbf16>, vector<4x120xbf16>, vector<4x120xbf16>, vector<4x120xbf16>, vector<4x120xbf16> -> vector<4x840xbf16>
      %c4_121 = arith.constant 4 : index
      %c0_122 = arith.constant 0 : index
      %c0_123 = arith.constant 0 : index
      %136 = vector.load %arg3[%c4_121, %c0_122, %c0_123] : memref<7x840x60xbf16, #tpu.memory_space<vmem>>, vector<1x840x60xbf16>
      %137 = vector.shape_cast %136 : vector<1x840x60xbf16> to vector<840x60xbf16>
      %cst_124 = arith.constant dense<0.000000e+00> : vector<4x60xf32>
      %138 = tpu.matmul %135, %137, %cst_124 {dimension_numbers = #tpu.dot_dimension_numbers<[1], [0], [0], [1], [0, 0, 1, 1], [], []>} : vector<4x840xbf16>, vector<840x60xbf16>, vector<4x60xf32> -> vector<4x60xf32>
      %139 = arith.addf %112, %138 : vector<4x60xf32>
      %c5_i32 = arith.constant 5 : i32
      %140 = arith.addi %3, %c5_i32 : i32
      %c0_125 = arith.constant 0 : index
      %141 = arith.index_cast %140 : i32 to index
      %c0_126 = arith.constant 0 : index
      %c0_127 = arith.constant 0 : index
      %142 = vector.load %arg2[%c0_125, %141, %c0_126, %c0_127] : memref<1x10x10x120xbf16, #tpu.memory_space<vmem>>, vector<1x1x4x120xbf16>
      %143 = vector.shape_cast %142 : vector<1x1x4x120xbf16> to vector<4x120xbf16>
      %c0_128 = arith.constant 0 : index
      %144 = arith.index_cast %140 : i32 to index
      %c1_129 = arith.constant 1 : index
      %c0_130 = arith.constant 0 : index
      %145 = vector.load %arg2[%c0_128, %144, %c1_129, %c0_130] : memref<1x10x10x120xbf16, #tpu.memory_space<vmem>>, vector<1x1x4x120xbf16>
      %146 = vector.shape_cast %145 : vector<1x1x4x120xbf16> to vector<4x120xbf16>
      %c0_131 = arith.constant 0 : index
      %147 = arith.index_cast %140 : i32 to index
      %c2_132 = arith.constant 2 : index
      %c0_133 = arith.constant 0 : index
      %148 = vector.load %arg2[%c0_131, %147, %c2_132, %c0_133] : memref<1x10x10x120xbf16, #tpu.memory_space<vmem>>, vector<1x1x4x120xbf16>
      %149 = vector.shape_cast %148 : vector<1x1x4x120xbf16> to vector<4x120xbf16>
      %c0_134 = arith.constant 0 : index
      %150 = arith.index_cast %140 : i32 to index
      %c3_135 = arith.constant 3 : index
      %c0_136 = arith.constant 0 : index
      %151 = vector.load %arg2[%c0_134, %150, %c3_135, %c0_136] : memref<1x10x10x120xbf16, #tpu.memory_space<vmem>>, vector<1x1x4x120xbf16>
      %152 = vector.shape_cast %151 : vector<1x1x4x120xbf16> to vector<4x120xbf16>
      %c0_137 = arith.constant 0 : index
      %153 = arith.index_cast %140 : i32 to index
      %c4_138 = arith.constant 4 : index
      %c0_139 = arith.constant 0 : index
      %154 = vector.load %arg2[%c0_137, %153, %c4_138, %c0_139] : memref<1x10x10x120xbf16, #tpu.memory_space<vmem>>, vector<1x1x4x120xbf16>
      %155 = vector.shape_cast %154 : vector<1x1x4x120xbf16> to vector<4x120xbf16>
      %c0_140 = arith.constant 0 : index
      %156 = arith.index_cast %140 : i32 to index
      %c5_141 = arith.constant 5 : index
      %c0_142 = arith.constant 0 : index
      %157 = vector.load %arg2[%c0_140, %156, %c5_141, %c0_142] : memref<1x10x10x120xbf16, #tpu.memory_space<vmem>>, vector<1x1x4x120xbf16>
      %158 = vector.shape_cast %157 : vector<1x1x4x120xbf16> to vector<4x120xbf16>
      %c0_143 = arith.constant 0 : index
      %159 = arith.index_cast %140 : i32 to index
      %c6_144 = arith.constant 6 : index
      %c0_145 = arith.constant 0 : index
      %160 = vector.load %arg2[%c0_143, %159, %c6_144, %c0_145] : memref<1x10x10x120xbf16, #tpu.memory_space<vmem>>, vector<1x1x4x120xbf16>
      %161 = vector.shape_cast %160 : vector<1x1x4x120xbf16> to vector<4x120xbf16>
      %162 = tpu.concatenate %143, %146, %149, %152, %155, %158, %161 in 1 : vector<4x120xbf16>, vector<4x120xbf16>, vector<4x120xbf16>, vector<4x120xbf16>, vector<4x120xbf16>, vector<4x120xbf16>, vector<4x120xbf16> -> vector<4x840xbf16>
      %c5_146 = arith.constant 5 : index
      %c0_147 = arith.constant 0 : index
      %c0_148 = arith.constant 0 : index
      %163 = vector.load %arg3[%c5_146, %c0_147, %c0_148] : memref<7x840x60xbf16, #tpu.memory_space<vmem>>, vector<1x840x60xbf16>
      %164 = vector.shape_cast %163 : vector<1x840x60xbf16> to vector<840x60xbf16>
      %cst_149 = arith.constant dense<0.000000e+00> : vector<4x60xf32>
      %165 = tpu.matmul %162, %164, %cst_149 {dimension_numbers = #tpu.dot_dimension_numbers<[1], [0], [0], [1], [0, 0, 1, 1], [], []>} : vector<4x840xbf16>, vector<840x60xbf16>, vector<4x60xf32> -> vector<4x60xf32>
      %166 = arith.addf %139, %165 : vector<4x60xf32>
      %c6_i32 = arith.constant 6 : i32
      %167 = arith.addi %3, %c6_i32 : i32
      %c0_150 = arith.constant 0 : index
      %168 = arith.index_cast %167 : i32 to index
      %c0_151 = arith.constant 0 : index
      %c0_152 = arith.constant 0 : index
      %169 = vector.load %arg2[%c0_150, %168, %c0_151, %c0_152] : memref<1x10x10x120xbf16, #tpu.memory_space<vmem>>, vector<1x1x4x120xbf16>
      %170 = vector.shape_cast %169 : vector<1x1x4x120xbf16> to vector<4x120xbf16>
      %c0_153 = arith.constant 0 : index
      %171 = arith.index_cast %167 : i32 to index
      %c1_154 = arith.constant 1 : index
      %c0_155 = arith.constant 0 : index
      %172 = vector.load %arg2[%c0_153, %171, %c1_154, %c0_155] : memref<1x10x10x120xbf16, #tpu.memory_space<vmem>>, vector<1x1x4x120xbf16>
      %173 = vector.shape_cast %172 : vector<1x1x4x120xbf16> to vector<4x120xbf16>
      %c0_156 = arith.constant 0 : index
      %174 = arith.index_cast %167 : i32 to index
      %c2_157 = arith.constant 2 : index
      %c0_158 = arith.constant 0 : index
      %175 = vector.load %arg2[%c0_156, %174, %c2_157, %c0_158] : memref<1x10x10x120xbf16, #tpu.memory_space<vmem>>, vector<1x1x4x120xbf16>
      %176 = vector.shape_cast %175 : vector<1x1x4x120xbf16> to vector<4x120xbf16>
      %c0_159 = arith.constant 0 : index
      %177 = arith.index_cast %167 : i32 to index
      %c3_160 = arith.constant 3 : index
      %c0_161 = arith.constant 0 : index
      %178 = vector.load %arg2[%c0_159, %177, %c3_160, %c0_161] : memref<1x10x10x120xbf16, #tpu.memory_space<vmem>>, vector<1x1x4x120xbf16>
      %179 = vector.shape_cast %178 : vector<1x1x4x120xbf16> to vector<4x120xbf16>
      %c0_162 = arith.constant 0 : index
      %180 = arith.index_cast %167 : i32 to index
      %c4_163 = arith.constant 4 : index
      %c0_164 = arith.constant 0 : index
      %181 = vector.load %arg2[%c0_162, %180, %c4_163, %c0_164] : memref<1x10x10x120xbf16, #tpu.memory_space<vmem>>, vector<1x1x4x120xbf16>
      %182 = vector.shape_cast %181 : vector<1x1x4x120xbf16> to vector<4x120xbf16>
      %c0_165 = arith.constant 0 : index
      %183 = arith.index_cast %167 : i32 to index
      %c5_166 = arith.constant 5 : index
      %c0_167 = arith.constant 0 : index
      %184 = vector.load %arg2[%c0_165, %183, %c5_166, %c0_167] : memref<1x10x10x120xbf16, #tpu.memory_space<vmem>>, vector<1x1x4x120xbf16>
      %185 = vector.shape_cast %184 : vector<1x1x4x120xbf16> to vector<4x120xbf16>
      %c0_168 = arith.constant 0 : index
      %186 = arith.index_cast %167 : i32 to index
      %c6_169 = arith.constant 6 : index
      %c0_170 = arith.constant 0 : index
      %187 = vector.load %arg2[%c0_168, %186, %c6_169, %c0_170] : memref<1x10x10x120xbf16, #tpu.memory_space<vmem>>, vector<1x1x4x120xbf16>
      %188 = vector.shape_cast %187 : vector<1x1x4x120xbf16> to vector<4x120xbf16>
      %189 = tpu.concatenate %170, %173, %176, %179, %182, %185, %188 in 1 : vector<4x120xbf16>, vector<4x120xbf16>, vector<4x120xbf16>, vector<4x120xbf16>, vector<4x120xbf16>, vector<4x120xbf16>, vector<4x120xbf16> -> vector<4x840xbf16>
      %c6_171 = arith.constant 6 : index
      %c0_172 = arith.constant 0 : index
      %c0_173 = arith.constant 0 : index
      %190 = vector.load %arg3[%c6_171, %c0_172, %c0_173] : memref<7x840x60xbf16, #tpu.memory_space<vmem>>, vector<1x840x60xbf16>
      %191 = vector.shape_cast %190 : vector<1x840x60xbf16> to vector<840x60xbf16>
      %cst_174 = arith.constant dense<0.000000e+00> : vector<4x60xf32>
      %192 = tpu.matmul %189, %191, %cst_174 {dimension_numbers = #tpu.dot_dimension_numbers<[1], [0], [0], [1], [0, 0, 1, 1], [], []>} : vector<4x840xbf16>, vector<840x60xbf16>, vector<4x60xf32> -> vector<4x60xf32>
      %193 = arith.addf %166, %192 : vector<4x60xf32>
      %194 = vector.broadcast %1 : vector<1x60xf32> to vector<4x60xf32>
      %195 = arith.addf %193, %194 : vector<4x60xf32>
      %cst_175 = arith.constant 0.000000e+00 : f32
      %196 = vector.broadcast %cst_175 : f32 to vector<4x60xf32>
      %197 = arith.maximumf %195, %196 : vector<4x60xf32>
      %198 = arith.truncf %197 : vector<4x60xf32> to vector<4x60xbf16>
      %c0_176 = arith.constant 0 : index
      %199 = arith.index_cast %arg6 : i32 to index
      %c0_177 = arith.constant 0 : index
      %c0_178 = arith.constant 0 : index
      %200 = vector.load %arg5[%c0_176, %199, %c0_177, %c0_178] : memref<1x4x4x60xbf16, #tpu.memory_space<vmem>>, vector<1x1x4x60xbf16>
      %201 = vector.shape_cast %200 : vector<1x1x4x60xbf16> to vector<4x60xbf16>
      %202 = vector.shape_cast %198 : vector<4x60xbf16> to vector<1x1x4x60xbf16>
      tpu.vector_store %arg5[%c0_176, %199, %c0_177, %c0_178], %202 {strides = array<i32>} : memref<1x4x4x60xbf16, #tpu.memory_space<vmem>>, vector<1x1x4x60xbf16>,
    }
    %c4_i32_2 = arith.constant 4 : i32
    return
  }
  func.func @transform_0(%arg0: i32, %arg1: i32) -> (i32, i32, i32, i32) {
    %c0_i32 = arith.constant 0 : i32
    %c0_i32_0 = arith.constant 0 : i32
    %c0_i32_1 = arith.constant 0 : i32
    %c0_i32_2 = arith.constant 0 : i32
    return %arg0, %c0_i32, %c0_i32_0, %c0_i32_1 : i32, i32, i32, i32
  }
  func.func @transform_1(%arg0: i32, %arg1: i32) -> (i32, i32, i32) {
    %c0_i32 = arith.constant 0 : i32
    %c0_i32_0 = arith.constant 0 : i32
    %c0_i32_1 = arith.constant 0 : i32
    %c0_i32_2 = arith.constant 0 : i32
    return %c0_i32, %c0_i32_0, %c0_i32_1 : i32, i32, i32
  }
  func.func @transform_2(%arg0: i32, %arg1: i32) -> (i32, i32) {
    %c0_i32 = arith.constant 0 : i32
    %c0_i32_0 = arith.constant 0 : i32
    %c0_i32_1 = arith.constant 0 : i32
    return %c0_i32, %c0_i32_0 : i32, i32
  }
  func.func @transform_3(%arg0: i32, %arg1: i32) -> (i32, i32, i32, i32) {
    %c0_i32 = arith.constant 0 : i32
    %c0_i32_0 = arith.constant 0 : i32
    %c0_i32_1 = arith.constant 0 : i32
    return %arg0, %arg1, %c0_i32, %c0_i32_0 : i32, i32, i32, i32
  }
}

module attributes {stable_mosaic.version = 11 : i64} {
  func.func @_conv_kernel(%arg0: i32, %arg1: i32, %arg2: memref<1x10x10x60xbf16, #tpu.memory_space<vmem>>, %arg3: memref<7x420x30xbf16, #tpu.memory_space<vmem>>, %arg4: memref<1x30xf32, #tpu.memory_space<vmem>>, %arg5: memref<1x4x4x30xbf16, #tpu.memory_space<vmem>>) attributes {dimension_semantics = [#tpu.dimension_semantics<parallel>, #tpu.dimension_semantics<parallel>], iteration_bounds = array<i64: 2, 1>, scalar_prefetch = 0 : i64, scratch_operands = 0 : i64, tpu.core_type = #tpu.core_type<tc>, window_params = [{transform_indices = @transform_0, window_bounds = array<i64: 1, 10, 10, 60>}, {pipeline_mode = #tpu.pipeline_mode<synchronous>, transform_indices = @transform_1, window_bounds = array<i64: 7, 420, 30>}, {pipeline_mode = #tpu.pipeline_mode<synchronous>, transform_indices = @transform_2, window_bounds = array<i64: 1, 30>}, {transform_indices = @transform_3, window_bounds = array<i64: 1, 4, 4, 30>}]} {
    %c4_i32 = arith.constant 4 : i32
    %0 = arith.muli %arg1, %c4_i32 : i32
    %c0 = arith.constant 0 : index
    %c0_0 = arith.constant 0 : index
    %1 = vector.load %arg4[%c0, %c0_0] : memref<1x30xf32, #tpu.memory_space<vmem>>, vector<1x30xf32>
    %c0_i32 = arith.constant 0 : i32
    %c4_i32_1 = arith.constant 4 : i32
    %2 = arith.addi %c0_i32, %c4_i32_1 : i32
    %c1_i32 = arith.constant 1 : i32
    scf.for %arg6 = %c0_i32 to %2 step %c1_i32  : i32 {
      %3 = arith.addi %0, %arg6 : i32
      %cst = arith.constant 0.000000e+00 : f32
      %4 = vector.broadcast %cst : f32 to vector<4x30xf32>
      %c0_i32_3 = arith.constant 0 : i32
      %5 = arith.addi %3, %c0_i32_3 : i32
      %c0_4 = arith.constant 0 : index
      %6 = arith.index_cast %5 : i32 to index
      %c0_5 = arith.constant 0 : index
      %c0_6 = arith.constant 0 : index
      %7 = vector.load %arg2[%c0_4, %6, %c0_5, %c0_6] : memref<1x10x10x60xbf16, #tpu.memory_space<vmem>>, vector<1x1x4x60xbf16>
      %8 = vector.shape_cast %7 : vector<1x1x4x60xbf16> to vector<4x60xbf16>
      %c0_7 = arith.constant 0 : index
      %9 = arith.index_cast %5 : i32 to index
      %c1 = arith.constant 1 : index
      %c0_8 = arith.constant 0 : index
      %10 = vector.load %arg2[%c0_7, %9, %c1, %c0_8] : memref<1x10x10x60xbf16, #tpu.memory_space<vmem>>, vector<1x1x4x60xbf16>
      %11 = vector.shape_cast %10 : vector<1x1x4x60xbf16> to vector<4x60xbf16>
      %c0_9 = arith.constant 0 : index
      %12 = arith.index_cast %5 : i32 to index
      %c2 = arith.constant 2 : index
      %c0_10 = arith.constant 0 : index
      %13 = vector.load %arg2[%c0_9, %12, %c2, %c0_10] : memref<1x10x10x60xbf16, #tpu.memory_space<vmem>>, vector<1x1x4x60xbf16>
      %14 = vector.shape_cast %13 : vector<1x1x4x60xbf16> to vector<4x60xbf16>
      %c0_11 = arith.constant 0 : index
      %15 = arith.index_cast %5 : i32 to index
      %c3 = arith.constant 3 : index
      %c0_12 = arith.constant 0 : index
      %16 = vector.load %arg2[%c0_11, %15, %c3, %c0_12] : memref<1x10x10x60xbf16, #tpu.memory_space<vmem>>, vector<1x1x4x60xbf16>
      %17 = vector.shape_cast %16 : vector<1x1x4x60xbf16> to vector<4x60xbf16>
      %c0_13 = arith.constant 0 : index
      %18 = arith.index_cast %5 : i32 to index
      %c4 = arith.constant 4 : index
      %c0_14 = arith.constant 0 : index
      %19 = vector.load %arg2[%c0_13, %18, %c4, %c0_14] : memref<1x10x10x60xbf16, #tpu.memory_space<vmem>>, vector<1x1x4x60xbf16>
      %20 = vector.shape_cast %19 : vector<1x1x4x60xbf16> to vector<4x60xbf16>
      %c0_15 = arith.constant 0 : index
      %21 = arith.index_cast %5 : i32 to index
      %c5 = arith.constant 5 : index
      %c0_16 = arith.constant 0 : index
      %22 = vector.load %arg2[%c0_15, %21, %c5, %c0_16] : memref<1x10x10x60xbf16, #tpu.memory_space<vmem>>, vector<1x1x4x60xbf16>
      %23 = vector.shape_cast %22 : vector<1x1x4x60xbf16> to vector<4x60xbf16>
      %c0_17 = arith.constant 0 : index
      %24 = arith.index_cast %5 : i32 to index
      %c6 = arith.constant 6 : index
      %c0_18 = arith.constant 0 : index
      %25 = vector.load %arg2[%c0_17, %24, %c6, %c0_18] : memref<1x10x10x60xbf16, #tpu.memory_space<vmem>>, vector<1x1x4x60xbf16>
      %26 = vector.shape_cast %25 : vector<1x1x4x60xbf16> to vector<4x60xbf16>
      %27 = tpu.concatenate %8, %11, %14, %17, %20, %23, %26 in 1 : vector<4x60xbf16>, vector<4x60xbf16>, vector<4x60xbf16>, vector<4x60xbf16>, vector<4x60xbf16>, vector<4x60xbf16>, vector<4x60xbf16> -> vector<4x420xbf16>
      %c0_19 = arith.constant 0 : index
      %c0_20 = arith.constant 0 : index
      %c0_21 = arith.constant 0 : index
      %28 = vector.load %arg3[%c0_19, %c0_20, %c0_21] : memref<7x420x30xbf16, #tpu.memory_space<vmem>>, vector<1x420x30xbf16>
      %29 = vector.shape_cast %28 : vector<1x420x30xbf16> to vector<420x30xbf16>
      %cst_22 = arith.constant dense<0.000000e+00> : vector<4x30xf32>
      %30 = tpu.matmul %27, %29, %cst_22 {dimension_numbers = #tpu.dot_dimension_numbers<[1], [0], [0], [1], [0, 0, 1, 1], [], []>} : vector<4x420xbf16>, vector<420x30xbf16>, vector<4x30xf32> -> vector<4x30xf32>
      %31 = arith.addf %4, %30 : vector<4x30xf32>
      %c1_i32_23 = arith.constant 1 : i32
      %32 = arith.addi %3, %c1_i32_23 : i32
      %c0_24 = arith.constant 0 : index
      %33 = arith.index_cast %32 : i32 to index
      %c0_25 = arith.constant 0 : index
      %c0_26 = arith.constant 0 : index
      %34 = vector.load %arg2[%c0_24, %33, %c0_25, %c0_26] : memref<1x10x10x60xbf16, #tpu.memory_space<vmem>>, vector<1x1x4x60xbf16>
      %35 = vector.shape_cast %34 : vector<1x1x4x60xbf16> to vector<4x60xbf16>
      %c0_27 = arith.constant 0 : index
      %36 = arith.index_cast %32 : i32 to index
      %c1_28 = arith.constant 1 : index
      %c0_29 = arith.constant 0 : index
      %37 = vector.load %arg2[%c0_27, %36, %c1_28, %c0_29] : memref<1x10x10x60xbf16, #tpu.memory_space<vmem>>, vector<1x1x4x60xbf16>
      %38 = vector.shape_cast %37 : vector<1x1x4x60xbf16> to vector<4x60xbf16>
      %c0_30 = arith.constant 0 : index
      %39 = arith.index_cast %32 : i32 to index
      %c2_31 = arith.constant 2 : index
      %c0_32 = arith.constant 0 : index
      %40 = vector.load %arg2[%c0_30, %39, %c2_31, %c0_32] : memref<1x10x10x60xbf16, #tpu.memory_space<vmem>>, vector<1x1x4x60xbf16>
      %41 = vector.shape_cast %40 : vector<1x1x4x60xbf16> to vector<4x60xbf16>
      %c0_33 = arith.constant 0 : index
      %42 = arith.index_cast %32 : i32 to index
      %c3_34 = arith.constant 3 : index
      %c0_35 = arith.constant 0 : index
      %43 = vector.load %arg2[%c0_33, %42, %c3_34, %c0_35] : memref<1x10x10x60xbf16, #tpu.memory_space<vmem>>, vector<1x1x4x60xbf16>
      %44 = vector.shape_cast %43 : vector<1x1x4x60xbf16> to vector<4x60xbf16>
      %c0_36 = arith.constant 0 : index
      %45 = arith.index_cast %32 : i32 to index
      %c4_37 = arith.constant 4 : index
      %c0_38 = arith.constant 0 : index
      %46 = vector.load %arg2[%c0_36, %45, %c4_37, %c0_38] : memref<1x10x10x60xbf16, #tpu.memory_space<vmem>>, vector<1x1x4x60xbf16>
      %47 = vector.shape_cast %46 : vector<1x1x4x60xbf16> to vector<4x60xbf16>
      %c0_39 = arith.constant 0 : index
      %48 = arith.index_cast %32 : i32 to index
      %c5_40 = arith.constant 5 : index
      %c0_41 = arith.constant 0 : index
      %49 = vector.load %arg2[%c0_39, %48, %c5_40, %c0_41] : memref<1x10x10x60xbf16, #tpu.memory_space<vmem>>, vector<1x1x4x60xbf16>
      %50 = vector.shape_cast %49 : vector<1x1x4x60xbf16> to vector<4x60xbf16>
      %c0_42 = arith.constant 0 : index
      %51 = arith.index_cast %32 : i32 to index
      %c6_43 = arith.constant 6 : index
      %c0_44 = arith.constant 0 : index
      %52 = vector.load %arg2[%c0_42, %51, %c6_43, %c0_44] : memref<1x10x10x60xbf16, #tpu.memory_space<vmem>>, vector<1x1x4x60xbf16>
      %53 = vector.shape_cast %52 : vector<1x1x4x60xbf16> to vector<4x60xbf16>
      %54 = tpu.concatenate %35, %38, %41, %44, %47, %50, %53 in 1 : vector<4x60xbf16>, vector<4x60xbf16>, vector<4x60xbf16>, vector<4x60xbf16>, vector<4x60xbf16>, vector<4x60xbf16>, vector<4x60xbf16> -> vector<4x420xbf16>
      %c1_45 = arith.constant 1 : index
      %c0_46 = arith.constant 0 : index
      %c0_47 = arith.constant 0 : index
      %55 = vector.load %arg3[%c1_45, %c0_46, %c0_47] : memref<7x420x30xbf16, #tpu.memory_space<vmem>>, vector<1x420x30xbf16>
      %56 = vector.shape_cast %55 : vector<1x420x30xbf16> to vector<420x30xbf16>
      %cst_48 = arith.constant dense<0.000000e+00> : vector<4x30xf32>
      %57 = tpu.matmul %54, %56, %cst_48 {dimension_numbers = #tpu.dot_dimension_numbers<[1], [0], [0], [1], [0, 0, 1, 1], [], []>} : vector<4x420xbf16>, vector<420x30xbf16>, vector<4x30xf32> -> vector<4x30xf32>
      %58 = arith.addf %31, %57 : vector<4x30xf32>
      %c2_i32 = arith.constant 2 : i32
      %59 = arith.addi %3, %c2_i32 : i32
      %c0_49 = arith.constant 0 : index
      %60 = arith.index_cast %59 : i32 to index
      %c0_50 = arith.constant 0 : index
      %c0_51 = arith.constant 0 : index
      %61 = vector.load %arg2[%c0_49, %60, %c0_50, %c0_51] : memref<1x10x10x60xbf16, #tpu.memory_space<vmem>>, vector<1x1x4x60xbf16>
      %62 = vector.shape_cast %61 : vector<1x1x4x60xbf16> to vector<4x60xbf16>
      %c0_52 = arith.constant 0 : index
      %63 = arith.index_cast %59 : i32 to index
      %c1_53 = arith.constant 1 : index
      %c0_54 = arith.constant 0 : index
      %64 = vector.load %arg2[%c0_52, %63, %c1_53, %c0_54] : memref<1x10x10x60xbf16, #tpu.memory_space<vmem>>, vector<1x1x4x60xbf16>
      %65 = vector.shape_cast %64 : vector<1x1x4x60xbf16> to vector<4x60xbf16>
      %c0_55 = arith.constant 0 : index
      %66 = arith.index_cast %59 : i32 to index
      %c2_56 = arith.constant 2 : index
      %c0_57 = arith.constant 0 : index
      %67 = vector.load %arg2[%c0_55, %66, %c2_56, %c0_57] : memref<1x10x10x60xbf16, #tpu.memory_space<vmem>>, vector<1x1x4x60xbf16>
      %68 = vector.shape_cast %67 : vector<1x1x4x60xbf16> to vector<4x60xbf16>
      %c0_58 = arith.constant 0 : index
      %69 = arith.index_cast %59 : i32 to index
      %c3_59 = arith.constant 3 : index
      %c0_60 = arith.constant 0 : index
      %70 = vector.load %arg2[%c0_58, %69, %c3_59, %c0_60] : memref<1x10x10x60xbf16, #tpu.memory_space<vmem>>, vector<1x1x4x60xbf16>
      %71 = vector.shape_cast %70 : vector<1x1x4x60xbf16> to vector<4x60xbf16>
      %c0_61 = arith.constant 0 : index
      %72 = arith.index_cast %59 : i32 to index
      %c4_62 = arith.constant 4 : index
      %c0_63 = arith.constant 0 : index
      %73 = vector.load %arg2[%c0_61, %72, %c4_62, %c0_63] : memref<1x10x10x60xbf16, #tpu.memory_space<vmem>>, vector<1x1x4x60xbf16>
      %74 = vector.shape_cast %73 : vector<1x1x4x60xbf16> to vector<4x60xbf16>
      %c0_64 = arith.constant 0 : index
      %75 = arith.index_cast %59 : i32 to index
      %c5_65 = arith.constant 5 : index
      %c0_66 = arith.constant 0 : index
      %76 = vector.load %arg2[%c0_64, %75, %c5_65, %c0_66] : memref<1x10x10x60xbf16, #tpu.memory_space<vmem>>, vector<1x1x4x60xbf16>
      %77 = vector.shape_cast %76 : vector<1x1x4x60xbf16> to vector<4x60xbf16>
      %c0_67 = arith.constant 0 : index
      %78 = arith.index_cast %59 : i32 to index
      %c6_68 = arith.constant 6 : index
      %c0_69 = arith.constant 0 : index
      %79 = vector.load %arg2[%c0_67, %78, %c6_68, %c0_69] : memref<1x10x10x60xbf16, #tpu.memory_space<vmem>>, vector<1x1x4x60xbf16>
      %80 = vector.shape_cast %79 : vector<1x1x4x60xbf16> to vector<4x60xbf16>
      %81 = tpu.concatenate %62, %65, %68, %71, %74, %77, %80 in 1 : vector<4x60xbf16>, vector<4x60xbf16>, vector<4x60xbf16>, vector<4x60xbf16>, vector<4x60xbf16>, vector<4x60xbf16>, vector<4x60xbf16> -> vector<4x420xbf16>
      %c2_70 = arith.constant 2 : index
      %c0_71 = arith.constant 0 : index
      %c0_72 = arith.constant 0 : index
      %82 = vector.load %arg3[%c2_70, %c0_71, %c0_72] : memref<7x420x30xbf16, #tpu.memory_space<vmem>>, vector<1x420x30xbf16>
      %83 = vector.shape_cast %82 : vector<1x420x30xbf16> to vector<420x30xbf16>
      %cst_73 = arith.constant dense<0.000000e+00> : vector<4x30xf32>
      %84 = tpu.matmul %81, %83, %cst_73 {dimension_numbers = #tpu.dot_dimension_numbers<[1], [0], [0], [1], [0, 0, 1, 1], [], []>} : vector<4x420xbf16>, vector<420x30xbf16>, vector<4x30xf32> -> vector<4x30xf32>
      %85 = arith.addf %58, %84 : vector<4x30xf32>
      %c3_i32 = arith.constant 3 : i32
      %86 = arith.addi %3, %c3_i32 : i32
      %c0_74 = arith.constant 0 : index
      %87 = arith.index_cast %86 : i32 to index
      %c0_75 = arith.constant 0 : index
      %c0_76 = arith.constant 0 : index
      %88 = vector.load %arg2[%c0_74, %87, %c0_75, %c0_76] : memref<1x10x10x60xbf16, #tpu.memory_space<vmem>>, vector<1x1x4x60xbf16>
      %89 = vector.shape_cast %88 : vector<1x1x4x60xbf16> to vector<4x60xbf16>
      %c0_77 = arith.constant 0 : index
      %90 = arith.index_cast %86 : i32 to index
      %c1_78 = arith.constant 1 : index
      %c0_79 = arith.constant 0 : index
      %91 = vector.load %arg2[%c0_77, %90, %c1_78, %c0_79] : memref<1x10x10x60xbf16, #tpu.memory_space<vmem>>, vector<1x1x4x60xbf16>
      %92 = vector.shape_cast %91 : vector<1x1x4x60xbf16> to vector<4x60xbf16>
      %c0_80 = arith.constant 0 : index
      %93 = arith.index_cast %86 : i32 to index
      %c2_81 = arith.constant 2 : index
      %c0_82 = arith.constant 0 : index
      %94 = vector.load %arg2[%c0_80, %93, %c2_81, %c0_82] : memref<1x10x10x60xbf16, #tpu.memory_space<vmem>>, vector<1x1x4x60xbf16>
      %95 = vector.shape_cast %94 : vector<1x1x4x60xbf16> to vector<4x60xbf16>
      %c0_83 = arith.constant 0 : index
      %96 = arith.index_cast %86 : i32 to index
      %c3_84 = arith.constant 3 : index
      %c0_85 = arith.constant 0 : index
      %97 = vector.load %arg2[%c0_83, %96, %c3_84, %c0_85] : memref<1x10x10x60xbf16, #tpu.memory_space<vmem>>, vector<1x1x4x60xbf16>
      %98 = vector.shape_cast %97 : vector<1x1x4x60xbf16> to vector<4x60xbf16>
      %c0_86 = arith.constant 0 : index
      %99 = arith.index_cast %86 : i32 to index
      %c4_87 = arith.constant 4 : index
      %c0_88 = arith.constant 0 : index
      %100 = vector.load %arg2[%c0_86, %99, %c4_87, %c0_88] : memref<1x10x10x60xbf16, #tpu.memory_space<vmem>>, vector<1x1x4x60xbf16>
      %101 = vector.shape_cast %100 : vector<1x1x4x60xbf16> to vector<4x60xbf16>
      %c0_89 = arith.constant 0 : index
      %102 = arith.index_cast %86 : i32 to index
      %c5_90 = arith.constant 5 : index
      %c0_91 = arith.constant 0 : index
      %103 = vector.load %arg2[%c0_89, %102, %c5_90, %c0_91] : memref<1x10x10x60xbf16, #tpu.memory_space<vmem>>, vector<1x1x4x60xbf16>
      %104 = vector.shape_cast %103 : vector<1x1x4x60xbf16> to vector<4x60xbf16>
      %c0_92 = arith.constant 0 : index
      %105 = arith.index_cast %86 : i32 to index
      %c6_93 = arith.constant 6 : index
      %c0_94 = arith.constant 0 : index
      %106 = vector.load %arg2[%c0_92, %105, %c6_93, %c0_94] : memref<1x10x10x60xbf16, #tpu.memory_space<vmem>>, vector<1x1x4x60xbf16>
      %107 = vector.shape_cast %106 : vector<1x1x4x60xbf16> to vector<4x60xbf16>
      %108 = tpu.concatenate %89, %92, %95, %98, %101, %104, %107 in 1 : vector<4x60xbf16>, vector<4x60xbf16>, vector<4x60xbf16>, vector<4x60xbf16>, vector<4x60xbf16>, vector<4x60xbf16>, vector<4x60xbf16> -> vector<4x420xbf16>
      %c3_95 = arith.constant 3 : index
      %c0_96 = arith.constant 0 : index
      %c0_97 = arith.constant 0 : index
      %109 = vector.load %arg3[%c3_95, %c0_96, %c0_97] : memref<7x420x30xbf16, #tpu.memory_space<vmem>>, vector<1x420x30xbf16>
      %110 = vector.shape_cast %109 : vector<1x420x30xbf16> to vector<420x30xbf16>
      %cst_98 = arith.constant dense<0.000000e+00> : vector<4x30xf32>
      %111 = tpu.matmul %108, %110, %cst_98 {dimension_numbers = #tpu.dot_dimension_numbers<[1], [0], [0], [1], [0, 0, 1, 1], [], []>} : vector<4x420xbf16>, vector<420x30xbf16>, vector<4x30xf32> -> vector<4x30xf32>
      %112 = arith.addf %85, %111 : vector<4x30xf32>
      %c4_i32_99 = arith.constant 4 : i32
      %113 = arith.addi %3, %c4_i32_99 : i32
      %c0_100 = arith.constant 0 : index
      %114 = arith.index_cast %113 : i32 to index
      %c0_101 = arith.constant 0 : index
      %c0_102 = arith.constant 0 : index
      %115 = vector.load %arg2[%c0_100, %114, %c0_101, %c0_102] : memref<1x10x10x60xbf16, #tpu.memory_space<vmem>>, vector<1x1x4x60xbf16>
      %116 = vector.shape_cast %115 : vector<1x1x4x60xbf16> to vector<4x60xbf16>
      %c0_103 = arith.constant 0 : index
      %117 = arith.index_cast %113 : i32 to index
      %c1_104 = arith.constant 1 : index
      %c0_105 = arith.constant 0 : index
      %118 = vector.load %arg2[%c0_103, %117, %c1_104, %c0_105] : memref<1x10x10x60xbf16, #tpu.memory_space<vmem>>, vector<1x1x4x60xbf16>
      %119 = vector.shape_cast %118 : vector<1x1x4x60xbf16> to vector<4x60xbf16>
      %c0_106 = arith.constant 0 : index
      %120 = arith.index_cast %113 : i32 to index
      %c2_107 = arith.constant 2 : index
      %c0_108 = arith.constant 0 : index
      %121 = vector.load %arg2[%c0_106, %120, %c2_107, %c0_108] : memref<1x10x10x60xbf16, #tpu.memory_space<vmem>>, vector<1x1x4x60xbf16>
      %122 = vector.shape_cast %121 : vector<1x1x4x60xbf16> to vector<4x60xbf16>
      %c0_109 = arith.constant 0 : index
      %123 = arith.index_cast %113 : i32 to index
      %c3_110 = arith.constant 3 : index
      %c0_111 = arith.constant 0 : index
      %124 = vector.load %arg2[%c0_109, %123, %c3_110, %c0_111] : memref<1x10x10x60xbf16, #tpu.memory_space<vmem>>, vector<1x1x4x60xbf16>
      %125 = vector.shape_cast %124 : vector<1x1x4x60xbf16> to vector<4x60xbf16>
      %c0_112 = arith.constant 0 : index
      %126 = arith.index_cast %113 : i32 to index
      %c4_113 = arith.constant 4 : index
      %c0_114 = arith.constant 0 : index
      %127 = vector.load %arg2[%c0_112, %126, %c4_113, %c0_114] : memref<1x10x10x60xbf16, #tpu.memory_space<vmem>>, vector<1x1x4x60xbf16>
      %128 = vector.shape_cast %127 : vector<1x1x4x60xbf16> to vector<4x60xbf16>
      %c0_115 = arith.constant 0 : index
      %129 = arith.index_cast %113 : i32 to index
      %c5_116 = arith.constant 5 : index
      %c0_117 = arith.constant 0 : index
      %130 = vector.load %arg2[%c0_115, %129, %c5_116, %c0_117] : memref<1x10x10x60xbf16, #tpu.memory_space<vmem>>, vector<1x1x4x60xbf16>
      %131 = vector.shape_cast %130 : vector<1x1x4x60xbf16> to vector<4x60xbf16>
      %c0_118 = arith.constant 0 : index
      %132 = arith.index_cast %113 : i32 to index
      %c6_119 = arith.constant 6 : index
      %c0_120 = arith.constant 0 : index
      %133 = vector.load %arg2[%c0_118, %132, %c6_119, %c0_120] : memref<1x10x10x60xbf16, #tpu.memory_space<vmem>>, vector<1x1x4x60xbf16>
      %134 = vector.shape_cast %133 : vector<1x1x4x60xbf16> to vector<4x60xbf16>
      %135 = tpu.concatenate %116, %119, %122, %125, %128, %131, %134 in 1 : vector<4x60xbf16>, vector<4x60xbf16>, vector<4x60xbf16>, vector<4x60xbf16>, vector<4x60xbf16>, vector<4x60xbf16>, vector<4x60xbf16> -> vector<4x420xbf16>
      %c4_121 = arith.constant 4 : index
      %c0_122 = arith.constant 0 : index
      %c0_123 = arith.constant 0 : index
      %136 = vector.load %arg3[%c4_121, %c0_122, %c0_123] : memref<7x420x30xbf16, #tpu.memory_space<vmem>>, vector<1x420x30xbf16>
      %137 = vector.shape_cast %136 : vector<1x420x30xbf16> to vector<420x30xbf16>
      %cst_124 = arith.constant dense<0.000000e+00> : vector<4x30xf32>
      %138 = tpu.matmul %135, %137, %cst_124 {dimension_numbers = #tpu.dot_dimension_numbers<[1], [0], [0], [1], [0, 0, 1, 1], [], []>} : vector<4x420xbf16>, vector<420x30xbf16>, vector<4x30xf32> -> vector<4x30xf32>
      %139 = arith.addf %112, %138 : vector<4x30xf32>
      %c5_i32 = arith.constant 5 : i32
      %140 = arith.addi %3, %c5_i32 : i32
      %c0_125 = arith.constant 0 : index
      %141 = arith.index_cast %140 : i32 to index
      %c0_126 = arith.constant 0 : index
      %c0_127 = arith.constant 0 : index
      %142 = vector.load %arg2[%c0_125, %141, %c0_126, %c0_127] : memref<1x10x10x60xbf16, #tpu.memory_space<vmem>>, vector<1x1x4x60xbf16>
      %143 = vector.shape_cast %142 : vector<1x1x4x60xbf16> to vector<4x60xbf16>
      %c0_128 = arith.constant 0 : index
      %144 = arith.index_cast %140 : i32 to index
      %c1_129 = arith.constant 1 : index
      %c0_130 = arith.constant 0 : index
      %145 = vector.load %arg2[%c0_128, %144, %c1_129, %c0_130] : memref<1x10x10x60xbf16, #tpu.memory_space<vmem>>, vector<1x1x4x60xbf16>
      %146 = vector.shape_cast %145 : vector<1x1x4x60xbf16> to vector<4x60xbf16>
      %c0_131 = arith.constant 0 : index
      %147 = arith.index_cast %140 : i32 to index
      %c2_132 = arith.constant 2 : index
      %c0_133 = arith.constant 0 : index
      %148 = vector.load %arg2[%c0_131, %147, %c2_132, %c0_133] : memref<1x10x10x60xbf16, #tpu.memory_space<vmem>>, vector<1x1x4x60xbf16>
      %149 = vector.shape_cast %148 : vector<1x1x4x60xbf16> to vector<4x60xbf16>
      %c0_134 = arith.constant 0 : index
      %150 = arith.index_cast %140 : i32 to index
      %c3_135 = arith.constant 3 : index
      %c0_136 = arith.constant 0 : index
      %151 = vector.load %arg2[%c0_134, %150, %c3_135, %c0_136] : memref<1x10x10x60xbf16, #tpu.memory_space<vmem>>, vector<1x1x4x60xbf16>
      %152 = vector.shape_cast %151 : vector<1x1x4x60xbf16> to vector<4x60xbf16>
      %c0_137 = arith.constant 0 : index
      %153 = arith.index_cast %140 : i32 to index
      %c4_138 = arith.constant 4 : index
      %c0_139 = arith.constant 0 : index
      %154 = vector.load %arg2[%c0_137, %153, %c4_138, %c0_139] : memref<1x10x10x60xbf16, #tpu.memory_space<vmem>>, vector<1x1x4x60xbf16>
      %155 = vector.shape_cast %154 : vector<1x1x4x60xbf16> to vector<4x60xbf16>
      %c0_140 = arith.constant 0 : index
      %156 = arith.index_cast %140 : i32 to index
      %c5_141 = arith.constant 5 : index
      %c0_142 = arith.constant 0 : index
      %157 = vector.load %arg2[%c0_140, %156, %c5_141, %c0_142] : memref<1x10x10x60xbf16, #tpu.memory_space<vmem>>, vector<1x1x4x60xbf16>
      %158 = vector.shape_cast %157 : vector<1x1x4x60xbf16> to vector<4x60xbf16>
      %c0_143 = arith.constant 0 : index
      %159 = arith.index_cast %140 : i32 to index
      %c6_144 = arith.constant 6 : index
      %c0_145 = arith.constant 0 : index
      %160 = vector.load %arg2[%c0_143, %159, %c6_144, %c0_145] : memref<1x10x10x60xbf16, #tpu.memory_space<vmem>>, vector<1x1x4x60xbf16>
      %161 = vector.shape_cast %160 : vector<1x1x4x60xbf16> to vector<4x60xbf16>
      %162 = tpu.concatenate %143, %146, %149, %152, %155, %158, %161 in 1 : vector<4x60xbf16>, vector<4x60xbf16>, vector<4x60xbf16>, vector<4x60xbf16>, vector<4x60xbf16>, vector<4x60xbf16>, vector<4x60xbf16> -> vector<4x420xbf16>
      %c5_146 = arith.constant 5 : index
      %c0_147 = arith.constant 0 : index
      %c0_148 = arith.constant 0 : index
      %163 = vector.load %arg3[%c5_146, %c0_147, %c0_148] : memref<7x420x30xbf16, #tpu.memory_space<vmem>>, vector<1x420x30xbf16>
      %164 = vector.shape_cast %163 : vector<1x420x30xbf16> to vector<420x30xbf16>
      %cst_149 = arith.constant dense<0.000000e+00> : vector<4x30xf32>
      %165 = tpu.matmul %162, %164, %cst_149 {dimension_numbers = #tpu.dot_dimension_numbers<[1], [0], [0], [1], [0, 0, 1, 1], [], []>} : vector<4x420xbf16>, vector<420x30xbf16>, vector<4x30xf32> -> vector<4x30xf32>
      %166 = arith.addf %139, %165 : vector<4x30xf32>
      %c6_i32 = arith.constant 6 : i32
      %167 = arith.addi %3, %c6_i32 : i32
      %c0_150 = arith.constant 0 : index
      %168 = arith.index_cast %167 : i32 to index
      %c0_151 = arith.constant 0 : index
      %c0_152 = arith.constant 0 : index
      %169 = vector.load %arg2[%c0_150, %168, %c0_151, %c0_152] : memref<1x10x10x60xbf16, #tpu.memory_space<vmem>>, vector<1x1x4x60xbf16>
      %170 = vector.shape_cast %169 : vector<1x1x4x60xbf16> to vector<4x60xbf16>
      %c0_153 = arith.constant 0 : index
      %171 = arith.index_cast %167 : i32 to index
      %c1_154 = arith.constant 1 : index
      %c0_155 = arith.constant 0 : index
      %172 = vector.load %arg2[%c0_153, %171, %c1_154, %c0_155] : memref<1x10x10x60xbf16, #tpu.memory_space<vmem>>, vector<1x1x4x60xbf16>
      %173 = vector.shape_cast %172 : vector<1x1x4x60xbf16> to vector<4x60xbf16>
      %c0_156 = arith.constant 0 : index
      %174 = arith.index_cast %167 : i32 to index
      %c2_157 = arith.constant 2 : index
      %c0_158 = arith.constant 0 : index
      %175 = vector.load %arg2[%c0_156, %174, %c2_157, %c0_158] : memref<1x10x10x60xbf16, #tpu.memory_space<vmem>>, vector<1x1x4x60xbf16>
      %176 = vector.shape_cast %175 : vector<1x1x4x60xbf16> to vector<4x60xbf16>
      %c0_159 = arith.constant 0 : index
      %177 = arith.index_cast %167 : i32 to index
      %c3_160 = arith.constant 3 : index
      %c0_161 = arith.constant 0 : index
      %178 = vector.load %arg2[%c0_159, %177, %c3_160, %c0_161] : memref<1x10x10x60xbf16, #tpu.memory_space<vmem>>, vector<1x1x4x60xbf16>
      %179 = vector.shape_cast %178 : vector<1x1x4x60xbf16> to vector<4x60xbf16>
      %c0_162 = arith.constant 0 : index
      %180 = arith.index_cast %167 : i32 to index
      %c4_163 = arith.constant 4 : index
      %c0_164 = arith.constant 0 : index
      %181 = vector.load %arg2[%c0_162, %180, %c4_163, %c0_164] : memref<1x10x10x60xbf16, #tpu.memory_space<vmem>>, vector<1x1x4x60xbf16>
      %182 = vector.shape_cast %181 : vector<1x1x4x60xbf16> to vector<4x60xbf16>
      %c0_165 = arith.constant 0 : index
      %183 = arith.index_cast %167 : i32 to index
      %c5_166 = arith.constant 5 : index
      %c0_167 = arith.constant 0 : index
      %184 = vector.load %arg2[%c0_165, %183, %c5_166, %c0_167] : memref<1x10x10x60xbf16, #tpu.memory_space<vmem>>, vector<1x1x4x60xbf16>
      %185 = vector.shape_cast %184 : vector<1x1x4x60xbf16> to vector<4x60xbf16>
      %c0_168 = arith.constant 0 : index
      %186 = arith.index_cast %167 : i32 to index
      %c6_169 = arith.constant 6 : index
      %c0_170 = arith.constant 0 : index
      %187 = vector.load %arg2[%c0_168, %186, %c6_169, %c0_170] : memref<1x10x10x60xbf16, #tpu.memory_space<vmem>>, vector<1x1x4x60xbf16>
      %188 = vector.shape_cast %187 : vector<1x1x4x60xbf16> to vector<4x60xbf16>
      %189 = tpu.concatenate %170, %173, %176, %179, %182, %185, %188 in 1 : vector<4x60xbf16>, vector<4x60xbf16>, vector<4x60xbf16>, vector<4x60xbf16>, vector<4x60xbf16>, vector<4x60xbf16>, vector<4x60xbf16> -> vector<4x420xbf16>
      %c6_171 = arith.constant 6 : index
      %c0_172 = arith.constant 0 : index
      %c0_173 = arith.constant 0 : index
      %190 = vector.load %arg3[%c6_171, %c0_172, %c0_173] : memref<7x420x30xbf16, #tpu.memory_space<vmem>>, vector<1x420x30xbf16>
      %191 = vector.shape_cast %190 : vector<1x420x30xbf16> to vector<420x30xbf16>
      %cst_174 = arith.constant dense<0.000000e+00> : vector<4x30xf32>
      %192 = tpu.matmul %189, %191, %cst_174 {dimension_numbers = #tpu.dot_dimension_numbers<[1], [0], [0], [1], [0, 0, 1, 1], [], []>} : vector<4x420xbf16>, vector<420x30xbf16>, vector<4x30xf32> -> vector<4x30xf32>
      %193 = arith.addf %166, %192 : vector<4x30xf32>
      %194 = vector.broadcast %1 : vector<1x30xf32> to vector<4x30xf32>
      %195 = arith.addf %193, %194 : vector<4x30xf32>
      %cst_175 = arith.constant 0.000000e+00 : f32
      %196 = vector.broadcast %cst_175 : f32 to vector<4x30xf32>
      %197 = arith.maximumf %195, %196 : vector<4x30xf32>
      %198 = arith.truncf %197 : vector<4x30xf32> to vector<4x30xbf16>
      %c0_176 = arith.constant 0 : index
      %199 = arith.index_cast %arg6 : i32 to index
      %c0_177 = arith.constant 0 : index
      %c0_178 = arith.constant 0 : index
      %200 = vector.load %arg5[%c0_176, %199, %c0_177, %c0_178] : memref<1x4x4x30xbf16, #tpu.memory_space<vmem>>, vector<1x1x4x30xbf16>
      %201 = vector.shape_cast %200 : vector<1x1x4x30xbf16> to vector<4x30xbf16>
      %202 = vector.shape_cast %198 : vector<4x30xbf16> to vector<1x1x4x30xbf16>
      tpu.vector_store %arg5[%c0_176, %199, %c0_177, %c0_178], %202 {strides = array<i32>} : memref<1x4x4x30xbf16, #tpu.memory_space<vmem>>, vector<1x1x4x30xbf16>,
    }
    %c4_i32_2 = arith.constant 4 : i32
    return
  }
  func.func @transform_0(%arg0: i32, %arg1: i32) -> (i32, i32, i32, i32) {
    %c0_i32 = arith.constant 0 : i32
    %c0_i32_0 = arith.constant 0 : i32
    %c0_i32_1 = arith.constant 0 : i32
    %c0_i32_2 = arith.constant 0 : i32
    return %arg0, %c0_i32, %c0_i32_0, %c0_i32_1 : i32, i32, i32, i32
  }
  func.func @transform_1(%arg0: i32, %arg1: i32) -> (i32, i32, i32) {
    %c0_i32 = arith.constant 0 : i32
    %c0_i32_0 = arith.constant 0 : i32
    %c0_i32_1 = arith.constant 0 : i32
    %c0_i32_2 = arith.constant 0 : i32
    return %c0_i32, %c0_i32_0, %c0_i32_1 : i32, i32, i32
  }
  func.func @transform_2(%arg0: i32, %arg1: i32) -> (i32, i32) {
    %c0_i32 = arith.constant 0 : i32
    %c0_i32_0 = arith.constant 0 : i32
    %c0_i32_1 = arith.constant 0 : i32
    return %c0_i32, %c0_i32_0 : i32, i32
  }
  func.func @transform_3(%arg0: i32, %arg1: i32) -> (i32, i32, i32, i32) {
    %c0_i32 = arith.constant 0 : i32
    %c0_i32_0 = arith.constant 0 : i32
    %c0_i32_1 = arith.constant 0 : i32
    return %arg0, %arg1, %c0_i32, %c0_i32_0 : i32, i32, i32, i32
  }
}

module attributes {stable_mosaic.version = 11 : i64} {
  func.func @_fuse_upsample_kernel(%arg0: i32, %arg1: memref<1x4x4x30xbf16, #tpu.memory_space<vmem>>, %arg2: memref<1x1x30xf32, #tpu.memory_space<vmem>>, %arg3: memref<1x1xf32, #tpu.memory_space<vmem>>, %arg4: memref<16x4xf32, #tpu.memory_space<vmem>>, %arg5: memref<4x16xf32, #tpu.memory_space<vmem>>, %arg6: memref<1x16x16xf32, #tpu.memory_space<vmem>>) attributes {dimension_semantics = [#tpu.dimension_semantics<parallel>], iteration_bounds = array<i64: 2>, scalar_prefetch = 0 : i64, scratch_operands = 0 : i64, tpu.core_type = #tpu.core_type<tc>, window_params = [{transform_indices = @transform_0, window_bounds = array<i64: 1, 4, 4, 30>}, {pipeline_mode = #tpu.pipeline_mode<synchronous>, transform_indices = @transform_1, window_bounds = array<i64: 1, 1, 30>}, {pipeline_mode = #tpu.pipeline_mode<synchronous>, transform_indices = @transform_2, window_bounds = array<i64: 1, 1>}, {pipeline_mode = #tpu.pipeline_mode<synchronous>, transform_indices = @transform_3, window_bounds = array<i64: 16, 4>}, {pipeline_mode = #tpu.pipeline_mode<synchronous>, transform_indices = @transform_4, window_bounds = array<i64: 4, 16>}, {transform_indices = @transform_5, window_bounds = array<i64: 1, 16, 16>}]} {
    %c0 = arith.constant 0 : index
    %c0_0 = arith.constant 0 : index
    %c0_1 = arith.constant 0 : index
    %c0_2 = arith.constant 0 : index
    %0 = vector.load %arg1[%c0, %c0_0, %c0_1, %c0_2] : memref<1x4x4x30xbf16, #tpu.memory_space<vmem>>, vector<1x4x4x30xbf16>
    %1 = vector.shape_cast %0 : vector<1x4x4x30xbf16> to vector<4x4x30xbf16>
    %c0_3 = arith.constant 0 : index
    %c0_4 = arith.constant 0 : index
    %c0_5 = arith.constant 0 : index
    %2 = vector.load %arg2[%c0_3, %c0_4, %c0_5] : memref<1x1x30xf32, #tpu.memory_space<vmem>>, vector<1x1x30xf32>
    %3 = arith.extf %1 : vector<4x4x30xbf16> to vector<4x4x30xf32>
    %4 = vector.broadcast %2 : vector<1x1x30xf32> to vector<4x4x30xf32>
    %5 = arith.mulf %3, %4 : vector<4x4x30xf32>
    %cst = arith.constant dense<0.000000e+00> : vector<4x4xf32>
    %6 = vector.multi_reduction <add>, %5, %cst [2] : vector<4x4x30xf32> to vector<4x4xf32>
    %c0_6 = arith.constant 0 : index
    %c0_7 = arith.constant 0 : index
    %7 = vector.load %arg3[%c0_6, %c0_7] : memref<1x1xf32, #tpu.memory_space<vmem>>, vector<1x1xf32>
    %8 = vector.broadcast %7 : vector<1x1xf32> to vector<4x4xf32>
    %9 = arith.addf %6, %8 : vector<4x4xf32>
    %cst_8 = arith.constant 0.000000e+00 : f32
    %10 = vector.broadcast %cst_8 : f32 to vector<4x4xf32>
    %11 = arith.maximumf %9, %10 : vector<4x4xf32>
    %c0_9 = arith.constant 0 : index
    %c0_10 = arith.constant 0 : index
    %12 = vector.load %arg4[%c0_9, %c0_10] : memref<16x4xf32, #tpu.memory_space<vmem>>, vector<16x4xf32>
    %cst_11 = arith.constant dense<0.000000e+00> : vector<16x4xf32>
    %13 = tpu.matmul %12, %11, %cst_11 {dimension_numbers = #tpu.dot_dimension_numbers<[1], [0], [0], [1], [0, 0, 1, 1], [], []>} : vector<16x4xf32>, vector<4x4xf32>, vector<16x4xf32> -> vector<16x4xf32>
    %c0_12 = arith.constant 0 : index
    %c0_13 = arith.constant 0 : index
    %14 = vector.load %arg5[%c0_12, %c0_13] : memref<4x16xf32, #tpu.memory_space<vmem>>, vector<4x16xf32>
    %cst_14 = arith.constant dense<0.000000e+00> : vector<16x16xf32>
    %15 = tpu.matmul %13, %14, %cst_14 {dimension_numbers = #tpu.dot_dimension_numbers<[1], [0], [0], [1], [0, 0, 1, 1], [], []>} : vector<16x4xf32>, vector<4x16xf32>, vector<16x16xf32> -> vector<16x16xf32>
    %c0_15 = arith.constant 0 : index
    %c0_16 = arith.constant 0 : index
    %c0_17 = arith.constant 0 : index
    %16 = vector.load %arg6[%c0_15, %c0_16, %c0_17] : memref<1x16x16xf32, #tpu.memory_space<vmem>>, vector<1x16x16xf32>
    %17 = vector.shape_cast %16 : vector<1x16x16xf32> to vector<16x16xf32>
    %18 = vector.shape_cast %15 : vector<16x16xf32> to vector<1x16x16xf32>
    tpu.vector_store %arg6[%c0_15, %c0_16, %c0_17], %18 {strides = array<i32>} : memref<1x16x16xf32, #tpu.memory_space<vmem>>, vector<1x16x16xf32>,
    return
  }
  func.func @transform_0(%arg0: i32) -> (i32, i32, i32, i32) {
    %c0_i32 = arith.constant 0 : i32
    %c0_i32_0 = arith.constant 0 : i32
    %c0_i32_1 = arith.constant 0 : i32
    %c0_i32_2 = arith.constant 0 : i32
    return %arg0, %c0_i32, %c0_i32_0, %c0_i32_1 : i32, i32, i32, i32
  }
  func.func @transform_1(%arg0: i32) -> (i32, i32, i32) {
    %c0_i32 = arith.constant 0 : i32
    %c0_i32_0 = arith.constant 0 : i32
    %c0_i32_1 = arith.constant 0 : i32
    %c0_i32_2 = arith.constant 0 : i32
    return %c0_i32, %c0_i32_0, %c0_i32_1 : i32, i32, i32
  }
  func.func @transform_2(%arg0: i32) -> (i32, i32) {
    %c0_i32 = arith.constant 0 : i32
    %c0_i32_0 = arith.constant 0 : i32
    %c0_i32_1 = arith.constant 0 : i32
    return %c0_i32, %c0_i32_0 : i32, i32
  }
  func.func @transform_3(%arg0: i32) -> (i32, i32) {
    %c0_i32 = arith.constant 0 : i32
    %c0_i32_0 = arith.constant 0 : i32
    %c0_i32_1 = arith.constant 0 : i32
    return %c0_i32, %c0_i32_0 : i32, i32
  }
  func.func @transform_4(%arg0: i32) -> (i32, i32) {
    %c0_i32 = arith.constant 0 : i32
    %c0_i32_0 = arith.constant 0 : i32
    %c0_i32_1 = arith.constant 0 : i32
    return %c0_i32, %c0_i32_0 : i32, i32
  }
  func.func @transform_5(%arg0: i32) -> (i32, i32, i32) {
    %c0_i32 = arith.constant 0 : i32
    %c0_i32_0 = arith.constant 0 : i32
    %c0_i32_1 = arith.constant 0 : i32
    return %arg0, %c0_i32, %c0_i32_0 : i32, i32, i32
  }
}

</mosaic_0001>

<bundles_post_ra>
// kernel: mcnn_forward.5
= control target key start
LH: loop header
LB: loop body
LE: loop exit
PB: predicated region body
PF: predicated region fallthrough
CT: control target
= control target key end

     0   :  { %s1305_s12 = smov 0   ;;  %s1307_s13 = smov 0   ;;  %s1482_s0 = inlined_call_operand.vmem [shape: bf16[2,24,16,27], index: 0, kind: input, shape index: {}]   ;;  %s1483_s1 = inlined_call_operand.vmem [shape: bf16[9,27,60], index: 1, kind: input, shape index: {}]   ;;  %s1484_s2 = inlined_call_operand.vmem [shape: f32[1,60], index: 2, kind: input, shape index: {}]   ;;  %s1485_s3 = inlined_call_operand.vmem [shape: bf16[2,8,8,60], index: 3, kind: output, shape index: {}]  }
   0x1   :  { %s1309_s14 = smov 0  }
   0x2 LB: > { %s25_s15 = sadd.s32 1, %s1274_s13  ;;  %p970_p0 = scmp.ge.s32.totalorder %s1278_s14, 1  ;;  %s1278_s14 = sphi %s1309_s14, %s13_s14   ;;  %s1274_s13 = sphi %s1307_s13, %s1487_s13   ;;  %s1270_s12 = sphi %s1305_s12, %s1486_s12  }
   0x3   : > { %p27_p1 = scmp.ge.s32.totalorder %s25_s15, 2  ;;  %p151_p2 = scmp.lt.s32.totalorder %s1278_s14, 3 }
   0x5   : > { %s1489_s15 = smov (%p27_p1, %s25_s15), 0  ;;  %p152_p3 = pnand %p970_p0, %p151_p2 }
   0x6   : > { %p179_p4 = scmp.lt.s32.totalorder (!%p152_p3), %s1270_s12, 1  ;;  %s1338_s26 = smov (!%p152_p3), 0  }
   0x7   : > { %155 = sbr.rel (%p152_p3) target bundleno = 251 (0xfb), region = 32 }
   0xc   : > { %v1326_v0 = vld [vmem:[%s1484_s2] sm:$0x1]  ;;  %s1491_s12 = smov (!%p179_p4, %s1270_s12), 1 }
   0xd   : > { %s1218_s18 = smul.u32 192, %s1491_s12  ;;  %s1178_s19 = sshll.u32 %s1491_s12, 5 }
   0xe   : > { %s1331_s22 = scalar_lea.vmem %s1485_s3, %s1178_s19 }
   0xf   : > { %s1336_s25 = scalar_lea.vmem %s1482_s0, %s1218_s18 }
  0x10 LB: >> { %v995_v1 = vld [vmem:[%s1483_s1 + $0x18] sm:$0xf]  ;;  %v1187_v2 = vld [vmem:[%s1483_s1 + $0x18] sm:$0x30]  ;;  %vm245_vm0 = vcmask 1044480   ;;  %vm246_vm1 = vcmask 1045504   ;;  %s1282_s26 = sphi %s1338_s26, %s202_s26  }
  0x11   : >> { %v996_v3 = vor.u32 %v1187_v2, %v995_v1  ;;  %v1008_v4 = vld [vmem:[%s1483_s1 + $0x8] sm:$0xf]  ;;  %v1183_v5 = vld [vmem:[%s1483_s1 + $0x8] sm:$0x30]  ;;  %v1284_v6 = vmov 65535   ;;  %s1180_s12 = sshll.u32 %s1282_s26, 4 }
  0x12   : >> { %v247_v7 = vsel %vm245_vm0, 4294967295, %v1284_v6  ;;  %v1009_v8 = vor.u32 %v1183_v5, %v1008_v4  ;;  %v1029_v9 = vld [vmem:[%s1483_s1 + $0x28] sm:$0xf]  ;;  %v1191_v10 = vld [vmem:[%s1483_s1 + $0x28] sm:$0x30]  ;;  %s1380_s27 = scalar_lea.vmem %s1336_s25, %s1180_s12  ;;  %v1186_v21 = vld [vmem:[%s1483_s1 + $0x10] sm:$0xff] }
  0x13   : >> { %v1361_v11 = vsel %vm246_vm1, %v247_v7, 0  ;;  %v1030_v12 = vor.u32 %v1191_v10, %v1029_v9  ;;  %v1052_v13 = vld [vmem:[%s1483_s1 + $0x38] sm:$0xf]  ;;  %v1195_v16 = vld [vmem:[%s1483_s1 + $0x38] sm:$0x30]  ;;  %v1182_v22 = vld [vmem:[%s1483_s1] sm:$0xff] }
  0x14   : >> { %v250_v14 = vand.u32 %v996_v3, %v1361_v11  ;;  %v286_v15 = vand.u32 %v1009_v8, %v1361_v11  ;;  %v1074_v17 = vld [vmem:[%s1483_s1 + $0x48] sm:$0xf]  ;;  %v1199_v18 = vld [vmem:[%s1483_s1 + $0x48] sm:$0x30]  ;;  %v1053_v20 = vor.u32 %v1195_v16, %v1052_v13  ;;  %v1190_v23 = vld [vmem:[%s1483_s1 + $0x20] sm:$0xff]  ;;  %vm241_vm2 = vcmask 220160  }
  0x15   : >> { %v333_v19 = vand.u32 %v1030_v12, %v1361_v11  ;;  %v1075_v24 = vor.u32 %v1199_v18, %v1074_v17  ;;  %v1096_v25 = vld [vmem:[%s1483_s1 + $0x58] sm:$0xf]  ;;  %v1203_v26 = vld [vmem:[%s1483_s1 + $0x58] sm:$0x30]  ;;  %v1185_v27 = vld [vmem:[%s1380_s27 + $0x8] sm:$0xff]  ;;  %vm808_vm3 = vcmask 490496  }
  0x16   : >> { %258 = vmatpush.bf16.msra.mxu0 %v250_v14  ;;  %294 = vmatpush.bf16.msra.mxu1 %v286_v15  ;;  %v410_v28 = vand.u32 %v1053_v20, %v1361_v11  ;;  %v1181_v29 = vld [vmem:[%s1380_s27] sm:$0xff]  ;;  %v1097_v30 = vor.u32 %v1203_v26, %v1096_v25  ;;  %v1118_v31 = vld [vmem:[%s1483_s1 + $0x68] sm:$0xf]  ;;  %v1207_v32 = vld [vmem:[%s1483_s1 + $0x68] sm:$0x30]  ;;  %vm818_vm4 = vcmask 486400  }
  0x17   : >> { %341 = vmatpush.bf16.msra.mxu2 %v333_v19  ;;  %357 = vmatpush.bf16.msra.mxu3 %v250_v14  ;;  %v1189_v33 = vld [vmem:[%s1380_s27 + $0x10] sm:$0xff]  ;;  %v475_v34 = vand.u32 %v1075_v24, %v1361_v11  ;;  %v1119_v36 = vor.u32 %v1207_v32, %v1118_v31  ;;  %v1198_v38 = vld [vmem:[%s1483_s1 + $0x40] sm:$0xff]  ;;  %v1140_v42 = vld [vmem:[%s1483_s1 + $0x78] sm:$0xf] }
  0x18   : >> { %v1194_v35 = vld [vmem:[%s1483_s1 + $0x30] sm:$0xff]  ;;  %v540_v37 = vand.u32 %v1097_v30, %v1361_v11  ;;  %v1206_v41 = vld [vmem:[%s1483_s1 + $0x60] sm:$0xff]  ;;  %v1211_v43 = vld [vmem:[%s1483_s1 + $0x78] sm:$0x30] }
  0x19   : >> { %v605_v39 = vand.u32 %v1119_v36, %v1361_v11  ;;  %v1202_v40 = vld [vmem:[%s1483_s1 + $0x50] sm:$0xff]  ;;  %v1162_v44 = vld [vmem:[%s1483_s1 + $0x88] sm:$0xf]  ;;  %v1215_v45 = vld [vmem:[%s1483_s1 + $0x88] sm:$0x30]  ;;  %v1141_v46 = vor.u32 %v1211_v43, %v1140_v42 }
  0x1a   : >> { %259 = vmatpush.bf16.msra.mxu0 %v1186_v21  ;;  %295 = vmatpush.bf16.msra.mxu1 %v1182_v22  ;;  %v1163_v47 = vor.u32 %v1215_v45, %v1162_v44  ;;  %v1193_v48 = vld [vmem:[%s1380_s27 + $0x18] sm:$0xff]  ;;  %v1197_v49 = vld [vmem:[%s1380_s27 + $0x20] sm:$0xff]  ;;  %v1210_v52 = vld [vmem:[%s1483_s1 + $0x70] sm:$0xff] }
  0x1b   : >> { %342 = vmatpush.bf16.msra.mxu2 %v1190_v23  ;;  %358 = vmatpush.bf16.msra.mxu3 %v1186_v21  ;;  %v670_v50 = vand.u32 %v1141_v46, %v1361_v11  ;;  %v1214_v53 = vld [vmem:[%s1483_s1 + $0x80] sm:$0xff]  ;;  %v1201_v54 = vld [vmem:[%s1380_s27 + $0x28] sm:$0xff]  ;;  %v1205_v55 = vld [vmem:[%s1380_s27 + $0x30] sm:$0xff] }
  0x1c   : >> { %v735_v51 = vand.u32 %v1163_v47, %v1361_v11  ;;  %v1209_v56 = vld [vmem:[%s1380_s27 + $0x38] sm:$0xff]  ;;  %v1213_v57 = vld [vmem:[%s1380_s27 + $0x40] sm:$0xff]  ;;  %v1217_v58 = vld [vmem:[%s1380_s27 + $0x48] sm:$0xff]  ;;  %s1175_s27 = sshll.u32 %s1282_s26, 2  ;;  %s202_s26 = sadd.s32 1, %s1282_s26  }
  0x1d   : >> { %997 = vmatmul.msk.bf16.vlgmr.msra.gmra.mxu0 %vm241_vm2, %v1185_v27  ;;  %1010 = vmatmul.msk.bf16.vlgmr.msra.gmra.mxu1 %vm241_vm2, %v1181_v29  ;;  %s817_s18 = scalar_lea.vmem %s1331_s22, %s1175_s27  ;;  %p199_p5 = scmp.ge.s32.totalorder %s202_s26, 8  }
  0x1e   : >> { %371 = vmatpush.bf16.msrb.mxu0 %v286_v15  ;;  %418 = vmatpush.bf16.msrb.mxu1 %v410_v28 }
  0x1f   : >> { %1031 = vmatmul.msk.bf16.vlgmr.msra.gmra.mxu2 %vm241_vm2, %v1189_v33  ;;  %1032 = vmatmul.msk.bf16.vlgmr.msra.gmra.mxu3 %vm241_vm2, %v1189_v33 }
  0x20   : >> { %434 = vmatpush.bf16.msrb.mxu2 %v333_v19  ;;  %483 = vmatpush.bf16.msrb.mxu3 %v475_v34 }
  0x22   : >> { %372 = vmatpush.bf16.msrb.mxu0 %v1182_v22  ;;  %419 = vmatpush.bf16.msrb.mxu1 %v1194_v35 }
  0x24   : >> { %435 = vmatpush.bf16.msrb.mxu2 %v1190_v23  ;;  %484 = vmatpush.bf16.msrb.mxu3 %v1198_v38 }
  0x26   : >> { %499 = vmatpush.bf16.msra.mxu0 %v410_v28  ;;  %548 = vmatpush.bf16.msra.mxu1 %v540_v37 }
  0x28   : >> { %564 = vmatpush.bf16.msra.mxu2 %v475_v34  ;;  %613 = vmatpush.bf16.msra.mxu3 %v605_v39 }
  0x2a   : >> { %500 = vmatpush.bf16.msra.mxu0 %v1194_v35  ;;  %549 = vmatpush.bf16.msra.mxu1 %v1202_v40 }
  0x2c   : >> { %565 = vmatpush.bf16.msra.mxu2 %v1198_v38  ;;  %614 = vmatpush.bf16.msra.mxu3 %v1206_v41 }
  0x2d   : >> { %1033 = vmatmul.msk.bf16.vlgmr.msrb.gmra.mxu0 %vm241_vm2, %v1185_v27  ;;  %1054 = vmatmul.msk.bf16.vlgmr.msrb.gmra.mxu1 %vm241_vm2, %v1193_v48 }
  0x2e   : >> { %629 = vmatpush.bf16.msrb.mxu0 %v540_v37  ;;  %678 = vmatpush.bf16.msrb.mxu1 %v670_v50 }
  0x2f   : >> { %1055 = vmatmul.msk.bf16.vlgmr.msrb.gmra.mxu2 %vm241_vm2, %v1193_v48  ;;  %1076 = vmatmul.msk.bf16.vlgmr.msrb.gmra.mxu3 %vm241_vm2, %v1197_v49 }
  0x30   : >> { %694 = vmatpush.bf16.msrb.mxu2 %v605_v39  ;;  %743 = vmatpush.bf16.msrb.mxu3 %v735_v51 }
  0x32   : >> { %630 = vmatpush.bf16.msrb.mxu0 %v1202_v40  ;;  %679 = vmatpush.bf16.msrb.mxu1 %v1210_v52 }
  0x34   : >> { %695 = vmatpush.bf16.msrb.mxu2 %v1206_v41  ;;  %744 = vmatpush.bf16.msrb.mxu3 %v1214_v53 }
  0x3d   : >> { %1077 = vmatmul.msk.bf16.vlgmr.msra.gmra.mxu0 %vm241_vm2, %v1197_v49  ;;  %1098 = vmatmul.msk.bf16.vlgmr.msra.gmra.mxu1 %vm241_vm2, %v1201_v54 }
  0x3e   : >> { %759 = vmatpush.bf16.msra.mxu0 %v670_v50  ;;  %789 = vmatpush.bf16.msra.mxu1 %v735_v51 }
  0x3f   : >> { %1099 = vmatmul.msk.bf16.vlgmr.msra.gmra.mxu2 %vm241_vm2, %v1201_v54  ;;  %1120 = vmatmul.msk.bf16.vlgmr.msra.gmra.mxu3 %vm241_vm2, %v1205_v55 }
  0x42   : >> { %760 = vmatpush.bf16.msra.mxu0 %v1210_v52  ;;  %790 = vmatpush.bf16.msra.mxu1 %v1214_v53  ;;  %v802_v52 = vperm.slane %v1326_v0, 0 }
  0x4d   : >> { %1121 = vmatmul.msk.bf16.vlgmr.msrb.gmra.mxu0 %vm241_vm2, %v1205_v55  ;;  %1142 = vmatmul.msk.bf16.vlgmr.msrb.gmra.mxu1 %vm241_vm2, %v1209_v56 }
  0x4f   : >> { %1143 = vmatmul.msk.bf16.vlgmr.msrb.gmra.mxu2 %vm241_vm2, %v1209_v56  ;;  %1164 = vmatmul.msk.bf16.vlgmr.msrb.gmra.mxu3 %vm241_vm2, %v1213_v57 }
  0x5d   : >> { %1165 = vmatmul.msk.bf16.vlgmr.msra.gmra.mxu0 %vm241_vm2, %v1213_v57  ;;  %1174 = vmatmul.msk.bf16.vlgmr.msra.gmra.mxu1 %vm241_vm2, %v1217_v58 }
  0x9a   : >> { %v261_v59 = vpop.f32.mrf.mxu0  ;;  %v297_v60 = vpop.f32.mrf.mxu1 }
  0x9b   : >> { %v298_v22 = vadd.f32 %v297_v60, %v261_v59 }
  0xa2   : >> { %v344_v61 = vpop.f32.mrf.mxu2  ;;  %v360_v62 = vpop.f32.mrf.mxu3 }
  0xa3   : >> { %v263_v63 = vpop.f32.mrf.mxu0  ;;  %v299_v1 = vpop.f32.mrf.mxu1  ;;  %v349_v24 = vadd.f32 %v344_v61, %v298_v22 }
  0xa4   : >> { %v300_v33 = vadd.f32 %v299_v1, %v263_v63 }
  0xaa   : >> { %v346_v2 = vpop.f32.mrf.mxu2  ;;  %v362_v3 = vpop.f32.mrf.mxu3 }
  0xab   : >> { %v374_v4 = vpop.f32.mrf.mxu0  ;;  %v421_v5 = vpop.f32.mrf.mxu1  ;;  %v350_v37 = vadd.f32 %v346_v2, %v300_v33 }
  0xac   : >> { %v375_v23 = vadd.f32 %v374_v4, %v360_v62  ;;  %v426_v28 = vadd.f32 %v421_v5, %v349_v24 }
  0xb2   : >> { %v437_v6 = vpop.f32.mrf.mxu2  ;;  %v486_v7 = vpop.f32.mrf.mxu3 }
  0xb3   : >> { %v376_v8 = vpop.f32.mrf.mxu0  ;;  %v423_v9 = vpop.f32.mrf.mxu1  ;;  %v442_v25 = vadd.f32 %v437_v6, %v375_v23  ;;  %v491_v31 = vadd.f32 %v486_v7, %v426_v28 }
  0xb4   : >> { %v377_v34 = vadd.f32 %v376_v8, %v362_v3  ;;  %v427_v42 = vadd.f32 %v423_v9, %v350_v37 }
  0xba   : >> { %v439_v10 = vpop.f32.mrf.mxu2  ;;  %v488_v11 = vpop.f32.mrf.mxu3 }
  0xbb   : >> { %v502_v12 = vpop.f32.mrf.mxu0  ;;  %v551_v13 = vpop.f32.mrf.mxu1  ;;  %v443_v39 = vadd.f32 %v439_v10, %v377_v34  ;;  %v492_v48 = vadd.f32 %v488_v11, %v427_v42 }
  0xbc   : >> { %v507_v29 = vadd.f32 %v502_v12, %v442_v25  ;;  %v556_v35 = vadd.f32 %v551_v13, %v491_v31 }
  0xc2   : >> { %v567_v14 = vpop.f32.mrf.mxu2  ;;  %v616_v17 = vpop.f32.mrf.mxu3 }
  0xc3   : >> { %v504_v15 = vpop.f32.mrf.mxu0  ;;  %v553_v16 = vpop.f32.mrf.mxu1  ;;  %v572_v32 = vadd.f32 %v567_v14, %v507_v29  ;;  %v621_v40 = vadd.f32 %v616_v17, %v556_v35 }
  0xc4   : >> { %v508_v45 = vadd.f32 %v504_v15, %v443_v39  ;;  %v557_v54 = vadd.f32 %v553_v16, %v492_v48 }
  0xca   : >> { %v569_v18 = vpop.f32.mrf.mxu2  ;;  %v618_v21 = vpop.f32.mrf.mxu3 }
  0xcb   : >> { %v632_v19 = vpop.f32.mrf.mxu0  ;;  %v681_v20 = vpop.f32.mrf.mxu1  ;;  %v573_v49 = vadd.f32 %v569_v18, %v508_v45  ;;  %v622_v57 = vadd.f32 %v618_v21, %v557_v54 }
  0xcc   : >> { %v637_v36 = vadd.f32 %v632_v19, %v572_v32  ;;  %v686_v46 = vadd.f32 %v681_v20, %v621_v40 }
  0xd2   : >> { %v697_v30 = vpop.f32.mrf.mxu2  ;;  %v746_v38 = vpop.f32.mrf.mxu3 }
  0xd3   : >> { %v634_v26 = vpop.f32.mrf.mxu0  ;;  %v683_v27 = vpop.f32.mrf.mxu1  ;;  %v702_v41 = vadd.f32 %v697_v30, %v637_v36  ;;  %v751_v50 = vadd.f32 %v746_v38, %v686_v46 }
  0xd4   : >> { %v638_v55 = vadd.f32 %v634_v26, %v573_v49  ;;  %v687_v62 = vadd.f32 %v683_v27, %v622_v57 }
  0xda   : >> { %v699_v53 = vpop.f32.mrf.mxu2  ;;  %v748_v60 = vpop.f32.mrf.mxu3 }
  0xdb   : >> { %v762_v43 = vpop.f32.mrf.mxu0  ;;  %v792_v44 = vpop.f32.mrf.mxu1  ;;  %v703_v58 = vadd.f32 %v699_v53, %v638_v55  ;;  %v752_v3 = vadd.f32 %v748_v60, %v687_v62 }
  0xdc   : >> { %v767_v47 = vadd.f32 %v762_v43, %v702_v41 }
  0xde   : >> { %v797_v51 = vadd.f32 %v792_v44, %v767_v47 }
  0xe0   : >> { %v799_v56 = vmax.f32 %v751_v50, %v797_v51 }
  0xe2   : >> { %v804_v59 = vadd.f32 %v802_v52, %v799_v56 }
  0xe3   : >> { %v764_v61 = vpop.f32.mrf.mxu0  ;;  %v794_v2 = vpop.f32.mrf.mxu1 }
  0xe4   : >> { %v806_v63 = vmax.f32 %v804_v59, 0.0  ;;  %v768_v1 = vadd.f32 %v764_v61, %v703_v58 }
  0xe6   : >> { %809 = vst.msk [vmem:[#allocation2] sm:$0xff] %vm808_vm3, %v806_v63  ;;  %v798_v4 = vadd.f32 %v794_v2, %v768_v1 }
  0xe8   : >> { %v800_v5 = vmax.f32 %v752_v3, %v798_v4 }
  0xea   : >> { %v805_v6 = vadd.f32 %v802_v52, %v800_v5 }
  0xec   : >> { %v807_v7 = vmax.f32 %v805_v6, 0.0 }
  0xee   : >> { %810 = vst.msk [vmem:[#allocation2 + $0x8] sm:$0xff] %vm808_vm3, %v807_v7 }
  0xf5   : >> { %v811_v8 = vld [vmem:[#allocation2] ss:$2 sm:$0xff]  ;;  %v813_v9 = vld [vmem:[#allocation2 + $0x1] ss:$2 sm:$0xff] }
  0xf6   : >> { %v814_v10 = vmax.f32 %v811_v8, %v813_v9  ;;  %201 = sbr.rel (!%p199_p5) target bundleno = 16 (0x10), region = 89 }
  0xf8   : >> { %v815_v11 = vpack.c.bf16 %v814_v10, %v814_v10 }
  0xfa   : >> { %819 = vst.msk [vmem:[%s817_s18] sm:$0xf] %vm818_vm4, %v815_v11 }
  0xfb PF: > { %s13_s14 = sadd.s32 1, %s1278_s14   ;;  %s1486_s12 = smov %s1274_s13 }
  0xfc   : > { %p10_p6 = scmp.ge.s32.totalorder %s13_s14, 4   ;;  %s1487_s13 = smov %s1489_s15 }
  0xfe   :  { %12 = sbr.rel (!%p10_p6) target bundleno = 2 (0x2), region = 100 }

// kernel: mcnn_forward.6
= control target key start
LH: loop header
LB: loop body
LE: loop exit
PB: predicated region body
PF: predicated region fallthrough
CT: control target
= control target key end

     0   :  { %s4733_s12 = smov 0   ;;  %s4735_s13 = smov 0   ;;  %s6530_s0 = inlined_call_operand.vmem [shape: bf16[2,14,14,60], index: 0, kind: input, shape index: {}]   ;;  %s6531_s1 = inlined_call_operand.vmem [shape: bf16[7,420,120], index: 1, kind: input, shape index: {}]   ;;  %s6532_s2 = inlined_call_operand.vmem [shape: f32[1,120], index: 2, kind: input, shape index: {}]   ;;  %s6533_s3 = inlined_call_operand.vmem [shape: bf16[2,4,4,120], index: 3, kind: output, shape index: {}]  }
   0x1   :  { %s4737_s14 = smov 0  }
   0x2 LB: > { %s25_s15 = sadd.s32 1, %s4697_s13  ;;  %p3311_p0 = scmp.ge.s32.totalorder %s4701_s14, 1  ;;  %s4701_s14 = sphi %s4737_s14, %s13_s14   ;;  %s4697_s13 = sphi %s4735_s13, %s6683_s13   ;;  %s4693_s12 = sphi %s4733_s12, %s6682_s12  }
   0x3   : > { %p27_p1 = scmp.ge.s32.totalorder %s25_s15, 2  ;;  %p151_p2 = scmp.lt.s32.totalorder %s4701_s14, 3 }
   0x5   : > { %s6685_s15 = smov (%p27_p1, %s25_s15), 0  ;;  %p152_p3 = pnand %p3311_p0, %p151_p2 }
   0x6   : > { %p179_p4 = scmp.lt.s32.totalorder (!%p152_p3), %s4693_s12, 1  ;;  %s4766_s26 = smov (!%p152_p3), 0  }
   0x7   : > { %155 = sbr.rel (%p152_p3) target bundleno = 643 (0x283), region = 32 }
   0xc   : > { %v4754_v0 = vld [vmem:[%s6532_s2] sm:$0x1]  ;;  %s6687_s12 = smov (!%p179_p4, %s4693_s12), 1 }
   0xd   : > { %6583 = vst [vmem:[#allocation3_spill] sm:$0xff] %v4754_v0  ;;  %s4636_s18 = smul.u32 112, %s6687_s12  ;;  %s4444_s19 = sshll.u32 %s6687_s12, 3 }
   0xe   : > { %s4759_s22 = scalar_lea.vmem %s6533_s3, %s4444_s19 }
   0xf   : > { %s4764_s25 = scalar_lea.vmem %s6530_s0, %s4636_s18 }
  0x10 LB: >> { %s4446_s27 = sshll.u32 %s4705_s26, 4  ;;  %s4707_s29 = smov 104   ;;  %vm649_vm0 = vcmask 1041408   ;;  %vm281_vm1 = vcmask 424960   ;;  %vm646_vm2 = vcmask 293888   ;;  %vm284_vm3 = vcmask 916480   ;;  %s4705_s26 = sphi %s4766_s26, %s202_s26  }
  0x11   : >> { %s4773_s28 = scalar_lea.vmem %s4764_s25, %s4446_s27  ;;  %s4708_s30 = smov 112   ;;  %vm273_vm4 = vcmask 490496   ;;  %vm288_vm5 = vcmask 359424   ;;  %vm277_vm6 = vcmask 982016   ;;  %vm291_vm7 = vcmask 850944  }
  0x12   : >> { %v3325_v1 = vld [vmem:[%s4773_s28 + $0xc] sm:$0x7]  ;;  %v3326_v2 = vld [vmem:[%s4773_s28 + $0x8] sm:$0x8]  ;;  %v209_v13 = vld [vmem:[%s4773_s28 + $0x4] sm:$0x1] }
  0x13   : >> { %v3323_v3 = vld [vmem:[%s4773_s28 + $0xc] sm:$0x3]  ;;  %v399_v4 = vunpack.c.l.b16 %v3325_v1  ;;  %v412_v5 = vunpack.c.l.b16 %v3326_v2  ;;  %v3324_v6 = vld [vmem:[%s4773_s28 + $0x8] sm:$0xc]  ;;  %v218_v15 = vunpack.c.l.b16 %v209_v13  ;;  %v4786_v16 = vld [vmem:[%s4773_s28] sm:$0xf] }
  0x14   : >> { %v380_v7 = vunpack.c.l.b16 %v3323_v3  ;;  %v4780_v8 = vld [vmem:[%s4773_s28 + $0x8] sm:$0xf]  ;;  %v3321_v9 = vld [vmem:[%s4773_s28 + $0xc] sm:$0x1]  ;;  %v393_v10 = vunpack.c.l.b16 %v3324_v6  ;;  %v217_v21 = vunpack.c.l.b16 %v4786_v16  ;;  %v210_v32 = vld [vmem:[%s4773_s28] sm:$0xe] }
  0x15   : >> { %v361_v11 = vunpack.c.l.b16 %v4780_v8  ;;  %v362_v12 = vunpack.c.l.b16 %v3321_v9  ;;  %v413_v14 = vpack.c.b16 %v399_v4, %v412_v5  ;;  %v3322_v17 = vld [vmem:[%s4773_s28 + $0x8] sm:$0xe]  ;;  %v211_v37 = vld [vmem:[%s4773_s28 + $0x4] sm:$0x3]  ;;  %v230_v40 = vunpack.c.l.b16 %v210_v32  ;;  %s4709_s4 = smov 120   ;;  %s4710_s5 = smov 60  }
  0x16   : >> { %v394_v18 = vpack.c.b16 %v380_v7, %v393_v10  ;;  %v400_v19 = vpack.c.b16 %v399_v4, %v393_v10  ;;  %v374_v23 = vunpack.c.l.b16 %v3322_v17  ;;  %v219_v33 = vpack.c.b16 %v218_v15, %v217_v21  ;;  %v213_v46 = vld [vmem:[%s4773_s28 + $0x4] sm:$0x7]  ;;  %v214_v47 = vld [vmem:[%s4773_s28] sm:$0x8]  ;;  %s4711_s6 = smov 44   ;;  %s4712_s7 = smov 52  }
  0x17   : >> { %v363_v20 = vpack.c.b16 %v362_v12, %v361_v11  ;;  %v414_v22 = vrot.slane %v413_v14, 3  ;;  %v236_v44 = vunpack.c.l.b16 %v211_v37  ;;  %v212_v49 = vld [vmem:[%s4773_s28] sm:$0xc]  ;;  %v231_v50 = vpack.c.b16 %v218_v15, %v230_v40  ;;  %v3593_v57 = vld [vmem:[%s4773_s28 + $0x14] sm:$0x1]  ;;  %v4808_v1 = vld [vmem:[%s6531_s1 + $0x10c] sm:$0xff] }
  0x18   : >> { %v395_v24 = vrot.slane %v394_v18, 2  ;;  %v402_v25 = vshrl.u32 %v400_v19, 16  ;;  %v405_v26 = vshll.u32 %v400_v19, 16  ;;  %v375_v29 = vpack.c.b16 %v362_v12, %v374_v23  ;;  %v4802_v59 = vld [vmem:[%s4773_s28 + $0x10] sm:$0xf]  ;;  %653 = vmatpush.bf16.msra.mxu0 %v4808_v1  ;;  %v4829_v10 = vld [vmem:[%s6531_s1 + $0x144] sm:$0xff] }
  0x19   : >> { %415 = vrot.lane.b32.xlu1 %v414_v22, %s4707_s29  ;;  %v365_v27 = vshrl.u32 %v363_v20, 16  ;;  %v367_v28 = vshll.u32 %v363_v20, 16  ;;  %v381_v34 = vpack.c.b16 %v380_v7, %v374_v23  ;;  %v223_v43 = vshll.u32 %v219_v33, 16  ;;  %v4813_v2 = vld [vmem:[%s6531_s1 + $0x14c] sm:$0xff]  ;;  %v4820_v7 = vld [vmem:[%s6531_s1 + $0x104] sm:$0xff]  ;;  %s4441_s12 = sshll.u32 %s4705_s26, 1 }
  0x1a   : >> { %396 = vrot.lane.b32.xlu0 %v395_v24, %s4708_s30  ;;  %v404_v30 = vrot.slane %v402_v25, 2  ;;  %v407_v31 = vrot.slane %v405_v26, 3  ;;  %v376_v36 = vrot.slane %v375_v29, 1  ;;  %v255_v52 = vunpack.c.l.b16 %v213_v46  ;;  %666 = vmatpush.bf16.msra.mxu1 %v4813_v2  ;;  %v3379_v9 = vld [vmem:[%s6531_s1 + $0x1a4] sm:$0x3]  ;;  %v4846_v24 = vld [vmem:[%s6531_s1 + $0x18c] sm:$0xff]  ;;  %s3170_s16 = scalar_lea.vmem %s4759_s22, %s4441_s12 }
  0x1b   : >> { %v369_v35 = vrot.slane %v367_v28, 1  ;;  %v383_v38 = vshrl.u32 %v381_v34, 16  ;;  %v386_v41 = vshll.u32 %v381_v34, 16  ;;  %v268_v53 = vunpack.c.l.b16 %v214_v47  ;;  %v3594_v12 = vld [vmem:[%s4773_s28 + $0x10] sm:$0xe]  ;;  %v4859_v29 = vld [vmem:[%s6531_s1 + $0x13c] sm:$0xff]  ;;  %679 = vmatpush.bf16.msra.mxu2 %v4846_v24 }
  0x1c   : >> { %377 = vrot.lane.b32.xlu2 %v376_v36, %s4709_s4  ;;  %v408_v42 = vor.u32 %v407_v31, %v404_v30  ;;  %v221_v54 = vshrl.u32 %v219_v33, 16  ;;  %v225_v55 = vrot.slane %v223_v43, 1  ;;  %v237_v56 = vpack.c.b16 %v236_v44, %v230_v40  ;;  %v4833_v13 = vld [vmem:[%s4773_s28 + $0x10] sm:$0xc]  ;;  %v4836_v14 = vld [vmem:[%s4773_s28 + $0x14] sm:$0x3]  ;;  %654 = vmatpush.bf16.msra.mxu0 %v4820_v7 }
  0x1d   : >> { %v370_v39 = vor.u32 %v369_v35, %v365_v27  ;;  %v385_v45 = vrot.slane %v383_v38, 1  ;;  %v388_v48 = vrot.slane %v386_v41, 2  ;;  %v249_v58 = vunpack.c.l.b16 %v212_v49  ;;  %v4840_v17 = vld [vmem:[%s4773_s28 + $0x14] sm:$0x7]  ;;  %v4853_v27 = vld [vmem:[%s6531_s1 + $0xfc] sm:$0xff]  ;;  %v4867_v33 = vld [vmem:[%s6531_s1 + $0x184] sm:$0xff] }
  0x1e   : >> { %v232_v60 = vrot.slane %v231_v50, 1  ;;  %v935_v61 = vunpack.c.l.b16 %v3593_v57  ;;  %v269_v62 = vpack.c.b16 %v255_v52, %v268_v53  ;;  %v226_v3 = vor.u32 %v225_v55, %v221_v54  ;;  %667 = vmatpush.bf16.msra.mxu1 %v4829_v10  ;;  %v4879_v40 = vld [vmem:[%s6531_s1 + $0x19c] sm:$0xff]  ;;  %v4885_v41 = vld [vmem:[%s6531_s1 + $0xf4] sm:$0xff]  ;;  %v4930_v57 = vld [vmem:[%s6531_s1 + $0x12c] sm:$0xff]  ;;  %s202_s26 = sadd.s32 1, %s4705_s26  }
  0x1f   : >> { %v389_v51 = vor.u32 %v388_v48, %v385_v45  ;;  %v256_v63 = vpack.c.b16 %v255_v52, %v249_v58  ;;  %v239_v4 = vshrl.u32 %v237_v56, 16  ;;  %v242_v5 = vshll.u32 %v237_v56, 16  ;;  %680 = vmatpush.bf16.msra.mxu2 %v4867_v33  ;;  %v4914_v52 = vld [vmem:[%s6531_s1 + $0x194] sm:$0xff]  ;;  %v3762_v54 = vld [vmem:[%s4773_s28 + $0x1c] sm:$0x1]  ;;  %p199_p5 = scmp.ge.s32.totalorder %s202_s26, 4  }
  0x20   : >> { %v934_v6 = vunpack.c.l.b16 %v4802_v59  ;;  %v250_v11 = vpack.c.b16 %v236_v44, %v249_v58  ;;  %v270_v15 = vrot.slane %v269_v62, 3  ;;  %v592_v20 = vunpack.c.l.b16 %v3379_v9  ;;  %655 = vmatpush.bf16.msra.mxu0 %v4853_v27  ;;  %v4897_v44 = vld [vmem:[%s6531_s1 + $0x17c] sm:$0xff]  ;;  %v4925_v55 = vld [vmem:[%s4773_s28 + $0x18] sm:$0xf]  ;;  %v4947_v9 = vld [vmem:[%s6531_s1 + $0xe4] sm:$0xff] }
  0x21   : >> { %371 = vrot.lane.b32.xlu1 %v370_v39, %s4710_s5  ;;  %v258_v18 = vshrl.u32 %v256_v63, 16  ;;  %v261_v19 = vshll.u32 %v256_v63, 16  ;;  %v241_v21 = vrot.slane %v239_v4, 1  ;;  %v244_v22 = vrot.slane %v242_v5, 2  ;;  %v4921_v53 = vld [vmem:[%s6531_s1 + $0x38] sm:$0xff]  ;;  %6584 = vst [vmem:[#allocation4_spill] sm:$0xff] %v4925_v55 }
  0x22   : >> { %409 = vrot.lane.b32.xlu0 %v408_v42, %s4711_s6  ;;  %v936_v23 = vpack.c.b16 %v935_v61, %v934_v6  ;;  %v947_v25 = vunpack.c.l.b16 %v3594_v12  ;;  %v953_v26 = vunpack.c.l.b16 %v4836_v14  ;;  %v619_v28 = vpack.c.b16 %v592_v20, %v592_v20  ;;  %668 = vmatpush.bf16.msra.mxu1 %v4859_v29  ;;  %v4891_v42 = vld [vmem:[%s6531_s1 + $0x134] sm:$0xff] }
  0x23   : >> { %v251_v30 = vrot.slane %v250_v11, 2  ;;  %v966_v31 = vunpack.c.l.b16 %v4833_v13  ;;  %v972_v32 = vunpack.c.l.b16 %v4840_v17  ;;  %v260_v34 = vrot.slane %v258_v18, 2  ;;  %681 = vmatpush.bf16.msra.mxu2 %v4897_v44  ;;  %v4936_v58 = vld [vmem:[%s6531_s1 + $0x174] sm:$0xff]  ;;  %v4964_v18 = vld [vmem:[%s6531_s1 + $0x16c] sm:$0xff] }
  0x24   : >> { %390 = vrot.lane.b32.xlu2 %v389_v51, %s4712_s7  ;;  %v263_v35 = vrot.slane %v261_v19, 3  ;;  %v954_v36 = vpack.c.b16 %v953_v26, %v947_v25  ;;  %v4873_v37 = vsel %vm649_vm0, %v619_v28, 0  ;;  %v245_v38 = vor.u32 %v244_v22, %v241_v21  ;;  %v4909_v51 = vld [vmem:[%s6531_s1 + $0xec] sm:$0xff]  ;;  %656 = vmatpush.bf16.msra.mxu0 %v4885_v41  ;;  %v3765_v28 = vld [vmem:[%s4773_s28 + $0x18] sm:$0xc] }
  0x25   : >> { %v940_v39 = vshll.u32 %v936_v23, 16  ;;  %697 = vmatpush.bf16.msra.mxu3 %v4873_v37  ;;  %v948_v43 = vpack.c.b16 %v935_v61, %v947_v25  ;;  %v973_v45 = vpack.c.b16 %v972_v32, %v966_v31  ;;  %v938_v49 = vshrl.u32 %v936_v23, 16  ;;  %v4952_v11 = vld [vmem:[%s6531_s1 + $0x30] sm:$0xff]  ;;  %v4973_v23 = vld [vmem:[%s4773_s28 + $0x18] sm:$0xe]  ;;  %v4989_v13 = vld [vmem:[%s6531_s1 + $0x28] sm:$0xff] }
  0x26   : >> { %v264_v46 = vor.u32 %v263_v35, %v260_v34  ;;  %v956_v47 = vshrl.u32 %v954_v36, 16  ;;  %v959_v48 = vshll.u32 %v954_v36, 16  ;;  %669 = vmatpush.bf16.msra.mxu1 %v4891_v42  ;;  %v1395_v5 = vunpack.c.l.b16 %v3762_v54  ;;  %v4984_v34 = vld [vmem:[%s6531_s1 + $0xdc] sm:$0xff] }
  0x27   : >> { %v942_v50 = vrot.slane %v940_v39, 1  ;;  %v949_v56 = vrot.slane %v948_v43, 1  ;;  %v978_v61 = vshll.u32 %v973_v45, 16  ;;  %v1394_v6 = vunpack.c.l.b16 %v4925_v55  ;;  %682 = vmatpush.bf16.msra.mxu2 %v4936_v58  ;;  %v5013_v43 = vld [vmem:[%s6531_s1 + $0xd4] sm:$0xff] }
  0x28   : >> { %v958_v62 = vrot.slane %v956_v47, 1  ;;  %v961_v63 = vrot.slane %v959_v48, 2  ;;  %657 = vmatpush.bf16.msra.mxu0 %v4909_v51  ;;  %v967_v22 = vpack.c.b16 %v953_v26, %v966_v31  ;;  %v4997_v26 = vld [vmem:[%s6531_s1 + $0x11c] sm:$0xff]  ;;  %v5003_v31 = vld [vmem:[%s6531_s1 + $0x164] sm:$0xff]  ;;  %v1407_v17 = vunpack.c.l.b16 %v4973_v23  ;;  %v5029_v47 = vld [vmem:[%s6531_s1 + $0x114] sm:$0xff] }
  0x29   : >> { %233 = vrot.lane.b32.xlu1 %v232_v60, %s4709_s4  ;;  %698 = vmatpush.bf16.msra.mxu3 %v4879_v40  ;;  %v975_v60 = vshrl.u32 %v973_v45, 16  ;;  %v943_v4 = vor.u32 %v942_v50, %v938_v49  ;;  %v980_v20 = vrot.slane %v978_v61, 3  ;;  %v1396_v25 = vpack.c.b16 %v1395_v5, %v1394_v6  ;;  %v5018_v45 = vld [vmem:[%s6531_s1 + $0x20] sm:$0xff]  ;;  %v5038_v50 = vld [vmem:[%s6531_s1 + $0xb8] sm:$0xff]  ;;  %v5063_v6 = vld [vmem:[%s6531_s1 + $0xb0] sm:$0xff] }
  0x2a   : >> { %227 = vrot.lane.b32.xlu0 %v226_v3, %s4710_s5  ;;  %v3598_v3 = vld [vmem:[%s4773_s28 + $0x10] sm:$0x8]  ;;  %670 = vmatpush.bf16.msra.mxu1 %v4930_v57  ;;  %v962_v21 = vor.u32 %v961_v63, %v958_v62  ;;  %6585 = vst [vmem:[#allocation5_spill] sm:$0xff] %v5018_v45  ;;  %v1408_v49 = vpack.c.b16 %v1395_v5, %v1407_v17  ;;  %v5048_v61 = vld [vmem:[%s6531_s1 + $0x18] sm:$0xff]  ;;  %v5160_v23 = vld [vmem:[%s6531_s1 + $0xc8] sm:$0xff]  ;;  %vm3171_vm8 = vcmask 975872  }
  0x2b   : >> { %v985_v12 = vunpack.c.l.b16 %v3598_v3  ;;  %v977_v19 = vrot.slane %v975_v60, 2  ;;  %683 = vmatpush.bf16.msra.mxu2 %v4964_v18  ;;  %v1400_v39 = vshll.u32 %v1396_v25, 16  ;;  %6586 = vst [vmem:[#allocation6_spill] sm:$0xff] %v5048_v61  ;;  %v3764_v62 = vld [vmem:[%s4773_s28 + $0x1c] sm:$0x3]  ;;  %v5055_v63 = vld [vmem:[%s6531_s1 + $0x70] sm:$0xff] }
  0x2c   : >> { %271 = vrot.lane.b32.xlu2 %v270_v15, %s4707_s29  ;;  %v4958_v15 = vld [vmem:[%s6531_s1 + $0x124] sm:$0xff]  ;;  %658 = vmatpush.bf16.msra.mxu0 %v4947_v9  ;;  %v1409_v3 = vrot.slane %v1408_v49, 1  ;;  %v5109_v49 = vld [vmem:[%s6531_s1 + $0x58] sm:$0xff]  ;;  %6593 = vst [vmem:[#allocation13_spill] sm:$0xff] %v5160_v23 }
  0x2d   : >> { %699 = vmatpush.bf16.msra.mxu3 %v4914_v52  ;;  %v986_v14 = vpack.c.b16 %v972_v32, %v985_v12  ;;  %v981_v35 = vor.u32 %v980_v20, %v977_v19  ;;  %v1426_v32 = vunpack.c.l.b16 %v3765_v28  ;;  %v1402_v60 = vrot.slane %v1400_v39, 1  ;;  %v5069_v20 = vld [vmem:[%s6531_s1 + $0x10] sm:$0xff]  ;;  %v5092_v39 = vld [vmem:[%s6531_s1 + $0x8] sm:$0xff] }
  0x2e   : >> { %671 = vmatpush.bf16.msra.mxu1 %v4958_v15  ;;  %v1413_v19 = vunpack.c.l.b16 %v3764_v62  ;;  %6587 = vst [vmem:[#allocation7_spill] sm:$0xff] %v5069_v20  ;;  %v5126_v62 = vld [vmem:[%s6531_s1 + $0x154] sm:$0xff] }
  0x2f   : >> { %684 = vmatpush.bf16.msra.mxu2 %v5003_v31  ;;  %v987_v48 = vrot.slane %v986_v14, 3  ;;  %6588 = vst [vmem:[#allocation8_spill] sm:$0xff] %v5092_v39 }
  0x30   : >> { %659 = vmatpush.bf16.msra.mxu0 %v4984_v34  ;;  %v1427_v28 = vpack.c.b16 %v1413_v19, %v1426_v32 }
  0x31   : >> { %252 = vrot.lane.b32.xlu1 %v251_v30, %s4708_s30  ;;  %869 = vmatpush.bf16.msrb.mxu3 %v4921_v53  ;;  %v4977_v30 = vld [vmem:[%s4773_s28 + $0x1c] sm:$0x7] }
  0x32   : >> { %246 = vrot.lane.b32.xlu0 %v245_v38, %s4712_s7  ;;  %v1432_v36 = vunpack.c.l.b16 %v4977_v30  ;;  %v968_v38 = vrot.slane %v967_v22, 2  ;;  %672 = vmatpush.bf16.msra.mxu1 %v4997_v26 }
  0x34   : >> { %265 = vrot.lane.b32.xlu2 %v264_v46, %s4711_s6  ;;  %v5023_v46 = vld [vmem:[%s6531_s1 + $0x78] sm:$0xff]  ;;  %v1433_v54 = vpack.c.b16 %v1432_v36, %v1426_v32  ;;  %660 = vmatpush.bf16.msra.mxu0 %v5013_v43 }
  0x35   : >> { %870 = vmatpush.bf16.msrb.mxu3 %v4952_v11  ;;  %v5097_v32 = vld [vmem:[%s6531_s1 + $0x15c] sm:$0xff] }
  0x36   : >> { %673 = vmatpush.bf16.msra.mxu1 %v5029_v47  ;;  %v1438_v5 = vshll.u32 %v1433_v54, 16  ;;  %685 = vmatpush.bf16.msra.mxu2 %v5097_v32 }
  0x38   : >> { %882 = vmatpush.bf16.msrb.mxu0 %v5023_v46 }
  0x39   : >> { %950 = vrot.lane.b32.xlu1 %v949_v56, %s4709_s4  ;;  %871 = vmatpush.bf16.msrb.mxu3 %v4989_v13  ;;  %v1398_v56 = vshrl.u32 %v1396_v25, 16  ;;  %v1440_v25 = vrot.slane %v1438_v5, 3  ;;  %v5136_v5 = vld [vmem:[%s6531_s1 + $0x50] sm:$0xff] }
  0x3a   : >> { %944 = vrot.lane.b32.xlu0 %v943_v4, %s4710_s5  ;;  %895 = vmatpush.bf16.msrb.mxu1 %v5038_v50  ;;  %v1435_v4 = vshrl.u32 %v1433_v54, 16  ;;  %v5114_v54 = vld [vmem:[%s6531_s1] sm:$0xff]  ;;  %6590 = vst [vmem:[#allocation10_spill] sm:$0xff] %v5136_v5 }
  0x3b   : >> { %v1403_v12 = vor.u32 %v1402_v60, %v1398_v56  ;;  %6589 = vst [vmem:[#allocation9_spill] sm:$0xff] %v5114_v54  ;;  %v347_v56 = vld [vmem:[%s6531_s1 + $0xd0] sm:$0x3]  ;;  %686 = vmatpush.bf16.msra.mxu2 %v5126_v62 }
  0x3c   : >> { %963 = vrot.lane.b32.xlu2 %v962_v21, %s4712_s7  ;;  %883 = vmatpush.bf16.msrb.mxu0 %v5055_v63  ;;  %v5075_v21 = vld [vmem:[%s6531_s1 + $0x68] sm:$0xff]  ;;  %v1437_v22 = vrot.slane %v1435_v4, 2  ;;  %v810_v60 = vunpack.c.l.b16 %v347_v56  ;;  %v5168_v56 = vld [vmem:[%s6531_s1 + $0x90] sm:$0xff] }
  0x3d   : >> { %872 = vmatpush.bf16.msrb.mxu3 %v5018_v45  ;;  %6594 = vst [vmem:[#allocation14_spill] sm:$0xff] %v5168_v56 }
  0x3e   : >> { %896 = vmatpush.bf16.msrb.mxu1 %v5063_v6  ;;  %v1441_v14 = vor.u32 %v1440_v25, %v1437_v22  ;;  %v837_v4 = vpack.c.b16 %v810_v60, %v810_v60  ;;  %v1414_v22 = vpack.c.b16 %v1413_v19, %v1407_v17  ;;  %v5150_v25 = vld [vmem:[%s6531_s1 + $0x98] sm:$0xff] }
  0x3f   : >> { %6591 = vst [vmem:[#allocation11_spill] sm:$0xff] %v5150_v25 }
  0x40   : >> { %884 = vmatpush.bf16.msrb.mxu0 %v5075_v21 }
  0x41   : >> { %982 = vrot.lane.b32.xlu1 %v981_v35, %s4711_s6  ;;  %873 = vmatpush.bf16.msrb.mxu3 %v5048_v61  ;;  %v1428_v35 = vrot.slane %v1427_v28, 2  ;;  %v1416_v28 = vshrl.u32 %v1414_v22, 16 }
  0x42   : >> { %969 = vrot.lane.b32.xlu0 %v968_v38, %s4708_s30  ;;  %v5087_v38 = vld [vmem:[%s6531_s1 + $0x60] sm:$0xff] }
  0x43   : >> { %v1418_v17 = vrot.slane %v1416_v28, 1  ;;  %v3767_v28 = vld [vmem:[%s4773_s28 + $0x18] sm:$0x8] }
  0x44   : >> { %988 = vrot.lane.b32.xlu2 %v987_v48, %s4707_s29  ;;  %v5102_v48 = vld [vmem:[%s6531_s1 + $0xa8] sm:$0xff]  ;;  %885 = vmatpush.bf16.msrb.mxu0 %v5087_v38 }
  0x45   : >> { %874 = vmatpush.bf16.msrb.mxu3 %v5069_v20  ;;  %897 = vmatpush.bf16.msrb.mxu1 %v5102_v48  ;;  %v5215_v20 = vld [vmem:[%s4773_s28 + $0x24] sm:$0x3] }
  0x48   : >> { %886 = vmatpush.bf16.msrb.mxu0 %v5109_v49 }
  0x49   : >> { %1410 = vrot.lane.b32.xlu1 %v1409_v3, %s4709_s4  ;;  %875 = vmatpush.bf16.msrb.mxu3 %v5092_v39  ;;  %v5131_v3 = vld [vmem:[%s6531_s1 + $0xa0] sm:$0xff] }
  0x4a   : >> { %1404 = vrot.lane.b32.xlu0 %v1403_v12, %s4710_s5  ;;  %898 = vmatpush.bf16.msrb.mxu1 %v5131_v3  ;;  %v5141_v12 = vsel %vm649_vm0, %v837_v4, 0  ;;  %v5173_v4 = vld [vmem:[%s6531_s1 + $0x40] sm:$0xff] }
  0x4b   : >> { %913 = vmatpush.bf16.msrb.mxu2 %v5141_v12  ;;  %6595 = vst [vmem:[#allocation15_spill] sm:$0xff] %v5173_v4 }
  0x4c   : >> { %887 = vmatpush.bf16.msrb.mxu0 %v5136_v5 }
  0x4d   : >> { %876 = vmatpush.bf16.msrb.mxu3 %v5114_v54 }
  0x4e   : >> { %899 = vmatpush.bf16.msrb.mxu1 %v5150_v25  ;;  %v5240_v25 = vld [vmem:[%s4773_s28 + $0x20] sm:$0xf] }
  0x4f   : >> { %914 = vmatpush.bf16.msrb.mxu2 %v5160_v23  ;;  %6603 = vst [vmem:[#allocation23_spill] sm:$0xff] %v5240_v25  ;;  %v1803_v45 = vunpack.c.l.b16 %v5240_v25 }
  0x51   : >> { %1442 = vrot.lane.b32.xlu1 %v1441_v14, %s4711_s6  ;;  %v1419_v14 = vshll.u32 %v1414_v22, 16  ;;  %v5178_v22 = vld [vmem:[%s6531_s1 + $0xc0] sm:$0xff] }
  0x52   : >> { %1429 = vrot.lane.b32.xlu0 %v1428_v35, %s4708_s30  ;;  %v5155_v35 = vld [vmem:[%s6531_s1 + $0x48] sm:$0xff]  ;;  %6596 = vst [vmem:[#allocation16_spill] sm:$0xff] %v5178_v22  ;;  %900 = vmatpush.bf16.msrb.mxu1 %v5168_v56 }
  0x53   : >> { %6592 = vst [vmem:[#allocation12_spill] sm:$0xff] %v5155_v35  ;;  %v1421_v19 = vrot.slane %v1419_v14, 2  ;;  %888 = vmatpush.bf16.msrb.mxu0 %v5155_v35  ;;  %915 = vmatpush.bf16.msrb.mxu2 %v5178_v22  ;;  %v5188_v14 = vld [vmem:[%s6531_s1 + $0x88] sm:$0xff] }
  0x54   : >> { %6597 = vst [vmem:[#allocation17_spill] sm:$0xff] %v5188_v14 }
  0x55   : >> { %v1422_v60 = vor.u32 %v1421_v19, %v1418_v17  ;;  %v1445_v17 = vunpack.c.l.b16 %v3767_v28  ;;  %v3651_v28 = vld [vmem:[%s6531_s1 + $0x278] sm:$0x3] }
  0x56   : >> { %901 = vmatpush.bf16.msrb.mxu1 %v5188_v14  ;;  %v1165_v54 = vunpack.c.l.b16 %v3651_v28 }
  0x57   : >> { %1423 = vrot.lane.b32.xlu2 %v1422_v60, %s4712_s7  ;;  %889 = vmatpush.bf16.msrb.mxu0 %v5173_v4  ;;  %v1446_v19 = vpack.c.b16 %v1432_v36, %v1445_v17  ;;  %v5196_v60 = vld [vmem:[%s6531_s1 + $0x80] sm:$0xff] }
  0x58   : >> { %6598 = vst [vmem:[#allocation18_spill] sm:$0xff] %v5196_v60  ;;  %v3933_v36 = vld [vmem:[%s4773_s28 + $0x20] sm:$0xc]  ;;  %v5205_v17 = vld [vmem:[%s4773_s28 + $0x24] sm:$0x7]  ;;  %v1192_v39 = vpack.c.b16 %v1165_v54, %v1165_v54  ;;  %v6551_v54 = vunpack.c.l.b16 %v5215_v20 }
  0x59   : >> { %v1447_v0 = vrot.slane %v1446_v19, 3  ;;  %v1835_v14 = vunpack.c.l.b16 %v3933_v36  ;;  %v6544_v19 = vunpack.c.l.b16 %v5205_v17 }
  0x5a   : >> { %902 = vmatpush.bf16.msrb.mxu1 %v5196_v60  ;;  %v5211_v60 = vld [vmem:[%s6531_s1 + $0x1e0] sm:$0xff]  ;;  %v5225_v22 = vsel %vm649_vm0, %v1192_v39, 0 }
  0x5b   : >> { %6599 = vst [vmem:[#allocation19_spill] sm:$0xff] %v5211_v60  ;;  %v1842_v28 = vpack.c.b16 %v6544_v19, %v1835_v14  ;;  %v5234_v19 = vld [vmem:[%s6531_s1 + $0x1d8] sm:$0xff]  ;;  %v1836_v35 = vpack.c.b16 %v6551_v54, %v1835_v14 }
  0x5c   : >> { %6600 = vst [vmem:[#allocation20_spill] sm:$0xff] %v5225_v22 }
  0x5d   : >> { %v1847_v56 = vshll.u32 %v1842_v28, 16  ;;  %6602 = vst [vmem:[#allocation22_spill] sm:$0xff] %v5234_v19 }
  0x5f   : >> { %1448 = vrot.lane.b32.xlu2 %v1447_v0, %s4707_s29  ;;  %v1849_v39 = vrot.slane %v1847_v56, 3  ;;  %v5254_v56 = vld [vmem:[%s6531_s1 + $0x1d0] sm:$0xff] }
  0x76   : >> { %v378_v55 = vpop.permute.xlu2 %377 }
  0x7e   : >> { %v391_v30 = vpop.permute.xlu2 %390 }
  0x7f   : >> { %v424_v0 = vsel %vm281_vm1, %v378_v55, %v391_v30  ;;  %v1844_v30 = vshrl.u32 %v1842_v28, 16  ;;  %v1837_v28 = vrot.slane %v1836_v35, 2 }
  0x81   : >> { %v1846_v23 = vrot.slane %v1844_v30, 2  ;;  %1838 = vrot.lane.b32.xlu0 %v1837_v28, %s4708_s30 }
  0x83   : >> { %v1850_v5 = vor.u32 %v1849_v39, %v1846_v23  ;;  %v5261_v23 = vld [vmem:[%s6531_s1 + $0x260] sm:$0xff] }
  0x84   : >> { %6605 = vst [vmem:[#allocation25_spill] sm:$0xff] %v5261_v23 }
  0x85   : >> { %1851 = vrot.lane.b32.xlu1 %v1850_v5, %s4711_s6  ;;  %v5272_v5 = vld [vmem:[%s6531_s1 + $0x220] sm:$0xff] }
  0x8b   : >> { %v5219_v4 = vpop.permute.xlu1 %415 }
  0x8c   : >> { %v397_v36 = vpop.permute.xlu0 %396  ;;  %3484 = vmatmul.msk.bf16.vlgmr.msra.gmra.mxu3 %vm646_vm2, %v5219_v4 }
  0x8d   : >> { %1224 = vmatpush.bf16.msra.mxu3 %v5211_v60  ;;  %v5229_v61 = vsel %vm284_vm3, %v424_v0, %v397_v36  ;;  %v5246_v0 = vld [vmem:[%s6531_s1 + $0x270] sm:$0xff]  ;;  %v3930_v60 = vld [vmem:[%s4773_s28 + $0x24] sm:$0x1] }
  0x8e   : >> { %6601 = vst [vmem:[#allocation21_spill] sm:$0xff] %v5229_v61  ;;  %674 = vmatmul.bf16.vlgmr.msra.gmra.mxu1 %v5229_v61  ;;  %v1804_v14 = vunpack.c.l.b16 %v3930_v60  ;;  %v5265_v60 = vld [vmem:[%s4773_s28 + $0x20] sm:$0xe] }
  0x8f   : >> { %1268 = vmatpush.bf16.msra.mxu1 %v5225_v22  ;;  %6604 = vst [vmem:[#allocation24_spill] sm:$0xff] %v5246_v0 }
  0x90   : >> { %v1805_v35 = vpack.c.b16 %v1804_v14, %v1803_v45  ;;  %v5277_v45 = vld [vmem:[%s6531_s1 + $0x268] sm:$0xff] }
  0x91   : >> { %1225 = vmatpush.bf16.msra.mxu3 %v5234_v19  ;;  %6606 = vst [vmem:[#allocation26_spill] sm:$0xff] %v5277_v45 }
  0x92   : >> { %v1809_v54 = vshll.u32 %v1805_v35, 16  ;;  %v1807_v19 = vshrl.u32 %v1805_v35, 16  ;;  %v5315_v35 = vld [vmem:[%s6531_s1 + $0x1c0] sm:$0xff] }
  0x93   : >> { %v372_v30 = vpop.permute.xlu1 %371  ;;  %1269 = vmatpush.bf16.msra.mxu1 %v5246_v0 }
  0x94   : >> { %v410_v39 = vpop.permute.xlu0 %409  ;;  %v419_v28 = vsel %vm273_vm4, %v4780_v8, %v372_v30  ;;  %v5288_v8 = vld [vmem:[%s6531_s1 + $0x1c8] sm:$0xff]  ;;  %v272_v30 = vpop.permute.xlu2 %271  ;;  %v1811_v25 = vrot.slane %v1809_v54, 1 }
  0x95   : >> { %v429_v0 = vsel %vm288_vm5, %v397_v36, %v410_v39  ;;  %1226 = vmatpush.bf16.msra.mxu3 %v5254_v56  ;;  %v5283_v22 = vsel %vm277_vm6, %v419_v28, %v378_v55  ;;  %v6607_v36 = vunpack.c.l.b16 %v5265_v60  ;;  %v5302_v55 = vld [vmem:[%s6531_s1 + $0x258] sm:$0xff] }
  0x96   : >> { %661 = vmatmul.bf16.vlgmr.msra.gmra.mxu0 %v5283_v22  ;;  %v5293_v61 = vsel %vm291_vm7, %v429_v0, %v5219_v4  ;;  %6608 = vst [vmem:[#allocation27_spill] sm:$0xff] %v5302_v55  ;;  %v5308_v0 = vld [vmem:[%s6531_s1 + $0x218] sm:$0xff]  ;;  %v1812_v54 = vor.u32 %v1811_v25, %v1807_v19  ;;  %v5329_v19 = vld [vmem:[%s6531_s1 + $0x210] sm:$0xff] }
  0x97   : >> { %v1817_v39 = vpack.c.b16 %v1804_v14, %v6607_v36  ;;  %687 = vmatmul.bf16.vlgmr.msra.gmra.mxu2 %v5293_v61  ;;  %1250 = vmatpush.bf16.msra.mxu0 %v5261_v23  ;;  %v5323_v36 = vld [vmem:[%s6531_s1 + $0x250] sm:$0xff]  ;;  %6610 = vst [vmem:[#allocation29_spill] sm:$0xff] %v5329_v19 }
  0x98   : >> { %1237 = vmatpush.bf16.msra.mxu2 %v5272_v5  ;;  %1270 = vmatpush.bf16.msra.mxu1 %v5277_v45  ;;  %6609 = vst [vmem:[#allocation28_spill] sm:$0xff] %v5323_v36  ;;  %v5364_v45 = vld [vmem:[%s6531_s1 + $0x200] sm:$0xff] }
  0x99   : >> { %v1818_v14 = vrot.slane %v1817_v39, 1  ;;  %1227 = vmatpush.bf16.msra.mxu3 %v5288_v8  ;;  %1813 = vrot.lane.b32.xlu0 %v1812_v54, %s4710_s5  ;;  %v5337_v54 = vld [vmem:[%s6531_s1 + $0x1b8] sm:$0xff]  ;;  %6614 = vst [vmem:[#allocation33_spill] sm:$0xff] %v5364_v45 }
  0x9a   : >> { %6611 = vst [vmem:[#allocation30_spill] sm:$0xff] %v5337_v54 }
  0x9b   : >> { %1819 = vrot.lane.b32.xlu1 %v1818_v14, %s4709_s4  ;;  %1251 = vmatpush.bf16.msra.mxu0 %v5302_v55  ;;  %v234_v28 = vpop.permute.xlu1 %233  ;;  %v5344_v55 = vld [vmem:[%s6531_s1 + $0x248] sm:$0xff] }
  0x9c   : >> { %1238 = vmatpush.bf16.msra.mxu2 %v5308_v0  ;;  %v228_v25 = vpop.permute.xlu0 %227  ;;  %6612 = vst [vmem:[#allocation31_spill] sm:$0xff] %v5344_v55  ;;  %v266_v23 = vpop.permute.xlu2 %265 }
  0x9d   : >> { %v276_v39 = vsel %vm273_vm4, %v4786_v16, %v228_v25  ;;  %1228 = vmatpush.bf16.msra.mxu3 %v5315_v35  ;;  %v5350_v16 = vld [vmem:[%s6531_s1 + $0x208] sm:$0xff]  ;;  %v5356_v25 = vld [vmem:[%s6531_s1 + $0x1b0] sm:$0xff] }
  0x9e   : >> { %v279_v14 = vsel %vm277_vm6, %v276_v39, %v234_v28  ;;  %6613 = vst [vmem:[#allocation32_spill] sm:$0xff] %v5350_v16 }
  0x9f   : >> { %877 = vmatmul.bf16.vlgmr.msrb.gmra.mxu3 %v279_v14  ;;  %1252 = vmatpush.bf16.msra.mxu0 %v5323_v36 }
  0xa0   : >> { %1239 = vmatpush.bf16.msra.mxu2 %v5329_v19  ;;  %v5369_v19 = vld [vmem:[%s6531_s1 + $0x240] sm:$0xff] }
  0xa1   : >> { %1229 = vmatpush.bf16.msra.mxu3 %v5337_v54  ;;  %6615 = vst [vmem:[#allocation34_spill] sm:$0xff] %v5369_v19 }
  0xa3   : >> { %1253 = vmatpush.bf16.msra.mxu0 %v5344_v55  ;;  %v253_v39 = vpop.permute.xlu1 %252 }
  0xa4   : >> { %1240 = vmatpush.bf16.msra.mxu2 %v5350_v16  ;;  %v290_v14 = vsel %vm288_vm5, %v253_v39, %v266_v23  ;;  %v247_v36 = vpop.permute.xlu0 %246  ;;  %v5377_v23 = vld [vmem:[%s6531_s1 + $0x1a8] sm:$0xff] }
  0xa5   : >> { %v283_v54 = vsel %vm281_vm1, %v234_v28, %v247_v36  ;;  %1230 = vmatpush.bf16.msra.mxu3 %v5356_v25  ;;  %v293_v55 = vsel %vm291_vm7, %v290_v14, %v272_v30  ;;  %v5386_v28 = vld [vmem:[%s6531_s1 + $0x1f8] sm:$0xff]  ;;  %v5402_v14 = vld [vmem:[%s6531_s1 + $0x1f0] sm:$0xff] }
  0xa6   : >> { %v286_v16 = vsel %vm284_vm3, %v283_v54, %v253_v39  ;;  %903 = vmatmul.bf16.vlgmr.msrb.gmra.mxu1 %v293_v55  ;;  %6616 = vst [vmem:[#allocation35_spill] sm:$0xff] %v5386_v28  ;;  %v5391_v36 = vld [vmem:[%s6531_s1 + $0x238] sm:$0xff]  ;;  %v964_v55 = vpop.permute.xlu2 %963 }
  0xa7   : >> { %890 = vmatmul.bf16.vlgmr.msrb.gmra.mxu0 %v286_v16  ;;  %3589 = vmatmul.msk.bf16.vlgmr.msrb.gmra.mxu2 %vm646_vm2, %v272_v30  ;;  %6617 = vst [vmem:[#allocation36_spill] sm:$0xff] %v5391_v36  ;;  %v3935_v30 = vld [vmem:[%s4773_s28 + $0x20] sm:$0x8] }
  0xa8   : >> { %1241 = vmatpush.bf16.msra.mxu2 %v5364_v45  ;;  %1254 = vmatpush.bf16.msra.mxu0 %v5369_v19  ;;  %v1854_v54 = vunpack.c.l.b16 %v3935_v30  ;;  %6618 = vst [vmem:[#allocation37_spill] sm:$0xff] %v5402_v14  ;;  %v6620_v19 = vunpack.c.l.b16 %v5205_v17  ;;  %v6622_v17 = vunpack.c.l.b16 %v5215_v20  ;;  %v5443_v45 = vld [vmem:[%s4773_s28 + $0x28] sm:$0xf] }
  0xa9   : >> { %1290 = vmatpush.bf16.msrb.mxu1 %v4813_v2  ;;  %1231 = vmatpush.bf16.msra.mxu3 %v5377_v23  ;;  %v5407_v2 = vld [vmem:[%s6531_s1 + $0x230] sm:$0xff] }
  0xaa   : >> { %6619 = vst [vmem:[#allocation38_spill] sm:$0xff] %v5407_v2 }
  0xab   : >> { %v951_v16 = vpop.permute.xlu1 %950 }
  0xac   : >> { %1242 = vmatpush.bf16.msra.mxu2 %v5386_v28  ;;  %1255 = vmatpush.bf16.msra.mxu0 %v5391_v36  ;;  %v945_v39 = vpop.permute.xlu0 %944 }
  0xad   : >> { %1277 = vmatpush.bf16.msrb.mxu3 %v4808_v1  ;;  %v1855_v1 = vpack.c.b16 %v6620_v19, %v1854_v54  ;;  %1291 = vmatpush.bf16.msrb.mxu1 %v4829_v10  ;;  %v992_v30 = vsel %vm273_vm4, %v4802_v59, %v945_v39  ;;  %v5424_v10 = vld [vmem:[%s6531_s1 + $0x1e8] sm:$0xff]  ;;  %v997_v54 = vsel %vm281_vm1, %v951_v16, %v964_v55  ;;  %v2212_v55 = vunpack.c.l.b16 %v5443_v45 }
  0xae   : >> { %v5416_v36 = vsel %vm277_vm6, %v992_v30, %v951_v16  ;;  %v5429_v59 = vld [vmem:[%s6531_s1 + $0x228] sm:$0xff] }
  0xaf   : >> { %v1856_v28 = vrot.slane %v1855_v1, 3  ;;  %1232 = vmatmul.bf16.vlgmr.msra.gmra.mxu3 %v5416_v36 }
  0xb0   : >> { %1243 = vmatpush.bf16.msra.mxu2 %v5402_v14  ;;  %1256 = vmatpush.bf16.msra.mxu0 %v5407_v2  ;;  %v5439_v2 = vpop.permute.xlu2 %988  ;;  %v4098_v14 = vld [vmem:[%s4773_s28 + $0x2c] sm:$0x1] }
  0xb1   : >> { %1278 = vmatpush.bf16.msrb.mxu3 %v4820_v7  ;;  %v6621_v7 = vunpack.c.l.b16 %v5265_v60  ;;  %1292 = vmatpush.bf16.msrb.mxu1 %v4859_v29 }
  0xb2   : >> { %1857 = vrot.lane.b32.xlu2 %v1856_v28, %s4707_s29  ;;  %v2213_v28 = vunpack.c.l.b16 %v4098_v14 }
  0xb3   : >> { %v1823_v19 = vpack.c.b16 %v6622_v17, %v6621_v7  ;;  %v983_v30 = vpop.permute.xlu1 %982 }
  0xb4   : >> { %1244 = vmatpush.bf16.msra.mxu2 %v5424_v10  ;;  %1257 = vmatpush.bf16.msra.mxu0 %v5429_v59  ;;  %v970_v20 = vpop.permute.xlu0 %969  ;;  %v2214_v17 = vpack.c.b16 %v2213_v28, %v2212_v55  ;;  %v5544_v55 = vld [vmem:[%s6531_s1 + $0x32c] sm:$0xff] }
  0xb5   : >> { %1279 = vmatpush.bf16.msrb.mxu3 %v4853_v27  ;;  %v1825_v39 = vshrl.u32 %v1823_v19, 16  ;;  %v1828_v1 = vshll.u32 %v1823_v19, 16  ;;  %1293 = vmatpush.bf16.msrb.mxu1 %v4891_v42  ;;  %v999_v27 = vsel %vm284_vm3, %v997_v54, %v970_v20  ;;  %v1002_v16 = vsel %vm288_vm5, %v970_v20, %v983_v30  ;;  %v4099_v42 = vld [vmem:[%s4773_s28 + $0x28] sm:$0xe] }
  0xb6   : >> { %v5456_v7 = vsel %vm291_vm7, %v1002_v16, %v5439_v2  ;;  %3756 = vmatmul.msk.bf16.vlgmr.msra.gmra.mxu1 %vm646_vm2, %v5439_v2  ;;  %v2225_v14 = vunpack.c.l.b16 %v4099_v42  ;;  %v2218_v19 = vshll.u32 %v2214_v17, 16  ;;  %v5554_v42 = vld [vmem:[%s6531_s1 + $0x2a4] sm:$0xff] }
  0xb7   : >> { %v1827_v29 = vrot.slane %v1825_v39, 1  ;;  %v1830_v60 = vrot.slane %v1828_v1, 2  ;;  %1245 = vmatmul.bf16.vlgmr.msra.gmra.mxu2 %v999_v27  ;;  %1258 = vmatmul.bf16.vlgmr.msra.gmra.mxu0 %v5456_v7  ;;  %v4101_v39 = vld [vmem:[%s4773_s28 + $0x28] sm:$0xc]  ;;  %v5469_v1 = vld [vmem:[%s4773_s28 + $0x2c] sm:$0x7] }
  0xb8   : >> { %1303 = vmatpush.bf16.msrb.mxu2 %v4846_v24  ;;  %1321 = vmatpush.bf16.msrb.mxu0 %v4873_v37  ;;  %v2226_v37 = vpack.c.b16 %v2213_v28, %v2225_v14  ;;  %v2220_v54 = vrot.slane %v2218_v19, 1 }
  0xb9   : >> { %1280 = vmatpush.bf16.msrb.mxu3 %v4885_v41  ;;  %v1831_v24 = vor.u32 %v1830_v60, %v1827_v29  ;;  %1294 = vmatpush.bf16.msrb.mxu1 %v4930_v57  ;;  %v2216_v41 = vshrl.u32 %v2214_v17, 16  ;;  %v2244_v29 = vunpack.c.l.b16 %v4101_v39  ;;  %v2250_v57 = vunpack.c.l.b16 %v5469_v1  ;;  %v6634_v17 = vld [vmem:[#allocation21_spill] sm:$0xff]  ;;  %v5578_v39 = vld [vmem:[%s6531_s1 + $0x344] sm:$0xff] }
  0xba   : >> { %v2227_v30 = vrot.slane %v2226_v37, 1  ;;  %v5564_v37 = vld [vmem:[%s6531_s1 + $0x324] sm:$0xff]  ;;  %v6637_v1 = vld [vmem:[#allocation9_spill] sm:$0xff] }
  0xbb   : >> { %1832 = vrot.lane.b32.xlu2 %v1831_v24, %s4712_s7  ;;  %v2221_v20 = vor.u32 %v2220_v54, %v2216_v41  ;;  %v6636_v41 = vld [vmem:[#allocation18_spill] sm:$0xff]  ;;  %v5571_v54 = vld [vmem:[%s6531_s1 + $0x2f4] sm:$0xff] }
  0xbc   : >> { %1304 = vmatpush.bf16.msrb.mxu2 %v4867_v33  ;;  %1322 = vmatpush.bf16.msrb.mxu0 %v4879_v40  ;;  %v2251_v33 = vpack.c.b16 %v2250_v57, %v2244_v29  ;;  %v4100_v40 = vld [vmem:[%s4773_s28 + $0x2c] sm:$0x3] }
  0xbd   : >> { %1281 = vmatpush.bf16.msrb.mxu3 %v4909_v51  ;;  %1295 = vmatpush.bf16.msrb.mxu1 %v4958_v15  ;;  %v2231_v28 = vunpack.c.l.b16 %v4100_v40  ;;  %v4269_v40 = vld [vmem:[%s4773_s28 + $0x30] sm:$0xc] }
  0xbe   : >> { %2228 = vrot.lane.b32.xlu1 %v2227_v30, %s4709_s4  ;;  %2222 = vrot.lane.b32.xlu0 %v2221_v20, %s4710_s5  ;;  %v2253_v51 = vshrl.u32 %v2251_v33, 16  ;;  %v2256_v60 = vshll.u32 %v2251_v33, 16  ;;  %v5585_v30 = vld [vmem:[%s6531_s1 + $0x29c] sm:$0xff]  ;;  %v1405_v33 = vpop.permute.xlu0 %1404 }
  0xbf   : >> { %v5590_v20 = vld [vmem:[%s6531_s1 + $0x31c] sm:$0xff] }
  0xc0   : >> { %1305 = vmatpush.bf16.msrb.mxu2 %v4897_v44  ;;  %1323 = vmatpush.bf16.msrb.mxu0 %v4914_v52  ;;  %v2255_v44 = vrot.slane %v2253_v51, 2  ;;  %v2258_v52 = vrot.slane %v2256_v60, 3  ;;  %v5624_v51 = vld [vmem:[%s4773_s28 + $0x34] sm:$0x7]  ;;  %v5626_v60 = vpop.permute.xlu2 %1423 }
  0xc1   : >> { %1282 = vmatpush.bf16.msrb.mxu3 %v4947_v9  ;;  %1296 = vmatpush.bf16.msrb.mxu1 %v4997_v26  ;;  %v2245_v9 = vpack.c.b16 %v2231_v28, %v2244_v29  ;;  %v6624_v26 = vld [vmem:[#allocation5_spill] sm:$0xff]  ;;  %v5599_v29 = vld [vmem:[%s6531_s1 + $0x2ec] sm:$0xff] }
  0xc2   : >> { %v2259_v15 = vor.u32 %v2258_v52, %v2255_v44  ;;  %v2659_v44 = vunpack.c.l.b16 %v5624_v51  ;;  %v5633_v52 = vld [vmem:[%s6531_s1 + $0x2e4] sm:$0xff] }
  0xc4   : >> { %1342 = vmatpush.bf16.msra.mxu0 %v5023_v46  ;;  %1306 = vmatpush.bf16.msrb.mxu2 %v4936_v58  ;;  %v2246_v58 = vrot.slane %v2245_v9, 2  ;;  %v6625_v46 = vld [vmem:[#allocation11_spill] sm:$0xff]  ;;  %v5637_v9 = vld [vmem:[%s4773_s28 + $0x34] sm:$0x3] }
  0xc5   : >> { %1283 = vmatpush.bf16.msrb.mxu3 %v4984_v34  ;;  %1297 = vmatpush.bf16.msrb.mxu1 %v5029_v47  ;;  %v6626_v47 = vld [vmem:[#allocation13_spill] sm:$0xff] }
  0xc6   : >> { %2260 = vrot.lane.b32.xlu1 %v2259_v15, %s4711_s6  ;;  %2247 = vrot.lane.b32.xlu0 %v2246_v58, %s4708_s30  ;;  %v5646_v58 = vld [vmem:[%s6531_s1 + $0x28c] sm:$0xff] }
  0xc7   : >> { %3757 = vmatmul.msk.bf16.vlgmr.msrb.gmra.mxu0 %vm646_vm2, %v5439_v2  ;;  %v6632_v2 = vld [vmem:[#allocation7_spill] sm:$0xff] }
  0xc8   : >> { %1343 = vmatpush.bf16.msra.mxu0 %v5055_v63  ;;  %1307 = vmatpush.bf16.msrb.mxu2 %v4964_v18  ;;  %v6627_v63 = vld [vmem:[#allocation12_spill] sm:$0xff] }
  0xc9   : >> { %1355 = vmatpush.bf16.msra.mxu1 %v5038_v50  ;;  %1284 = vmatpush.bf16.msrb.mxu3 %v5013_v43 }
  0xca   : >> { %1298 = vmatmul.bf16.vlgmr.msrb.gmra.mxu1 %v999_v27 }
  0xcc   : >> { %1344 = vmatpush.bf16.msra.mxu0 %v5075_v21  ;;  %1308 = vmatpush.bf16.msrb.mxu2 %v5003_v31  ;;  %v5521_v21 = vld [vmem:[%s6531_s1 + $0x2b4] sm:$0xff] }
  0xcd   : >> { %1329 = vmatpush.bf16.msra.mxu3 %v4921_v53  ;;  %1356 = vmatpush.bf16.msra.mxu1 %v5063_v6  ;;  %v2232_v53 = vpack.c.b16 %v2231_v28, %v2225_v14  ;;  %v6628_v6 = vld [vmem:[#allocation6_spill] sm:$0xff]  ;;  %v6635_v14 = vld [vmem:[#allocation8_spill] sm:$0xff]  ;;  %v2653_v28 = vunpack.c.l.b16 %v4269_v40 }
  0xce   : >> { %1285 = vmatmul.bf16.vlgmr.msrb.gmra.mxu3 %v5416_v36  ;;  %v5537_v36 = vld [vmem:[%s6531_s1 + $0x2ac] sm:$0xff] }
  0xcf   : >> { %v2234_v18 = vshrl.u32 %v2232_v53, 16  ;;  %v2237_v34 = vshll.u32 %v2232_v53, 16  ;;  %v2660_v15 = vpack.c.b16 %v2659_v44, %v2653_v28  ;;  %v5651_v53 = vld [vmem:[%s6531_s1 + $0x30c] sm:$0xff] }
  0xd0   : >> { %1345 = vmatpush.bf16.msra.mxu0 %v5087_v38  ;;  %1309 = vmatpush.bf16.msrb.mxu2 %v5097_v32  ;;  %v5526_v38 = vld [vmem:[%s6531_s1 + $0x334] sm:$0xff] }
  0xd1   : >> { %1330 = vmatpush.bf16.msra.mxu3 %v4952_v11  ;;  %1357 = vmatpush.bf16.msra.mxu1 %v5102_v48  ;;  %v6623_v11 = vld [vmem:[#allocation10_spill] sm:$0xff]  ;;  %v2236_v31 = vrot.slane %v2234_v18, 1  ;;  %v2239_v43 = vrot.slane %v2237_v34, 2  ;;  %v4103_v48 = vld [vmem:[%s4773_s28 + $0x28] sm:$0x8]  ;;  %v2640_v18 = vunpack.c.l.b16 %v5637_v9 }
  0xd2   : >> { %v6638_v34 = vld [vmem:[#allocation19_spill] sm:$0xff]  ;;  %v5842_v9 = vld [vmem:[%s6531_s1 + $0x360] sm:$0xff] }
  0xd3   : >> { %v2240_v50 = vor.u32 %v2239_v43, %v2236_v31  ;;  %v5659_v31 = vld [vmem:[%s6531_s1 + $0x2dc] sm:$0xff]  ;;  %v2654_v43 = vpack.c.b16 %v2640_v18, %v2653_v28 }
  0xd4   : >> { %1346 = vmatpush.bf16.msra.mxu0 %v5109_v49  ;;  %1310 = vmatpush.bf16.msrb.mxu2 %v5126_v62  ;;  %v6629_v49 = vld [vmem:[#allocation14_spill] sm:$0xff]  ;;  %v6630_v62 = vld [vmem:[#allocation16_spill] sm:$0xff] }
  0xd5   : >> { %1331 = vmatpush.bf16.msra.mxu3 %v4989_v13  ;;  %1358 = vmatpush.bf16.msra.mxu1 %v5131_v3  ;;  %v3820_v13 = vld [vmem:[%s6531_s1 + $0x34c] sm:$0x3]  ;;  %v2263_v3 = vunpack.c.l.b16 %v4103_v48 }
  0xd6   : >> { %v1625_v32 = vunpack.c.l.b16 %v3820_v13  ;;  %2241 = vrot.lane.b32.xlu2 %v2240_v50, %s4712_s7  ;;  %v4266_v50 = vld [vmem:[%s4773_s28 + $0x34] sm:$0x1] }
  0xd7   : >> { %1311 = vmatmul.bf16.vlgmr.msrb.gmra.mxu2 %v5456_v7  ;;  %v2264_v16 = vpack.c.b16 %v2250_v57, %v2263_v3  ;;  %v6633_v7 = vld [vmem:[#allocation17_spill] sm:$0xff] }
  0xd8   : >> { %1373 = vmatpush.bf16.msra.mxu2 %v5141_v12  ;;  %1347 = vmatpush.bf16.msra.mxu0 %v6623_v11  ;;  %v6631_v12 = vld [vmem:[#allocation15_spill] sm:$0xff]  ;;  %v1652_v27 = vpack.c.b16 %v1625_v32, %v1625_v32  ;;  %v5606_v57 = vld [vmem:[%s6531_s1 + $0x33c] sm:$0xff]  ;;  %v2662_v11 = vshrl.u32 %v2660_v15, 16  ;;  %v2655_v32 = vrot.slane %v2654_v43, 2 }
  0xd9   : >> { %1332 = vmatpush.bf16.msra.mxu3 %v6624_v26  ;;  %1359 = vmatpush.bf16.msra.mxu1 %v6625_v46  ;;  %v2265_v24 = vrot.slane %v2264_v16, 3  ;;  %v2665_v26 = vshll.u32 %v2660_v15, 16 }
  0xda   : >> { %v5559_v19 = vsel %vm649_vm0, %v1652_v27, 0  ;;  %v2664_v13 = vrot.slane %v2662_v11, 2  ;;  %v1430_v27 = vpop.permute.xlu0 %1429  ;;  %2656 = vrot.lane.b32.xlu0 %v2655_v32, %s4708_s30  ;;  %v5736_v32 = vld [vmem:[%s6531_s1 + $0x2c4] sm:$0xff] }
  0xdb   : >> { %v2667_v46 = vrot.slane %v2665_v26, 3 }
  0xdc   : >> { %1374 = vmatpush.bf16.msra.mxu2 %v6626_v47  ;;  %1348 = vmatpush.bf16.msra.mxu0 %v6627_v63  ;;  %v5664_v47 = vld [vmem:[%s4773_s28 + $0x30] sm:$0xf]  ;;  %v5672_v63 = vld [vmem:[%s6531_s1 + $0x284] sm:$0xff] }
  0xdd   : >> { %1333 = vmatpush.bf16.msra.mxu3 %v6628_v6  ;;  %1360 = vmatpush.bf16.msra.mxu1 %v6629_v49  ;;  %6639 = vst [vmem:[#allocation10_spill] sm:$0xff] %v5664_v47  ;;  %v5677_v6 = vld [vmem:[%s6531_s1 + $0x304] sm:$0xff]  ;;  %v2621_v48 = vunpack.c.l.b16 %v5664_v47  ;;  %v2622_v49 = vunpack.c.l.b16 %v4266_v50  ;;  %v2668_v3 = vor.u32 %v2667_v46, %v2664_v13  ;;  %v6642_v50 = vld [vmem:[#allocation20_spill] sm:$0xff] }
  0xde   : >> { %2266 = vrot.lane.b32.xlu2 %v2265_v24, %s4707_s29  ;;  %v5701_v24 = vld [vmem:[%s6531_s1 + $0x2fc] sm:$0xff] }
  0xdf   : >> { %v2623_v16 = vpack.c.b16 %v2622_v49, %v2621_v48  ;;  %2669 = vrot.lane.b32.xlu1 %v2668_v3, %s4711_s6  ;;  %v6646_v3 = vld [vmem:[#allocation26_spill] sm:$0xff] }
  0xe0   : >> { %1375 = vmatpush.bf16.msra.mxu2 %v6630_v62  ;;  %1349 = vmatpush.bf16.msra.mxu0 %v6631_v12  ;;  %v6640_v62 = vld [vmem:[#allocation22_spill] sm:$0xff]  ;;  %v5685_v12 = vld [vmem:[%s6531_s1 + $0x2d4] sm:$0xff] }
  0xe1   : >> { %1334 = vmatpush.bf16.msra.mxu3 %v6632_v2  ;;  %1361 = vmatpush.bf16.msra.mxu1 %v6633_v7  ;;  %v5688_v7 = vpop.permute.xlu2 %1448  ;;  %v2625_v11 = vshrl.u32 %v2623_v16, 16 }
  0xe3   : >> { %1350 = vmatmul.bf16.vlgmr.msra.gmra.mxu0 %v6634_v17  ;;  %v5696_v17 = vld [vmem:[%s6531_s1 + $0x27c] sm:$0xff] }
  0xe4   : >> { %1684 = vmatpush.bf16.msrb.mxu2 %v5521_v21  ;;  %1710 = vmatpush.bf16.msrb.mxu0 %v5526_v38 }
  0xe5   : >> { %1335 = vmatpush.bf16.msra.mxu3 %v6635_v14  ;;  %1362 = vmatpush.bf16.msra.mxu1 %v6636_v41  ;;  %v2627_v14 = vshll.u32 %v2623_v16, 16  ;;  %v5704_v41 = vld [vmem:[%s4773_s28 + $0x30] sm:$0xe]  ;;  %v6649_v16 = vld [vmem:[#allocation27_spill] sm:$0xff] }
  0xe6   : >> { %v2634_v15 = vunpack.c.l.b16 %v5704_v41 }
  0xe7   : >> { %3758 = vmatmul.msk.bf16.vlgmr.msra.gmra.mxu2 %vm646_vm2, %v5219_v4  ;;  %v5618_v4 = vld [vmem:[%s6531_s1 + $0x314] sm:$0xff]  ;;  %v2629_v26 = vrot.slane %v2627_v14, 1 }
  0xe8   : >> { %1685 = vmatpush.bf16.msrb.mxu2 %v5537_v36  ;;  %1711 = vmatpush.bf16.msrb.mxu0 %v5544_v55  ;;  %v5785_v14 = vld [vmem:[%s6531_s1 + $0x378] sm:$0xff] }
  0xe9   : >> { %1728 = vmatpush.bf16.msrb.mxu1 %v5559_v19  ;;  %1336 = vmatpush.bf16.msra.mxu3 %v6637_v1  ;;  %v6641_v1 = vld [vmem:[#allocation4_spill] sm:$0xff]  ;;  %v2630_v13 = vor.u32 %v2629_v26, %v2625_v11 }
  0xea   : >> { %1363 = vmatmul.bf16.vlgmr.msra.gmra.mxu1 %v5293_v61  ;;  %v5611_v61 = vld [vmem:[%s6531_s1 + $0x294] sm:$0xff]  ;;  %v1452_v40 = vsel %vm273_vm4, %v6641_v1, %v1405_v33  ;;  %v2635_v33 = vpack.c.b16 %v2622_v49, %v2634_v15  ;;  %v5756_v49 = vld [vmem:[%s6531_s1 + $0x388] sm:$0xff]  ;;  %v5793_v1 = vld [vmem:[%s6531_s1 + $0x3c0] sm:$0xff] }
  0xeb   : >> { %2631 = vrot.lane.b32.xlu0 %v2630_v13, %s4710_s5  ;;  %v5801_v11 = vld [vmem:[%s6531_s1 + $0x370] sm:$0xff]  ;;  %v6652_v13 = vld [vmem:[#allocation35_spill] sm:$0xff] }
  0xec   : >> { %1686 = vmatpush.bf16.msrb.mxu2 %v5554_v42  ;;  %1712 = vmatpush.bf16.msrb.mxu0 %v5564_v37  ;;  %v2636_v46 = vrot.slane %v2635_v33, 1 }
  0xed   : >> { %1697 = vmatpush.bf16.msrb.mxu3 %v5571_v54  ;;  %1729 = vmatpush.bf16.msrb.mxu1 %v5578_v39 }
  0xee   : >> { %1337 = vmatmul.bf16.vlgmr.msra.gmra.mxu3 %v5283_v22  ;;  %v5620_v22 = vpop.permute.xlu1 %1410  ;;  %2637 = vrot.lane.b32.xlu1 %v2636_v46, %s4709_s4  ;;  %v5812_v46 = vld [vmem:[%s6531_s1 + $0x3b8] sm:$0xff] }
  0xef   : >> { %v1454_v43 = vsel %vm277_vm6, %v1452_v40, %v5620_v22  ;;  %v1457_v48 = vsel %vm281_vm1, %v5620_v22, %v5626_v60  ;;  %v6647_v22 = vld [vmem:[#allocation25_spill] sm:$0xff]  ;;  %v5770_v60 = vld [vmem:[%s6531_s1 + $0x380] sm:$0xff]  ;;  %v4271_v40 = vld [vmem:[%s4773_s28 + $0x30] sm:$0x8] }
  0xf0   : >> { %1687 = vmatpush.bf16.msrb.mxu2 %v5585_v30  ;;  %1713 = vmatpush.bf16.msrb.mxu0 %v5590_v20  ;;  %v2672_v26 = vunpack.c.l.b16 %v4271_v40 }
  0xf1   : >> { %1698 = vmatpush.bf16.msrb.mxu3 %v5599_v29  ;;  %1730 = vmatpush.bf16.msrb.mxu1 %v5606_v57 }
  0xf2   : >> { %v2673_v33 = vpack.c.b16 %v2659_v44, %v2672_v26  ;;  %v5857_v26 = vld [vmem:[%s6531_s1 + $0x3a8] sm:$0xff] }
  0xf3   : >> { %v5821_v51 = vpop.permute.xlu0 %1838  ;;  %6656 = vst [vmem:[#allocation5_spill] sm:$0xff] %v5857_v26 }
  0xf4   : >> { %1688 = vmatpush.bf16.msrb.mxu2 %v5611_v61  ;;  %1714 = vmatpush.bf16.msrb.mxu0 %v5618_v4  ;;  %v2674_v44 = vrot.slane %v2673_v33, 3  ;;  %v5862_v33 = vld [vmem:[%s6531_s1 + $0x358] sm:$0xff] }
  0xf5   : >> { %1737 = vmatpush.bf16.msra.mxu1 %v6638_v34  ;;  %1699 = vmatpush.bf16.msrb.mxu3 %v5633_v52  ;;  %v5715_v34 = vld [vmem:[%s6531_s1 + $0x2cc] sm:$0xff] }
  0xf6   : >> { %v1443_v2 = vpop.permute.xlu1 %1442  ;;  %2675 = vrot.lane.b32.xlu2 %v2674_v44, %s4707_s29 }
  0xf7   : >> { %v1462_v28 = vsel %vm288_vm5, %v1430_v27, %v1443_v2  ;;  %v6648_v2 = vld [vmem:[#allocation32_spill] sm:$0xff] }
  0xf8   : >> { %1689 = vmatpush.bf16.msrb.mxu2 %v5646_v58  ;;  %1715 = vmatpush.bf16.msrb.mxu0 %v5651_v53 }
  0xf9   : >> { %1738 = vmatpush.bf16.msra.mxu1 %v6640_v62  ;;  %1700 = vmatpush.bf16.msrb.mxu3 %v5659_v31  ;;  %v5761_v62 = vsel %vm284_vm3, %v1457_v48, %v1430_v27  ;;  %v5778_v27 = vld [vmem:[%s6531_s1 + $0x3c8] sm:$0xff]  ;;  %v6654_v48 = vld [vmem:[#allocation37_spill] sm:$0xff] }
  0xfa   : >> { %3925 = vmatmul.msk.bf16.vlgmr.msrb.gmra.mxu1 %vm646_vm2, %v5688_v7 }
  0xfc   : >> { %1690 = vmatpush.bf16.msrb.mxu2 %v5672_v63  ;;  %1716 = vmatpush.bf16.msrb.mxu0 %v5677_v6 }
  0xfd   : >> { %1739 = vmatpush.bf16.msra.mxu1 %v5254_v56  ;;  %1701 = vmatpush.bf16.msrb.mxu3 %v5685_v12  ;;  %v5725_v56 = vsel %vm291_vm7, %v1462_v28, %v5688_v7  ;;  %v6651_v28 = vld [vmem:[#allocation28_spill] sm:$0xff] }
 0x100   : >> { %1691 = vmatpush.bf16.msrb.mxu2 %v5696_v17  ;;  %1717 = vmatpush.bf16.msrb.mxu0 %v5701_v24 }
 0x101   : >> { %1740 = vmatpush.bf16.msra.mxu1 %v5288_v8  ;;  %1702 = vmatpush.bf16.msrb.mxu3 %v5715_v34  ;;  %v5748_v8 = vld [vmem:[%s6531_s1 + $0x2bc] sm:$0xff] }
 0x103   : >> { %1718 = vmatmul.bf16.vlgmr.msrb.gmra.mxu0 %v5725_v56  ;;  %1692 = vmatmul.bf16.vlgmr.msrb.gmra.mxu2 %v1454_v43 }
 0x104   : >> { %1750 = vmatpush.bf16.msra.mxu2 %v5272_v5  ;;  %1781 = vmatpush.bf16.msra.mxu0 %v6642_v50  ;;  %v6643_v5 = vld [vmem:[#allocation24_spill] sm:$0xff]  ;;  %v6653_v50 = vld [vmem:[#allocation31_spill] sm:$0xff] }
 0x105   : >> { %1741 = vmatpush.bf16.msra.mxu1 %v5315_v35  ;;  %1703 = vmatpush.bf16.msrb.mxu3 %v5736_v32  ;;  %v6644_v35 = vld [vmem:[#allocation30_spill] sm:$0xff] }
 0x108   : >> { %1751 = vmatpush.bf16.msra.mxu2 %v5308_v0  ;;  %1782 = vmatpush.bf16.msra.mxu0 %v6643_v5  ;;  %v6645_v0 = vld [vmem:[#allocation29_spill] sm:$0xff]  ;;  %v2641_v5 = vpack.c.b16 %v2640_v18, %v2634_v15  ;;  %v5847_v18 = vld [vmem:[%s6531_s1 + $0x408] sm:$0xff]  ;;  %v3988_v15 = vld [vmem:[%s6531_s1 + $0x420] sm:$0x3] }
 0x109   : >> { %1742 = vmatpush.bf16.msra.mxu1 %v6644_v35  ;;  %1704 = vmatpush.bf16.msrb.mxu3 %v5748_v8  ;;  %v5833_v35 = vld [vmem:[%s6531_s1 + $0x3b0] sm:$0xff] }
 0x10c   : >> { %1752 = vmatpush.bf16.msra.mxu2 %v6645_v0  ;;  %1783 = vmatpush.bf16.msra.mxu0 %v6646_v3  ;;  %v5835_v0 = vpop.permute.xlu1 %1851  ;;  %v6655_v3 = vld [vmem:[#allocation34_spill] sm:$0xff] }
 0x10d   : >> { %1763 = vmatpush.bf16.msra.mxu3 %v6647_v22  ;;  %1743 = vmatpush.bf16.msra.mxu1 %v5356_v25  ;;  %v6650_v25 = vld [vmem:[#allocation33_spill] sm:$0xff] }
 0x10e   : >> { %1705 = vmatmul.bf16.vlgmr.msrb.gmra.mxu3 %v5761_v62 }
 0x110   : >> { %2093 = vmatpush.bf16.msrb.mxu0 %v5756_v49  ;;  %1753 = vmatpush.bf16.msra.mxu2 %v6648_v2  ;;  %v2643_v2 = vshrl.u32 %v2641_v5, 16 }
 0x111   : >> { %1764 = vmatpush.bf16.msra.mxu3 %v6649_v16  ;;  %1744 = vmatpush.bf16.msra.mxu1 %v5377_v23  ;;  %v675_v23 = vpop.f32.mrf.mxu1  ;;  %v2646_v16 = vshll.u32 %v2641_v5, 16  ;;  %v4434_v5 = vld [vmem:[%s4773_s28 + $0x3c] sm:$0x1] }
 0x112   : >> { %v2645_v40 = vrot.slane %v2643_v2, 1 }
 0x113   : >> { %3926 = vmatmul.msk.bf16.vlgmr.msra.gmra.mxu0 %vm646_vm2, %v5688_v7  ;;  %v5819_v7 = vld [vmem:[%s6531_s1 + $0x368] sm:$0xff]  ;;  %v662_v22 = vpop.f32.mrf.mxu0 }
 0x114   : >> { %2094 = vmatpush.bf16.msrb.mxu0 %v5770_v60  ;;  %1754 = vmatpush.bf16.msra.mxu2 %v6650_v25  ;;  %v676_v25 = vadd.f32 %v675_v23, %v662_v22  ;;  %v5871_v23 = vld [vmem:[%s6531_s1 + $0x400] sm:$0xff]  ;;  %v3031_v22 = vunpack.c.l.b16 %v4434_v5  ;;  %v1820_v47 = vpop.permute.xlu1 %1819 }
 0x115   : >> { %2106 = vmatpush.bf16.msrb.mxu1 %v5778_v27  ;;  %1765 = vmatpush.bf16.msra.mxu3 %v6651_v28  ;;  %v2648_v28 = vrot.slane %v2646_v16, 2  ;;  %6657 = vst [vmem:[#allocation11_spill] sm:$0xff] %v5871_v23  ;;  %v5885_v16 = vld [vmem:[%s6531_s1 + $0x3a0] sm:$0xff] }
 0x116   : >> { %1745 = vmatmul.bf16.vlgmr.msra.gmra.mxu1 %v1454_v43  ;;  %v701_v43 = vpop.f32.mrf.mxu3  ;;  %6660 = vst [vmem:[#allocation12_spill] sm:$0xff] %v5885_v16 }
 0x117   : >> { %v2649_v44 = vor.u32 %v2648_v28, %v2645_v40 }
 0x118   : >> { %2095 = vmatpush.bf16.msrb.mxu0 %v5785_v14  ;;  %1755 = vmatpush.bf16.msra.mxu2 %v6652_v13  ;;  %v2034_v13 = vunpack.c.l.b16 %v3988_v15  ;;  %v1814_v15 = vpop.permute.xlu0 %1813 }
 0x119   : >> { %2107 = vmatpush.bf16.msrb.mxu1 %v5793_v1  ;;  %1766 = vmatpush.bf16.msra.mxu3 %v6653_v50  ;;  %v677_v41 = vpop.f32.mrf.mxu1  ;;  %v5864_v50 = vpop.permute.xlu2 %1857 }
 0x11a   : >> { %2650 = vrot.lane.b32.xlu2 %v2649_v44, %s4712_s7  ;;  %v688_v2 = vpop.f32.mrf.mxu2  ;;  %v2061_v40 = vpack.c.b16 %v2034_v13, %v2034_v13  ;;  %v5897_v44 = vld [vmem:[%s6531_s1 + $0x3f8] sm:$0xff]  ;;  %v6663_v13 = vld [vmem:[#allocation38_spill] sm:$0xff] }
 0x11b   : >> { %v664_v5 = vpop.f32.mrf.mxu0  ;;  %6662 = vst [vmem:[#allocation14_spill] sm:$0xff] %v5897_v44 }
 0x11c   : >> { %2096 = vmatpush.bf16.msrb.mxu0 %v5801_v11  ;;  %1756 = vmatpush.bf16.msra.mxu2 %v6654_v48  ;;  %v5875_v48 = vld [vmem:[%s4773_s28 + $0x38] sm:$0xf] }
 0x11d   : >> { %2108 = vmatpush.bf16.msrb.mxu1 %v5812_v46  ;;  %1767 = vmatpush.bf16.msra.mxu3 %v6655_v3  ;;  %6658 = vst [vmem:[#allocation13_spill] sm:$0xff] %v5875_v48  ;;  %v6659_v3 = vld [vmem:[#allocation36_spill] sm:$0xff]  ;;  %v3030_v41 = vunpack.c.l.b16 %v5875_v48 }
 0x11f   : >> { %v3032_v28 = vpack.c.b16 %v3031_v22, %v3030_v41  ;;  %v6664_v41 = vld [vmem:[#allocation23_spill] sm:$0xff] }
 0x120   : >> { %2097 = vmatpush.bf16.msrb.mxu0 %v5819_v7  ;;  %1757 = vmatpush.bf16.msra.mxu2 %v5424_v10  ;;  %v703_v10 = vpop.f32.mrf.mxu3  ;;  %v1861_v48 = vsel %vm273_vm4, %v6664_v41, %v1814_v15 }
 0x121   : >> { %2109 = vmatpush.bf16.msrb.mxu1 %v5833_v35  ;;  %1768 = vmatpush.bf16.msra.mxu3 %v6659_v3  ;;  %v689_v10 = vadd.f32 %v688_v2, %v676_v25  ;;  %v5900_v3 = vld [vmem:[%s4773_s28 + $0x38] sm:$0xe]  ;;  %v3036_v2 = vshll.u32 %v3032_v28, 16 }
 0x122   : >> { %v6575_v25 = vunpack.c.l.b16 %v5900_v3 }
 0x123   : >> { %1758 = vmatmul.bf16.vlgmr.msra.gmra.mxu2 %v5761_v62  ;;  %v5892_v62 = vld [vmem:[%s6531_s1 + $0x350] sm:$0xff]  ;;  %v702_v5 = vadd.f32 %v701_v43, %v689_v10  ;;  %v3038_v41 = vrot.slane %v3036_v2, 1  ;;  %v1833_v10 = vpop.permute.xlu2 %1832  ;;  %v5931_v2 = vld [vmem:[%s4773_s28 + $0x3c] sm:$0x7] }
 0x124   : >> { %2098 = vmatpush.bf16.msrb.mxu0 %v5842_v9  ;;  %2119 = vmatpush.bf16.msrb.mxu2 %v5847_v18  ;;  %6661 = vst [vmem:[#allocation6_spill] sm:$0xff] %v5892_v62  ;;  %v3044_v15 = vpack.c.b16 %v3031_v22, %v6575_v25  ;;  %v5922_v43 = vld [vmem:[%s6531_s1 + $0x3f0] sm:$0xff]  ;;  %v5937_v25 = vld [vmem:[%s6531_s1 + $0x418] sm:$0xff] }
 0x125   : >> { %2110 = vmatpush.bf16.msrb.mxu1 %v5857_v26  ;;  %1769 = vmatpush.bf16.msra.mxu3 %v6663_v13  ;;  %v5908_v26 = vsel %vm649_vm0, %v2061_v40, 0  ;;  %v3034_v13 = vshrl.u32 %v3032_v28, 16  ;;  %6666 = vst [vmem:[#allocation15_spill] sm:$0xff] %v5922_v43  ;;  %v5925_v40 = vsel %vm277_vm6, %v1861_v48, %v1820_v47  ;;  %v4437_v28 = vld [vmem:[%s4773_s28 + $0x38] sm:$0xc]  ;;  %v3068_v48 = vunpack.c.l.b16 %v5931_v2 }
 0x126   : >> { %v3045_v22 = vrot.slane %v3044_v15, 1  ;;  %v5944_v15 = vld [vmem:[%s6531_s1 + $0x390] sm:$0xff] }
 0x128   : >> { %2099 = vmatpush.bf16.msrb.mxu0 %v5862_v33  ;;  %2120 = vmatpush.bf16.msrb.mxu2 %v5871_v23  ;;  %v5913_v23 = vld [vmem:[%s6531_s1 + $0x398] sm:$0xff] }
 0x129   : >> { %2111 = vmatpush.bf16.msrb.mxu1 %v5885_v16  ;;  %6665 = vst [vmem:[#allocation16_spill] sm:$0xff] %v5913_v23  ;;  %1770 = vmatpush.bf16.msra.mxu3 %v5429_v59  ;;  %v3039_v16 = vor.u32 %v3038_v41, %v3034_v13  ;;  %v690_v59 = vpop.f32.mrf.mxu2  ;;  %v904_v41 = vpop.f32.mrf.mxu1 }
 0x12a   : >> { %v1866_v59 = vsel %vm281_vm1, %v1820_v47, %v1833_v10  ;;  %3046 = vrot.lane.b32.xlu1 %v3045_v22, %s4709_s4 }
 0x12b   : >> { %3040 = vrot.lane.b32.xlu0 %v3039_v16, %s4710_s5 }
 0x12c   : >> { %2100 = vmatpush.bf16.msrb.mxu0 %v5892_v62  ;;  %2121 = vmatpush.bf16.msrb.mxu2 %v5897_v44  ;;  %v3062_v44 = vunpack.c.l.b16 %v4437_v28  ;;  %v5952_v28 = vld [vmem:[%s6531_s1 + $0x3e8] sm:$0xff]  ;;  %v891_v62 = vpop.f32.mrf.mxu0 }
 0x12d   : >> { %2137 = vmatpush.bf16.msrb.mxu3 %v5908_v26  ;;  %2112 = vmatpush.bf16.msrb.mxu1 %v5913_v23 }
 0x12e   : >> { %1771 = vmatmul.bf16.vlgmr.msra.gmra.mxu3 %v5725_v56  ;;  %v3069_v23 = vpack.c.b16 %v3068_v48, %v3062_v44  ;;  %v4436_v56 = vld [vmem:[%s4773_s28 + $0x3c] sm:$0x3] }
 0x12f   : >> { %2101 = vmatmul.bf16.vlgmr.msrb.gmra.mxu0 %v5925_v40 }
 0x130   : >> { %2159 = vmatpush.bf16.msra.mxu0 %v5571_v54  ;;  %v878_v54 = vpop.f32.mrf.mxu3  ;;  %2122 = vmatpush.bf16.msrb.mxu2 %v5922_v43  ;;  %v3071_v47 = vshrl.u32 %v3069_v23, 16  ;;  %v3074_v10 = vshll.u32 %v3069_v23, 16  ;;  %v3049_v43 = vunpack.c.l.b16 %v4436_v56 }
 0x131   : >> { %v879_v13 = vadd.f32 %v878_v54, %v702_v5  ;;  %2138 = vmatpush.bf16.msrb.mxu3 %v5937_v25  ;;  %v5964_v54 = vld [vmem:[%s6531_s1 + $0x410] sm:$0xff]  ;;  %2113 = vmatpush.bf16.msrb.mxu1 %v5944_v15  ;;  %v917_v56 = vpop.f32.mrf.mxu2 }
 0x132   : >> { %v3073_v16 = vrot.slane %v3071_v47, 2  ;;  %v3063_v23 = vpack.c.b16 %v3049_v43, %v3062_v44  ;;  %v906_v47 = vpop.f32.mrf.mxu1 }
 0x133   : >> { %v892_v5 = vadd.f32 %v891_v62, %v879_v13  ;;  %v5977_v62 = vld [vmem:[%s6531_s1 + $0x3e0] sm:$0xff]  ;;  %v3076_v13 = vrot.slane %v3074_v10, 3 }
 0x134   : >> { %2160 = vmatpush.bf16.msra.mxu0 %v5599_v29  ;;  %v5970_v29 = vsel %vm284_vm3, %v1866_v59, %v5821_v51  ;;  %2123 = vmatpush.bf16.msrb.mxu2 %v5952_v28  ;;  %v893_v44 = vpop.f32.mrf.mxu0 }
 0x135   : >> { %v905_v22 = vadd.f32 %v904_v41, %v892_v5  ;;  %2172 = vmatpush.bf16.msra.mxu1 %v5526_v38  ;;  %2139 = vmatpush.bf16.msrb.mxu3 %v5964_v54  ;;  %v3077_v59 = vor.u32 %v3076_v13, %v3073_v16  ;;  %v3064_v41 = vrot.slane %v3063_v23, 2  ;;  %v6087_v44 = vld [vmem:[%s6531_s1 + $0x4ec] sm:$0xff] }
 0x136   : >> { %2114 = vmatmul.bf16.vlgmr.msrb.gmra.mxu1 %v5970_v29 }
 0x137   : >> { %v5985_v5 = vadd.f32 %v917_v56, %v905_v22  ;;  %3078 = vrot.lane.b32.xlu1 %v3077_v59, %s4711_s6  ;;  %3065 = vrot.lane.b32.xlu0 %v3064_v41, %s4708_s30  ;;  %v4439_v41 = vld [vmem:[%s4773_s28 + $0x38] sm:$0x8] }
 0x138   : >> { %2161 = vmatpush.bf16.msra.mxu0 %v5633_v52  ;;  %v880_v38 = vpop.f32.mrf.mxu3  ;;  %2124 = vmatpush.bf16.msrb.mxu2 %v5977_v62  ;;  %v5990_v52 = vld [vmem:[%s6531_s1 + $0x3d8] sm:$0xff] }
 0x139   : >> { %2146 = vmatpush.bf16.msra.mxu3 %v5521_v21  ;;  %2173 = vmatpush.bf16.msra.mxu1 %v5544_v55  ;;  %v6001_v21 = vld [vmem:[%s6531_s1 + $0x3d0] sm:$0xff]  ;;  %v1871_v55 = vsel %vm288_vm5, %v5821_v51, %v5835_v0  ;;  %v6667_v51 = vunpack.c.l.b16 %v5900_v3  ;;  %v6028_v3 = vld [vmem:[%s6531_s1 + $0x45c] sm:$0xff] }
 0x13b   : >> { %v3050_v0 = vpack.c.b16 %v3049_v43, %v6667_v51  ;;  %v6130_v51 = vld [vmem:[%s6531_s1 + $0x4bc] sm:$0xff] }
 0x13c   : >> { %2162 = vmatpush.bf16.msra.mxu0 %v5659_v31  ;;  %2125 = vmatpush.bf16.msrb.mxu2 %v5990_v52  ;;  %v919_v31 = vpop.f32.mrf.mxu2 }
 0x13d   : >> { %2147 = vmatpush.bf16.msra.mxu3 %v5537_v36  ;;  %2174 = vmatpush.bf16.msra.mxu1 %v5564_v37  ;;  %v1873_v36 = vsel %vm291_vm7, %v1871_v55, %v5864_v50  ;;  %v1272_v37 = vpop.f32.mrf.mxu1  ;;  %v3055_v22 = vshll.u32 %v3050_v0, 16  ;;  %v6102_v31 = vld [vmem:[%s6531_s1 + $0x4c4] sm:$0xff] }
 0x13e   : >> { %4093 = vmatmul.msk.bf16.vlgmr.msrb.gmra.mxu3 %vm646_vm2, %v5864_v50 }
 0x140   : >> { %2163 = vmatpush.bf16.msra.mxu0 %v5685_v12  ;;  %v1233_v10 = vpop.f32.mrf.mxu3  ;;  %2126 = vmatpush.bf16.msrb.mxu2 %v6001_v21  ;;  %v1259_v12 = vpop.f32.mrf.mxu0 }
 0x141   : >> { %2148 = vmatpush.bf16.msra.mxu3 %v5554_v42  ;;  %2175 = vmatpush.bf16.msra.mxu1 %v5590_v20  ;;  %v4156_v42 = vld [vmem:[%s6531_s1 + $0x4f4] sm:$0x3]  ;;  %v3052_v20 = vshrl.u32 %v3050_v0, 16  ;;  %v2223_v0 = vpop.permute.xlu0 %2222 }
 0x142   : >> { %v2443_v43 = vunpack.c.l.b16 %v4156_v42 }
 0x143   : >> { %2127 = vmatmul.bf16.vlgmr.msrb.gmra.mxu2 %v1873_v36 }
 0x144   : >> { %2164 = vmatpush.bf16.msra.mxu0 %v5715_v34  ;;  %2190 = vmatpush.bf16.msra.mxu2 %v5559_v19  ;;  %v3054_v19 = vrot.slane %v3052_v20, 1  ;;  %v3057_v34 = vrot.slane %v3055_v22, 2 }
 0x145   : >> { %2149 = vmatpush.bf16.msra.mxu3 %v5585_v30  ;;  %2176 = vmatpush.bf16.msra.mxu1 %v5618_v4  ;;  %v6033_v30 = vld [vmem:[%s6531_s1 + $0x4dc] sm:$0xff]  ;;  %v1246_v4 = vpop.f32.mrf.mxu2  ;;  %v1274_v13 = vpop.f32.mrf.mxu1 }
 0x146   : >> { %v3058_v16 = vor.u32 %v3057_v34, %v3054_v19  ;;  %v6144_v19 = vld [vmem:[%s6531_s1 + $0x434] sm:$0xff] }
 0x147   : >> { %v6150_v34 = vld [vmem:[%s6531_s1 + $0x4b4] sm:$0xff] }
 0x148   : >> { %2165 = vmatpush.bf16.msra.mxu0 %v5736_v32  ;;  %2191 = vmatpush.bf16.msra.mxu2 %v5578_v39  ;;  %v1235_v32 = vpop.f32.mrf.mxu3  ;;  %v1247_v39 = vadd.f32 %v1246_v4, %v1233_v10  ;;  %v1261_v59 = vpop.f32.mrf.mxu0  ;;  %v6110_v10 = vld [vmem:[%s6531_s1 + $0x494] sm:$0xff]  ;;  %v6169_v4 = vld [vmem:[%s6531_s1 + $0x4ac] sm:$0xff] }
 0x149   : >> { %2150 = vmatpush.bf16.msra.mxu3 %v5611_v61  ;;  %2177 = vmatpush.bf16.msra.mxu1 %v5651_v53  ;;  %v6044_v61 = vld [vmem:[%s6531_s1 + $0x454] sm:$0xff]  ;;  %v6175_v32 = vld [vmem:[%s6531_s1 + $0x47c] sm:$0xff]  ;;  %v2248_v13 = vpop.permute.xlu0 %2247  ;;  %v2270_v59 = vsel %vm273_vm4, %v5443_v45, %v2223_v0 }
 0x14a   : >> { %v1260_v23 = vadd.f32 %v1259_v12, %v1247_v39  ;;  %v6049_v53 = vld [vmem:[%s6531_s1 + $0x4d4] sm:$0xff]  ;;  %3059 = vrot.lane.b32.xlu2 %v3058_v16, %s4712_s7 }
 0x14c   : >> { %2166 = vmatpush.bf16.msra.mxu0 %v5748_v8  ;;  %2192 = vmatpush.bf16.msra.mxu2 %v5606_v57  ;;  %v2470_v8 = vpack.c.b16 %v2443_v43, %v2443_v43  ;;  %v3081_v57 = vunpack.c.l.b16 %v4439_v41  ;;  %v1273_v56 = vadd.f32 %v1272_v37, %v1260_v23  ;;  %v2242_v37 = vpop.permute.xlu2 %2241  ;;  %v6163_v43 = vld [vmem:[%s6531_s1 + $0x42c] sm:$0xff]  ;;  %v6184_v23 = vld [vmem:[%s6531_s1 + $0x424] sm:$0xff] }
 0x14d   : >> { %2151 = vmatpush.bf16.msra.mxu3 %v5646_v58  ;;  %2178 = vmatpush.bf16.msra.mxu1 %v5677_v6  ;;  %v6066_v58 = vld [vmem:[%s6531_s1 + $0x44c] sm:$0xff]  ;;  %v1248_v2 = vpop.f32.mrf.mxu2 }
 0x14e   : >> { %v3082_v38 = vpack.c.b16 %v3068_v48, %v3081_v57  ;;  %v6061_v47 = vsel %vm649_vm0, %v2470_v8, 0  ;;  %v6074_v6 = vadd.f32 %v1273_v56, %v5985_v5  ;;  %v6081_v48 = vld [vmem:[%s6531_s1 + $0x49c] sm:$0xff]  ;;  %v6192_v8 = vld [vmem:[%s6531_s1 + $0x4a4] sm:$0xff]  ;;  %v6201_v57 = vld [vmem:[%s6531_s1 + $0x474] sm:$0xff] }
 0x14f   : >> { %2167 = vmatmul.bf16.vlgmr.msra.gmra.mxu0 %v5970_v29  ;;  %v6071_v29 = vld [vmem:[%s6531_s1 + $0x4cc] sm:$0xff] }
 0x150   : >> { %2502 = vmatpush.bf16.msrb.mxu2 %v6028_v3  ;;  %2528 = vmatpush.bf16.msrb.mxu0 %v6033_v30  ;;  %v3083_v55 = vrot.slane %v3082_v38, 3  ;;  %v6091_v5 = vpop.f32.mrf.mxu0 }
 0x151   : >> { %2152 = vmatpush.bf16.msra.mxu3 %v5672_v63  ;;  %2179 = vmatpush.bf16.msra.mxu1 %v5701_v24  ;;  %v1299_v63 = vpop.f32.mrf.mxu1  ;;  %v6096_v24 = vld [vmem:[%s6531_s1 + $0x444] sm:$0xff]  ;;  %v1286_v12 = vpop.f32.mrf.mxu3 }
 0x152   : >> { %3084 = vrot.lane.b32.xlu2 %v3083_v55, %s4707_s29  ;;  %v1300_v42 = vadd.f32 %v1299_v63, %v1286_v12  ;;  %v6268_v12 = vld [vmem:[%s6531_s1 + $0x568] sm:$0xff] }
 0x153   : >> { %4094 = vmatmul.msk.bf16.vlgmr.msra.gmra.mxu2 %vm646_vm2, %v5864_v50  ;;  %v6124_v50 = vld [vmem:[%s6531_s1 + $0x43c] sm:$0xff] }
 0x154   : >> { %2503 = vmatpush.bf16.msrb.mxu2 %v6044_v61  ;;  %2529 = vmatpush.bf16.msrb.mxu0 %v6049_v53  ;;  %v6177_v16 = vpop.permute.xlu2 %2266 }
 0x155   : >> { %2546 = vmatpush.bf16.msrb.mxu1 %v6061_v47  ;;  %2153 = vmatpush.bf16.msra.mxu3 %v5696_v17  ;;  %v6116_v17 = vld [vmem:[%s6531_s1 + $0x4e4] sm:$0xff] }
 0x156   : >> { %2180 = vmatmul.bf16.vlgmr.msra.gmra.mxu1 %v1873_v36  ;;  %v2229_v36 = vpop.permute.xlu1 %2228 }
 0x157   : >> { %v2272_v56 = vsel %vm277_vm6, %v2270_v59, %v2229_v36  ;;  %v2275_v63 = vsel %vm281_vm1, %v2229_v36, %v2242_v37  ;;  %v6246_v36 = vld [vmem:[%s6531_s1 + $0x528] sm:$0xff]  ;;  %v6669_v37 = vld [vmem:[#allocation6_spill] sm:$0xff] }
 0x158   : >> { %2504 = vmatpush.bf16.msrb.mxu2 %v6066_v58  ;;  %2530 = vmatpush.bf16.msrb.mxu0 %v6071_v29  ;;  %v1327_v22 = vpop.f32.mrf.mxu0 }
 0x159   : >> { %2515 = vmatpush.bf16.msrb.mxu3 %v6081_v48  ;;  %2547 = vmatpush.bf16.msrb.mxu1 %v6087_v44  ;;  %v1301_v20 = vpop.f32.mrf.mxu1  ;;  %v1288_v39 = vpop.f32.mrf.mxu3 }
 0x15a   : >> { %2154 = vmatmul.bf16.vlgmr.msra.gmra.mxu3 %v5925_v40  ;;  %v6136_v40 = vld [vmem:[%s6531_s1 + $0x48c] sm:$0xff]  ;;  %v6274_v20 = vld [vmem:[%s6531_s1 + $0x518] sm:$0xff] }
 0x15b   : >> { %v6672_v39 = vld [vmem:[#allocation12_spill] sm:$0xff] }
 0x15c   : >> { %2505 = vmatpush.bf16.msrb.mxu2 %v6096_v24  ;;  %2531 = vmatpush.bf16.msrb.mxu0 %v6102_v31 }
 0x15d   : >> { %2516 = vmatpush.bf16.msrb.mxu3 %v6110_v10  ;;  %2548 = vmatpush.bf16.msrb.mxu1 %v6116_v17 }
 0x160   : >> { %2506 = vmatpush.bf16.msrb.mxu2 %v6124_v50  ;;  %2532 = vmatpush.bf16.msrb.mxu0 %v6130_v51  ;;  %v1351_v55 = vpop.f32.mrf.mxu0 }
 0x161   : >> { %2555 = vmatpush.bf16.msra.mxu1 %v5756_v49  ;;  %2517 = vmatpush.bf16.msrb.mxu3 %v6136_v40  ;;  %v6156_v49 = vld [vmem:[%s6531_s1 + $0x484] sm:$0xff] }
 0x164   : >> { %2507 = vmatpush.bf16.msrb.mxu2 %v6144_v19  ;;  %2533 = vmatpush.bf16.msrb.mxu0 %v6150_v34 }
 0x165   : >> { %2556 = vmatpush.bf16.msra.mxu1 %v5770_v60  ;;  %2518 = vmatpush.bf16.msrb.mxu3 %v6156_v49  ;;  %v2261_v60 = vpop.permute.xlu1 %2260 }
 0x166   : >> { %4261 = vmatmul.msk.bf16.vlgmr.msrb.gmra.mxu1 %vm646_vm2, %v6177_v16  ;;  %v2280_v41 = vsel %vm288_vm5, %v2248_v13, %v2261_v60  ;;  %v6671_v60 = vld [vmem:[#allocation14_spill] sm:$0xff] }
 0x167   : >> { %v6210_v38 = vsel %vm291_vm7, %v2280_v41, %v6177_v16  ;;  %v6290_v41 = vld [vmem:[%s6531_s1 + $0x510] sm:$0xff] }
 0x168   : >> { %2508 = vmatpush.bf16.msrb.mxu2 %v6163_v43  ;;  %2534 = vmatpush.bf16.msrb.mxu0 %v6169_v4 }
 0x169   : >> { %2557 = vmatpush.bf16.msra.mxu1 %v5785_v14  ;;  %2519 = vmatpush.bf16.msrb.mxu3 %v6175_v32  ;;  %v1312_v14 = vpop.f32.mrf.mxu2 }
 0x16a   : >> { %v1313_v45 = vadd.f32 %v1312_v14, %v1300_v42 }
 0x16c   : >> { %2509 = vmatpush.bf16.msrb.mxu2 %v6184_v23  ;;  %2535 = vmatpush.bf16.msrb.mxu0 %v6192_v8  ;;  %v1326_v2 = vadd.f32 %v6091_v5, %v1313_v45  ;;  %v6234_v5 = vld [vmem:[%s6531_s1 + $0x530] sm:$0xff]  ;;  %v6292_v45 = vpop.permute.xlu0 %2656 }
 0x16d   : >> { %2558 = vmatpush.bf16.msra.mxu1 %v5801_v11  ;;  %2520 = vmatpush.bf16.msrb.mxu3 %v6201_v57  ;;  %v6218_v11 = vld [vmem:[%s6531_s1 + $0x46c] sm:$0xff] }
 0x16f   : >> { %2510 = vmatmul.bf16.vlgmr.msrb.gmra.mxu2 %v2272_v56  ;;  %2536 = vmatmul.bf16.vlgmr.msrb.gmra.mxu0 %v6210_v38 }
 0x170   : >> { %2568 = vmatpush.bf16.msra.mxu2 %v5778_v27  ;;  %2599 = vmatpush.bf16.msra.mxu0 %v5908_v26  ;;  %v6228_v26 = vld [vmem:[%s6531_s1 + $0x464] sm:$0xff] }
 0x171   : >> { %2559 = vmatpush.bf16.msra.mxu1 %v5819_v7  ;;  %2521 = vmatpush.bf16.msrb.mxu3 %v6218_v11  ;;  %v1314_v27 = vpop.f32.mrf.mxu2  ;;  %v2277_v7 = vsel %vm284_vm3, %v2275_v63, %v2248_v13  ;;  %v1338_v0 = vpop.f32.mrf.mxu3  ;;  %v6284_v13 = vld [vmem:[%s6531_s1 + $0x560] sm:$0xff]  ;;  %v6307_v63 = vld [vmem:[%s6531_s1 + $0x5b0] sm:$0xff] }
 0x172   : >> { %v1339_v42 = vadd.f32 %v1338_v0, %v1326_v2  ;;  %v6674_v2 = vld [vmem:[#allocation16_spill] sm:$0xff]  ;;  %v6302_v27 = vld [vmem:[%s6531_s1 + $0x558] sm:$0xff] }
 0x174   : >> { %2569 = vmatpush.bf16.msra.mxu2 %v5793_v1  ;;  %2600 = vmatpush.bf16.msra.mxu0 %v5937_v25  ;;  %v1364_v1 = vpop.f32.mrf.mxu1  ;;  %v1353_v25 = vpop.f32.mrf.mxu0  ;;  %v1352_v22 = vadd.f32 %v1351_v55, %v1339_v42  ;;  %v6349_v42 = vld [vmem:[%s6531_s1 + $0x548] sm:$0xff] }
 0x175   : >> { %2560 = vmatpush.bf16.msra.mxu1 %v5842_v9  ;;  %2522 = vmatpush.bf16.msrb.mxu3 %v6228_v26  ;;  %v6668_v9 = vld [vmem:[#allocation11_spill] sm:$0xff]  ;;  %v6311_v25 = vpop.permute.xlu1 %2669 }
 0x176   : >> { %v1365_v59 = vadd.f32 %v1364_v1, %v1352_v22  ;;  %v2632_v22 = vpop.permute.xlu0 %2631 }
 0x178   : >> { %2570 = vmatpush.bf16.msra.mxu2 %v5812_v46  ;;  %2601 = vmatpush.bf16.msra.mxu0 %v5964_v54  ;;  %v6253_v46 = vld [vmem:[%s6531_s1 + $0x570] sm:$0xff]  ;;  %v6260_v54 = vld [vmem:[%s6531_s1 + $0x520] sm:$0xff] }
 0x179   : >> { %2581 = vmatpush.bf16.msra.mxu3 %v5847_v18  ;;  %2561 = vmatpush.bf16.msra.mxu1 %v5862_v33  ;;  %v1377_v18 = vpop.f32.mrf.mxu2  ;;  %v6670_v33 = vld [vmem:[#allocation5_spill] sm:$0xff]  ;;  %v1340_v55 = vpop.f32.mrf.mxu3 }
 0x17a   : >> { %2523 = vmatmul.bf16.vlgmr.msrb.gmra.mxu3 %v2277_v7 }
 0x17c   : >> { %2911 = vmatpush.bf16.msrb.mxu0 %v6234_v5  ;;  %2571 = vmatpush.bf16.msra.mxu2 %v5833_v35  ;;  %v1366_v35 = vpop.f32.mrf.mxu1 }
 0x17d   : >> { %2582 = vmatpush.bf16.msra.mxu3 %v6668_v9  ;;  %2562 = vmatpush.bf16.msra.mxu1 %v6669_v37  ;;  %v6317_v9 = vld [vmem:[%s6531_s1 + $0x508] sm:$0xff]  ;;  %v6328_v37 = vld [vmem:[%s6531_s1 + $0x550] sm:$0xff] }
 0x17e   : >> { %v6336_v35 = vld [vmem:[%s6531_s1 + $0x5a8] sm:$0xff] }
 0x17f   : >> { %4262 = vmatmul.msk.bf16.vlgmr.msra.gmra.mxu0 %vm646_vm2, %v6177_v16  ;;  %v6673_v16 = vld [vmem:[#allocation15_spill] sm:$0xff] }
 0x180   : >> { %2912 = vmatpush.bf16.msrb.mxu0 %v6246_v36  ;;  %2572 = vmatpush.bf16.msra.mxu2 %v6670_v33  ;;  %v6330_v33 = vpop.permute.xlu2 %2675 }
 0x181   : >> { %2924 = vmatpush.bf16.msrb.mxu1 %v6253_v46  ;;  %2583 = vmatpush.bf16.msra.mxu3 %v6671_v60  ;;  %v1379_v14 = vpop.f32.mrf.mxu2  ;;  %v6355_v60 = vld [vmem:[%s6531_s1 + $0x5a0] sm:$0xff] }
 0x182   : >> { %2563 = vmatmul.bf16.vlgmr.msra.gmra.mxu1 %v2272_v56  ;;  %v6295_v56 = vadd.f32 %v1377_v18, %v1365_v59  ;;  %v4324_v18 = vld [vmem:[%s6531_s1 + $0x5c8] sm:$0x3] }
 0x183   : >> { %v2852_v0 = vunpack.c.l.b16 %v4324_v18 }
 0x184   : >> { %2913 = vmatpush.bf16.msrb.mxu0 %v6260_v54  ;;  %2573 = vmatpush.bf16.msra.mxu2 %v6672_v39  ;;  %v6309_v1 = vpop.f32.mrf.mxu1 }
 0x185   : >> { %2925 = vmatpush.bf16.msrb.mxu1 %v6268_v12  ;;  %2584 = vmatpush.bf16.msra.mxu3 %v6673_v16  ;;  %v2879_v59 = vpack.c.b16 %v2852_v0, %v2852_v0  ;;  %v2638_v16 = vpop.permute.xlu1 %2637 }
 0x187   : >> { %v6374_v18 = vsel %vm649_vm0, %v2879_v59, 0  ;;  %v6392_v59 = vld [vmem:[%s6531_s1 + $0x5c0] sm:$0xff] }
 0x188   : >> { %2914 = vmatpush.bf16.msrb.mxu0 %v6274_v20  ;;  %2574 = vmatpush.bf16.msra.mxu2 %v6674_v2  ;;  %v6370_v2 = vld [vmem:[%s6531_s1 + $0x540] sm:$0xff] }
 0x189   : >> { %2926 = vmatpush.bf16.msrb.mxu1 %v6284_v13  ;;  %2585 = vmatpush.bf16.msra.mxu3 %v5952_v28  ;;  %v6342_v28 = vld [vmem:[%s6531_s1 + $0x500] sm:$0xff]  ;;  %6676 = vst [vmem:[#allocation7_spill] sm:$0xff] %v6370_v2  ;;  %v1693_v55 = vpop.f32.mrf.mxu2 }
 0x18c   : >> { %2915 = vmatpush.bf16.msrb.mxu0 %v6290_v41  ;;  %2575 = vmatpush.bf16.msra.mxu2 %v5944_v15  ;;  %v1719_v15 = vpop.f32.mrf.mxu0  ;;  %v1734_v39 = vpop.f32.mrf.mxu1 }
 0x18d   : >> { %2927 = vmatpush.bf16.msrb.mxu1 %v6302_v27  ;;  %2586 = vmatpush.bf16.msra.mxu3 %v5977_v62  ;;  %v6361_v62 = vld [vmem:[%s6531_s1 + $0x4f8] sm:$0xff]  ;;  %v2651_v39 = vpop.permute.xlu2 %2650 }
 0x18f   : >> { %2576 = vmatmul.bf16.vlgmr.msra.gmra.mxu2 %v2277_v7  ;;  %v6675_v7 = vld [vmem:[#allocation10_spill] sm:$0xff] }
 0x190   : >> { %2937 = vmatpush.bf16.msrb.mxu2 %v6307_v63  ;;  %2916 = vmatpush.bf16.msrb.mxu0 %v6317_v9  ;;  %v2679_v14 = vsel %vm273_vm4, %v6675_v7, %v2632_v22  ;;  %v6397_v7 = vld [vmem:[%s6531_s1 + $0x538] sm:$0xff] }
 0x191   : >> { %2928 = vmatpush.bf16.msrb.mxu1 %v6328_v37  ;;  %2587 = vmatpush.bf16.msra.mxu3 %v5990_v52  ;;  %v6379_v52 = vld [vmem:[%s6531_s1 + $0x598] sm:$0xff]  ;;  %v6383_v22 = vsel %vm277_vm6, %v2679_v14, %v2638_v16  ;;  %6677 = vst [vmem:[#allocation17_spill] sm:$0xff] %v6397_v7 }
 0x192   : >> { %v6414_v14 = vld [vmem:[%s6531_s1 + $0x5b8] sm:$0xff] }
 0x194   : >> { %2938 = vmatpush.bf16.msrb.mxu2 %v6336_v35  ;;  %2917 = vmatpush.bf16.msrb.mxu0 %v6342_v28  ;;  %v1721_v0 = vpop.f32.mrf.mxu0 }
 0x195   : >> { %2929 = vmatpush.bf16.msrb.mxu1 %v6349_v42  ;;  %2588 = vmatpush.bf16.msra.mxu3 %v6001_v21  ;;  %v6403_v21 = vld [vmem:[%s6531_s1 + $0x590] sm:$0xff]  ;;  %v1695_v0 = vpop.f32.mrf.mxu2 }
 0x198   : >> { %2939 = vmatpush.bf16.msrb.mxu2 %v6355_v60  ;;  %2918 = vmatpush.bf16.msrb.mxu0 %v6361_v62 }
 0x199   : >> { %2955 = vmatpush.bf16.msrb.mxu3 %v6374_v18  ;;  %2930 = vmatpush.bf16.msrb.mxu1 %v6370_v2 }
 0x19a   : >> { %2589 = vmatmul.bf16.vlgmr.msra.gmra.mxu3 %v6210_v38  ;;  %v1706_v38 = vpop.f32.mrf.mxu3 }
 0x19b   : >> { %2919 = vmatmul.bf16.vlgmr.msrb.gmra.mxu0 %v6383_v22 }
 0x19c   : >> { %2977 = vmatpush.bf16.msra.mxu0 %v6081_v48  ;;  %2940 = vmatpush.bf16.msrb.mxu2 %v6379_v52  ;;  %v2684_v48 = vsel %vm281_vm1, %v2638_v16, %v2651_v39  ;;  %v1707_v16 = vadd.f32 %v1706_v38, %v1693_v55  ;;  %v1746_v39 = vpop.f32.mrf.mxu1 }
 0x19d   : >> { %2956 = vmatpush.bf16.msrb.mxu3 %v6392_v59  ;;  %2931 = vmatpush.bf16.msrb.mxu1 %v6397_v7  ;;  %v2686_v2 = vsel %vm284_vm3, %v2684_v48, %v6292_v45  ;;  %v1785_v7 = vpop.f32.mrf.mxu0 }
 0x19e   : >> { %v1720_v0 = vadd.f32 %v1719_v15, %v1707_v16 }
 0x1a0   : >> { %2978 = vmatpush.bf16.msra.mxu0 %v6110_v10  ;;  %2941 = vmatpush.bf16.msrb.mxu2 %v6403_v21  ;;  %v6423_v10 = vld [vmem:[%s6531_s1 + $0x588] sm:$0xff] }
 0x1a1   : >> { %2990 = vmatpush.bf16.msra.mxu1 %v6033_v30  ;;  %2957 = vmatpush.bf16.msrb.mxu3 %v6414_v14  ;;  %v6432_v30 = vld [vmem:[%s6531_s1 + $0x580] sm:$0xff] }
 0x1a2   : >> { %2932 = vmatmul.bf16.vlgmr.msrb.gmra.mxu1 %v2686_v2 }
 0x1a4   : >> { %2979 = vmatpush.bf16.msra.mxu0 %v6136_v40  ;;  %2942 = vmatpush.bf16.msrb.mxu2 %v6423_v10  ;;  %v1733_v40 = vadd.f32 %v6309_v1, %v1720_v0  ;;  %v1708_v1 = vpop.f32.mrf.mxu3 }
 0x1a5   : >> { %2964 = vmatpush.bf16.msra.mxu3 %v6028_v3  ;;  %2991 = vmatpush.bf16.msra.mxu1 %v6049_v53  ;;  %v6442_v3 = vld [vmem:[%s6531_s1 + $0x578] sm:$0xff]  ;;  %v2689_v53 = vsel %vm288_vm5, %v6292_v45, %v6311_v25 }
 0x1a6   : >> { %v6445_v15 = vadd.f32 %v1733_v40, %v6074_v6  ;;  %v2691_v55 = vsel %vm291_vm7, %v2689_v53, %v6330_v33 }
 0x1a8   : >> { %2980 = vmatpush.bf16.msra.mxu0 %v6156_v49  ;;  %2943 = vmatpush.bf16.msrb.mxu2 %v6432_v30  ;;  %v1787_v49 = vpop.f32.mrf.mxu0 }
 0x1a9   : >> { %2965 = vmatpush.bf16.msra.mxu3 %v6044_v61  ;;  %2992 = vmatpush.bf16.msra.mxu1 %v6071_v29  ;;  %v1748_v61 = vpop.f32.mrf.mxu1 }
 0x1aa   : >> { %4429 = vmatmul.msk.bf16.vlgmr.msrb.gmra.mxu3 %vm646_vm2, %v6330_v33 }
 0x1ac   : >> { %2981 = vmatpush.bf16.msra.mxu0 %v6175_v32  ;;  %2944 = vmatpush.bf16.msrb.mxu2 %v6442_v3 }
 0x1ad   : >> { %2966 = vmatpush.bf16.msra.mxu3 %v6066_v58  ;;  %2993 = vmatpush.bf16.msra.mxu1 %v6102_v31  ;;  %v1759_v58 = vpop.f32.mrf.mxu2 }
 0x1af   : >> { %2945 = vmatmul.bf16.vlgmr.msrb.gmra.mxu2 %v2691_v55 }
 0x1b0   : >> { %3008 = vmatpush.bf16.msra.mxu2 %v6061_v47  ;;  %2982 = vmatpush.bf16.msra.mxu0 %v6201_v57  ;;  %v1760_v47 = vadd.f32 %v1759_v58, %v1746_v39  ;;  %v2102_v29 = vpop.f32.mrf.mxu0 }
 0x1b1   : >> { %2967 = vmatpush.bf16.msra.mxu3 %v6096_v24  ;;  %2994 = vmatpush.bf16.msra.mxu1 %v6130_v51 }
 0x1b3   : >> { %v2115_v24 = vpop.f32.mrf.mxu1 }
 0x1b4   : >> { %3009 = vmatpush.bf16.msra.mxu2 %v6087_v44  ;;  %2983 = vmatpush.bf16.msra.mxu0 %v6218_v11  ;;  %v1772_v44 = vpop.f32.mrf.mxu3  ;;  %v6678_v11 = vld [vmem:[#allocation13_spill] sm:$0xff] }
 0x1b5   : >> { %2968 = vmatpush.bf16.msra.mxu3 %v6124_v50  ;;  %2995 = vmatpush.bf16.msra.mxu1 %v6150_v34  ;;  %v1761_v6 = vpop.f32.mrf.mxu2  ;;  %v1773_v31 = vadd.f32 %v1772_v44, %v1760_v47  ;;  %v3041_v34 = vpop.permute.xlu0 %3040 }
 0x1b7   : >> { %v1786_v51 = vadd.f32 %v1785_v7, %v1773_v31 }
 0x1b8   : >> { %3010 = vmatpush.bf16.msra.mxu2 %v6116_v17  ;;  %2984 = vmatpush.bf16.msra.mxu0 %v6228_v26  ;;  %v2116_v17 = vadd.f32 %v2115_v24, %v2102_v29  ;;  %v2104_v50 = vpop.f32.mrf.mxu0  ;;  %v3088_v26 = vsel %vm273_vm4, %v6678_v11, %v3041_v34 }
 0x1b9   : >> { %2969 = vmatpush.bf16.msra.mxu3 %v6144_v19  ;;  %2996 = vmatpush.bf16.msra.mxu1 %v6169_v4  ;;  %v3047_v19 = vpop.permute.xlu1 %3046  ;;  %v3060_v4 = vpop.permute.xlu2 %3059 }
 0x1ba   : >> { %v3093_v25 = vsel %vm281_vm1, %v3047_v19, %v3060_v4 }
 0x1bb   : >> { %2985 = vmatmul.bf16.vlgmr.msra.gmra.mxu0 %v2686_v2 }
 0x1bc   : >> { %3104 = vmatpush.bf16.msrb.mxu2 %v6234_v5  ;;  %3130 = vmatpush.bf16.msrb.mxu0 %v6307_v63  ;;  %v1774_v32 = vpop.f32.mrf.mxu3 }
 0x1bd   : >> { %2970 = vmatpush.bf16.msra.mxu3 %v6163_v43  ;;  %2997 = vmatpush.bf16.msra.mxu1 %v6192_v8  ;;  %v1789_v43 = vadd.f32 %v1786_v51, %v6295_v56  ;;  %v3066_v57 = vpop.permute.xlu0 %3065 }
 0x1bf   : >> { %4430 = vmatmul.msk.bf16.vlgmr.msra.gmra.mxu2 %vm646_vm2, %v6330_v33  ;;  %v3095_v33 = vsel %vm284_vm3, %v3093_v25, %v3066_v57 }
 0x1c0   : >> { %3105 = vmatpush.bf16.msrb.mxu2 %v6246_v36  ;;  %3131 = vmatpush.bf16.msrb.mxu0 %v6336_v35  ;;  %v6680_v35 = vld [vmem:[#allocation17_spill] sm:$0xff] }
 0x1c1   : >> { %3148 = vmatpush.bf16.msrb.mxu1 %v6374_v18  ;;  %2971 = vmatpush.bf16.msra.mxu3 %v6184_v23  ;;  %v2117_v23 = vpop.f32.mrf.mxu1  ;;  %v3079_v8 = vpop.permute.xlu1 %3078 }
 0x1c2   : >> { %2998 = vmatmul.bf16.vlgmr.msra.gmra.mxu1 %v2691_v55  ;;  %v3085_v5 = vpop.permute.xlu2 %3084  ;;  %v3098_v36 = vsel %vm288_vm5, %v3066_v57, %v3079_v8 }
 0x1c4   : >> { %3106 = vmatpush.bf16.msrb.mxu2 %v6260_v54  ;;  %3132 = vmatpush.bf16.msrb.mxu0 %v6355_v60  ;;  %v3090_v54 = vsel %vm277_vm6, %v3088_v26, %v3047_v19 }
 0x1c5   : >> { %3117 = vmatpush.bf16.msrb.mxu3 %v6253_v46  ;;  %3149 = vmatpush.bf16.msrb.mxu1 %v6392_v59  ;;  %v2141_v46 = vpop.f32.mrf.mxu3 }
 0x1c6   : >> { %2972 = vmatmul.bf16.vlgmr.msra.gmra.mxu3 %v6383_v22 }
 0x1c8   : >> { %3107 = vmatpush.bf16.msrb.mxu2 %v6274_v20  ;;  %3133 = vmatpush.bf16.msrb.mxu0 %v6379_v52 }
 0x1c9   : >> { %3118 = vmatpush.bf16.msrb.mxu3 %v6268_v12  ;;  %3150 = vmatpush.bf16.msrb.mxu1 %v6414_v14  ;;  %v2128_v12 = vpop.f32.mrf.mxu2 }
 0x1ca   : >> { %v2129_v20 = vadd.f32 %v2128_v12, %v2116_v17 }
 0x1cc   : >> { %3108 = vmatpush.bf16.msrb.mxu2 %v6290_v41  ;;  %3134 = vmatpush.bf16.msrb.mxu0 %v6403_v21  ;;  %v2142_v41 = vadd.f32 %v2141_v46, %v2129_v20  ;;  %v2168_v45 = vpop.f32.mrf.mxu0 }
 0x1cd   : >> { %3119 = vmatpush.bf16.msrb.mxu3 %v6284_v13  ;;  %v3100_v13 = vsel %vm291_vm7, %v3098_v36, %v3085_v5  ;;  %v2143_v63 = vpop.f32.mrf.mxu3 }
 0x1ce   : >> { %v2145_v56 = vadd.f32 %v2142_v41, %v6445_v15 }
 0x1d0   : >> { %3109 = vmatpush.bf16.msrb.mxu2 %v6317_v9  ;;  %3135 = vmatpush.bf16.msrb.mxu0 %v6423_v10 }
 0x1d1   : >> { %3120 = vmatpush.bf16.msrb.mxu3 %v6302_v27  ;;  %v6679_v27 = vld [vmem:[#allocation7_spill] sm:$0xff]  ;;  %v2130_v9 = vpop.f32.mrf.mxu2 }
 0x1d2   : >> { %4440 = vmatmul.msk.bf16.vlgmr.msrb.gmra.mxu1 %vm646_vm2, %v3085_v5 }
 0x1d4   : >> { %3110 = vmatpush.bf16.msrb.mxu2 %v6342_v28  ;;  %3136 = vmatpush.bf16.msrb.mxu0 %v6432_v30  ;;  %v2170_v28 = vpop.f32.mrf.mxu0 }
 0x1d5   : >> { %3121 = vmatpush.bf16.msrb.mxu3 %v6328_v37  ;;  %v2181_v37 = vpop.f32.mrf.mxu1 }
 0x1d8   : >> { %3111 = vmatpush.bf16.msrb.mxu2 %v6361_v62  ;;  %3137 = vmatpush.bf16.msrb.mxu0 %v6442_v3 }
 0x1d9   : >> { %3122 = vmatpush.bf16.msrb.mxu3 %v6349_v42  ;;  %v2194_v60 = vpop.f32.mrf.mxu2 }
 0x1db   : >> { %3112 = vmatmul.bf16.vlgmr.msrb.gmra.mxu2 %v3090_v54  ;;  %3138 = vmatmul.bf16.vlgmr.msrb.gmra.mxu0 %v3100_v13 }
 0x1dd   : >> { %3123 = vmatpush.bf16.msrb.mxu3 %v6679_v27  ;;  %v2183_v42 = vpop.f32.mrf.mxu1  ;;  %v2155_v62 = vpop.f32.mrf.mxu3 }
 0x1de   : >> { %v2169_v2 = vadd.f32 %v2168_v45, %v2155_v62 }
 0x1e0   : >> { %v2182_v18 = vadd.f32 %v2181_v37, %v2169_v2 }
 0x1e1   : >> { %3124 = vmatpush.bf16.msrb.mxu3 %v6680_v35  ;;  %v2196_v22 = vpop.f32.mrf.mxu2 }
 0x1e2   : >> { %v2195_v52 = vadd.f32 %v2194_v60, %v2182_v18  ;;  %v6681_v18 = vld [vmem:[#allocation3_spill] sm:$0xff] }
 0x1e4   : >> { %3125 = vmatmul.bf16.vlgmr.msrb.gmra.mxu3 %v3095_v33  ;;  %v2198_v7 = vadd.f32 %v2195_v52, %v1789_v43  ;;  %v3159_v52 = vperm.slane %v6681_v18, 0 }
 0x1e5   : >> { %v2550_v59 = vpop.f32.mrf.mxu1  ;;  %v2157_v21 = vpop.f32.mrf.mxu3 }
 0x1ec   : >> { %v2537_v48 = vpop.f32.mrf.mxu0 }
 0x1ed   : >> { %v2552_v14 = vpop.f32.mrf.mxu1 }
 0x1f2   : >> { %v2511_v10 = vpop.f32.mrf.mxu2 }
 0x1f4   : >> { %v2539_v38 = vpop.f32.mrf.mxu0 }
 0x1fa   : >> { %v2513_v16 = vpop.f32.mrf.mxu2 }
 0x1fc   : >> { %v2603_v40 = vpop.f32.mrf.mxu0 }
 0x1fd   : >> { %v2524_v39 = vpop.f32.mrf.mxu3 }
 0x1fe   : >> { %v2525_v30 = vadd.f32 %v2524_v39, %v2511_v10 }
 0x1ff   : >> { %v2564_v0 = vpop.f32.mrf.mxu1 }
 0x200   : >> { %v2538_v3 = vadd.f32 %v2537_v48, %v2525_v30 }
 0x202   : >> { %v2551_v15 = vadd.f32 %v2550_v59, %v2538_v3 }
 0x204   : >> { %v2554_v53 = vadd.f32 %v2551_v15, %v2145_v56  ;;  %v2605_v49 = vpop.f32.mrf.mxu0 }
 0x205   : >> { %v2526_v1 = vpop.f32.mrf.mxu3 }
 0x207   : >> { %v2566_v61 = vpop.f32.mrf.mxu1 }
 0x212   : >> { %v2577_v55 = vpop.f32.mrf.mxu2 }
 0x213   : >> { %v2578_v58 = vadd.f32 %v2577_v55, %v2564_v0 }
 0x218   : >> { %v2920_v47 = vpop.f32.mrf.mxu0 }
 0x21a   : >> { %v2579_v29 = vpop.f32.mrf.mxu2 }
 0x21d   : >> { %v2590_v44 = vpop.f32.mrf.mxu3 }
 0x21e   : >> { %v2591_v31 = vadd.f32 %v2590_v44, %v2578_v58 }
 0x21f   : >> { %v2933_v6 = vpop.f32.mrf.mxu1 }
 0x220   : >> { %v2934_v24 = vadd.f32 %v2933_v6, %v2920_v47  ;;  %v2922_v17 = vpop.f32.mrf.mxu0  ;;  %v2604_v50 = vadd.f32 %v2603_v40, %v2591_v31 }
 0x222   : >> { %v2607_v51 = vadd.f32 %v2604_v50, %v2198_v7 }
 0x225   : >> { %v2592_v34 = vpop.f32.mrf.mxu3 }
 0x227   : >> { %v2935_v19 = vpop.f32.mrf.mxu1 }
 0x22d   : >> { %v2959_v43 = vpop.f32.mrf.mxu3 }
 0x232   : >> { %v2946_v4 = vpop.f32.mrf.mxu2 }
 0x233   : >> { %v2947_v32 = vadd.f32 %v2946_v4, %v2934_v24 }
 0x235   : >> { %v2960_v23 = vadd.f32 %v2959_v43, %v2947_v32  ;;  %v2961_v11 = vpop.f32.mrf.mxu3 }
 0x237   : >> { %v2963_v57 = vadd.f32 %v2960_v23, %v2554_v53 }
 0x238   : >> { %v2986_v8 = vpop.f32.mrf.mxu0 }
 0x23a   : >> { %v2948_v26 = vpop.f32.mrf.mxu2 }
 0x23f   : >> { %v2999_v5 = vpop.f32.mrf.mxu1 }
 0x240   : >> { %v2988_v36 = vpop.f32.mrf.mxu0 }
 0x242   : >> { %v3012_v46 = vpop.f32.mrf.mxu2 }
 0x247   : >> { %v3001_v54 = vpop.f32.mrf.mxu1 }
 0x249   : >> { %v2973_v12 = vpop.f32.mrf.mxu3 }
 0x24a   : >> { %v3014_v20 = vpop.f32.mrf.mxu2  ;;  %v2987_v25 = vadd.f32 %v2986_v8, %v2973_v12 }
 0x24c   : >> { %v3000_v9 = vadd.f32 %v2999_v5, %v2987_v25 }
 0x24e   : >> { %v3013_v35 = vadd.f32 %v3012_v46, %v3000_v9 }
 0x24f   : >> { %v3152_v13 = vpop.f32.mrf.mxu1 }
 0x250   : >> { %v3016_v42 = vadd.f32 %v3013_v35, %v2607_v51 }
 0x251   : >> { %v2975_v41 = vpop.f32.mrf.mxu3 }
 0x257   : >> { %v3154_v56 = vpop.f32.mrf.mxu1 }
 0x258   : >> { %v3139_v45 = vpop.f32.mrf.mxu0 }
 0x25e   : >> { %v3113_v27 = vpop.f32.mrf.mxu2 }
 0x260   : >> { %v3141_v63 = vpop.f32.mrf.mxu0 }
 0x266   : >> { %v3115_v37 = vpop.f32.mrf.mxu2 }
 0x267   : >> { %v3126_v33 = vpop.f32.mrf.mxu3 }
 0x268   : >> { %v3127_v28 = vadd.f32 %v3126_v33, %v3113_v27 }
 0x26a   : >> { %v3140_v60 = vadd.f32 %v3139_v45, %v3127_v28 }
 0x26c   : >> { %v3153_v62 = vadd.f32 %v3152_v13, %v3140_v60 }
 0x26e   : >> { %v3156_v2 = vadd.f32 %v3153_v62, %v3016_v42 }
 0x26f   : >> { %v3128_v22 = vpop.f32.mrf.mxu3 }
 0x270   : >> { %v3157_v59 = vmax.f32 %v2963_v57, %v3156_v2 }
 0x272   : >> { %v3161_v7 = vadd.f32 %v3159_v52, %v3157_v59 }
 0x274   : >> { %v3162_v21 = vmax.f32 %v3161_v7, 0.0 }
 0x276   : >> { %3163 = vst.msk [vmem:[#allocation2] sm:$0xff] %vm277_vm6, %v3162_v21 }
 0x27d   : >> { %v3164_v48 = vld [vmem:[#allocation2] ss:$2 sm:$0xf]  ;;  %v3166_v14 = vld [vmem:[#allocation2 + $0x1] ss:$2 sm:$0xf] }
 0x27e   : >> { %v3167_v10 = vmax.f32 %v3164_v48, %v3166_v14  ;;  %201 = sbr.rel (!%p199_p5) target bundleno = 16 (0x10), region = 85 }
 0x280   : >> { %v3168_v38 = vpack.c.bf16 %v3167_v10, %v3167_v10 }
 0x282   : >> { %3172 = vst.msk [vmem:[%s3170_s16] sm:$0x3] %vm3171_vm8, %v3168_v38 }
 0x283 PF: > { %s13_s14 = sadd.s32 1, %s4701_s14   ;;  %s6682_s12 = smov %s4697_s13 }
 0x284   : > { %p10_p6 = scmp.ge.s32.totalorder %s13_s14, 4   ;;  %s6683_s13 = smov %s6685_s15 }
 0x286   :  { %12 = sbr.rel (!%p10_p6) target bundleno = 2 (0x2), region = 96 }

// kernel: mcnn_forward.7
= control target key start
LH: loop header
LB: loop body
LE: loop exit
PB: predicated region body
PF: predicated region fallthrough
CT: control target
= control target key end

     0   :  { %s7185_s12 = smov 0   ;;  %s7187_s13 = smov 0   ;;  %s8616_s0 = inlined_call_operand.vmem [shape: bf16[2,10,10,120], index: 0, kind: input, shape index: {}]   ;;  %s8617_s1 = inlined_call_operand.vmem [shape: bf16[7,840,60], index: 1, kind: input, shape index: {}]   ;;  %s8618_s2 = inlined_call_operand.vmem [shape: f32[1,60], index: 2, kind: input, shape index: {}]   ;;  %s8619_s3 = inlined_call_operand.vmem [shape: bf16[2,4,4,60], index: 3, kind: output, shape index: {}]  }
   0x1   :  { %s7189_s14 = smov 0  }
   0x2 LB: > { %s25_s15 = sadd.s32 1, %s7149_s13  ;;  %p4572_p0 = scmp.ge.s32.totalorder %s7153_s14, 1  ;;  %s7153_s14 = sphi %s7189_s14, %s13_s14   ;;  %s7149_s13 = sphi %s7187_s13, %s8621_s13   ;;  %s7145_s12 = sphi %s7185_s12, %s8620_s12  }
   0x3   : > { %p27_p1 = scmp.ge.s32.totalorder %s25_s15, 2  ;;  %p151_p2 = scmp.lt.s32.totalorder %s7153_s14, 3 }
   0x5   : > { %s8623_s15 = smov (%p27_p1, %s25_s15), 0  ;;  %p152_p3 = pnand %p4572_p0, %p151_p2 }
   0x6   : > { %p179_p4 = scmp.lt.s32.totalorder (!%p152_p3), %s7145_s12, 1  ;;  %s7218_s26 = smov (!%p152_p3), 0  }
   0x7   : > { %155 = sbr.rel (%p152_p3) target bundleno = 615 (0x267), region = 32 }
   0xc   : > { %v7206_v0 = vld [vmem:[%s8618_s2] sm:$0x1]  ;;  %s8625_s12 = smov (!%p179_p4, %s7145_s12), 1 }
   0xd   : > { %s7088_s18 = smul.u32 80, %s8625_s12  ;;  %s6722_s19 = sshll.u32 %s8625_s12, 3 }
   0xe   : > { %s7211_s22 = scalar_lea.vmem %s8619_s3, %s6722_s19 }
   0xf   : > { %s7216_s25 = scalar_lea.vmem %s8616_s0, %s7088_s18 }
  0x10 LB: >> { %s6723_s27 = sshll.u32 %s7157_s26, 3  ;;  %s7159_s29 = smov 112   ;;  %v6783_v38 = vld [vmem:[%s8617_s1 + $0x1dc] sm:$0xff]  ;;  %v6782_v45 = vld [vmem:[%s8617_s1 + $0x1d4] sm:$0xff]  ;;  %v6781_v60 = vld [vmem:[%s8617_s1 + $0x1cc] sm:$0xff]  ;;  %vm910_vm0 = vcmask 1043456   ;;  %s7157_s26 = sphi %s7218_s26, %s202_s26  }
  0x11   : >> { %s7225_s28 = scalar_lea.vmem %s7216_s25, %s6723_s27  ;;  %s7160_s30 = smov 104   ;;  %v6791_v42 = vld [vmem:[%s8617_s1 + $0x21c] sm:$0xff]  ;;  %914 = vmatpush.bf16.msra.mxu0 %v6783_v38  ;;  %v6790_v47 = vld [vmem:[%s8617_s1 + $0x214] sm:$0xff]  ;;  %v6789_v62 = vld [vmem:[%s8617_s1 + $0x20c] sm:$0xff]  ;;  %vm270_vm1 = vcmask 982016   ;;  %vm275_vm2 = vcmask 916480  }
  0x12   : >> { %v4581_v1 = vld [vmem:[%s7225_s28 + $0x8] sm:$0x6]  ;;  %v208_v7 = vld [vmem:[%s7225_s28] sm:$0x7]  ;;  %v4584_v12 = vld [vmem:[%s7225_s28 + $0xc] sm:$0x1]  ;;  %927 = vmatpush.bf16.msra.mxu1 %v6791_v42 }
  0x13   : >> { %v4582_v2 = vld [vmem:[%s7225_s28 + $0x8] sm:$0xe]  ;;  %v424_v3 = vunpack.c.l.b16 %v4581_v1  ;;  %v215_v13 = vunpack.c.l.b16 %v208_v7  ;;  %v449_v25 = vunpack.c.l.b16 %v4584_v12  ;;  %v211_v27 = vld [vmem:[%s7225_s28] sm:$0xc]  ;;  %v7237_v28 = vld [vmem:[%s7225_s28 + $0x4] sm:$0x1] }
  0x14   : >> { %v430_v4 = vunpack.c.l.b16 %v4582_v2  ;;  %v4580_v5 = vld [vmem:[%s7225_s28 + $0x8] sm:$0x7]  ;;  %v4585_v17 = vld [vmem:[%s7225_s28 + $0x8] sm:$0x8]  ;;  %v246_v34 = vunpack.c.l.b16 %v211_v27  ;;  %v252_v36 = vunpack.c.l.b16 %v7237_v28  ;;  %v5111_v37 = vld [vmem:[%s7225_s28 + $0x10] sm:$0x7] }
  0x15   : >> { %v412_v6 = vunpack.c.l.b16 %v4580_v5  ;;  %v425_v8 = vpack.c.b16 %v424_v3, %v424_v3  ;;  %v4583_v10 = vld [vmem:[%s7225_s28 + $0x8] sm:$0xc]  ;;  %v216_v23 = vpack.c.b16 %v215_v13, %v215_v13  ;;  %v462_v26 = vunpack.c.l.b16 %v4585_v17  ;;  %s7161_s6 = smov 120   ;;  %v6807_v46 = vld [vmem:[%s8617_s1 + $0x29c] sm:$0xff]  ;;  %v6806_v53 = vld [vmem:[%s8617_s1 + $0x294] sm:$0xff]  ;;  %915 = vmatpush.bf16.msra.mxu0 %v6782_v45  ;;  %s7162_s8 = smov 96  }
  0x16   : >> { %v431_v9 = vpack.c.b16 %v430_v4, %v430_v4  ;;  %v443_v22 = vunpack.c.l.b16 %v4583_v10  ;;  %v1428_v41 = vunpack.c.l.b16 %v5111_v37  ;;  %v253_v44 = vpack.c.b16 %v252_v36, %v246_v34  ;;  %v6799_v48 = vld [vmem:[%s8617_s1 + $0x25c] sm:$0xff]  ;;  %953 = vmatpush.bf16.msra.mxu3 %v6807_v46  ;;  %v6798_v57 = vld [vmem:[%s8617_s1 + $0x254] sm:$0xff]  ;;  %928 = vmatpush.bf16.msra.mxu1 %v6790_v47  ;;  %v6805_v3 = vld [vmem:[%s8617_s1 + $0x28c] sm:$0xff]  ;;  %s7163_s11 = smov 80   ;;  %s7164_s21 = smov 88  }
  0x17   : >> { %v413_v11 = vpack.c.b16 %v412_v6, %v412_v6  ;;  %v426_v14 = vrot.slane %v425_v8, 1  ;;  %v218_v30 = vshrl.u32 %v216_v23, 16  ;;  %v220_v31 = vshll.u32 %v216_v23, 16  ;;  %940 = vmatpush.bf16.msra.mxu2 %v6799_v48  ;;  %v210_v61 = vld [vmem:[%s7225_s28] sm:$0xe]  ;;  %v6797_v7 = vld [vmem:[%s8617_s1 + $0x24c] sm:$0xff] }
  0x18   : >> { %v433_v15 = vshrl.u32 %v431_v9, 16  ;;  %v436_v16 = vshll.u32 %v431_v9, 16  ;;  %v444_v33 = vpack.c.b16 %v443_v22, %v443_v22  ;;  %v463_v39 = vpack.c.b16 %v449_v25, %v462_v26  ;;  %v209_v6 = vld [vmem:[%s7225_s28] sm:$0x6]  ;;  %v6780_v9 = vld [vmem:[%s8617_s1 + $0x1c4] sm:$0xff]  ;;  %v6778_v37 = vld [vmem:[%s8617_s1 + $0x1b4] sm:$0xff] }
  0x19   : >> { %v415_v18 = vshrl.u32 %v413_v11, 16  ;;  %v417_v19 = vshll.u32 %v413_v11, 16  ;;  %427 = vrot.lane.b32.xlu1 %v426_v14, %s7159_s29  ;;  %v222_v35 = vrot.slane %v220_v31, 1  ;;  %v450_v40 = vpack.c.b16 %v449_v25, %v443_v22  ;;  %916 = vmatpush.bf16.msra.mxu0 %v6781_v60  ;;  %v6788_v10 = vld [vmem:[%s8617_s1 + $0x204] sm:$0xff]  ;;  %v6779_v22 = vld [vmem:[%s8617_s1 + $0x1bc] sm:$0xff]  ;;  %v6802_v45 = vld [vmem:[%s8617_s1 + $0x274] sm:$0xff] }
  0x1a   : >> { %v435_v20 = vrot.slane %v433_v15, 1  ;;  %v438_v21 = vrot.slane %v436_v16, 2  ;;  %v445_v49 = vrot.slane %v444_v33, 2  ;;  %v255_v50 = vshrl.u32 %v253_v44, 16  ;;  %954 = vmatpush.bf16.msra.mxu3 %v6806_v53  ;;  %929 = vmatpush.bf16.msra.mxu1 %v6789_v62  ;;  %v213_v15 = vld [vmem:[%s7225_s28] sm:$0x8] }
  0x1b   : >> { %v419_v24 = vrot.slane %v417_v19, 1  ;;  %v223_v43 = vor.u32 %v222_v35, %v218_v30  ;;  %v258_v51 = vshll.u32 %v253_v44, 16  ;;  %v1429_v52 = vpack.c.b16 %v1428_v41, %v1428_v41  ;;  %941 = vmatpush.bf16.msra.mxu2 %v6798_v57  ;;  %v6804_v16 = vld [vmem:[%s8617_s1 + $0x284] sm:$0xff]  ;;  %v7309_v25 = vld [vmem:[%s7225_s28 + $0x14] sm:$0x1]  ;;  %v6803_v31 = vld [vmem:[%s8617_s1 + $0x27c] sm:$0xff] }
  0x1c   : >> { %v439_v29 = vor.u32 %v438_v21, %v435_v20  ;;  %v464_v54 = vrot.slane %v463_v39, 3  ;;  %v452_v55 = vshrl.u32 %v450_v40, 16  ;;  %v455_v56 = vshll.u32 %v450_v40, 16  ;;  %v6796_v19 = vld [vmem:[%s8617_s1 + $0x244] sm:$0xff]  ;;  %v5112_v20 = vld [vmem:[%s7225_s28 + $0x10] sm:$0x6] }
  0x1d   : >> { %v420_v32 = vor.u32 %v419_v24, %v415_v18  ;;  %v257_v58 = vrot.slane %v255_v50, 2  ;;  %v260_v59 = vrot.slane %v258_v51, 3  ;;  %v247_v63 = vpack.c.b16 %v246_v34, %v246_v34  ;;  %v5113_v18 = vld [vmem:[%s7225_s28 + $0x10] sm:$0xe]  ;;  %917 = vmatpush.bf16.msra.mxu0 %v6780_v9  ;;  %v6787_v24 = vld [vmem:[%s8617_s1 + $0x1fc] sm:$0xff]  ;;  %v6786_v41 = vld [vmem:[%s8617_s1 + $0x1f4] sm:$0xff] }
  0x1e   : >> { %440 = vrot.lane.b32.xlu0 %v439_v29, %s7160_s30  ;;  %v1433_v2 = vshll.u32 %v1429_v52, 16  ;;  %v454_v4 = vrot.slane %v452_v55, 2  ;;  %v457_v5 = vrot.slane %v455_v56, 3  ;;  %v233_v8 = vunpack.c.l.b16 %v210_v61  ;;  %955 = vmatpush.bf16.msra.mxu3 %v6805_v3  ;;  %v5114_v34 = vld [vmem:[%s7225_s28 + $0x10] sm:$0xc]  ;;  %v6794_v28 = vld [vmem:[%s8617_s1 + $0x234] sm:$0xff] }
  0x1f   : >> { %421 = vrot.lane.b32.xlu2 %v420_v32, %s7161_s6  ;;  %v261_v1 = vor.u32 %v260_v59, %v257_v58  ;;  %v248_v11 = vrot.slane %v247_v63, 2  ;;  %v227_v12 = vunpack.c.l.b16 %v209_v6  ;;  %v1431_v13 = vshrl.u32 %v1429_v52, 16  ;;  %942 = vmatpush.bf16.msra.mxu2 %v6797_v7  ;;  %v6795_v32 = vld [vmem:[%s8617_s1 + $0x23c] sm:$0xff]  ;;  %v4690_v46 = vld [vmem:[%s8617_s1 + $0x344] sm:$0xf]  ;;  %v6785_v51 = vld [vmem:[%s8617_s1 + $0x1ec] sm:$0xff] }
  0x20   : >> { %v1435_v14 = vrot.slane %v1433_v2, 1  ;;  %v458_v17 = vor.u32 %v457_v5, %v454_v4  ;;  %v234_v21 = vpack.c.b16 %v233_v8, %v233_v8  ;;  %v1440_v23 = vunpack.c.l.b16 %v5112_v20  ;;  %930 = vmatpush.bf16.msra.mxu1 %v6788_v10  ;;  %v6801_v58 = vld [vmem:[%s8617_s1 + $0x26c] sm:$0xff]  ;;  %v6776_v61 = vld [vmem:[%s8617_s1 + $0x1a4] sm:$0xff]  ;;  %v6823_v7 = vld [vmem:[%s8617_s1 + $0x31c] sm:$0xff] }
  0x21   : >> { %224 = vrot.lane.b32.xlu1 %v223_v43, %s7161_s6  ;;  %v228_v26 = vpack.c.b16 %v227_v12, %v227_v12  ;;  %v265_v29 = vunpack.c.l.b16 %v213_v15  ;;  %v1446_v30 = vunpack.c.l.b16 %v5113_v18  ;;  %918 = vmatpush.bf16.msra.mxu0 %v6779_v22  ;;  %v1465_v38 = vunpack.c.l.b16 %v7309_v25  ;;  %v6793_v59 = vld [vmem:[%s8617_s1 + $0x22c] sm:$0xff]  ;;  %v6784_v63 = vld [vmem:[%s8617_s1 + $0x1e4] sm:$0xff]  ;;  %v6814_v12 = vld [vmem:[%s8617_s1 + $0x2d4] sm:$0xff] }
  0x22   : >> { %v1436_v27 = vor.u32 %v1435_v14, %v1431_v13  ;;  %956 = vmatpush.bf16.msra.mxu3 %v6804_v16  ;;  %v1441_v33 = vpack.c.b16 %v1440_v23, %v1440_v23  ;;  %v236_v35 = vshrl.u32 %v234_v21, 16  ;;  %v7324_v39 = vunpack.c.l.b16 %v5114_v34  ;;  %v5116_v60 = vld [vmem:[%s7225_s28 + $0x10] sm:$0x8]  ;;  %v6800_v9 = vld [vmem:[%s8617_s1 + $0x264] sm:$0xff]  ;;  %v6822_v16 = vld [vmem:[%s8617_s1 + $0x314] sm:$0xff] }
  0x23   : >> { %943 = vmatpush.bf16.msra.mxu2 %v6796_v19  ;;  %v239_v40 = vshll.u32 %v234_v21, 16  ;;  %v229_v42 = vrot.slane %v228_v26, 1  ;;  %v266_v43 = vpack.c.b16 %v252_v36, %v265_v29  ;;  %v1447_v44 = vpack.c.b16 %v1446_v30, %v1446_v30  ;;  %v6792_v10 = vld [vmem:[%s8617_s1 + $0x224] sm:$0xff]  ;;  %v6730_v18 = vld [vmem:[%s8617_s1 + $0x30] sm:$0xff]  ;;  %v6827_v19 = vld [vmem:[%s8617_s1 + $0x33c] sm:$0xff] }
  0x24   : >> { %931 = vmatpush.bf16.msra.mxu1 %v6787_v24  ;;  %v1466_v47 = vpack.c.b16 %v1465_v38, %v7324_v39  ;;  %v1442_v36 = vrot.slane %v1441_v33, 1  ;;  %v238_v48 = vrot.slane %v236_v35, 1  ;;  %v801_v52 = vunpack.c.l.b16 %v4690_v46  ;;  %v6813_v20 = vld [vmem:[%s8617_s1 + $0x2cc] sm:$0xff]  ;;  %v6812_v24 = vld [vmem:[%s8617_s1 + $0x2c4] sm:$0xff]  ;;  %v6811_v26 = vld [vmem:[%s8617_s1 + $0x2bc] sm:$0xff] }
  0x25   : >> { %919 = vmatpush.bf16.msra.mxu0 %v6778_v37  ;;  %v241_v50 = vrot.slane %v239_v40, 2  ;;  %v267_v55 = vrot.slane %v266_v43, 3  ;;  %v1449_v56 = vshrl.u32 %v1447_v44, 16  ;;  %v1452_v57 = vshll.u32 %v1447_v44, 16  ;;  %v6821_v22 = vld [vmem:[%s8617_s1 + $0x30c] sm:$0xff]  ;;  %v6820_v25 = vld [vmem:[%s8617_s1 + $0x304] sm:$0xff] }
  0x26   : >> { %446 = vrot.lane.b32.xlu0 %v445_v49, %s7162_s8  ;;  %957 = vmatpush.bf16.msra.mxu3 %v6803_v31  ;;  %v6777_v49 = vld [vmem:[%s8617_s1 + $0x1ac] sm:$0xff]  ;;  %v1468_v53 = vshrl.u32 %v1466_v47, 16  ;;  %v854_v2 = vpack.c.b16 %v801_v52, %v801_v52  ;;  %v1478_v8 = vunpack.c.l.b16 %v5116_v60  ;;  %v6826_v29 = vld [vmem:[%s8617_s1 + $0x334] sm:$0xff]  ;;  %v6728_v30 = vld [vmem:[%s8617_s1 + $0x20] sm:$0xff]  ;;  %v1460_v34 = vpack.c.b16 %v7324_v39, %v7324_v39 }
  0x27   : >> { %465 = vrot.lane.b32.xlu2 %v464_v54, %s7163_s11  ;;  %944 = vmatpush.bf16.msra.mxu2 %v6795_v32  ;;  %v1471_v54 = vshll.u32 %v1466_v47, 16  ;;  %v242_v62 = vor.u32 %v241_v50, %v238_v48  ;;  %v1451_v5 = vrot.slane %v1449_v56, 1  ;;  %v1454_v6 = vrot.slane %v1452_v57, 2  ;;  %v6729_v23 = vld [vmem:[%s8617_s1 + $0x28] sm:$0xff]  ;;  %v6810_v31 = vld [vmem:[%s8617_s1 + $0x2b4] sm:$0xff]  ;;  %v6724_v50 = vld [vmem:[%s8617_s1] sm:$0xff] }
  0x28   : >> { %932 = vmatpush.bf16.msra.mxu1 %v6786_v41  ;;  %v1470_v3 = vrot.slane %v1468_v53, 2  ;;  %v912_v13 = vsel %vm910_vm0, %v854_v2, 0  ;;  %v6818_v32 = vld [vmem:[%s8617_s1 + $0x2f4] sm:$0xff]  ;;  %v6825_v33 = vld [vmem:[%s8617_s1 + $0x32c] sm:$0xff]  ;;  %v1461_v37 = vrot.slane %v1460_v34, 2  ;;  %v6824_v40 = vld [vmem:[%s8617_s1 + $0x324] sm:$0xff] }
  0x29   : >> { %262 = vrot.lane.b32.xlu1 %v261_v1, %s7164_s21  ;;  %920 = vmatpush.bf16.msra.mxu0 %v6777_v49  ;;  %v6815_v1 = vld [vmem:[%s8617_s1 + $0x2dc] sm:$0xff]  ;;  %v1473_v4 = vrot.slane %v1471_v54, 3  ;;  %v1455_v15 = vor.u32 %v1454_v6, %v1451_v5  ;;  %v6817_v39 = vld [vmem:[%s8617_s1 + $0x2ec] sm:$0xff]  ;;  %v6808_v43 = vld [vmem:[%s8617_s1 + $0x2a4] sm:$0xff]  ;;  %vm279_vm3 = vcmask 850944   ;;  %vm283_vm4 = vcmask 785408  }
  0x2a   : >> { %958 = vmatpush.bf16.msra.mxu3 %v6802_v45  ;;  %v6727_v35 = vld [vmem:[%s8617_s1 + $0x18] sm:$0xff]  ;;  %v6726_v41 = vld [vmem:[%s8617_s1 + $0x10] sm:$0xff]  ;;  %v6816_v44 = vld [vmem:[%s8617_s1 + $0x2e4] sm:$0xff]  ;;  %vm287_vm5 = vcmask 719872   ;;  %vm291_vm6 = vcmask 654336   ;;  %vm907_vm7 = vcmask 588800  }
  0x2b   : >> { %945 = vmatpush.bf16.msra.mxu2 %v6794_v28  ;;  %v1474_v14 = vor.u32 %v1473_v4, %v1470_v3  ;;  %v6725_v45 = vld [vmem:[%s8617_s1 + $0x8] sm:$0xff]  ;;  %v6747_v49 = vld [vmem:[%s8617_s1 + $0xb8] sm:$0xff]  ;;  %v6746_v56 = vld [vmem:[%s8617_s1 + $0xb0] sm:$0xff]  ;;  %vm4444_vm8 = vcmask 484352  }
  0x2c   : >> { %933 = vmatpush.bf16.msra.mxu1 %v6785_v51  ;;  %v4579_v28 = vld [vmem:[%s7225_s28 + $0x8] sm:$0x3]  ;;  %v5434_v57 = vld [vmem:[%s7225_s28 + $0x18] sm:$0x6]  ;;  %v6744_v3 = vld [vmem:[%s8617_s1 + $0xa0] sm:$0xff] }
  0x2d   : >> { %921 = vmatpush.bf16.msra.mxu0 %v6776_v61  ;;  %v6745_v61 = vld [vmem:[%s8617_s1 + $0xa8] sm:$0xff]  ;;  %v6743_v4 = vld [vmem:[%s8617_s1 + $0x98] sm:$0xff] }
  0x2e   : >> { %249 = vrot.lane.b32.xlu0 %v248_v11, %s7162_s8  ;;  %959 = vmatpush.bf16.msra.mxu3 %v6801_v58  ;;  %v6731_v11 = vld [vmem:[%s8617_s1 + $0x38] sm:$0xff] }
  0x2f   : >> { %459 = vrot.lane.b32.xlu2 %v458_v17, %s7164_s21  ;;  %946 = vmatpush.bf16.msra.mxu2 %v6793_v59  ;;  %v1479_v17 = vpack.c.b16 %v1465_v38, %v1478_v8  ;;  %v6809_v38 = vld [vmem:[%s8617_s1 + $0x2ac] sm:$0xff]  ;;  %v5436_v58 = vld [vmem:[%s7225_s28 + $0x18] sm:$0xc]  ;;  %v2044_v59 = vunpack.c.l.b16 %v5434_v57 }
  0x30   : >> { %934 = vmatpush.bf16.msra.mxu1 %v6784_v63  ;;  %v7478_v60 = vunpack.c.l.b16 %v5436_v58  ;;  %v6755_v5 = vld [vmem:[%s8617_s1 + $0xf8] sm:$0xff]  ;;  %v6742_v8 = vld [vmem:[%s8617_s1 + $0x90] sm:$0xff] }
  0x31   : >> { %1437 = vrot.lane.b32.xlu1 %v1436_v27, %s7161_s6  ;;  %966 = vmatpush.bf16.msrb.mxu0 %v6815_v1  ;;  %v1480_v21 = vrot.slane %v1479_v17, 3  ;;  %v6819_v27 = vld [vmem:[%s8617_s1 + $0x2fc] sm:$0xff]  ;;  %v5438_v17 = vld [vmem:[%s7225_s28 + $0x18] sm:$0x8] }
  0x32   : >> { %960 = vmatpush.bf16.msra.mxu3 %v6800_v9  ;;  %v2064_v63 = vpack.c.b16 %v7478_v60, %v7478_v60 }
  0x33   : >> { %947 = vmatpush.bf16.msra.mxu2 %v6792_v10  ;;  %v399_v10 = vld [vmem:[%s8617_s1 + $0x1a0] sm:$0xf] }
  0x34   : >> { %979 = vmatpush.bf16.msrb.mxu1 %v6823_v7  ;;  %v2065_v2 = vrot.slane %v2064_v63, 2 }
  0x35   : >> { %967 = vmatpush.bf16.msrb.mxu0 %v6814_v12  ;;  %v6754_v12 = vld [vmem:[%s8617_s1 + $0xf0] sm:$0xff] }
  0x36   : >> { %230 = vrot.lane.b32.xlu0 %v229_v42, %s7159_s29  ;;  %1325 = vmatpush.bf16.msrb.mxu3 %v6731_v11  ;;  %v5435_v42 = vld [vmem:[%s7225_s28 + $0x18] sm:$0xe] }
  0x37   : >> { %1443 = vrot.lane.b32.xlu2 %v1442_v36, %s7159_s29  ;;  %995 = vmatpush.bf16.msrb.mxu2 %v912_v13  ;;  %v2050_v46 = vunpack.c.l.b16 %v5435_v42  ;;  %v6739_v11 = vld [vmem:[%s8617_s1 + $0x78] sm:$0xff] }
  0x38   : >> { %980 = vmatpush.bf16.msrb.mxu1 %v6822_v16  ;;  %v5433_v13 = vld [vmem:[%s7225_s28 + $0x18] sm:$0x7]  ;;  %v7516_v16 = vld [vmem:[%s7225_s28 + $0x1c] sm:$0x1] }
  0x39   : >> { %268 = vrot.lane.b32.xlu1 %v267_v55, %s7163_s11  ;;  %968 = vmatpush.bf16.msrb.mxu0 %v6813_v20  ;;  %v2051_v47 = vpack.c.b16 %v2050_v46, %v2050_v46  ;;  %v1214_v20 = vunpack.c.l.b16 %v399_v10 }
  0x3a   : >> { %1326 = vmatpush.bf16.msrb.mxu3 %v6730_v18  ;;  %v2032_v18 = vunpack.c.l.b16 %v5433_v13 }
  0x3b   : >> { %996 = vmatpush.bf16.msrb.mxu2 %v6827_v19  ;;  %v2053_v36 = vshrl.u32 %v2051_v47, 16  ;;  %v2056_v48 = vshll.u32 %v2051_v47, 16  ;;  %v6751_v47 = vld [vmem:[%s8617_s1 + $0xd8] sm:$0xff] }
  0x3c   : >> { %981 = vmatpush.bf16.msrb.mxu1 %v6821_v22  ;;  %v2082_v22 = vunpack.c.l.b16 %v5438_v17  ;;  %v6732_v17 = vld [vmem:[%s8617_s1 + $0x40] sm:$0xff] }
  0x3d   : >> { %969 = vmatpush.bf16.msrb.mxu0 %v6812_v24  ;;  %v2055_v52 = vrot.slane %v2053_v36, 1  ;;  %v2058_v53 = vrot.slane %v2056_v48, 2  ;;  %v6738_v24 = vld [vmem:[%s8617_s1 + $0x70] sm:$0xff]  ;;  %v6735_v36 = vld [vmem:[%s8617_s1 + $0x58] sm:$0xff]  ;;  %v6761_v48 = vld [vmem:[%s8617_s1 + $0x128] sm:$0xff] }
  0x3e   : >> { %243 = vrot.lane.b32.xlu0 %v242_v62, %s7160_s30  ;;  %1327 = vmatpush.bf16.msrb.mxu3 %v6729_v23  ;;  %v2045_v62 = vpack.c.b16 %v2044_v59, %v2044_v59  ;;  %v2033_v23 = vpack.c.b16 %v2032_v18, %v2032_v18  ;;  %v207_v59 = vld [vmem:[%s7225_s28] sm:$0x3]  ;;  %v6758_v18 = vld [vmem:[%s8617_s1 + $0x110] sm:$0xff] }
  0x3f   : >> { %1475 = vrot.lane.b32.xlu2 %v1474_v14, %s7164_s21  ;;  %997 = vmatpush.bf16.msrb.mxu2 %v6826_v29  ;;  %v2059_v55 = vor.u32 %v2058_v53, %v2055_v52  ;;  %v5757_v52 = vld [vmem:[%s7225_s28 + $0x20] sm:$0xe] }
  0x40   : >> { %982 = vmatpush.bf16.msrb.mxu1 %v6820_v25  ;;  %v2046_v1 = vrot.slane %v2045_v62, 1  ;;  %v6753_v25 = vld [vmem:[%s8617_s1 + $0xe8] sm:$0xff]  ;;  %v2037_v29 = vshll.u32 %v2033_v23, 16  ;;  %v2654_v53 = vunpack.c.l.b16 %v5757_v52  ;;  %v6830_v52 = vld [vmem:[%s8617_s1 + $0x358] sm:$0xff] }
  0x41   : >> { %1456 = vrot.lane.b32.xlu1 %v1455_v15, %s7160_s30  ;;  %970 = vmatpush.bf16.msrb.mxu0 %v6811_v26  ;;  %v6741_v15 = vld [vmem:[%s8617_s1 + $0x88] sm:$0xff] }
  0x42   : >> { %1328 = vmatpush.bf16.msrb.mxu3 %v6728_v30  ;;  %v1267_v30 = vpack.c.b16 %v1214_v20, %v1214_v20  ;;  %v2039_v34 = vrot.slane %v2037_v29, 1  ;;  %v2655_v57 = vpack.c.b16 %v2654_v53, %v2654_v53  ;;  %v6771_v20 = vld [vmem:[%s8617_s1 + $0x178] sm:$0xff]  ;;  %v6848_v53 = vld [vmem:[%s8617_s1 + $0x3e8] sm:$0xff] }
  0x43   : >> { %998 = vmatpush.bf16.msrb.mxu2 %v6825_v33  ;;  %v2035_v33 = vshrl.u32 %v2033_v23, 16 }
  0x44   : >> { %983 = vmatpush.bf16.msrb.mxu1 %v6819_v27  ;;  %v6740_v27 = vld [vmem:[%s8617_s1 + $0x80] sm:$0xff]  ;;  %v1323_v42 = vsel %vm910_vm0, %v1267_v30, 0 }
  0x45   : >> { %971 = vmatpush.bf16.msrb.mxu0 %v6810_v31 }
  0x46   : >> { %1481 = vrot.lane.b32.xlu0 %v1480_v21, %s7163_s11  ;;  %1329 = vmatpush.bf16.msrb.mxu3 %v6727_v35  ;;  %v2069_v21 = vunpack.c.l.b16 %v7516_v16  ;;  %v6737_v35 = vld [vmem:[%s8617_s1 + $0x68] sm:$0xff]  ;;  %v5756_v16 = vld [vmem:[%s7225_s28 + $0x20] sm:$0x6] }
  0x47   : >> { %1462 = vrot.lane.b32.xlu2 %v1461_v37, %s7162_s8  ;;  %999 = vmatpush.bf16.msrb.mxu2 %v6824_v40  ;;  %v6763_v37 = vld [vmem:[%s8617_s1 + $0x138] sm:$0xff] }
  0x48   : >> { %984 = vmatpush.bf16.msrb.mxu1 %v6818_v32  ;;  %v2083_v26 = vpack.c.b16 %v2069_v21, %v2082_v22  ;;  %v6834_v22 = vld [vmem:[%s8617_s1 + $0x378] sm:$0xff] }
  0x49   : >> { %972 = vmatpush.bf16.msrb.mxu0 %v6809_v38  ;;  %2060 = vrot.lane.b32.xlu1 %v2059_v55, %s7160_s30  ;;  %v6734_v55 = vld [vmem:[%s8617_s1 + $0x50] sm:$0xff] }
  0x4a   : >> { %1330 = vmatpush.bf16.msrb.mxu3 %v6726_v41  ;;  %v2084_v31 = vrot.slane %v2083_v26, 3  ;;  %v6757_v26 = vld [vmem:[%s8617_s1 + $0x108] sm:$0xff] }
  0x4c   : >> { %985 = vmatpush.bf16.msrb.mxu1 %v6817_v39  ;;  %v6752_v39 = vld [vmem:[%s8617_s1 + $0xe0] sm:$0xff] }
  0x4d   : >> { %973 = vmatpush.bf16.msrb.mxu0 %v6808_v43  ;;  %v2040_v43 = vor.u32 %v2039_v34, %v2035_v33  ;;  %v6851_v33 = vld [vmem:[%s8617_s1 + $0x400] sm:$0xff] }
  0x4e   : >> { %1331 = vmatpush.bf16.msrb.mxu3 %v6725_v45  ;;  %2047 = vrot.lane.b32.xlu0 %v2046_v1, %s7159_s29  ;;  %v6762_v45 = vld [vmem:[%s8617_s1 + $0x130] sm:$0xff]  ;;  %v2657_v1 = vshrl.u32 %v2655_v57, 16 }
  0x4f   : >> { %2041 = vrot.lane.b32.xlu2 %v2040_v43, %s7161_s6  ;;  %v6850_v43 = vld [vmem:[%s8617_s1 + $0x3f8] sm:$0xff] }
  0x50   : >> { %986 = vmatpush.bf16.msrb.mxu1 %v6816_v44  ;;  %v6736_v44 = vld [vmem:[%s8617_s1 + $0x60] sm:$0xff] }
  0x51   : >> { %2066 = vrot.lane.b32.xlu1 %v2065_v2, %s7162_s8  ;;  %v2660_v2 = vshll.u32 %v2655_v57, 16  ;;  %v6840_v57 = vld [vmem:[%s8617_s1 + $0x3a8] sm:$0xff] }
  0x52   : >> { %1332 = vmatpush.bf16.msrb.mxu3 %v6724_v50  ;;  %v6750_v50 = vld [vmem:[%s8617_s1 + $0xd0] sm:$0xff] }
  0x56   : >> { %2085 = vrot.lane.b32.xlu0 %v2084_v31, %s7163_s11  ;;  %v6770_v31 = vld [vmem:[%s8617_s1 + $0x170] sm:$0xff] }
  0x79   : >> { %v422_v51 = vpop.permute.xlu2 %421 }
  0x7a   : >> { %v469_v54 = vsel %vm270_vm1, %v4579_v28, %v422_v51  ;;  %v6775_v28 = vld [vmem:[%s8617_s1 + $0x198] sm:$0xff] }
  0x7b   : >> { %922 = vmatmul.bf16.vlgmr.msra.gmra.mxu0 %v469_v54  ;;  %v2070_v54 = vpack.c.b16 %v2069_v21, %v7478_v60  ;;  %v6773_v60 = vld [vmem:[%s8617_s1 + $0x188] sm:$0xff]  ;;  %v5758_v21 = vld [vmem:[%s7225_s28 + $0x20] sm:$0xc] }
  0x7c   : >> { %1351 = vmatpush.bf16.msra.mxu0 %v6747_v49 }
  0x7d   : >> { %v2072_v62 = vshrl.u32 %v2070_v54, 16  ;;  %v2075_v63 = vshll.u32 %v2070_v54, 16 }
  0x80   : >> { %1352 = vmatpush.bf16.msra.mxu0 %v6746_v56  ;;  %v6760_v56 = vld [vmem:[%s8617_s1 + $0x120] sm:$0xff] }
  0x81   : >> { %v7496_v7 = vpop.permute.xlu2 %465 }
  0x84   : >> { %1353 = vmatpush.bf16.msra.mxu0 %v6745_v61  ;;  %v6749_v61 = vld [vmem:[%s8617_s1 + $0xc8] sm:$0xff] }
  0x88   : >> { %1354 = vmatpush.bf16.msra.mxu0 %v6744_v3  ;;  %v2074_v3 = vrot.slane %v2072_v62, 2 }
  0x89   : >> { %v460_v32 = vpop.permute.xlu2 %459 }
  0x8a   : >> { %v484_v46 = vsel %vm291_vm6, %v460_v32, %v7496_v7 }
  0x8b   : >> { %v428_v6 = vpop.permute.xlu1 %427 }
  0x8c   : >> { %1355 = vmatpush.bf16.msra.mxu0 %v6743_v4  ;;  %v472_v9 = vsel %vm275_vm2, %v422_v51, %v428_v6  ;;  %v6774_v51 = vld [vmem:[%s8617_s1 + $0x190] sm:$0xff]  ;;  %v2077_v4 = vrot.slane %v2075_v63, 3 }
  0x8d   : >> { %935 = vmatmul.bf16.vlgmr.msra.gmra.mxu1 %v472_v9  ;;  %v2662_v9 = vrot.slane %v2660_v2, 2  ;;  %v6839_v2 = vld [vmem:[%s8617_s1 + $0x3a0] sm:$0xff] }
  0x8e   : >> { %1364 = vmatpush.bf16.msra.mxu1 %v6755_v5  ;;  %v2078_v13 = vor.u32 %v2077_v4, %v2074_v3  ;;  %v6828_v3 = vld [vmem:[%s8617_s1 + $0x348] sm:$0xff]  ;;  %v6846_v4 = vld [vmem:[%s8617_s1 + $0x3d8] sm:$0xff] }
  0x90   : >> { %v441_v14 = vpop.permute.xlu0 %440  ;;  %1356 = vmatpush.bf16.msra.mxu0 %v6742_v8  ;;  %v2659_v8 = vrot.slane %v2657_v1, 1  ;;  %2079 = vrot.lane.b32.xlu2 %v2078_v13, %s7164_s21  ;;  %v6765_v1 = vld [vmem:[%s8617_s1 + $0x148] sm:$0xff]  ;;  %v6838_v13 = vld [vmem:[%s8617_s1 + $0x398] sm:$0xff] }
  0x91   : >> { %v475_v19 = vsel %vm279_vm3, %v428_v6, %v441_v14  ;;  %v6733_v6 = vld [vmem:[%s8617_s1 + $0x48] sm:$0xff] }
  0x92   : >> { %948 = vmatmul.bf16.vlgmr.msra.gmra.mxu2 %v475_v19  ;;  %1365 = vmatpush.bf16.msra.mxu1 %v6754_v12  ;;  %v6772_v12 = vld [vmem:[%s8617_s1 + $0x180] sm:$0xff]  ;;  %v2648_v19 = vunpack.c.l.b16 %v5756_v16 }
  0x93   : >> { %1338 = vmatpush.bf16.msra.mxu2 %v6739_v11  ;;  %v225_v58 = vpop.permute.xlu1 %224  ;;  %v6748_v11 = vld [vmem:[%s8617_s1 + $0xc0] sm:$0xff] }
  0x94   : >> { %1357 = vmatpush.bf16.msra.mxu0 %v6741_v15  ;;  %v273_v5 = vsel %vm270_vm1, %v207_v59, %v225_v58  ;;  %v2663_v15 = vor.u32 %v2662_v9, %v2659_v8  ;;  %v2649_v23 = vpack.c.b16 %v2648_v19, %v2648_v19  ;;  %v5760_v8 = vld [vmem:[%s7225_s28 + $0x20] sm:$0x8]  ;;  %v6845_v19 = vld [vmem:[%s8617_s1 + $0x3d0] sm:$0xff] }
  0x96   : >> { %1366 = vmatpush.bf16.msra.mxu1 %v6753_v25  ;;  %2664 = vrot.lane.b32.xlu1 %v2663_v15, %s7160_s30  ;;  %v2650_v29 = vrot.slane %v2649_v23, 1  ;;  %v6859_v15 = vld [vmem:[%s8617_s1 + $0x440] sm:$0xff] }
  0x97   : >> { %1339 = vmatpush.bf16.msra.mxu2 %v6738_v24  ;;  %v7621_v24 = vunpack.c.l.b16 %v5758_v21 }
  0x98   : >> { %v447_v38 = vpop.permute.xlu0 %446  ;;  %1358 = vmatpush.bf16.msra.mxu0 %v6740_v27  ;;  %2651 = vrot.lane.b32.xlu0 %v2650_v29, %s7159_s29  ;;  %v6865_v29 = vld [vmem:[%s8617_s1 + $0x470] sm:$0xff] }
  0x99   : >> { %v478_v40 = vsel %vm283_vm4, %v441_v14, %v447_v38  ;;  %v481_v41 = vsel %vm287_vm5, %v447_v38, %v460_v32  ;;  %v6835_v14 = vld [vmem:[%s8617_s1 + $0x380] sm:$0xff]  ;;  %v2668_v30 = vpack.c.b16 %v7621_v24, %v7621_v24 }
  0x9a   : >> { %961 = vmatmul.bf16.vlgmr.msra.gmra.mxu3 %v478_v40  ;;  %974 = vmatmul.bf16.vlgmr.msrb.gmra.mxu0 %v481_v41  ;;  %v6769_v40 = vld [vmem:[%s8617_s1 + $0x168] sm:$0xff]  ;;  %v6843_v41 = vld [vmem:[%s8617_s1 + $0x3c0] sm:$0xff] }
  0x9b   : >> { %1340 = vmatpush.bf16.msra.mxu2 %v6737_v35  ;;  %1377 = vmatpush.bf16.msra.mxu3 %v6763_v37  ;;  %v7627_v27 = vpop.permute.xlu1 %262  ;;  %v6833_v37 = vld [vmem:[%s8617_s1 + $0x370] sm:$0xff]  ;;  %v2669_v38 = vrot.slane %v2668_v30, 2 }
  0x9c   : >> { %1367 = vmatpush.bf16.msra.mxu1 %v6752_v39  ;;  %1406 = vmatpush.bf16.msrb.mxu0 %v1323_v42  ;;  %v6756_v39 = vld [vmem:[%s8617_s1 + $0x100] sm:$0xff]  ;;  %v6832_v42 = vld [vmem:[%s8617_s1 + $0x368] sm:$0xff] }
  0x9d   : >> { %987 = vmatmul.bf16.vlgmr.msrb.gmra.mxu1 %v484_v46  ;;  %v6768_v46 = vld [vmem:[%s8617_s1 + $0x160] sm:$0xff] }
  0x9e   : >> { %2670 = vrot.lane.b32.xlu1 %v2669_v38, %s7162_s8 }
  0x9f   : >> { %1341 = vmatpush.bf16.msra.mxu2 %v6736_v44  ;;  %1378 = vmatpush.bf16.msra.mxu3 %v6762_v45 }
  0xa0   : >> { %1368 = vmatpush.bf16.msra.mxu1 %v6751_v47  ;;  %v7564_v49 = vpop.permute.xlu0 %249  ;;  %1407 = vmatpush.bf16.msrb.mxu0 %v6775_v28  ;;  %v6842_v47 = vld [vmem:[%s8617_s1 + $0x3b8] sm:$0xff]  ;;  %v6831_v28 = vld [vmem:[%s8617_s1 + $0x360] sm:$0xff] }
  0xa1   : >> { %v289_v44 = vsel %vm287_vm5, %v7564_v49, %v7627_v27 }
  0xa2   : >> { %4899 = vmatmul.msk.bf16.vlgmr.msrb.gmra.mxu2 %vm907_vm7, %v7496_v7  ;;  %v6759_v7 = vld [vmem:[%s8617_s1 + $0x118] sm:$0xff] }
  0xa3   : >> { %1342 = vmatpush.bf16.msra.mxu2 %v6735_v36  ;;  %1379 = vmatpush.bf16.msra.mxu3 %v6761_v48  ;;  %v7663_v45 = vpop.permute.xlu1 %1437  ;;  %v6849_v36 = vld [vmem:[%s8617_s1 + $0x3f0] sm:$0xff]  ;;  %v5755_v48 = vld [vmem:[%s7225_s28 + $0x20] sm:$0x7] }
  0xa4   : >> { %1369 = vmatpush.bf16.msra.mxu1 %v6750_v50  ;;  %1408 = vmatpush.bf16.msrb.mxu0 %v6774_v51  ;;  %v6767_v50 = vld [vmem:[%s8617_s1 + $0x158] sm:$0xff]  ;;  %v6841_v51 = vld [vmem:[%s8617_s1 + $0x3b0] sm:$0xff] }
  0xa7   : >> { %1343 = vmatpush.bf16.msra.mxu2 %v6734_v55  ;;  %1380 = vmatpush.bf16.msra.mxu3 %v6760_v56  ;;  %v6766_v56 = vld [vmem:[%s8617_s1 + $0x150] sm:$0xff] }
  0xa8   : >> { %1370 = vmatpush.bf16.msra.mxu1 %v6749_v61  ;;  %v231_v10 = vpop.permute.xlu0 %230  ;;  %1409 = vmatpush.bf16.msrb.mxu0 %v6773_v60  ;;  %v6847_v61 = vld [vmem:[%s8617_s1 + $0x3e0] sm:$0xff] }
  0xa9   : >> { %v277_v25 = vsel %vm275_vm2, %v225_v58, %v231_v10  ;;  %v6829_v58 = vld [vmem:[%s8617_s1 + $0x350] sm:$0xff] }
  0xaa   : >> { %1333 = vmatmul.bf16.vlgmr.msrb.gmra.mxu3 %v273_v5  ;;  %v5221_v5 = vld [vmem:[%s8617_s1 + $0x4e8] sm:$0xf] }
  0xab   : >> { %1344 = vmatpush.bf16.msra.mxu2 %v6733_v6  ;;  %1381 = vmatpush.bf16.msra.mxu3 %v6759_v7  ;;  %v269_v59 = vpop.permute.xlu1 %268  ;;  %v5759_v6 = vld [vmem:[%s7225_s28 + $0x24] sm:$0x1] }
  0xac   : >> { %1371 = vmatpush.bf16.msra.mxu1 %v6748_v11  ;;  %1410 = vmatpush.bf16.msrb.mxu0 %v6772_v12  ;;  %v6867_v7 = vld [vmem:[%s8617_s1 + $0x480] sm:$0xff]  ;;  %v2673_v9 = vunpack.c.l.b16 %v5759_v6  ;;  %v2686_v11 = vunpack.c.l.b16 %v5760_v8  ;;  %v293_v21 = vsel %vm291_vm6, %v7627_v27, %v269_v59  ;;  %v6844_v27 = vld [vmem:[%s8617_s1 + $0x3c8] sm:$0xff]  ;;  %v6853_v6 = vld [vmem:[%s8617_s1 + $0x410] sm:$0xff] }
  0xad   : >> { %v6764_v12 = vld [vmem:[%s8617_s1 + $0x140] sm:$0xff]  ;;  %v6860_v8 = vld [vmem:[%s8617_s1 + $0x448] sm:$0xff] }
  0xae   : >> { %v2687_v16 = vpack.c.b16 %v2673_v9, %v2686_v11 }
  0xaf   : >> { %1345 = vmatpush.bf16.msra.mxu2 %v6732_v17  ;;  %1382 = vmatpush.bf16.msra.mxu3 %v6758_v18  ;;  %v6866_v18 = vld [vmem:[%s8617_s1 + $0x478] sm:$0xff] }
  0xb0   : >> { %1928 = vmatpush.bf16.msrb.mxu1 %v6835_v14  ;;  %v244_v32 = vpop.permute.xlu0 %243  ;;  %v1817_v14 = vunpack.c.l.b16 %v5221_v5  ;;  %v6911_v5 = vld [vmem:[%s8617_s1 + $0x5e4] sm:$0xff] }
  0xb1   : >> { %v281_v34 = vsel %vm279_vm3, %v231_v10, %v244_v32  ;;  %v285_v35 = vsel %vm283_vm4, %v244_v32, %v7564_v49  ;;  %v2636_v49 = vunpack.c.l.b16 %v5755_v48  ;;  %v5110_v10 = vld [vmem:[%s7225_s28 + $0x10] sm:$0x3] }
  0xb2   : >> { %1346 = vmatmul.bf16.vlgmr.msra.gmra.mxu2 %v277_v25  ;;  %1359 = vmatmul.bf16.vlgmr.msra.gmra.mxu0 %v281_v34  ;;  %v1485_v17 = vsel %vm270_vm1, %v5110_v10, %v7663_v45  ;;  %v1870_v23 = vpack.c.b16 %v1817_v14, %v1817_v14  ;;  %v6858_v25 = vld [vmem:[%s8617_s1 + $0x438] sm:$0xff]  ;;  %v6857_v34 = vld [vmem:[%s8617_s1 + $0x430] sm:$0xff]  ;;  %v6895_v10 = vld [vmem:[%s8617_s1 + $0x564] sm:$0xff] }
  0xb3   : >> { %1390 = vmatpush.bf16.msrb.mxu2 %v6771_v20  ;;  %1383 = vmatpush.bf16.msra.mxu3 %v6757_v26  ;;  %v2637_v54 = vpack.c.b16 %v2636_v49, %v2636_v49  ;;  %v2688_v20 = vrot.slane %v2687_v16, 3  ;;  %v2674_v26 = vpack.c.b16 %v2673_v9, %v7621_v24  ;;  %v6836_v24 = vld [vmem:[%s8617_s1 + $0x388] sm:$0xff]  ;;  %v7761_v32 = vpop.permute.xlu1 %1456  ;;  %v6870_v14 = vld [vmem:[%s8617_s1 + $0x498] sm:$0xff] }
  0xb4   : >> { %1929 = vmatpush.bf16.msrb.mxu1 %v6834_v22  ;;  %1954 = vmatpush.bf16.msra.mxu0 %v6851_v33  ;;  %v6837_v22 = vld [vmem:[%s8617_s1 + $0x390] sm:$0xff]  ;;  %v1926_v33 = vsel %vm910_vm0, %v1870_v23, 0  ;;  %v6078_v49 = vld [vmem:[%s7225_s28 + $0x28] sm:$0x6] }
  0xb5   : >> { %1372 = vmatmul.bf16.vlgmr.msra.gmra.mxu1 %v285_v35  ;;  %v2641_v55 = vshll.u32 %v2637_v54, 16  ;;  %v2639_v60 = vshrl.u32 %v2637_v54, 16  ;;  %2689 = vrot.lane.b32.xlu0 %v2688_v20, %s7163_s11  ;;  %v2676_v30 = vshrl.u32 %v2674_v26, 16  ;;  %v6875_v35 = vld [vmem:[%s8617_s1 + $0x4c0] sm:$0xff]  ;;  %v6862_v54 = vld [vmem:[%s8617_s1 + $0x458] sm:$0xff] }
  0xb6   : >> { %v6080_v9 = vld [vmem:[%s7225_s28 + $0x28] sm:$0xc]  ;;  %v6894_v20 = vld [vmem:[%s8617_s1 + $0x55c] sm:$0xff] }
  0xb7   : >> { %1391 = vmatpush.bf16.msrb.mxu2 %v6770_v31  ;;  %1384 = vmatpush.bf16.msra.mxu3 %v6756_v39  ;;  %v2643_v62 = vrot.slane %v2641_v55, 1  ;;  %v2679_v31 = vshll.u32 %v2674_v26, 16  ;;  %v2678_v38 = vrot.slane %v2676_v30, 2  ;;  %v7839_v11 = vunpack.c.l.b16 %v6080_v9  ;;  %v6886_v26 = vld [vmem:[%s8617_s1 + $0x51c] sm:$0xff]  ;;  %v6893_v30 = vld [vmem:[%s8617_s1 + $0x554] sm:$0xff] }
  0xb8   : >> { %1930 = vmatpush.bf16.msrb.mxu1 %v6833_v37  ;;  %1955 = vmatpush.bf16.msra.mxu0 %v6850_v43  ;;  %v1444_v37 = vpop.permute.xlu2 %1443 }
  0xb9   : >> { %v2644_v63 = vor.u32 %v2643_v62, %v2639_v60  ;;  %v2681_v39 = vrot.slane %v2679_v31, 3  ;;  %v1488_v43 = vsel %vm275_vm2, %v7663_v45, %v1444_v37  ;;  %v6878_v45 = vld [vmem:[%s8617_s1 + $0x4d8] sm:$0xff]  ;;  %v3272_v16 = vpack.c.b16 %v7839_v11, %v7839_v11 }
  0xba   : >> { %1385 = vmatmul.bf16.vlgmr.msra.gmra.mxu3 %v289_v44  ;;  %v6854_v62 = vld [vmem:[%s8617_s1 + $0x418] sm:$0xff] }
  0xbb   : >> { %1392 = vmatpush.bf16.msrb.mxu2 %v6769_v40  ;;  %1941 = vmatpush.bf16.msrb.mxu3 %v6843_v41  ;;  %v6864_v40 = vld [vmem:[%s8617_s1 + $0x468] sm:$0xff]  ;;  %v1491_v41 = vsel %vm279_vm3, %v1444_v37, %v7761_v32  ;;  %v2682_v44 = vor.u32 %v2681_v39, %v2678_v38 }
  0xbc   : >> { %1931 = vmatpush.bf16.msrb.mxu1 %v6832_v42  ;;  %1956 = vmatpush.bf16.msra.mxu0 %v6849_v36  ;;  %v6879_v42 = vld [vmem:[%s8617_s1 + $0x4e0] sm:$0xff]  ;;  %v6077_v38 = vld [vmem:[%s7225_s28 + $0x28] sm:$0x7]  ;;  %v6892_v39 = vld [vmem:[%s8617_s1 + $0x54c] sm:$0xff] }
  0xbd   : >> { %2645 = vrot.lane.b32.xlu2 %v2644_v63, %s7161_s6  ;;  %v6863_v36 = vld [vmem:[%s8617_s1 + $0x460] sm:$0xff]  ;;  %v6872_v63 = vld [vmem:[%s8617_s1 + $0x4a8] sm:$0xff] }
  0xbe   : >> { %v6903_v37 = vld [vmem:[%s8617_s1 + $0x5a4] sm:$0xff] }
  0xbf   : >> { %1393 = vmatpush.bf16.msrb.mxu2 %v6768_v46  ;;  %1942 = vmatpush.bf16.msrb.mxu3 %v6842_v47  ;;  %v6856_v46 = vld [vmem:[%s8617_s1 + $0x428] sm:$0xff]  ;;  %v6874_v47 = vld [vmem:[%s8617_s1 + $0x4b8] sm:$0xff] }
  0xc0   : >> { %1932 = vmatpush.bf16.msrb.mxu1 %v6831_v28  ;;  %1957 = vmatpush.bf16.msra.mxu0 %v6848_v53  ;;  %v6079_v28 = vld [vmem:[%s7225_s28 + $0x28] sm:$0xe]  ;;  %v3252_v53 = vunpack.c.l.b16 %v6078_v49 }
  0xc1   : >> { %v3258_v48 = vunpack.c.l.b16 %v6079_v28  ;;  %v6891_v28 = vld [vmem:[%s8617_s1 + $0x544] sm:$0xff] }
  0xc2   : >> { %5108 = vmatmul.msk.bf16.vlgmr.msrb.gmra.mxu0 %vm907_vm7, %v269_v59  ;;  %v7807_v59 = vpop.permute.xlu2 %1475 }
  0xc3   : >> { %1394 = vmatpush.bf16.msrb.mxu2 %v6767_v50  ;;  %1943 = vmatpush.bf16.msrb.mxu3 %v6841_v51  ;;  %v3259_v50 = vpack.c.b16 %v3258_v48, %v3258_v48  ;;  %v6855_v51 = vld [vmem:[%s8617_s1 + $0x420] sm:$0xff] }
  0xc4   : >> { %1933 = vmatpush.bf16.msrb.mxu1 %v6830_v52  ;;  %1958 = vmatpush.bf16.msra.mxu0 %v6847_v61  ;;  %v6873_v52 = vld [vmem:[%s8617_s1 + $0x4b0] sm:$0xff] }
  0xc5   : >> { %2683 = vrot.lane.b32.xlu2 %v2682_v44, %s7164_s21  ;;  %v3261_v55 = vshrl.u32 %v3259_v50, 16 }
  0xc7   : >> { %1395 = vmatpush.bf16.msrb.mxu2 %v6766_v56  ;;  %1944 = vmatpush.bf16.msrb.mxu3 %v6840_v57  ;;  %v3264_v56 = vshll.u32 %v3259_v50, 16  ;;  %v6877_v57 = vld [vmem:[%s8617_s1 + $0x4d0] sm:$0xff]  ;;  %v3263_v61 = vrot.slane %v3261_v55, 1 }
  0xc8   : >> { %1934 = vmatpush.bf16.msrb.mxu1 %v6829_v58  ;;  %1959 = vmatpush.bf16.msra.mxu0 %v6846_v4  ;;  %v3253_v58 = vpack.c.b16 %v3252_v53, %v3252_v53  ;;  %v6876_v4 = vld [vmem:[%s8617_s1 + $0x4c8] sm:$0xff]  ;;  %v6890_v53 = vld [vmem:[%s8617_s1 + $0x53c] sm:$0xff] }
  0xc9   : >> { %v3266_v60 = vrot.slane %v3264_v56, 2  ;;  %v6905_v56 = vld [vmem:[%s8617_s1 + $0x5b4] sm:$0xff] }
  0xcb   : >> { %1396 = vmatpush.bf16.msrb.mxu2 %v6765_v1  ;;  %1945 = vmatpush.bf16.msrb.mxu3 %v6839_v2  ;;  %v3254_v1 = vrot.slane %v3253_v58, 1  ;;  %v6861_v2 = vld [vmem:[%s8617_s1 + $0x450] sm:$0xff] }
  0xcc   : >> { %1935 = vmatpush.bf16.msrb.mxu1 %v6828_v3  ;;  %1960 = vmatpush.bf16.msra.mxu0 %v6845_v19  ;;  %v3267_v3 = vor.u32 %v3266_v60, %v3263_v61  ;;  %v6900_v58 = vld [vmem:[%s8617_s1 + $0x58c] sm:$0xff] }
  0xcd   : >> { %3255 = vrot.lane.b32.xlu0 %v3254_v1, %s7159_s29  ;;  %v6904_v61 = vld [vmem:[%s8617_s1 + $0x5ac] sm:$0xff]  ;;  %v6899_v1 = vld [vmem:[%s8617_s1 + $0x584] sm:$0xff] }
  0xce   : >> { %3268 = vrot.lane.b32.xlu1 %v3267_v3, %s7160_s30  ;;  %v6939_v60 = vld [vmem:[%s8617_s1 + $0x6c8] sm:$0xff] }
  0xcf   : >> { %1397 = vmatpush.bf16.msrb.mxu2 %v6764_v12  ;;  %1946 = vmatpush.bf16.msrb.mxu3 %v6838_v13  ;;  %v6910_v12 = vld [vmem:[%s8617_s1 + $0x5dc] sm:$0xff]  ;;  %v6852_v13 = vld [vmem:[%s8617_s1 + $0x408] sm:$0xff] }
  0xd0   : >> { %1980 = vmatpush.bf16.msra.mxu1 %v6867_v7  ;;  %1961 = vmatpush.bf16.msra.mxu0 %v6844_v27  ;;  %v6871_v7 = vld [vmem:[%s8617_s1 + $0x4a0] sm:$0xff]  ;;  %v6082_v27 = vld [vmem:[%s7225_s28 + $0x28] sm:$0x8] }
  0xd1   : >> { %1936 = vmatmul.bf16.vlgmr.msrb.gmra.mxu1 %v1485_v17  ;;  %v1463_v17 = vpop.permute.xlu2 %1462  ;;  %v6927_v3 = vld [vmem:[%s8617_s1 + $0x664] sm:$0xff] }
  0xd2   : >> { %1398 = vmatmul.bf16.vlgmr.msrb.gmra.mxu2 %v293_v21  ;;  %v1497_v19 = vsel %vm287_vm5, %v1463_v17, %v7807_v59  ;;  %v3273_v21 = vrot.slane %v3272_v16, 2  ;;  %v1494_v23 = vsel %vm283_vm4, %v7761_v32, %v1463_v17  ;;  %v6908_v32 = vld [vmem:[%s8617_s1 + $0x5cc] sm:$0xff]  ;;  %v5432_v16 = vld [vmem:[%s7225_s28 + $0x18] sm:$0x3] }
  0xd3   : >> { %1967 = vmatpush.bf16.msra.mxu2 %v6859_v15  ;;  %1947 = vmatpush.bf16.msrb.mxu3 %v6837_v22  ;;  %v1482_v15 = vpop.permute.xlu0 %1481  ;;  %v6909_v22 = vld [vmem:[%s8617_s1 + $0x5d4] sm:$0xff] }
  0xd4   : >> { %1981 = vmatpush.bf16.msra.mxu1 %v6866_v18  ;;  %2009 = vmatpush.bf16.msrb.mxu0 %v1926_v33  ;;  %v6887_v18 = vld [vmem:[%s8617_s1 + $0x524] sm:$0xff] }
  0xd5   : >> { %1962 = vmatmul.bf16.vlgmr.msra.gmra.mxu0 %v1491_v41  ;;  %3274 = vrot.lane.b32.xlu0 %v3273_v21, %s7162_s8  ;;  %v6868_v33 = vld [vmem:[%s8617_s1 + $0x488] sm:$0xff]  ;;  %v3240_v41 = vunpack.c.l.b16 %v6077_v38  ;;  %v6925_v38 = vld [vmem:[%s8617_s1 + $0x654] sm:$0xff] }
  0xd7   : >> { %1968 = vmatpush.bf16.msra.mxu2 %v6858_v25  ;;  %1948 = vmatpush.bf16.msrb.mxu3 %v6836_v24  ;;  %v6869_v25 = vld [vmem:[%s8617_s1 + $0x490] sm:$0xff]  ;;  %v3290_v24 = vunpack.c.l.b16 %v6082_v27  ;;  %v3241_v44 = vpack.c.b16 %v3240_v41, %v3240_v41 }
  0xd8   : >> { %1982 = vmatpush.bf16.msra.mxu1 %v6865_v29  ;;  %2010 = vmatpush.bf16.msrb.mxu0 %v6879_v42  ;;  %v7873_v29 = vld [vmem:[%s7225_s28 + $0x2c] sm:$0x1]  ;;  %v6907_v42 = vld [vmem:[%s8617_s1 + $0x5c4] sm:$0xff] }
  0xd9   : >> { %v3277_v31 = vunpack.c.l.b16 %v7873_v29  ;;  %v3245_v48 = vshll.u32 %v3241_v44, 16  ;;  %v3243_v49 = vshrl.u32 %v3241_v44, 16  ;;  %v2042_v17 = vpop.permute.xlu2 %2041 }
  0xda   : >> { %1949 = vmatmul.bf16.vlgmr.msrb.gmra.mxu3 %v1488_v43  ;;  %v1500_v43 = vsel %vm291_vm6, %v7807_v59, %v1482_v15  ;;  %v6889_v59 = vld [vmem:[%s8617_s1 + $0x534] sm:$0xff] }
  0xdb   : >> { %1969 = vmatpush.bf16.msra.mxu2 %v6857_v34  ;;  %1993 = vmatpush.bf16.msra.mxu3 %v6875_v35  ;;  %v3291_v34 = vpack.c.b16 %v3277_v31, %v3290_v24  ;;  %v6885_v35 = vld [vmem:[%s8617_s1 + $0x514] sm:$0xff]  ;;  %v3247_v50 = vrot.slane %v3245_v48, 1  ;;  %v2048_v9 = vpop.permute.xlu0 %2047  ;;  %v6924_v48 = vld [vmem:[%s8617_s1 + $0x64c] sm:$0xff] }
  0xdc   : >> { %1983 = vmatpush.bf16.msra.mxu1 %v6864_v40  ;;  %2011 = vmatpush.bf16.msrb.mxu0 %v6878_v45  ;;  %v6906_v45 = vld [vmem:[%s8617_s1 + $0x5bc] sm:$0xff] }
  0xdd   : >> { %v3292_v40 = vrot.slane %v3291_v34, 3 }
  0xdf   : >> { %1970 = vmatpush.bf16.msra.mxu2 %v6856_v46  ;;  %1994 = vmatpush.bf16.msra.mxu3 %v6874_v47  ;;  %v6884_v46 = vld [vmem:[%s8617_s1 + $0x50c] sm:$0xff]  ;;  %v6902_v47 = vld [vmem:[%s8617_s1 + $0x59c] sm:$0xff] }
  0xe0   : >> { %1984 = vmatpush.bf16.msra.mxu1 %v6863_v36  ;;  %2012 = vmatpush.bf16.msrb.mxu0 %v6877_v57  ;;  %v7914_v36 = vpop.permute.xlu1 %2060  ;;  %v6882_v57 = vld [vmem:[%s8617_s1 + $0x4fc] sm:$0xff] }
  0xe1   : >> { %3293 = vrot.lane.b32.xlu1 %v3292_v40, %s7163_s11  ;;  %v6936_v40 = vld [vmem:[%s8617_s1 + $0x6b0] sm:$0xff] }
  0xe3   : >> { %1971 = vmatpush.bf16.msra.mxu2 %v6855_v51  ;;  %1995 = vmatpush.bf16.msra.mxu3 %v6873_v52  ;;  %v6883_v51 = vld [vmem:[%s8617_s1 + $0x504] sm:$0xff]  ;;  %v6901_v52 = vld [vmem:[%s8617_s1 + $0x594] sm:$0xff] }
  0xe4   : >> { %1985 = vmatpush.bf16.msra.mxu1 %v6862_v54  ;;  %2013 = vmatpush.bf16.msrb.mxu0 %v6876_v4  ;;  %v3248_v54 = vor.u32 %v3247_v50, %v3243_v49  ;;  %v2095_v49 = vsel %vm279_vm3, %v2048_v9, %v7914_v36  ;;  %v6916_v50 = vld [vmem:[%s8617_s1 + $0x60c] sm:$0xff] }
  0xe6   : >> { %3249 = vrot.lane.b32.xlu2 %v3248_v54, %s7161_s6 }
  0xe7   : >> { %1972 = vmatpush.bf16.msra.mxu2 %v6854_v62  ;;  %1996 = vmatpush.bf16.msra.mxu3 %v6872_v63  ;;  %v6881_v63 = vld [vmem:[%s8617_s1 + $0x4f4] sm:$0xff] }
  0xe8   : >> { %1986 = vmatpush.bf16.msra.mxu1 %v6861_v2  ;;  %2571 = vmatpush.bf16.msra.mxu0 %v6911_v5  ;;  %v7949_v62 = vpop.permute.xlu1 %2066  ;;  %v6888_v2 = vld [vmem:[%s8617_s1 + $0x52c] sm:$0xff] }
  0xe9   : >> { %5430 = vmatmul.msk.bf16.vlgmr.msrb.gmra.mxu0 %vm907_vm7, %v1482_v15  ;;  %v2098_v5 = vsel %vm283_vm4, %v7914_v36, %v7949_v62  ;;  %v6919_v15 = vld [vmem:[%s8617_s1 + $0x624] sm:$0xff] }
  0xea   : >> { %v6934_v36 = vld [vmem:[%s8617_s1 + $0x6a0] sm:$0xff] }
  0xeb   : >> { %1973 = vmatpush.bf16.msra.mxu2 %v6853_v6  ;;  %1997 = vmatpush.bf16.msra.mxu3 %v6871_v7  ;;  %v6399_v6 = vld [vmem:[%s7225_s28 + $0x30] sm:$0x7]  ;;  %v5543_v7 = vld [vmem:[%s8617_s1 + $0x68c] sm:$0xf] }
  0xec   : >> { %1987 = vmatpush.bf16.msra.mxu1 %v6860_v8  ;;  %2572 = vmatpush.bf16.msra.mxu0 %v6910_v12  ;;  %v6938_v8 = vld [vmem:[%s8617_s1 + $0x6c0] sm:$0xff]  ;;  %v3844_v12 = vunpack.c.l.b16 %v6399_v6  ;;  %v2421_v21 = vunpack.c.l.b16 %v5543_v7  ;;  %v2080_v6 = vpop.permute.xlu2 %2079  ;;  %v8062_v7 = vld [vmem:[%s7225_s28 + $0x34] sm:$0x1] }
  0xef   : >> { %1974 = vmatpush.bf16.msra.mxu2 %v6852_v13  ;;  %1998 = vmatpush.bf16.msra.mxu3 %v6870_v14  ;;  %v6880_v13 = vld [vmem:[%s8617_s1 + $0x4ec] sm:$0xff]  ;;  %v6898_v14 = vld [vmem:[%s8617_s1 + $0x57c] sm:$0xff] }
  0xf0   : >> { %2545 = vmatpush.bf16.msrb.mxu1 %v6895_v10  ;;  %2573 = vmatpush.bf16.msra.mxu0 %v6909_v22  ;;  %v3278_v10 = vpack.c.b16 %v3277_v31, %v7839_v11  ;;  %v2092_v22 = vsel %vm275_vm2, %v2042_v17, %v2048_v9  ;;  %v2089_v31 = vsel %vm270_vm1, %v5432_v16, %v2042_v17  ;;  %v3881_v9 = vunpack.c.l.b16 %v8062_v7 }
  0xf1   : >> { %1988 = vmatmul.bf16.vlgmr.msra.gmra.mxu1 %v1497_v19  ;;  %v3845_v19 = vpack.c.b16 %v3844_v12, %v3844_v12  ;;  %v6971_v12 = vld [vmem:[%s8617_s1 + $0x7c8] sm:$0xff] }
  0xf2   : >> { %1975 = vmatmul.bf16.vlgmr.msra.gmra.mxu2 %v1494_v23  ;;  %v3280_v11 = vshrl.u32 %v3278_v10, 16  ;;  %v6400_v23 = vld [vmem:[%s7225_s28 + $0x30] sm:$0x6] }
  0xf3   : >> { %2532 = vmatpush.bf16.msrb.mxu2 %v6887_v18  ;;  %1999 = vmatpush.bf16.msra.mxu3 %v6869_v25  ;;  %v3283_v18 = vshll.u32 %v3278_v10, 16  ;;  %v6937_v25 = vld [vmem:[%s8617_s1 + $0x6b8] sm:$0xff]  ;;  %v3849_v27 = vshll.u32 %v3845_v19, 16  ;;  %v3856_v24 = vunpack.c.l.b16 %v6400_v23  ;;  %v3847_v34 = vshrl.u32 %v3845_v19, 16  ;;  %v6401_v10 = vld [vmem:[%s7225_s28 + $0x30] sm:$0xe] }
  0xf4   : >> { %2546 = vmatpush.bf16.msrb.mxu1 %v6894_v20  ;;  %2574 = vmatpush.bf16.msra.mxu0 %v6908_v32  ;;  %v6926_v20 = vld [vmem:[%s8617_s1 + $0x65c] sm:$0xff] }
  0xf5   : >> { %v3285_v29 = vrot.slane %v3283_v18, 3  ;;  %v6918_v32 = vld [vmem:[%s8617_s1 + $0x61c] sm:$0xff]  ;;  %v6920_v18 = vld [vmem:[%s8617_s1 + $0x62c] sm:$0xff] }
  0xf7   : >> { %2533 = vmatpush.bf16.msrb.mxu2 %v6886_v26  ;;  %2000 = vmatpush.bf16.msra.mxu3 %v6868_v33  ;;  %v3282_v26 = vrot.slane %v3280_v11, 2  ;;  %v6955_v11 = vld [vmem:[%s8617_s1 + $0x748] sm:$0xff] }
  0xf8   : >> { %2547 = vmatpush.bf16.msrb.mxu1 %v6893_v30  ;;  %2575 = vmatpush.bf16.msra.mxu0 %v6907_v42  ;;  %v7928_v55 = vpop.f32.mrf.mxu0  ;;  %v6897_v30 = vld [vmem:[%s8617_s1 + $0x574] sm:$0xff]  ;;  %v6896_v42 = vld [vmem:[%s8617_s1 + $0x56c] sm:$0xff] }
  0xf9   : >> { %v3286_v33 = vor.u32 %v3285_v29, %v3282_v26  ;;  %v6970_v29 = vld [vmem:[%s8617_s1 + $0x7c0] sm:$0xff] }
  0xfa   : >> { %2001 = vmatmul.bf16.vlgmr.msra.gmra.mxu3 %v1500_v43 }
  0xfb   : >> { %2534 = vmatpush.bf16.msrb.mxu2 %v6885_v35  ;;  %2558 = vmatpush.bf16.msrb.mxu3 %v6903_v37  ;;  %v3851_v35 = vrot.slane %v3849_v27, 1  ;;  %v2474_v37 = vpack.c.b16 %v2421_v21, %v2421_v21 }
  0xfc   : >> { %2548 = vmatpush.bf16.msrb.mxu1 %v6892_v39  ;;  %2576 = vmatpush.bf16.msra.mxu0 %v6906_v45  ;;  %v3857_v39 = vpack.c.b16 %v3856_v24, %v3856_v24  ;;  %v6935_v45 = vld [vmem:[%s8617_s1 + $0x6a8] sm:$0xff] }
  0xfd   : >> { %v3852_v41 = vor.u32 %v3851_v35, %v3847_v34  ;;  %3287 = vrot.lane.b32.xlu2 %v3286_v33, %s7164_s21  ;;  %v6912_v24 = vld [vmem:[%s8617_s1 + $0x5ec] sm:$0xff]  ;;  %v5754_v33 = vld [vmem:[%s7225_s28 + $0x20] sm:$0x3] }
  0xfe   : >> { %v3858_v43 = vrot.slane %v3857_v39, 1  ;;  %v6954_v39 = vld [vmem:[%s8617_s1 + $0x740] sm:$0xff] }
  0xff   : >> { %2535 = vmatpush.bf16.msrb.mxu2 %v6884_v46  ;;  %2559 = vmatpush.bf16.msrb.mxu3 %v6902_v47  ;;  %v6917_v46 = vld [vmem:[%s8617_s1 + $0x614] sm:$0xff] }
 0x100   : >> { %2549 = vmatpush.bf16.msrb.mxu1 %v6891_v28  ;;  %2577 = vmatpush.bf16.msra.mxu0 %v6905_v56  ;;  %v925_v4 = vpop.f32.mrf.mxu0  ;;  %v2530_v28 = vsel %vm910_vm0, %v2474_v37, 0 }
 0x101   : >> { %3853 = vrot.lane.b32.xlu0 %v3852_v41, %s7161_s6  ;;  %3859 = vrot.lane.b32.xlu1 %v3858_v43, %s7159_s29  ;;  %v6929_v4 = vld [vmem:[%s8617_s1 + $0x674] sm:$0xff]  ;;  %s6719_s29 = sshll.u32 %s7157_s26, 1  ;;  %s202_s26 = sadd.s32 1, %s7157_s26  }
 0x102   : >> { %s4443_s7 = scalar_lea.vmem %s7211_s22, %s6719_s29  ;;  %p199_p5 = scmp.ge.s32.totalorder %s202_s26, 4  }
 0x103   : >> { %2536 = vmatpush.bf16.msrb.mxu2 %v6883_v51  ;;  %2560 = vmatpush.bf16.msrb.mxu3 %v6901_v52  ;;  %v6931_v51 = vld [vmem:[%s8617_s1 + $0x684] sm:$0xff]  ;;  %v6402_v52 = vld [vmem:[%s7225_s28 + $0x30] sm:$0xc] }
 0x104   : >> { %2550 = vmatpush.bf16.msrb.mxu1 %v6890_v53  ;;  %2578 = vmatpush.bf16.msra.mxu0 %v6904_v61  ;;  %v6923_v53 = vld [vmem:[%s8617_s1 + $0x644] sm:$0xff]  ;;  %v3875_v54 = vunpack.c.l.b16 %v6402_v52  ;;  %v6953_v52 = vld [vmem:[%s8617_s1 + $0x738] sm:$0xff] }
 0x106   : >> { %v3882_v17 = vpack.c.b16 %v3881_v9, %v3875_v54 }
 0x107   : >> { %2537 = vmatpush.bf16.msrb.mxu2 %v6882_v57  ;;  %2561 = vmatpush.bf16.msrb.mxu3 %v6900_v58  ;;  %v6915_v57 = vld [vmem:[%s8617_s1 + $0x604] sm:$0xff]  ;;  %v6930_v58 = vld [vmem:[%s8617_s1 + $0x67c] sm:$0xff] }
 0x108   : >> { %2551 = vmatpush.bf16.msrb.mxu1 %v6889_v59  ;;  %3136 = vmatpush.bf16.msrb.mxu0 %v6939_v60  ;;  %v6922_v59 = vld [vmem:[%s8617_s1 + $0x63c] sm:$0xff]  ;;  %v3884_v23 = vshrl.u32 %v3882_v17, 16 }
 0x109   : >> { %2579 = vmatmul.bf16.vlgmr.msra.gmra.mxu0 %v2098_v5  ;;  %v6921_v5 = vld [vmem:[%s8617_s1 + $0x634] sm:$0xff] }
 0x10a   : >> { %v936_v44 = vpop.f32.mrf.mxu1  ;;  %v3886_v34 = vrot.slane %v3884_v23, 2 }
 0x10b   : >> { %2538 = vmatpush.bf16.msrb.mxu2 %v6881_v63  ;;  %2562 = vmatpush.bf16.msrb.mxu3 %v6899_v1  ;;  %v937_v47 = vadd.f32 %v936_v44, %v7928_v55  ;;  %v3876_v55 = vpack.c.b16 %v3875_v54, %v3875_v54  ;;  %v6933_v63 = vld [vmem:[%s8617_s1 + $0x698] sm:$0xff]  ;;  %v6962_v44 = vld [vmem:[%s8617_s1 + $0x780] sm:$0xff] }
 0x10c   : >> { %2552 = vmatpush.bf16.msrb.mxu1 %v6888_v2  ;;  %3137 = vmatpush.bf16.msrb.mxu0 %v6938_v8  ;;  %v6932_v8 = vld [vmem:[%s8617_s1 + $0x690] sm:$0xff] }
 0x10d   : >> { %v3877_v61 = vrot.slane %v3876_v55, 2  ;;  %v6968_v55 = vld [vmem:[%s8617_s1 + $0x7b0] sm:$0xff] }
 0x10f   : >> { %2539 = vmatpush.bf16.msrb.mxu2 %v6880_v13  ;;  %2563 = vmatpush.bf16.msrb.mxu3 %v6898_v14  ;;  %v3862_v13 = vunpack.c.l.b16 %v6401_v10  ;;  %v6913_v14 = vld [vmem:[%s8617_s1 + $0x5f4] sm:$0xff] }
 0x110   : >> { %2597 = vmatpush.bf16.msra.mxu1 %v6927_v3  ;;  %3138 = vmatpush.bf16.msrb.mxu0 %v6937_v25  ;;  %v6914_v3 = vld [vmem:[%s8617_s1 + $0x5fc] sm:$0xff]  ;;  %v3887_v25 = vshll.u32 %v3882_v17, 16 }
 0x111   : >> { %2553 = vmatmul.bf16.vlgmr.msrb.gmra.mxu1 %v2092_v22  ;;  %3878 = vrot.lane.b32.xlu0 %v3877_v61, %s7162_s8  ;;  %v3863_v19 = vpack.c.b16 %v3862_v13, %v3862_v13  ;;  %v6963_v22 = vld [vmem:[%s8617_s1 + $0x788] sm:$0xff]  ;;  %v6944_v61 = vld [vmem:[%s8617_s1 + $0x6f0] sm:$0xff]  ;;  %v6950_v13 = vld [vmem:[%s8617_s1 + $0x720] sm:$0xff] }
 0x112   : >> { %2540 = vmatmul.bf16.vlgmr.msrb.gmra.mxu2 %v2089_v31  ;;  %v938_v56 = vpop.f32.mrf.mxu1  ;;  %v3889_v35 = vrot.slane %v3887_v25, 3 }
 0x113   : >> { %2584 = vmatpush.bf16.msra.mxu2 %v6919_v15  ;;  %2564 = vmatpush.bf16.msrb.mxu3 %v6897_v30  ;;  %v6928_v15 = vld [vmem:[%s8617_s1 + $0x66c] sm:$0xff]  ;;  %v3865_v27 = vshrl.u32 %v3863_v19, 16  ;;  %v3868_v30 = vshll.u32 %v3863_v19, 16  ;;  %v6945_v56 = vld [vmem:[%s8617_s1 + $0x6f8] sm:$0xff] }
 0x114   : >> { %2598 = vmatpush.bf16.msra.mxu1 %v6926_v20  ;;  %3139 = vmatpush.bf16.msrb.mxu0 %v6936_v40 }
 0x115   : >> { %v949_v60 = vpop.f32.mrf.mxu2  ;;  %v3870_v43 = vrot.slane %v3868_v30, 2 }
 0x116   : >> { %v950_v1 = vadd.f32 %v949_v60, %v937_v47  ;;  %v6969_v47 = vld [vmem:[%s8617_s1 + $0x7b8] sm:$0xff]  ;;  %v6951_v60 = vld [vmem:[%s8617_s1 + $0x728] sm:$0xff] }
 0x117   : >> { %2585 = vmatpush.bf16.msra.mxu2 %v6918_v32  ;;  %2565 = vmatpush.bf16.msrb.mxu3 %v6896_v42  ;;  %v975_v2 = vpop.f32.mrf.mxu0  ;;  %v2086_v32 = vpop.permute.xlu0 %2085  ;;  %v3867_v42 = vrot.slane %v3865_v27, 1  ;;  %v6999_v27 = vld [vmem:[%s8617_s1 + $0x8ac] sm:$0xff] }
 0x118   : >> { %2599 = vmatpush.bf16.msra.mxu1 %v6925_v38  ;;  %3140 = vmatpush.bf16.msrb.mxu0 %v6935_v45  ;;  %v6947_v38 = vld [vmem:[%s8617_s1 + $0x708] sm:$0xff]  ;;  %v2104_v40 = vsel %vm291_vm6, %v2080_v6, %v2086_v32  ;;  %v8103_v41 = vpop.permute.xlu2 %2645 }
 0x11a   : >> { %2566 = vmatmul.bf16.vlgmr.msrb.gmra.mxu3 %v2095_v49  ;;  %v988_v16 = vpop.f32.mrf.mxu1  ;;  %v3890_v49 = vor.u32 %v3889_v35, %v3886_v34  ;;  %v6956_v34 = vld [vmem:[%s8617_s1 + $0x750] sm:$0xff] }
 0x11b   : >> { %2586 = vmatpush.bf16.msra.mxu2 %v6917_v46  ;;  %2613 = vmatpush.bf16.msra.mxu3 %v2530_v28  ;;  %v2693_v28 = vsel %vm270_vm1, %v5754_v33, %v8103_v41 }
 0x11c   : >> { %2600 = vmatpush.bf16.msra.mxu1 %v6924_v48  ;;  %3141 = vmatpush.bf16.msrb.mxu0 %v6934_v36  ;;  %v2101_v48 = vsel %vm287_vm5, %v7949_v62, %v2080_v6  ;;  %v6961_v62 = vld [vmem:[%s8617_s1 + $0x778] sm:$0xff] }
 0x11d   : >> { %v951_v20 = vpop.f32.mrf.mxu2  ;;  %v962_v21 = vpop.f32.mrf.mxu3  ;;  %3891 = vrot.lane.b32.xlu1 %v3890_v49, %s7164_s21 }
 0x11e   : >> { %v963_v26 = vadd.f32 %v962_v21, %v950_v1  ;;  %v6942_v20 = vld [vmem:[%s8617_s1 + $0x6e0] sm:$0xff]  ;;  %v6949_v21 = vld [vmem:[%s8617_s1 + $0x718] sm:$0xff] }
 0x11f   : >> { %2587 = vmatpush.bf16.msra.mxu2 %v6916_v50  ;;  %2614 = vmatpush.bf16.msra.mxu3 %v6931_v51  ;;  %v977_v31 = vpop.f32.mrf.mxu0  ;;  %v3871_v50 = vor.u32 %v3870_v43, %v3867_v42  ;;  %v6946_v51 = vld [vmem:[%s8617_s1 + $0x700] sm:$0xff] }
 0x120   : >> { %2601 = vmatpush.bf16.msra.mxu1 %v6923_v53  ;;  %3142 = vmatpush.bf16.msrb.mxu0 %v6933_v63  ;;  %v976_v37 = vadd.f32 %v975_v2, %v963_v26  ;;  %v6959_v2 = vld [vmem:[%s8617_s1 + $0x768] sm:$0xff]  ;;  %v6964_v26 = vld [vmem:[%s8617_s1 + $0x790] sm:$0xff]  ;;  %v6941_v31 = vld [vmem:[%s8617_s1 + $0x6d8] sm:$0xff]  ;;  %v8194_v33 = vpop.permute.xlu2 %2683 }
 0x121   : >> { %3872 = vrot.lane.b32.xlu2 %v3871_v50, %s7160_s30  ;;  %v6998_v43 = vld [vmem:[%s8617_s1 + $0x8a4] sm:$0xff] }
 0x122   : >> { %v989_v46 = vadd.f32 %v988_v16, %v976_v37  ;;  %v990_v45 = vpop.f32.mrf.mxu1  ;;  %v6958_v16 = vld [vmem:[%s8617_s1 + $0x760] sm:$0xff] }
 0x123   : >> { %2588 = vmatpush.bf16.msra.mxu2 %v6915_v57  ;;  %2615 = vmatpush.bf16.msra.mxu3 %v6930_v58  ;;  %v6952_v57 = vld [vmem:[%s8617_s1 + $0x730] sm:$0xff]  ;;  %v6983_v45 = vld [vmem:[%s8617_s1 + $0x828] sm:$0xff] }
 0x124   : >> { %2602 = vmatpush.bf16.msra.mxu1 %v6922_v59  ;;  %3143 = vmatpush.bf16.msrb.mxu0 %v6932_v8  ;;  %v6960_v58 = vld [vmem:[%s8617_s1 + $0x770] sm:$0xff]  ;;  %v6967_v59 = vld [vmem:[%s8617_s1 + $0x7a8] sm:$0xff] }
 0x125   : >> { %v964_v53 = vpop.f32.mrf.mxu3  ;;  %v1001_v54 = vpop.f32.mrf.mxu2  ;;  %v5865_v8 = vld [vmem:[%s8617_s1 + $0x830] sm:$0xf] }
 0x126   : >> { %v1002_v36 = vadd.f32 %v1001_v54, %v989_v46  ;;  %v6997_v53 = vld [vmem:[%s8617_s1 + $0x89c] sm:$0xff] }
 0x127   : >> { %2589 = vmatpush.bf16.msra.mxu2 %v6914_v3  ;;  %2616 = vmatpush.bf16.msra.mxu3 %v6929_v4  ;;  %v6966_v4 = vld [vmem:[%s8617_s1 + $0x7a0] sm:$0xff] }
 0x128   : >> { %2603 = vmatpush.bf16.msra.mxu1 %v6921_v5  ;;  %3188 = vmatpush.bf16.msra.mxu0 %v6971_v12  ;;  %v6404_v5 = vld [vmem:[%s7225_s28 + $0x30] sm:$0x8]  ;;  %v6943_v12 = vld [vmem:[%s8617_s1 + $0x6e8] sm:$0xff] }
 0x129   : >> { %3144 = vmatmul.bf16.vlgmr.msrb.gmra.mxu0 %v2693_v28  ;;  %v3894_v10 = vunpack.c.l.b16 %v6404_v5  ;;  %v6994_v5 = vld [vmem:[%s8617_s1 + $0x884] sm:$0xff] }
 0x12b   : >> { %2590 = vmatpush.bf16.msra.mxu2 %v6913_v14  ;;  %2617 = vmatpush.bf16.msra.mxu3 %v6928_v15  ;;  %v2665_v15 = vpop.permute.xlu1 %2664  ;;  %v3895_v17 = vpack.c.b16 %v3881_v9, %v3894_v10  ;;  %v6957_v9 = vld [vmem:[%s8617_s1 + $0x758] sm:$0xff]  ;;  %v6986_v10 = vld [vmem:[%s8617_s1 + $0x844] sm:$0xff] }
 0x12c   : >> { %2604 = vmatpush.bf16.msra.mxu1 %v6920_v18  ;;  %3189 = vmatpush.bf16.msra.mxu0 %v6970_v29  ;;  %v6965_v18 = vld [vmem:[%s8617_s1 + $0x798] sm:$0xff] }
 0x12d   : >> { %v1003_v63 = vpop.f32.mrf.mxu2  ;;  %v1334_v1 = vpop.f32.mrf.mxu3  ;;  %v3896_v19 = vrot.slane %v3895_v17, 3  ;;  %v6985_v17 = vld [vmem:[%s8617_s1 + $0x83c] sm:$0xff] }
 0x12e   : >> { %5752 = vmatmul.msk.bf16.vlgmr.msra.gmra.mxu3 %vm907_vm7, %v2086_v32  ;;  %v1335_v3 = vadd.f32 %v1334_v1, %v1002_v36  ;;  %v6982_v36 = vld [vmem:[%s8617_s1 + $0x820] sm:$0xff]  ;;  %v6976_v63 = vld [vmem:[%s8617_s1 + $0x7f0] sm:$0xff] }
 0x12f   : >> { %3162 = vmatpush.bf16.msrb.mxu3 %v6955_v11  ;;  %2591 = vmatpush.bf16.msra.mxu2 %v6912_v24  ;;  %v1360_v6 = vpop.f32.mrf.mxu0  ;;  %v3025_v11 = vunpack.c.l.b16 %v5865_v8  ;;  %v6948_v24 = vld [vmem:[%s8617_s1 + $0x710] sm:$0xff]  ;;  %v7006_v8 = vld [vmem:[%s8617_s1 + $0x8e4] sm:$0xff] }
 0x130   : >> { %3175 = vmatpush.bf16.msrb.mxu1 %v6963_v22  ;;  %3190 = vmatpush.bf16.msra.mxu0 %v6969_v47  ;;  %v6980_v1 = vld [vmem:[%s8617_s1 + $0x810] sm:$0xff] }
 0x131   : >> { %2605 = vmatmul.bf16.vlgmr.msra.gmra.mxu1 %v2104_v40  ;;  %3897 = vrot.lane.b32.xlu2 %v3896_v19, %s7163_s11  ;;  %v3078_v25 = vpack.c.b16 %v3025_v11, %v3025_v11  ;;  %v2652_v40 = vpop.permute.xlu0 %2651 }
 0x132   : >> { %2592 = vmatmul.bf16.vlgmr.msra.gmra.mxu2 %v2101_v48  ;;  %v1373_v14 = vpop.f32.mrf.mxu1  ;;  %v2699_v46 = vsel %vm279_vm3, %v2652_v40, %v2665_v15  ;;  %v6979_v48 = vld [vmem:[%s8617_s1 + $0x808] sm:$0xff]  ;;  %v2696_v54 = vsel %vm275_vm2, %v8103_v41, %v2652_v40  ;;  %v6996_v41 = vld [vmem:[%s8617_s1 + $0x894] sm:$0xff] }
 0x133   : >> { %3149 = vmatpush.bf16.msrb.mxu2 %v6947_v38  ;;  %3163 = vmatpush.bf16.msrb.mxu3 %v6954_v39  ;;  %v3134_v37 = vsel %vm910_vm0, %v3078_v25, 0  ;;  %v2671_v38 = vpop.permute.xlu1 %2670  ;;  %v6991_v39 = vld [vmem:[%s8617_s1 + $0x86c] sm:$0xff]  ;;  %v6984_v25 = vld [vmem:[%s8617_s1 + $0x834] sm:$0xff]  ;;  %v7022_v40 = vld [vmem:[%s8617_s1 + $0x964] sm:$0xff] }
 0x134   : >> { %3176 = vmatpush.bf16.msrb.mxu1 %v6962_v44  ;;  %3191 = vmatpush.bf16.msra.mxu0 %v6968_v55  ;;  %v2705_v42 = vsel %vm287_vm5, %v2671_v38, %v8194_v33  ;;  %v6940_v44 = vld [vmem:[%s8617_s1 + $0x6d0] sm:$0xff]  ;;  %v2702_v49 = vsel %vm283_vm4, %v2665_v15, %v2671_v38  ;;  %v6989_v55 = vld [vmem:[%s8617_s1 + $0x85c] sm:$0xff] }
 0x135   : >> { %v1336_v22 = vpop.f32.mrf.mxu3  ;;  %v1347_v7 = vpop.f32.mrf.mxu2 }
 0x136   : >> { %v1348_v23 = vadd.f32 %v1347_v7, %v1335_v3  ;;  %v6987_v3 = vld [vmem:[%s8617_s1 + $0x84c] sm:$0xff]  ;;  %v6973_v7 = vld [vmem:[%s8617_s1 + $0x7d8] sm:$0xff] }
 0x137   : >> { %3150 = vmatpush.bf16.msrb.mxu2 %v6946_v51  ;;  %3164 = vmatpush.bf16.msrb.mxu3 %v6953_v52  ;;  %v1362_v29 = vpop.f32.mrf.mxu0  ;;  %v6990_v51 = vld [vmem:[%s8617_s1 + $0x864] sm:$0xff] }
 0x138   : >> { %3177 = vmatpush.bf16.msrb.mxu1 %v6961_v62  ;;  %3192 = vmatpush.bf16.msra.mxu0 %v6967_v59  ;;  %v1361_v30 = vadd.f32 %v1360_v6, %v1348_v23  ;;  %v6978_v62 = vld [vmem:[%s8617_s1 + $0x800] sm:$0xff]  ;;  %v6988_v59 = vld [vmem:[%s8617_s1 + $0x854] sm:$0xff]  ;;  %v6975_v6 = vld [vmem:[%s8617_s1 + $0x7e8] sm:$0xff] }
 0x139   : >> { %v7004_v23 = vld [vmem:[%s8617_s1 + $0x8d4] sm:$0xff] }
 0x13a   : >> { %v1375_v32 = vpop.f32.mrf.mxu1  ;;  %v1374_v35 = vadd.f32 %v1373_v14, %v1361_v30  ;;  %v6974_v14 = vld [vmem:[%s8617_s1 + $0x7e0] sm:$0xff] }
 0x13b   : >> { %3151 = vmatpush.bf16.msrb.mxu2 %v6945_v56  ;;  %3165 = vmatpush.bf16.msrb.mxu3 %v6952_v57  ;;  %v6977_v57 = vld [vmem:[%s8617_s1 + $0x7f8] sm:$0xff]  ;;  %v7030_v30 = vld [vmem:[%s8617_s1 + $0x9a4] sm:$0xff] }
 0x13c   : >> { %3178 = vmatpush.bf16.msrb.mxu1 %v6960_v58  ;;  %3193 = vmatpush.bf16.msra.mxu0 %v6966_v4  ;;  %v6981_v58 = vld [vmem:[%s8617_s1 + $0x818] sm:$0xff] }
 0x13d   : >> { %v1349_v47 = vpop.f32.mrf.mxu2  ;;  %v1386_v28 = vpop.f32.mrf.mxu3 }
 0x13e   : >> { %v1387_v50 = vadd.f32 %v1386_v28, %v1374_v35  ;;  %v7003_v35 = vld [vmem:[%s8617_s1 + $0x8cc] sm:$0xff]  ;;  %v6187_v47 = vld [vmem:[%s8617_s1 + $0x9d4] sm:$0xf]  ;;  %v7002_v28 = vld [vmem:[%s8617_s1 + $0x8c4] sm:$0xff] }
 0x13f   : >> { %3152 = vmatpush.bf16.msrb.mxu2 %v6944_v61  ;;  %3166 = vmatpush.bf16.msrb.mxu3 %v6951_v60  ;;  %v1412_v52 = vpop.f32.mrf.mxu0  ;;  %v6995_v60 = vld [vmem:[%s8617_s1 + $0x88c] sm:$0xff] }
 0x140   : >> { %3179 = vmatpush.bf16.msrb.mxu1 %v6959_v2  ;;  %3194 = vmatpush.bf16.msra.mxu0 %v6965_v18  ;;  %v7007_v2 = vld [vmem:[%s8617_s1 + $0x8ec] sm:$0xff] }
 0x143   : >> { %3153 = vmatpush.bf16.msrb.mxu2 %v6943_v12  ;;  %3167 = vmatpush.bf16.msrb.mxu3 %v6950_v13  ;;  %v2690_v12 = vpop.permute.xlu0 %2689  ;;  %v6993_v13 = vld [vmem:[%s8617_s1 + $0x87c] sm:$0xff] }
 0x144   : >> { %3180 = vmatpush.bf16.msrb.mxu1 %v6958_v16  ;;  %3195 = vmatpush.bf16.msra.mxu0 %v6964_v26  ;;  %v7005_v16 = vld [vmem:[%s8617_s1 + $0x8dc] sm:$0xff]  ;;  %v7023_v26 = vld [vmem:[%s8617_s1 + $0x96c] sm:$0xff] }
 0x145   : >> { %v1388_v56 = vpop.f32.mrf.mxu3 }
 0x147   : >> { %3154 = vmatpush.bf16.msrb.mxu2 %v6942_v20  ;;  %3168 = vmatpush.bf16.msrb.mxu3 %v6949_v21  ;;  %v1414_v61 = vpop.f32.mrf.mxu0  ;;  %v6992_v20 = vld [vmem:[%s8617_s1 + $0x874] sm:$0xff]  ;;  %v7031_v21 = vld [vmem:[%s8617_s1 + $0x9ac] sm:$0xff] }
 0x148   : >> { %3181 = vmatpush.bf16.msrb.mxu1 %v6957_v9  ;;  %3753 = vmatpush.bf16.msrb.mxu0 %v6999_v27  ;;  %v3250_v9 = vpop.permute.xlu2 %3249  ;;  %v6076_v27 = vld [vmem:[%s7225_s28 + $0x28] sm:$0x3] }
 0x149   : >> { %3196 = vmatmul.bf16.vlgmr.msra.gmra.mxu0 %v2705_v42  ;;  %v3297_v38 = vsel %vm270_vm1, %v6076_v27, %v3250_v9  ;;  %v7026_v61 = vld [vmem:[%s8617_s1 + $0x984] sm:$0xff]  ;;  %v7043_v27 = vld [vmem:[%s8617_s1 + $0xa10] sm:$0xff] }
 0x14b   : >> { %3155 = vmatpush.bf16.msrb.mxu2 %v6941_v31  ;;  %3169 = vmatpush.bf16.msrb.mxu3 %v6948_v24  ;;  %v3256_v29 = vpop.permute.xlu0 %3255  ;;  %v6972_v24 = vld [vmem:[%s8617_s1 + $0x7d0] sm:$0xff] }
 0x14c   : >> { %3182 = vmatpush.bf16.msrb.mxu1 %v6956_v34  ;;  %3754 = vmatpush.bf16.msrb.mxu0 %v6998_v43  ;;  %v3300_v31 = vsel %vm275_vm2, %v3250_v9, %v3256_v29  ;;  %v7029_v43 = vld [vmem:[%s8617_s1 + $0x99c] sm:$0xff]  ;;  %v7066_v9 = vld [vmem:[%s8617_s1 + $0xac8] sm:$0xff] }
 0x14e   : >> { %3170 = vmatmul.bf16.vlgmr.msrb.gmra.mxu3 %v2699_v46  ;;  %v1937_v4 = vpop.f32.mrf.mxu1 }
 0x14f   : >> { %3217 = vmatpush.bf16.msra.mxu3 %v3134_v37  ;;  %3156 = vmatpush.bf16.msrb.mxu2 %v6940_v44  ;;  %v7015_v37 = vld [vmem:[%s8617_s1 + $0x92c] sm:$0xff]  ;;  %v2708_v44 = vsel %vm291_vm6, %v8194_v33, %v2690_v12  ;;  %v7021_v33 = vld [vmem:[%s8617_s1 + $0x95c] sm:$0xff] }
 0x150   : >> { %3740 = vmatpush.bf16.msra.mxu1 %v6991_v39  ;;  %3755 = vmatpush.bf16.msrb.mxu0 %v6997_v53  ;;  %v7020_v53 = vld [vmem:[%s8617_s1 + $0x954] sm:$0xff] }
 0x151   : >> { %3183 = vmatmul.bf16.vlgmr.msrb.gmra.mxu1 %v2702_v49  ;;  %v7028_v49 = vld [vmem:[%s8617_s1 + $0x994] sm:$0xff] }
 0x152   : >> { %3157 = vmatmul.bf16.vlgmr.msrb.gmra.mxu2 %v2696_v54  ;;  %v1963_v19 = vpop.f32.mrf.mxu0 }
 0x153   : >> { %3201 = vmatpush.bf16.msra.mxu2 %v6979_v48  ;;  %3218 = vmatpush.bf16.msra.mxu3 %v6983_v45  ;;  %v7014_v48 = vld [vmem:[%s8617_s1 + $0x924] sm:$0xff]  ;;  %v3629_v45 = vunpack.c.l.b16 %v6187_v47 }
 0x154   : >> { %3741 = vmatpush.bf16.msra.mxu1 %v6990_v51  ;;  %3756 = vmatpush.bf16.msrb.mxu0 %v6996_v41  ;;  %v7001_v51 = vld [vmem:[%s8617_s1 + $0x8bc] sm:$0xff]  ;;  %v7012_v41 = vld [vmem:[%s8617_s1 + $0x914] sm:$0xff] }
 0x155   : >> { %v1399_v15 = vpop.f32.mrf.mxu2  ;;  %v7049_v47 = vld [vmem:[%s8617_s1 + $0xa40] sm:$0xff] }
 0x156   : >> { %v1939_v11 = vpop.f32.mrf.mxu1  ;;  %v1400_v18 = vadd.f32 %v1399_v15, %v1387_v50  ;;  %v7067_v15 = vld [vmem:[%s8617_s1 + $0xad0] sm:$0xff] }
 0x157   : >> { %3202 = vmatpush.bf16.msra.mxu2 %v6978_v62  ;;  %3219 = vmatpush.bf16.msra.mxu3 %v6982_v36  ;;  %v3682_v62 = vpack.c.b16 %v3629_v45, %v3629_v45  ;;  %v7027_v36 = vld [vmem:[%s8617_s1 + $0x98c] sm:$0xff]  ;;  %v7033_v11 = vld [vmem:[%s8617_s1 + $0x9bc] sm:$0xff] }
 0x158   : >> { %3742 = vmatpush.bf16.msra.mxu1 %v6989_v55  ;;  %3757 = vmatpush.bf16.msrb.mxu0 %v6995_v60  ;;  %v8294_v22 = vadd.f32 %v1412_v52, %v1400_v18  ;;  %v7013_v52 = vld [vmem:[%s8617_s1 + $0x91c] sm:$0xff]  ;;  %v7000_v55 = vld [vmem:[%s8617_s1 + $0x8b4] sm:$0xff]  ;;  %v7011_v60 = vld [vmem:[%s8617_s1 + $0x90c] sm:$0xff] }
 0x159   : >> { %v7016_v18 = vld [vmem:[%s8617_s1 + $0x934] sm:$0xff] }
 0x15a   : >> { %v1965_v42 = vpop.f32.mrf.mxu0  ;;  %v7040_v45 = vld [vmem:[%s8617_s1 + $0x9f8] sm:$0xff] }
 0x15b   : >> { %3203 = vmatpush.bf16.msra.mxu2 %v6977_v57  ;;  %3220 = vmatpush.bf16.msra.mxu3 %v6981_v58  ;;  %v8366_v57 = vpop.permute.xlu1 %3268  ;;  %v7019_v58 = vld [vmem:[%s8617_s1 + $0x94c] sm:$0xff] }
 0x15c   : >> { %3743 = vmatpush.bf16.msra.mxu1 %v6988_v59  ;;  %3758 = vmatpush.bf16.msrb.mxu0 %v6994_v5  ;;  %v3738_v59 = vsel %vm910_vm0, %v3682_v62, 0  ;;  %v7010_v5 = vld [vmem:[%s8617_s1 + $0x904] sm:$0xff]  ;;  %v6509_v62 = vld [vmem:[%s8617_s1 + $0xb78] sm:$0xf] }
 0x15d   : >> { %v1401_v32 = vpop.f32.mrf.mxu2  ;;  %v1950_v34 = vpop.f32.mrf.mxu3  ;;  %v7050_v42 = vld [vmem:[%s8617_s1 + $0xa48] sm:$0xff] }
 0x15e   : >> { %v1951_v39 = vadd.f32 %v1950_v34, %v1937_v4  ;;  %v7025_v4 = vld [vmem:[%s8617_s1 + $0x97c] sm:$0xff]  ;;  %v7051_v32 = vld [vmem:[%s8617_s1 + $0xa50] sm:$0xff]  ;;  %v7058_v34 = vld [vmem:[%s8617_s1 + $0xa88] sm:$0xff] }
 0x15f   : >> { %3204 = vmatpush.bf16.msra.mxu2 %v6976_v63  ;;  %3221 = vmatpush.bf16.msra.mxu3 %v6980_v1  ;;  %v3303_v63 = vsel %vm279_vm3, %v3256_v29, %v8366_v57  ;;  %v7035_v1 = vld [vmem:[%s8617_s1 + $0x9cc] sm:$0xff]  ;;  %v7032_v29 = vld [vmem:[%s8617_s1 + $0x9b4] sm:$0xff] }
 0x160   : >> { %3744 = vmatpush.bf16.msra.mxu1 %v6987_v3  ;;  %3759 = vmatpush.bf16.msrb.mxu0 %v6993_v13  ;;  %v1964_v46 = vadd.f32 %v1963_v19, %v1951_v39  ;;  %v7059_v19 = vld [vmem:[%s8617_s1 + $0xa90] sm:$0xff]  ;;  %v7042_v39 = vld [vmem:[%s8617_s1 + $0xa08] sm:$0xff] }
 0x162   : >> { %6074 = vmatmul.msk.bf16.vlgmr.msra.gmra.mxu3 %vm907_vm7, %v2690_v12 }
 0x163   : >> { %3766 = vmatpush.bf16.msrb.mxu3 %v7007_v2  ;;  %3205 = vmatpush.bf16.msra.mxu2 %v6975_v6  ;;  %v7018_v2 = vld [vmem:[%s8617_s1 + $0x944] sm:$0xff] }
 0x164   : >> { %3745 = vmatpush.bf16.msra.mxu1 %v6986_v10  ;;  %3760 = vmatpush.bf16.msrb.mxu0 %v6992_v20  ;;  %v7017_v10 = vld [vmem:[%s8617_s1 + $0x93c] sm:$0xff]  ;;  %v3294_v20 = vpop.permute.xlu1 %3293 }
 0x165   : >> { %v1952_v50 = vpop.f32.mrf.mxu3 }
 0x166   : >> { %v8355_v54 = vpop.f32.mrf.mxu0  ;;  %v7055_v50 = vld [vmem:[%s8617_s1 + $0xa70] sm:$0xff] }
 0x167   : >> { %3767 = vmatpush.bf16.msrb.mxu3 %v7006_v8  ;;  %3206 = vmatpush.bf16.msra.mxu2 %v6974_v14  ;;  %v7034_v8 = vld [vmem:[%s8617_s1 + $0x9c4] sm:$0xff]  ;;  %v7024_v14 = vld [vmem:[%s8617_s1 + $0x974] sm:$0xff] }
 0x168   : >> { %3746 = vmatpush.bf16.msra.mxu1 %v6985_v17  ;;  %3805 = vmatpush.bf16.msra.mxu0 %v7031_v21  ;;  %v7009_v17 = vld [vmem:[%s8617_s1 + $0x8fc] sm:$0xff]  ;;  %v3288_v21 = vpop.permute.xlu2 %3287 }
 0x169   : >> { %3761 = vmatmul.bf16.vlgmr.msrb.gmra.mxu0 %v3300_v31 }
 0x16b   : >> { %3768 = vmatpush.bf16.msrb.mxu3 %v7005_v16  ;;  %3207 = vmatpush.bf16.msra.mxu2 %v6973_v7  ;;  %v3312_v7 = vsel %vm291_vm6, %v3288_v21, %v3294_v20 }
 0x16c   : >> { %3747 = vmatpush.bf16.msra.mxu1 %v6984_v25  ;;  %3806 = vmatpush.bf16.msra.mxu0 %v7030_v30  ;;  %v3275_v25 = vpop.permute.xlu0 %3274 }
 0x16d   : >> { %v3309_v30 = vsel %vm287_vm5, %v3275_v25, %v3288_v21  ;;  %v7083_v21 = vld [vmem:[%s8617_s1 + $0xb50] sm:$0xff] }
 0x16e   : >> { %v1989_v56 = vpop.f32.mrf.mxu1  ;;  %v2017_v3 = vpop.f32.mrf.mxu0 }
 0x16f   : >> { %3769 = vmatpush.bf16.msrb.mxu3 %v7004_v23  ;;  %3208 = vmatpush.bf16.msra.mxu2 %v6972_v24  ;;  %v7008_v23 = vld [vmem:[%s8617_s1 + $0x8f4] sm:$0xff] }
 0x170   : >> { %3792 = vmatpush.bf16.msrb.mxu1 %v7023_v26  ;;  %3807 = vmatpush.bf16.msra.mxu0 %v7029_v43  ;;  %v7057_v43 = vld [vmem:[%s8617_s1 + $0xa80] sm:$0xff] }
 0x171   : >> { %3748 = vmatmul.bf16.vlgmr.msra.gmra.mxu1 %v3297_v38  ;;  %v3306_v38 = vsel %vm283_vm4, %v8366_v57, %v3275_v25  ;;  %v4233_v57 = vunpack.c.l.b16 %v6509_v62 }
 0x172   : >> { %3209 = vmatmul.bf16.vlgmr.msra.gmra.mxu2 %v2708_v44  ;;  %v7064_v44 = vld [vmem:[%s8617_s1 + $0xab8] sm:$0xff] }
 0x173   : >> { %3770 = vmatpush.bf16.msrb.mxu3 %v7003_v35  ;;  %3779 = vmatpush.bf16.msrb.mxu2 %v7015_v37  ;;  %v7065_v35 = vld [vmem:[%s8617_s1 + $0xac0] sm:$0xff]  ;;  %v4286_v3 = vpack.c.b16 %v4233_v57, %v4233_v57 }
 0x174   : >> { %3793 = vmatpush.bf16.msrb.mxu1 %v7022_v40  ;;  %3808 = vmatpush.bf16.msra.mxu0 %v7028_v49  ;;  %v7048_v49 = vld [vmem:[%s8617_s1 + $0xa38] sm:$0xff] }
 0x175   : >> { %v1976_v6 = vpop.f32.mrf.mxu2 }
 0x176   : >> { %v1991_v12 = vpop.f32.mrf.mxu1  ;;  %v1977_v13 = vadd.f32 %v1976_v6, %v1964_v46  ;;  %v7041_v46 = vld [vmem:[%s8617_s1 + $0xa00] sm:$0xff] }
 0x177   : >> { %3771 = vmatpush.bf16.msrb.mxu3 %v7002_v28  ;;  %3780 = vmatpush.bf16.msrb.mxu2 %v7014_v48  ;;  %v7056_v28 = vld [vmem:[%s8617_s1 + $0xa78] sm:$0xff]  ;;  %v7045_v6 = vld [vmem:[%s8617_s1 + $0xa20] sm:$0xff] }
 0x178   : >> { %3794 = vmatpush.bf16.msrb.mxu1 %v7021_v33  ;;  %3809 = vmatpush.bf16.msra.mxu0 %v7027_v36  ;;  %v1990_v16 = vadd.f32 %v1989_v56, %v1977_v13  ;;  %v7063_v33 = vld [vmem:[%s8617_s1 + $0xab0] sm:$0xff]  ;;  %v7061_v56 = vld [vmem:[%s8617_s1 + $0xaa0] sm:$0xff]  ;;  %v4342_v13 = vsel %vm910_vm0, %v4286_v3, 0 }
 0x179   : >> { %v7047_v36 = vld [vmem:[%s8617_s1 + $0xa30] sm:$0xff] }
 0x17b   : >> { %3772 = vmatpush.bf16.msrb.mxu3 %v7001_v51  ;;  %3781 = vmatpush.bf16.msrb.mxu2 %v7013_v52  ;;  %v7062_v52 = vld [vmem:[%s8617_s1 + $0xaa8] sm:$0xff]  ;;  %v3873_v12 = vpop.permute.xlu2 %3872 }
 0x17c   : >> { %3795 = vmatpush.bf16.msrb.mxu1 %v7020_v53  ;;  %3810 = vmatpush.bf16.msra.mxu0 %v7026_v61  ;;  %v7039_v53 = vld [vmem:[%s8617_s1 + $0x9f0] sm:$0xff]  ;;  %v7053_v61 = vld [vmem:[%s8617_s1 + $0xa60] sm:$0xff] }
 0x17d   : >> { %v2002_v26 = vpop.f32.mrf.mxu3  ;;  %v1978_v31 = vpop.f32.mrf.mxu2 }
 0x17e   : >> { %v2003_v24 = vadd.f32 %v2002_v26, %v1990_v16  ;;  %v7044_v16 = vld [vmem:[%s8617_s1 + $0xa18] sm:$0xff]  ;;  %v7074_v26 = vld [vmem:[%s8617_s1 + $0xb08] sm:$0xff]  ;;  %v7073_v31 = vld [vmem:[%s8617_s1 + $0xb00] sm:$0xff] }
 0x17f   : >> { %3773 = vmatpush.bf16.msrb.mxu3 %v7000_v55  ;;  %3782 = vmatpush.bf16.msrb.mxu2 %v7012_v41  ;;  %v7054_v55 = vld [vmem:[%s8617_s1 + $0xa68] sm:$0xff] }
 0x180   : >> { %3796 = vmatpush.bf16.msrb.mxu1 %v7019_v58  ;;  %3811 = vmatpush.bf16.msra.mxu0 %v7025_v4  ;;  %v2016_v37 = vadd.f32 %v8355_v54, %v2003_v24  ;;  %v3854_v54 = vpop.permute.xlu0 %3853  ;;  %v7038_v58 = vld [vmem:[%s8617_s1 + $0x9e8] sm:$0xff]  ;;  %v7037_v4 = vld [vmem:[%s8617_s1 + $0x9e0] sm:$0xff] }
 0x182   : >> { %3774 = vmatmul.bf16.vlgmr.msrb.gmra.mxu3 %v3303_v63  ;;  %v8446_v40 = vadd.f32 %v2016_v37, %v8294_v22 }
 0x183   : >> { %3821 = vmatpush.bf16.msra.mxu3 %v3738_v59  ;;  %3783 = vmatpush.bf16.msrb.mxu2 %v7011_v60  ;;  %v7046_v59 = vld [vmem:[%s8617_s1 + $0xa28] sm:$0xff] }
 0x184   : >> { %3797 = vmatpush.bf16.msrb.mxu1 %v7018_v2  ;;  %3812 = vmatpush.bf16.msra.mxu0 %v7024_v14  ;;  %v7060_v2 = vld [vmem:[%s8617_s1 + $0xa98] sm:$0xff] }
 0x185   : >> { %v2004_v22 = vpop.f32.mrf.mxu3 }
 0x186   : >> { %v8467_v48 = vpop.f32.mrf.mxu0 }
 0x187   : >> { %3822 = vmatpush.bf16.msra.mxu3 %v7035_v1  ;;  %3784 = vmatpush.bf16.msrb.mxu2 %v7010_v5 }
 0x188   : >> { %3798 = vmatpush.bf16.msrb.mxu1 %v7017_v10  ;;  %4383 = vmatpush.bf16.msrb.mxu0 %v7067_v15  ;;  %v8514_v5 = vpop.permute.xlu0 %3878  ;;  %v3860_v10 = vpop.permute.xlu1 %3859  ;;  %v7036_v15 = vld [vmem:[%s8617_s1 + $0x9d8] sm:$0xff] }
 0x189   : >> { %3813 = vmatmul.bf16.vlgmr.msra.gmra.mxu0 %v3312_v7  ;;  %v3910_v14 = vsel %vm283_vm4, %v3873_v12, %v8514_v5 }
 0x18b   : >> { %3823 = vmatpush.bf16.msra.mxu3 %v7034_v8  ;;  %3785 = vmatpush.bf16.msrb.mxu2 %v7009_v17  ;;  %v7052_v8 = vld [vmem:[%s8617_s1 + $0xa58] sm:$0xff]  ;;  %v7075_v17 = vld [vmem:[%s8617_s1 + $0xb10] sm:$0xff] }
 0x18c   : >> { %3799 = vmatpush.bf16.msrb.mxu1 %v7016_v18  ;;  %4384 = vmatpush.bf16.msrb.mxu0 %v7066_v9  ;;  %v6398_v18 = vld [vmem:[%s7225_s28 + $0x30] sm:$0x3] }
 0x18d   : >> { %v7087_v9 = vld [vmem:[%s8617_s1 + $0xb70] sm:$0xff] }
 0x18e   : >> { %v2554_v51 = vpop.f32.mrf.mxu1  ;;  %v2582_v41 = vpop.f32.mrf.mxu0 }
 0x18f   : >> { %3824 = vmatpush.bf16.msra.mxu3 %v7033_v11  ;;  %3786 = vmatpush.bf16.msrb.mxu2 %v7008_v23  ;;  %v3901_v23 = vsel %vm270_vm1, %v6398_v18, %v3854_v54  ;;  %v7076_v41 = vld [vmem:[%s8617_s1 + $0xb18] sm:$0xff] }
 0x190   : >> { %4370 = vmatpush.bf16.msra.mxu1 %v7059_v19  ;;  %4385 = vmatpush.bf16.msrb.mxu0 %v7065_v35  ;;  %v3907_v19 = vsel %vm279_vm3, %v3860_v10, %v3873_v12  ;;  %v7072_v35 = vld [vmem:[%s8617_s1 + $0xaf8] sm:$0xff] }
 0x191   : >> { %3800 = vmatmul.bf16.vlgmr.msrb.gmra.mxu1 %v3309_v30  ;;  %v7086_v30 = vld [vmem:[%s8617_s1 + $0xb68] sm:$0xff] }
 0x192   : >> { %3787 = vmatmul.bf16.vlgmr.msrb.gmra.mxu2 %v3306_v38  ;;  %v7080_v38 = vld [vmem:[%s8617_s1 + $0xb38] sm:$0xff] }
 0x193   : >> { %3825 = vmatpush.bf16.msra.mxu3 %v7032_v29  ;;  %4344 = vmatpush.bf16.msra.mxu2 %v7043_v27  ;;  %v3904_v29 = vsel %vm275_vm2, %v3854_v54, %v3860_v10  ;;  %v7082_v27 = vld [vmem:[%s8617_s1 + $0xb48] sm:$0xff] }
 0x194   : >> { %4371 = vmatpush.bf16.msra.mxu1 %v7058_v34  ;;  %4386 = vmatpush.bf16.msrb.mxu0 %v7064_v44  ;;  %v7085_v34 = vld [vmem:[%s8617_s1 + $0xb60] sm:$0xff]  ;;  %v7079_v44 = vld [vmem:[%s8617_s1 + $0xb30] sm:$0xff] }
 0x195   : >> { %v2541_v60 = vpop.f32.mrf.mxu2 }
 0x196   : >> { %6396 = vmatmul.msk.bf16.vlgmr.msra.gmra.mxu3 %vm907_vm7, %v3294_v20  ;;  %v2556_v63 = vpop.f32.mrf.mxu1  ;;  %v2555_v1 = vadd.f32 %v2554_v51, %v2541_v60  ;;  %v7069_v51 = vld [vmem:[%s8617_s1 + $0xae0] sm:$0xff] }
 0x197   : >> { %4357 = vmatpush.bf16.msrb.mxu3 %v7051_v32  ;;  %4345 = vmatpush.bf16.msra.mxu2 %v7042_v39  ;;  %v7081_v32 = vld [vmem:[%s8617_s1 + $0xb40] sm:$0xff]  ;;  %v7084_v39 = vld [vmem:[%s8617_s1 + $0xb58] sm:$0xff] }
 0x198   : >> { %4372 = vmatpush.bf16.msra.mxu1 %v7057_v43  ;;  %4387 = vmatpush.bf16.msrb.mxu0 %v7063_v33  ;;  %v7071_v43 = vld [vmem:[%s8617_s1 + $0xaf0] sm:$0xff]  ;;  %v7078_v33 = vld [vmem:[%s8617_s1 + $0xb28] sm:$0xff] }
 0x19b   : >> { %4358 = vmatpush.bf16.msrb.mxu3 %v7050_v42  ;;  %4346 = vmatpush.bf16.msra.mxu2 %v7041_v46  ;;  %v3898_v46 = vpop.permute.xlu2 %3897 }
 0x19c   : >> { %4373 = vmatpush.bf16.msra.mxu1 %v7056_v28  ;;  %4388 = vmatpush.bf16.msrb.mxu0 %v7062_v52  ;;  %v7077_v52 = vld [vmem:[%s8617_s1 + $0xb20] sm:$0xff] }
 0x19d   : >> { %v2567_v11 = vpop.f32.mrf.mxu3  ;;  %v2543_v20 = vpop.f32.mrf.mxu2 }
 0x19e   : >> { %v2568_v7 = vadd.f32 %v2567_v11, %v2555_v1 }
 0x19f   : >> { %4359 = vmatpush.bf16.msrb.mxu3 %v7049_v47  ;;  %4347 = vmatpush.bf16.msra.mxu2 %v7040_v45  ;;  %v7070_v47 = vld [vmem:[%s8617_s1 + $0xae8] sm:$0xff] }
 0x1a0   : >> { %4374 = vmatpush.bf16.msra.mxu1 %v7055_v50  ;;  %4389 = vmatpush.bf16.msrb.mxu0 %v7061_v56  ;;  %v2581_v25 = vadd.f32 %v8467_v48, %v2568_v7 }
 0x1a3   : >> { %4360 = vmatpush.bf16.msrb.mxu3 %v7048_v49  ;;  %4348 = vmatpush.bf16.msra.mxu2 %v7039_v53 }
 0x1a4   : >> { %4375 = vmatpush.bf16.msra.mxu1 %v7054_v55  ;;  %4390 = vmatpush.bf16.msrb.mxu0 %v7060_v2  ;;  %v3892_v55 = vpop.permute.xlu1 %3891 }
 0x1a5   : >> { %v2569_v24 = vpop.f32.mrf.mxu3  ;;  %v3913_v57 = vsel %vm287_vm5, %v8514_v5, %v3892_v55 }
 0x1a6   : >> { %v3145_v42 = vpop.f32.mrf.mxu0 }
 0x1a7   : >> { %4361 = vmatpush.bf16.msrb.mxu3 %v7047_v36  ;;  %4349 = vmatpush.bf16.msra.mxu2 %v7038_v58  ;;  %v7068_v36 = vld [vmem:[%s8617_s1 + $0xad8] sm:$0xff]  ;;  %v3916_v58 = vsel %vm291_vm6, %v3892_v55, %v3898_v46  ;;  %v4437_v55 = vperm.slane %v7206_v0, 0 }
 0x1a8   : >> { %4376 = vmatpush.bf16.msra.mxu1 %v7053_v61  ;;  %4391 = vmatmul.bf16.vlgmr.msrb.gmra.mxu0 %v3910_v14 }
 0x1ab   : >> { %4362 = vmatpush.bf16.msrb.mxu3 %v7046_v59  ;;  %4350 = vmatpush.bf16.msra.mxu2 %v7037_v4 }
 0x1ac   : >> { %4377 = vmatpush.bf16.msra.mxu1 %v7052_v8 }
 0x1ae   : >> { %v2606_v37 = vpop.f32.mrf.mxu1  ;;  %v3147_v49 = vpop.f32.mrf.mxu0 }
 0x1af   : >> { %4363 = vmatpush.bf16.msrb.mxu3 %v7045_v6  ;;  %4351 = vmatpush.bf16.msra.mxu2 %v7036_v15 }
 0x1b0   : >> { %4425 = vmatpush.bf16.msrb.mxu1 %v4342_v13 }
 0x1b1   : >> { %4378 = vmatmul.bf16.vlgmr.msra.gmra.mxu1 %v3907_v19  ;;  %v2619_v22 = vpop.f32.mrf.mxu3 }
 0x1b2   : >> { %4352 = vmatmul.bf16.vlgmr.msra.gmra.mxu2 %v3901_v23 }
 0x1b3   : >> { %4364 = vmatpush.bf16.msrb.mxu3 %v7044_v16  ;;  %4396 = vmatpush.bf16.msrb.mxu2 %v7075_v17 }
 0x1b4   : >> { %4426 = vmatpush.bf16.msrb.mxu1 %v7087_v9 }
 0x1b5   : >> { %v2593_v48 = vpop.f32.mrf.mxu2 }
 0x1b6   : >> { %4365 = vmatmul.bf16.vlgmr.msrb.gmra.mxu3 %v3904_v29  ;;  %v2608_v28 = vpop.f32.mrf.mxu1  ;;  %v2594_v45 = vadd.f32 %v2593_v48, %v2581_v25 }
 0x1b7   : >> { %4409 = vmatpush.bf16.msra.mxu3 %v7083_v21  ;;  %4397 = vmatpush.bf16.msrb.mxu2 %v7074_v26 }
 0x1b8   : >> { %4427 = vmatpush.bf16.msrb.mxu1 %v7086_v30  ;;  %v2607_v50 = vadd.f32 %v2606_v37, %v2594_v45 }
 0x1b9   : >> { %v2621_v53 = vpop.f32.mrf.mxu3 }
 0x1ba   : >> { %v2620_v54 = vadd.f32 %v2619_v22, %v2607_v50 }
 0x1bb   : >> { %4410 = vmatpush.bf16.msra.mxu3 %v7082_v27  ;;  %4398 = vmatpush.bf16.msrb.mxu2 %v7073_v31 }
 0x1bc   : >> { %4428 = vmatpush.bf16.msrb.mxu1 %v7085_v34  ;;  %v2623_v62 = vadd.f32 %v2620_v54, %v8446_v40 }
 0x1bd   : >> { %v2595_v56 = vpop.f32.mrf.mxu2 }
 0x1bf   : >> { %4411 = vmatpush.bf16.msra.mxu3 %v7081_v32  ;;  %4399 = vmatpush.bf16.msrb.mxu2 %v7072_v35 }
 0x1c0   : >> { %4429 = vmatpush.bf16.msrb.mxu1 %v7084_v39 }
 0x1c3   : >> { %4412 = vmatpush.bf16.msra.mxu3 %v7080_v38  ;;  %4400 = vmatpush.bf16.msrb.mxu2 %v7071_v43 }
 0x1c4   : >> { %6718 = vmatmul.msk.bf16.vlgmr.msrb.gmra.mxu1 %vm907_vm7, %v3898_v46 }
 0x1c6   : >> { %v3197_v40 = vpop.f32.mrf.mxu0 }
 0x1c7   : >> { %4413 = vmatpush.bf16.msra.mxu3 %v7079_v44  ;;  %4401 = vmatpush.bf16.msrb.mxu2 %v7070_v47 }
 0x1cb   : >> { %4414 = vmatpush.bf16.msra.mxu3 %v7078_v33  ;;  %4402 = vmatpush.bf16.msrb.mxu2 %v7069_v51 }
 0x1ce   : >> { %v3184_v59 = vpop.f32.mrf.mxu1  ;;  %v3199_v60 = vpop.f32.mrf.mxu0 }
 0x1cf   : >> { %4415 = vmatpush.bf16.msra.mxu3 %v7077_v52  ;;  %4403 = vmatpush.bf16.msrb.mxu2 %v7068_v36 }
 0x1d1   : >> { %v3171_v61 = vpop.f32.mrf.mxu3 }
 0x1d2   : >> { %4404 = vmatmul.bf16.vlgmr.msrb.gmra.mxu2 %v3913_v57 }
 0x1d3   : >> { %4416 = vmatpush.bf16.msra.mxu3 %v7076_v41 }
 0x1d5   : >> { %v3158_v1 = vpop.f32.mrf.mxu2 }
 0x1d6   : >> { %4417 = vmatmul.bf16.vlgmr.msra.gmra.mxu3 %v3916_v58  ;;  %v3186_v63 = vpop.f32.mrf.mxu1  ;;  %v3159_v2 = vadd.f32 %v3158_v1, %v3145_v42 }
 0x1d8   : >> { %v3172_v3 = vadd.f32 %v3171_v61, %v3159_v2 }
 0x1d9   : >> { %v3173_v4 = vpop.f32.mrf.mxu3 }
 0x1da   : >> { %v3185_v6 = vadd.f32 %v3184_v59, %v3172_v3 }
 0x1dc   : >> { %v3198_v8 = vadd.f32 %v3197_v40, %v3185_v6 }
 0x1dd   : >> { %v3160_v10 = vpop.f32.mrf.mxu2 }
 0x1e5   : >> { %v3223_v12 = vpop.f32.mrf.mxu3 }
 0x1e6   : >> { %v3762_v13 = vpop.f32.mrf.mxu0 }
 0x1ed   : >> { %v3225_v14 = vpop.f32.mrf.mxu3 }
 0x1ee   : >> { %v3749_v5 = vpop.f32.mrf.mxu1  ;;  %v3764_v16 = vpop.f32.mrf.mxu0 }
 0x1ef   : >> { %v3763_v15 = vadd.f32 %v3762_v13, %v3749_v5 }
 0x1f5   : >> { %v3210_v11 = vpop.f32.mrf.mxu2 }
 0x1f6   : >> { %v3751_v17 = vpop.f32.mrf.mxu1  ;;  %v3211_v18 = vadd.f32 %v3210_v11, %v3198_v8 }
 0x1f8   : >> { %v3224_v19 = vadd.f32 %v3223_v12, %v3211_v18 }
 0x1fa   : >> { %v3227_v20 = vadd.f32 %v3224_v19, %v2623_v62 }
 0x1fd   : >> { %v3212_v21 = vpop.f32.mrf.mxu2 }
 0x205   : >> { %v3775_v7 = vpop.f32.mrf.mxu3 }
 0x206   : >> { %v3776_v9 = vadd.f32 %v3775_v7, %v3763_v15  ;;  %v3814_v23 = vpop.f32.mrf.mxu0 }
 0x20d   : >> { %v3777_v26 = vpop.f32.mrf.mxu3 }
 0x20e   : >> { %v3801_v25 = vpop.f32.mrf.mxu1  ;;  %v3816_v29 = vpop.f32.mrf.mxu0 }
 0x215   : >> { %v3788_v30 = vpop.f32.mrf.mxu2 }
 0x216   : >> { %v3803_v27 = vpop.f32.mrf.mxu1  ;;  %v3789_v31 = vadd.f32 %v3788_v30, %v3776_v9 }
 0x218   : >> { %v3802_v32 = vadd.f32 %v3801_v25, %v3789_v31 }
 0x219   : >> { %v3827_v24 = vpop.f32.mrf.mxu3 }
 0x21a   : >> { %v3815_v34 = vadd.f32 %v3814_v23, %v3802_v32 }
 0x21c   : >> { %v3828_v35 = vadd.f32 %v3827_v24, %v3815_v34 }
 0x21d   : >> { %v3790_v37 = vpop.f32.mrf.mxu2 }
 0x21e   : >> { %v3831_v38 = vadd.f32 %v3828_v35, %v3227_v20 }
 0x221   : >> { %v3829_v39 = vpop.f32.mrf.mxu3 }
 0x225   : >> { %v4392_v42 = vpop.f32.mrf.mxu0 }
 0x22d   : >> { %v4394_v44 = vpop.f32.mrf.mxu0 }
 0x22e   : >> { %v4379_v43 = vpop.f32.mrf.mxu1 }
 0x235   : >> { %v4353_v46 = vpop.f32.mrf.mxu2 }
 0x236   : >> { %v4381_v22 = vpop.f32.mrf.mxu1 }
 0x239   : >> { %v4366_v47 = vpop.f32.mrf.mxu3 }
 0x23a   : >> { %v4367_v49 = vadd.f32 %v4366_v47, %v4353_v46 }
 0x23c   : >> { %v4380_v50 = vadd.f32 %v4379_v43, %v4367_v49 }
 0x23d   : >> { %v4355_v28 = vpop.f32.mrf.mxu2 }
 0x23e   : >> { %v4393_v51 = vadd.f32 %v4392_v42, %v4380_v50 }
 0x241   : >> { %v4431_v48 = vpop.f32.mrf.mxu1  ;;  %v4368_v33 = vpop.f32.mrf.mxu3 }
 0x249   : >> { %v4433_v45 = vpop.f32.mrf.mxu1 }
 0x255   : >> { %v4405_v52 = vpop.f32.mrf.mxu2 }
 0x256   : >> { %v4406_v53 = vadd.f32 %v4405_v52, %v4393_v51 }
 0x259   : >> { %v4418_v54 = vpop.f32.mrf.mxu3 }
 0x25a   : >> { %v4419_v62 = vadd.f32 %v4418_v54, %v4406_v53 }
 0x25c   : >> { %v4432_v36 = vadd.f32 %v4431_v48, %v4419_v62 }
 0x25d   : >> { %v4407_v56 = vpop.f32.mrf.mxu2 }
 0x25e   : >> { %v4435_v41 = vadd.f32 %v4432_v36, %v3831_v38 }
 0x260   : >> { %v4439_v57 = vadd.f32 %v4437_v55, %v4435_v41 }
 0x261   : >> { %v4420_v58 = vpop.f32.mrf.mxu3 }
 0x262   : >> { %v4440_v40 = vmax.f32 %v4439_v57, 0.0  ;;  %201 = sbr.rel (!%p199_p5) target bundleno = 16 (0x10), region = 83 }
 0x264   : >> { %v4441_v59 = vpack.c.bf16 %v4440_v40, %v4440_v40 }
 0x266   : >> { %4445 = vst.msk [vmem:[%s4443_s7] sm:$0x3] %vm4444_vm8, %v4441_v59 }
 0x267 PF: > { %s13_s14 = sadd.s32 1, %s7153_s14   ;;  %s8620_s12 = smov %s7149_s13 }
 0x268   : > { %p10_p6 = scmp.ge.s32.totalorder %s13_s14, 4   ;;  %s8621_s13 = smov %s8623_s15 }
 0x26a   :  { %12 = sbr.rel (!%p10_p6) target bundleno = 2 (0x2), region = 94 }

// kernel: mcnn_forward.9
= control target key start
LH: loop header
LB: loop body
LE: loop exit
PB: predicated region body
PF: predicated region fallthrough
CT: control target
= control target key end

     0   :  { %s699_s0 = inlined_call_operand.vmem [shape: bf16[2,4,4,30], index: 0, kind: input, shape index: {}]   ;;  %s700_s1 = inlined_call_operand.vmem [shape: f32[1,1,30], index: 1, kind: input, shape index: {}]   ;;  %s701_s2 = inlined_call_operand.<no memory space> [shape: f32[1,1], index: 2, kind: input, shape index: {}]   ;;  %s702_s3 = inlined_call_operand.vmem [shape: f32[16,4], index: 3, kind: input, shape index: {}]   ;;  %s703_s4 = inlined_call_operand.vmem [shape: f32[4,16], index: 4, kind: input, shape index: {}]   ;;  %s704_s5 = inlined_call_operand.hbm [shape: f32[2,16,16], index: 5, kind: output, shape index: {}]  }
   0x1   :  { %v10_v0 = vstv %s701_s2 }
   0x2   :  { %11 = vst [vmem:[#allocation2] sm:$0x1] %v10_v0 }
   0x3   :  { %12 = vsyncpa [#allocation4], 0 }
   0x4   :  { %14 = vsyncpa [#allocation4 + $0x1], 0  ;;  %s602_s20 = smov 0   ;;  %s604_s21 = smov 0  }
   0x5   :  { %s606_s22 = smov 0   ;;  %s608_s23 = smov 0  }
   0x6 LB: > { %s623_s2 = sadd.s32 4294967295, %s564_s23   ;;  %s434_s24 = sadd.s32 4294967294, %s564_s23   ;;  %s564_s23 = sphi %s608_s23, %s710_s23   ;;  %s560_s22 = sphi %s606_s22, %s709_s22   ;;  %s556_s21 = sphi %s604_s21, %s708_s21   ;;  %s552_s20 = sphi %s602_s20, %s707_s20  }
   0x7   : > { %s627_s25 = sadd.s32 1, %s564_s23   ;;  %s137_s26 = sadd.s32 1, %s560_s22 }
   0x8   : > { %s134_s27 = ssub.s32 %s564_s23, %s627_s25  ;;  %p147_p0 = scmp.ne.s32.totalorder %s560_s22, %s556_s21 }
   0x9   : > { %p135_p1 = scmp.eq.s32.totalorder %s134_s27, 0  ;;  %p148_p2 = scmp.eq.s32.totalorder %s623_s2, 1 }
   0xa   : > { %p153_p3 = scmp.ne.s32.totalorder %s556_s21, %s552_s20  ;;  %p154_p4 = scmp.eq.s32.totalorder %s434_s24, 1 }
   0xb   : > { %s638_s28 = scalar_select %p135_p1, %s560_s22, %s137_s26  }
   0xc   : > { %p640_p5 = por %p148_p2, %p147_p0  ;;  %p644_p6 = por %p154_p4, %p153_p3 }
   0xd   : > { %p437_p7 = scmp.ge.s32.totalorder %s564_s23, 1  ;;  %p192_p8 = scmp.lt.s32.totalorder %s564_s23, 3 }
   0xf   : > { %p193_p9 = pnand %p437_p7, %p192_p8 }
  0x10   : > { %p220_p10 = scmp.lt.s32.totalorder (!%p193_p9), %s623_s2, 1  ;;  %s217_s19 = sand.u32 (!%p193_p9), 1, %s556_s21  }
  0x11   : > { %196 = sbr.rel (%p193_p9) target bundleno = 450 (0x1c2), region = 40  ;;  %s438_s24 = sshll.u32 (!%p193_p9), %s217_s19, 4 }
  0x12   : > { %s219_s26 = scalar_lea.vmem (!%p193_p9), [#allocation3], %s438_s24  ;;  %s453_s27 = sshll.u32 (!%p193_p9), %s623_s2, 4 }
  0x13   : > { %s368_s8 = scalar_lea.hbm (!%p193_p9), %s704_s5, %s453_s27  ;;  %s369_s9 = sshll.u32 (!%p193_p9), %s219_s26, 4  ;;  %s370_s9 = int_to_ptr.vmem [resolvable:$true] %s369_s9 }
  0x14   : > { %s357_s11 = scalar_lea.sflag (!%p193_p9), [#allocation4], %s217_s19  ;;  %s522_s15 = scalar_lea.hbm (!%p193_p9), %s704_s5, 32 }
  0x16   : > { %s221_s6 = scalar_select %p220_p10, %s623_s2, 1  ;;  %v566_v1 = vmov 0   ;;  %v500_v2 = vld [vmem:[%s700_s1] ss:$0 sm:$0xff]  ;;  %vm241_vm0 = vcmask 240640   ;;  %v275_v22 = vlaneseq  ;;  %vm281_vm1 = vcmask 1041409  }
  0x17   : > { %498 = vset.pattern.permute.xlu1 %v566_v1  ;;  %499 = vset.pattern.permute.xlu0 %v566_v1  ;;  %v501_v19 = vld [vmem:[#allocation2] ss:$0 sm:$0xff]  ;;  %vm283_vm2 = vcmask 1042434   ;;  %vm285_vm3 = vcmask 1043459   ;;  %vm294_vm4 = vcmask 1043456   ;;  %v270_v41 = vld [vmem:[%s702_s3 + $0x8] sm:$0xff] }
  0x18   : > { %s452_s7 = sshll.u32 %s221_s6, 3  ;;  %v276_v25 = vand.u32 127, %v275_v22  ;;  %vm287_vm5 = vcmask 31744   ;;  %v269_v42 = vld [vmem:[%s702_s3] sm:$0xff]  ;;  %vm353_vm6 = vcmask 130048  }
  0x19   : > { %s224_s10 = scalar_lea.vmem %s699_s0, %s452_s7  ;;  %v320_v44 = vld [vmem:[%s703_s4] sm:$0xf] }
  0x1a   : > { %v227_v3 = vld [vmem:[%s224_s10 + $0x4] sm:$0x3]  ;;  %v225_v4 = vld [vmem:[%s224_s10] sm:$0x3]  ;;  %v228_v5 = vld [vmem:[%s224_s10 + $0x6] sm:$0x3]  ;;  %455 = vmatpush.msk.msra.mxu3 %vm294_vm4, %v320_v44  ;;  %444 = vmatpush.msk.msra.mxu1 %vm294_vm4, %v320_v44 }
  0x1b   : > { %v232_v6 = vunpack.c.l.bf16 %v227_v3  ;;  %v230_v7 = vunpack.c.l.bf16 %v225_v4  ;;  %v233_v8 = vunpack.c.l.bf16 %v228_v5  ;;  %v226_v9 = vld [vmem:[%s224_s10 + $0x2] sm:$0x3]  ;;  %s371_s10 = sshll.u32 %s368_s8, 4  ;;  %s372_s10 = int_to_ptr.hbm [resolvable:$true] %s371_s10 }
  0x1c   : > { %v231_v13 = vunpack.c.l.bf16 %v226_v9  ;;  %s516_s12 = sshra.s32 %s372_s10, 4  ;;  %s517_s12 = int_to_ptr.hbm [resolvable:$true] %s516_s12 }
  0x1d   : > { %v239_v10 = vmul.f32 %v500_v2, %v232_v6  ;;  %v237_v11 = vmul.f32 %v500_v2, %v230_v7  ;;  %v240_v12 = vmul.f32 %v500_v2, %v233_v8  ;;  %s518_s13 = scalar_lea.hbm %s517_s12, 16  ;;  %p523_p0 = scmp.lt.s32.totalorder %s517_s12, %s704_s5 }
  0x1e   : > { %v238_v17 = vmul.f32 %v500_v2, %v231_v13  ;;  %p519_p11 = scmp.ne.s32.totalorder %s517_s12, %s518_s13  ;;  %p524_p1 = scmp.lt.s32.totalorder %s522_s15, %s518_s13 }
  0x1f   : > { %v248_v14 = vsel %vm241_vm0, %v239_v10, 0.0  ;;  %v242_v15 = vsel %vm241_vm0, %v237_v11, 0.0  ;;  %v251_v16 = vsel %vm241_vm0, %v240_v12, 0.0 }
  0x20   : > { %249 = vadd.xlane.f32.xlu1 %v248_v14  ;;  %243 = vadd.xlane.f32.xlu0 %v242_v15  ;;  %v245_v18 = vsel %vm241_vm0, %v238_v17, 0.0  ;;  %p520_p12 = pnand %p519_p11, %p640_p5  ;;  %p525_p2 = por %p524_p1, %p523_p0 }
  0x21   : > { %252 = vadd.xlane.f32.xlu2 %v251_v16 }
  0x22   : > { %p521_p13 = pneg %p520_p12 }
  0x24   : > { %p526_p3 = pnand %p525_p2, %p521_p13 }
  0x28   : > { %246 = vadd.xlane.f32.xlu0 %v245_v18 }
  0x39   : > { %258 = vperm.xlu1 %498, %v501_v19  }
  0x93   : > { %v244_v20 = vpop.xlane.xlu0 %243  ;;  %v250_v21 = vpop.xlane.xlu1 %249 }
  0x94   : > { %v253_v23 = vpop.xlane.xlu2 %252 }
  0x9b   : > { %v247_v24 = vpop.xlane.xlu0 %246 }
  0xab   : > { %v259_v26 = vpop.permute.xlu1 %258 }
  0xac   : > { %v261_v27 = vadd.f32 %v259_v26, %v244_v20  ;;  %v263_v28 = vadd.f32 %v259_v26, %v250_v21  ;;  %v264_v29 = vadd.f32 %v259_v26, %v253_v23  ;;  %v262_v30 = vadd.f32 %v259_v26, %v247_v24 }
  0xae   : > { %v265_v31 = vmax.f32 %v261_v27, 0.0  ;;  %v267_v32 = vmax.f32 %v263_v28, 0.0  ;;  %v268_v33 = vmax.f32 %v264_v29, 0.0  ;;  %v266_v34 = vmax.f32 %v262_v30, 0.0 }
  0xb0   : > { %v277_v35 = vperm.slane %v265_v31, %v276_v25  ;;  %v279_v36 = vperm.slane %v267_v32, %v276_v25  ;;  %v278_v37 = vperm.slane %v266_v34, %v276_v25  ;;  %v280_v38 = vperm.slane %v268_v33, %v276_v25 }
  0xb2   : > { %v282_v39 = vsel %vm281_vm1, %v278_v37, %v277_v35 }
  0xb3   : > { %v284_v40 = vsel %vm283_vm2, %v279_v36, %v282_v39 }
  0xb4   : > { %v286_v43 = vsel %vm285_vm3, %v280_v38, %v284_v40 }
  0xb5   : > { %441 = vmatpush.msk.msra.mxu0 %vm294_vm4, %v286_v43  ;;  %454 = vmatpush.msk.msra.mxu2 %vm294_vm4, %v286_v43 }
  0xb6   : > { %443 = vmatmul.msk.f32.vlgmr.msra.gmra.mxu2 %vm287_vm5, %v270_v41  ;;  %442 = vmatmul.msk.f32.vlgmr.msra.gmra.mxu0 %vm287_vm5, %v269_v42 }
 0x133   : > { %v314_v45 = vpop.f32.mrf.mxu0 }
 0x134   : > { %445 = vmatmul.msk.f32.vlgmr.msra.gmra.mxu1 %vm287_vm5, %v314_v45 }
 0x139   : > { %v317_v46 = vpop.f32.mrf.mxu2 }
 0x13a   : > { %446 = vmatmul.msk.f32.vlgmr.msra.gmra.mxu3 %vm287_vm5, %v317_v46 }
 0x1b1   : > { %v347_v47 = vpop.f32.mrf.mxu1 }
 0x1b2   : > { %354 = vst.msk [vmem:[%s219_s26] sm:$0xff] %vm353_vm6, %v347_v47 }
 0x1bd   : > { %v350_v48 = vpop.f32.mrf.mxu3 }
 0x1be   : > { %355 = vst.msk [vmem:[%s219_s26 + $0x8] sm:$0xff] %vm353_vm6, %v350_v48 }
 0x1bf   : > { %529 = shalt.err (!%p526_p3)
}
 0x1c0   : > { %s567_s18 = smov 128   ;;  %s568_s19 = smov 8  }
 0x1c1   : > { %456 = dma.vmem_to_hbm [thread:$0]  (%p640_p5), %s370_s9, 256, %s372_s10, %s357_s11, %s567_s18, %s567_s18, %s568_s19  }
 0x1c2 PF: > { %p462_p4 = scmp.ge.s32.totalorder %s564_s23, 2  ;;  %s386_s24 = sand.u32 1, %s552_s20  }
 0x1c3   : > { %s387_s26 = scalar_lea.sflag [#allocation4], %s386_s24 }
 0x1c4   : > { %p459_p7 = pnand %p462_p4, %p644_p6 }
 0x1c6   : > { %p460_p8 = pneg %p459_p7 }
 0x1c8   : > { %547 = dma.done.wait (%p460_p8), %s387_s26, 256  }
 0x1c9   : > { %549 = vsyncadd (%p460_p8), %s387_s26, 4294967040  ;;  %p17_p9 = scmp.ge.s32.totalorder %s627_s25, 4   ;;  %s707_s20 = smov %s556_s21 }
 0x1ca   : > { %s708_s21 = smov %s560_s22  ;;  %s709_s22 = smov %s638_s28 }
 0x1cb   : > { %s710_s23 = smov %s627_s25  ;;  %19 = sbr.rel (!%p17_p9) target bundleno = 6 (0x6), region = 75 }
 0x1d0   :  { %393 = vsyncpa [#allocation4], 1 }
 0x1d1   :  { %395 = vsyncpa [#allocation4 + $0x1], 1 }

// kernel: mcnn_forward.8
= control target key start
LH: loop header
LB: loop body
LE: loop exit
PB: predicated region body
PF: predicated region fallthrough
CT: control target
= control target key end

     0   :  { %s4213_s12 = smov 0   ;;  %s4215_s13 = smov 0   ;;  %s5022_s0 = inlined_call_operand.vmem [shape: bf16[2,10,10,60], index: 0, kind: input, shape index: {}]   ;;  %s5023_s1 = inlined_call_operand.vmem [shape: bf16[7,420,30], index: 1, kind: input, shape index: {}]   ;;  %s5024_s2 = inlined_call_operand.vmem [shape: f32[1,30], index: 2, kind: input, shape index: {}]   ;;  %s5025_s3 = inlined_call_operand.vmem [shape: bf16[2,4,4,30], index: 3, kind: output, shape index: {}]  }
   0x1   :  { %s4217_s14 = smov 0  }
   0x2 LB: > { %s25_s15 = sadd.s32 1, %s4177_s13  ;;  %p2822_p0 = scmp.ge.s32.totalorder %s4181_s14, 1  ;;  %s4181_s14 = sphi %s4217_s14, %s13_s14   ;;  %s4177_s13 = sphi %s4215_s13, %s5027_s13   ;;  %s4173_s12 = sphi %s4213_s12, %s5026_s12  }
   0x3   : > { %p27_p1 = scmp.ge.s32.totalorder %s25_s15, 2  ;;  %p151_p2 = scmp.lt.s32.totalorder %s4181_s14, 3 }
   0x5   : > { %s5029_s15 = smov (%p27_p1, %s25_s15), 0  ;;  %p152_p3 = pnand %p2822_p0, %p151_p2 }
   0x6   : > { %p179_p4 = scmp.lt.s32.totalorder (!%p152_p3), %s4173_s12, 1  ;;  %s4246_s26 = smov (!%p152_p3), 0  }
   0x7   : > { %155 = sbr.rel (%p152_p3) target bundleno = 445 (0x1bd), region = 32 }
   0xc   : > { %v4234_v0 = vld [vmem:[%s5024_s2] sm:$0x1]  ;;  %s5031_s12 = smov (!%p179_p4, %s4173_s12), 1 }
   0xd   : > { %s4116_s18 = smul.u32 80, %s5031_s12  ;;  %s3932_s19 = sshll.u32 %s5031_s12, 3 }
   0xe   : > { %s4239_s22 = scalar_lea.vmem %s5025_s3, %s3932_s19 }
   0xf   : > { %s4244_s25 = scalar_lea.vmem %s5022_s0, %s4116_s18 }
  0x10 LB: >> { %s3933_s27 = sshll.u32 %s4185_s26, 3  ;;  %s4187_s29 = smov 104   ;;  %vm644_vm0 = vcmask 1041408   ;;  %vm641_vm1 = vcmask 293888   ;;  %vm270_vm2 = vcmask 490496   ;;  %vm285_vm3 = vcmask 359424   ;;  %s4185_s26 = sphi %s4246_s26, %s202_s26  }
  0x11   : >> { %s4253_s28 = scalar_lea.vmem %s4244_s25, %s3933_s27  ;;  %s4188_s30 = smov 112   ;;  %vm278_vm4 = vcmask 424960   ;;  %vm274_vm5 = vcmask 982016   ;;  %vm281_vm6 = vcmask 916480   ;;  %vm288_vm7 = vcmask 850944  }
  0x12   : >> { %v2834_v1 = vld [vmem:[%s4253_s28 + $0xc] sm:$0x1]  ;;  %v2835_v2 = vld [vmem:[%s4253_s28 + $0x8] sm:$0x8]  ;;  %v2831_v7 = vld [vmem:[%s4253_s28 + $0x8] sm:$0x6] }
  0x13   : >> { %v2833_v3 = vld [vmem:[%s4253_s28 + $0x8] sm:$0xc]  ;;  %v394_v4 = vunpack.c.l.b16 %v2834_v1  ;;  %v407_v5 = vunpack.c.l.b16 %v2835_v2  ;;  %v208_v8 = vld [vmem:[%s4253_s28] sm:$0x7]  ;;  %v369_v9 = vunpack.c.l.b16 %v2831_v7  ;;  %v212_v23 = vld [vmem:[%s4253_s28 + $0x4] sm:$0x1] }
  0x14   : >> { %v388_v6 = vunpack.c.l.b16 %v2833_v3  ;;  %v215_v10 = vunpack.c.l.b16 %v208_v8  ;;  %v2832_v11 = vld [vmem:[%s4253_s28 + $0x8] sm:$0xe]  ;;  %v213_v26 = vld [vmem:[%s4253_s28] sm:$0x8]  ;;  %v252_v30 = vunpack.c.l.b16 %v212_v23  ;;  %s4189_s4 = smov 44   ;;  %s4190_s5 = smov 120  }
  0x15   : >> { %v408_v12 = vpack.c.b16 %v394_v4, %v407_v5  ;;  %v375_v15 = vunpack.c.l.b16 %v2832_v11  ;;  %v2830_v20 = vld [vmem:[%s4253_s28 + $0x8] sm:$0x7]  ;;  %v370_v21 = vpack.c.b16 %v369_v9, %v369_v9  ;;  %v211_v28 = vld [vmem:[%s4253_s28] sm:$0xc]  ;;  %v265_v35 = vunpack.c.l.b16 %v213_v26  ;;  %s4191_s6 = smov 52   ;;  %s4192_s7 = smov 60  }
  0x16   : >> { %v389_v13 = vpack.c.b16 %v388_v6, %v388_v6  ;;  %v395_v14 = vpack.c.b16 %v394_v4, %v388_v6  ;;  %v216_v22 = vpack.c.b16 %v215_v10, %v215_v10  ;;  %v357_v29 = vunpack.c.l.b16 %v2830_v20  ;;  %v3103_v49 = vld [vmem:[%s4253_s28 + $0x10] sm:$0xe]  ;;  %v210_v50 = vld [vmem:[%s4253_s28] sm:$0xe]  ;;  %s3929_s8 = sshll.u32 %s4185_s26, 1  ;;  %s202_s26 = sadd.s32 1, %s4185_s26  }
  0x17   : >> { %v409_v16 = vrot.slane %v408_v12, 3  ;;  %v376_v27 = vpack.c.b16 %v375_v15, %v375_v15  ;;  %v371_v33 = vrot.slane %v370_v21, 1  ;;  %v246_v40 = vunpack.c.l.b16 %v211_v28  ;;  %v209_v51 = vld [vmem:[%s4253_s28] sm:$0x6]  ;;  %v3102_v61 = vld [vmem:[%s4253_s28 + $0x10] sm:$0x6]  ;;  %s2693_s9 = scalar_lea.vmem %s4239_s22, %s3929_s8 }
  0x18   : >> { %v390_v17 = vrot.slane %v389_v13, 2  ;;  %v397_v18 = vshrl.u32 %v395_v14, 16  ;;  %v400_v19 = vshll.u32 %v395_v14, 16  ;;  %v220_v34 = vshll.u32 %v216_v22, 16  ;;  %v3101_v2 = vld [vmem:[%s4253_s28 + $0x10] sm:$0x7] }
  0x19   : >> { %410 = vrot.lane.b32.xlu1 %v409_v16, %s4187_s29  ;;  %v378_v31 = vshrl.u32 %v376_v27, 16  ;;  %v381_v32 = vshll.u32 %v376_v27, 16  ;;  %v358_v36 = vpack.c.b16 %v357_v29, %v357_v29  ;;  %v218_v43 = vshrl.u32 %v216_v22, 16  ;;  %v3105_v16 = vld [vmem:[%s4253_s28 + $0x14] sm:$0x1]  ;;  %v3967_v22 = vld [vmem:[%s5023_s1 + $0x10c] sm:$0xff] }
  0x1a   : >> { %391 = vrot.lane.b32.xlu0 %v390_v17, %s4188_s30  ;;  %v399_v24 = vrot.slane %v397_v18, 2  ;;  %v402_v25 = vrot.slane %v400_v19, 3  ;;  %v222_v44 = vrot.slane %v220_v34, 1  ;;  %v266_v45 = vpack.c.b16 %v252_v30, %v265_v35  ;;  %v3106_v17 = vld [vmem:[%s4253_s28 + $0x10] sm:$0x8]  ;;  %648 = vmatpush.bf16.msra.mxu0 %v3967_v22  ;;  %v3974_v34 = vld [vmem:[%s5023_s1 + $0x144] sm:$0xff] }
  0x1b   : >> { %v380_v38 = vrot.slane %v378_v31, 1  ;;  %v383_v39 = vrot.slane %v381_v32, 2  ;;  %v362_v41 = vshll.u32 %v358_v36, 16  ;;  %v253_v46 = vpack.c.b16 %v252_v30, %v246_v40  ;;  %v3270_v21 = vld [vmem:[%s4253_s28 + $0x18] sm:$0xc]  ;;  %v3975_v26 = vld [vmem:[%s5023_s1 + $0x14c] sm:$0xff] }
  0x1c   : >> { %v403_v37 = vor.u32 %v402_v25, %v399_v24  ;;  %v360_v47 = vshrl.u32 %v358_v36, 16  ;;  %v223_v52 = vor.u32 %v222_v44, %v218_v43  ;;  %v267_v53 = vrot.slane %v266_v45, 3  ;;  %v4288_v24 = vld [vmem:[%s4253_s28 + $0x1c] sm:$0x1]  ;;  %v2888_v25 = vld [vmem:[%s5023_s1 + $0x1a4] sm:$0x3]  ;;  %661 = vmatpush.bf16.msra.mxu1 %v3975_v26 }
  0x1d   : >> { %v384_v42 = vor.u32 %v383_v39, %v380_v38  ;;  %v364_v48 = vrot.slane %v362_v41, 1  ;;  %v255_v54 = vshrl.u32 %v253_v46, 16  ;;  %v258_v55 = vshll.u32 %v253_v46, 16  ;;  %v3104_v28 = vld [vmem:[%s4253_s28 + $0x10] sm:$0xc]  ;;  %v3966_v30 = vld [vmem:[%s5023_s1 + $0x104] sm:$0xff] }
  0x1e   : >> { %v946_v56 = vunpack.c.l.b16 %v3103_v49  ;;  %v233_v57 = vunpack.c.l.b16 %v210_v50  ;;  %v227_v59 = vunpack.c.l.b16 %v209_v51  ;;  %v247_v60 = vpack.c.b16 %v246_v40, %v246_v40  ;;  %649 = vmatpush.bf16.msra.mxu0 %v3966_v30  ;;  %v3985_v43 = vld [vmem:[%s5023_s1 + $0x19c] sm:$0xff]  ;;  %v3983_v49 = vld [vmem:[%s5023_s1 + $0x18c] sm:$0xff]  ;;  %p199_p5 = scmp.ge.s32.totalorder %s202_s26, 4  }
  0x1f   : >> { %385 = vrot.lane.b32.xlu2 %v384_v42, %s4191_s6  ;;  %v365_v58 = vor.u32 %v364_v48, %v360_v47  ;;  %v257_v62 = vrot.slane %v255_v54, 2  ;;  %v260_v63 = vrot.slane %v258_v55, 3  ;;  %v940_v5 = vunpack.c.l.b16 %v3102_v61  ;;  %v3965_v42 = vld [vmem:[%s5023_s1 + $0xfc] sm:$0xff]  ;;  %v3267_v48 = vld [vmem:[%s4253_s28 + $0x18] sm:$0x7]  ;;  %674 = vmatpush.bf16.msra.mxu2 %v3983_v49  ;;  %v3982_v54 = vld [vmem:[%s5023_s1 + $0x184] sm:$0xff] }
  0x20   : >> { %v947_v1 = vpack.c.b16 %v946_v56, %v946_v56  ;;  %v234_v3 = vpack.c.b16 %v233_v57, %v233_v57  ;;  %v228_v4 = vpack.c.b16 %v227_v59, %v227_v59  ;;  %v248_v6 = vrot.slane %v247_v60, 2  ;;  %662 = vmatpush.bf16.msra.mxu1 %v3974_v34  ;;  %v3984_v56 = vld [vmem:[%s5023_s1 + $0x194] sm:$0xff]  ;;  %v3961_v30 = vld [vmem:[%s5023_s1 + $0xdc] sm:$0xff] }
  0x21   : >> { %372 = vrot.lane.b32.xlu1 %v371_v33, %s4190_s5  ;;  %v928_v7 = vunpack.c.l.b16 %v3101_v2  ;;  %v261_v8 = vor.u32 %v260_v63, %v257_v62  ;;  %v941_v14 = vpack.c.b16 %v940_v5, %v940_v5  ;;  %v587_v29 = vunpack.c.l.b16 %v2888_v25  ;;  %v3972_v57 = vld [vmem:[%s5023_s1 + $0x134] sm:$0xff] }
  0x22   : >> { %404 = vrot.lane.b32.xlu0 %v403_v37, %s4189_s4  ;;  %v949_v9 = vshrl.u32 %v947_v1, 16  ;;  %v952_v10 = vshll.u32 %v947_v1, 16  ;;  %v236_v11 = vshrl.u32 %v234_v3, 16  ;;  %v229_v12 = vrot.slane %v228_v4, 1  ;;  %650 = vmatpush.bf16.msra.mxu0 %v3965_v42  ;;  %v3941_v2 = vld [vmem:[%s5023_s1 + $0x38] sm:$0xff] }
  0x23   : >> { %v239_v13 = vshll.u32 %v234_v3, 16  ;;  %v929_v15 = vpack.c.b16 %v928_v7, %v928_v7  ;;  %v942_v27 = vrot.slane %v941_v14, 1  ;;  %v965_v32 = vunpack.c.l.b16 %v3105_v16  ;;  %675 = vmatpush.bf16.msra.mxu2 %v3982_v54  ;;  %v3963_v3 = vld [vmem:[%s5023_s1 + $0xec] sm:$0xff]  ;;  %v3268_v5 = vld [vmem:[%s4253_s28 + $0x18] sm:$0x6] }
  0x24   : >> { %v951_v18 = vrot.slane %v949_v9, 1  ;;  %v954_v19 = vrot.slane %v952_v10, 2  ;;  %v238_v20 = vrot.slane %v236_v11, 1  ;;  %v978_v33 = vunpack.c.l.b16 %v3106_v17  ;;  %v3433_v9 = vld [vmem:[%s4253_s28 + $0x20] sm:$0x7]  ;;  %v3940_v14 = vld [vmem:[%s5023_s1 + $0x30] sm:$0xff] }
  0x25   : >> { %v241_v23 = vrot.slane %v239_v13, 2  ;;  %v933_v31 = vshll.u32 %v929_v15, 16  ;;  %v4303_v36 = vunpack.c.l.b16 %v3270_v21  ;;  %v1319_v37 = vunpack.c.l.b16 %v4288_v24  ;;  %v3981_v10 = vld [vmem:[%s5023_s1 + $0x17c] sm:$0xff]  ;;  %v3272_v13 = vld [vmem:[%s4253_s28 + $0x18] sm:$0x8]  ;;  %v3962_v17 = vld [vmem:[%s5023_s1 + $0xe4] sm:$0xff] }
  0x26   : >> { %v955_v35 = vor.u32 %v954_v19, %v951_v18  ;;  %v614_v38 = vpack.c.b16 %v587_v29, %v587_v29  ;;  %v959_v40 = vunpack.c.l.b16 %v3104_v28  ;;  %v931_v44 = vshrl.u32 %v929_v15, 16  ;;  %v3971_v15 = vld [vmem:[%s5023_s1 + $0x12c] sm:$0xff]  ;;  %v3269_v16 = vld [vmem:[%s4253_s28 + $0x18] sm:$0xe]  ;;  %v3970_v21 = vld [vmem:[%s5023_s1 + $0x124] sm:$0xff] }
  0x27   : >> { %366 = vrot.lane.b32.xlu2 %v365_v58, %s4192_s7  ;;  %v242_v39 = vor.u32 %v241_v23, %v238_v20  ;;  %v935_v45 = vrot.slane %v933_v31, 1  ;;  %v979_v46 = vpack.c.b16 %v965_v32, %v978_v33  ;;  %v1320_v47 = vpack.c.b16 %v1319_v37, %v4303_v36  ;;  %676 = vmatpush.bf16.msra.mxu2 %v3981_v10  ;;  %v3980_v18 = vld [vmem:[%s5023_s1 + $0x174] sm:$0xff]  ;;  %v3939_v29 = vld [vmem:[%s5023_s1 + $0x28] sm:$0xff]  ;;  %v3436_v42 = vld [vmem:[%s4253_s28 + $0x20] sm:$0xc] }
  0x28   : >> { %v646_v41 = vsel %vm644_vm0, %v614_v38, 0  ;;  %v960_v50 = vpack.c.b16 %v959_v40, %v959_v40  ;;  %v966_v51 = vpack.c.b16 %v965_v32, %v959_v40  ;;  %v1282_v55 = vunpack.c.l.b16 %v3267_v48  ;;  %v3979_v31 = vld [vmem:[%s5023_s1 + $0x16c] sm:$0xff]  ;;  %v3437_v38 = vld [vmem:[%s4253_s28 + $0x24] sm:$0x1]  ;;  %v3438_v40 = vld [vmem:[%s4253_s28 + $0x20] sm:$0x8] }
  0x29   : >> { %268 = vrot.lane.b32.xlu1 %v267_v53, %s4187_s29  ;;  %692 = vmatpush.bf16.msra.mxu3 %v646_v41  ;;  %v3964_v53 = vld [vmem:[%s5023_s1 + $0xf4] sm:$0xff]  ;;  %v936_v58 = vor.u32 %v935_v45, %v931_v44  ;;  %v980_v59 = vrot.slane %v979_v46, 3  ;;  %v1322_v60 = vshrl.u32 %v1320_v47, 16  ;;  %v1325_v61 = vshll.u32 %v1320_v47, 16  ;;  %v3978_v45 = vld [vmem:[%s5023_s1 + $0x164] sm:$0xff] }
  0x2a   : >> { %224 = vrot.lane.b32.xlu0 %v223_v52, %s4192_s7  ;;  %v3973_v52 = vld [vmem:[%s5023_s1 + $0x13c] sm:$0xff]  ;;  %v961_v62 = vrot.slane %v960_v50, 2  ;;  %v968_v63 = vshrl.u32 %v966_v51, 16  ;;  %v971_v1 = vshll.u32 %v966_v51, 16  ;;  %651 = vmatpush.bf16.msra.mxu0 %v3964_v53  ;;  %v1283_v4 = vpack.c.b16 %v1282_v55, %v1282_v55  ;;  %v3960_v44 = vld [vmem:[%s5023_s1 + $0xd4] sm:$0xff] }
  0x2b   : >> { %663 = vmatpush.bf16.msra.mxu1 %v3973_v52  ;;  %v1324_v7 = vrot.slane %v1322_v60, 2  ;;  %v1636_v20 = vunpack.c.l.b16 %v3433_v9  ;;  %v1294_v25 = vunpack.c.l.b16 %v3268_v5  ;;  %v1300_v28 = vunpack.c.l.b16 %v3269_v16  ;;  %677 = vmatpush.bf16.msra.mxu2 %v3980_v18  ;;  %v3949_v46 = vld [vmem:[%s5023_s1 + $0x78] sm:$0xff]  ;;  %v3948_v60 = vld [vmem:[%s5023_s1 + $0x70] sm:$0xff] }
  0x2c   : >> { %v970_v11 = vrot.slane %v968_v63, 2  ;;  %v1287_v19 = vshll.u32 %v1283_v4, 16  ;;  %v1285_v32 = vshrl.u32 %v1283_v4, 16  ;;  %v3968_v47 = vld [vmem:[%s5023_s1 + $0x114] sm:$0xff]  ;;  %v1673_v49 = vunpack.c.l.b16 %v3437_v38  ;;  %v3434_v4 = vld [vmem:[%s4253_s28 + $0x20] sm:$0x6] }
  0x2d   : >> { %693 = vmatpush.bf16.msra.mxu3 %v3985_v43  ;;  %v1637_v34 = vpack.c.b16 %v1636_v20, %v1636_v20  ;;  %v1301_v41 = vpack.c.b16 %v1300_v28, %v1300_v28  ;;  %v3938_v43 = vld [vmem:[%s5023_s1 + $0x20] sm:$0xff]  ;;  %v1686_v50 = vunpack.c.l.b16 %v3438_v40  ;;  %v1667_v51 = vunpack.c.l.b16 %v3436_v42  ;;  %v3937_v55 = vld [vmem:[%s5023_s1 + $0x18] sm:$0xff]  ;;  %v3956_v5 = vld [vmem:[%s5023_s1 + $0xb0] sm:$0xff] }
  0x2e   : >> { %652 = vmatpush.bf16.msra.mxu0 %v3963_v3  ;;  %v1289_v33 = vrot.slane %v1287_v19, 1  ;;  %v3599_v3 = vld [vmem:[%s4253_s28 + $0x28] sm:$0x7]  ;;  %vm2694_vm8 = vcmask 238592  }
  0x2f   : >> { %230 = vrot.lane.b32.xlu2 %v229_v12, %s4190_s5  ;;  %664 = vmatpush.bf16.msra.mxu1 %v3972_v57  ;;  %v973_v12 = vrot.slane %v971_v1, 3  ;;  %v1303_v53 = vshrl.u32 %v1301_v41, 16  ;;  %v1306_v54 = vshll.u32 %v1301_v41, 16  ;;  %v3977_v57 = vld [vmem:[%s5023_s1 + $0x15c] sm:$0xff]  ;;  %v1668_v16 = vpack.c.b16 %v1667_v51, %v1667_v51  ;;  %v344_v41 = vld [vmem:[%s5023_s1 + $0xd0] sm:$0x3] }
  0x30   : >> { %678 = vmatpush.bf16.msra.mxu2 %v3979_v31  ;;  %v1290_v24 = vor.u32 %v1289_v33, %v1285_v32  ;;  %v4446_v32 = vld [vmem:[%s4253_s28 + $0x2c] sm:$0x1]  ;;  %v3604_v33 = vld [vmem:[%s4253_s28 + $0x28] sm:$0x8] }
  0x31   : >> { %262 = vrot.lane.b32.xlu1 %v261_v8, %s4189_s4  ;;  %694 = vmatpush.bf16.msra.mxu3 %v3984_v56  ;;  %v1327_v8 = vrot.slane %v1325_v61, 3  ;;  %v974_v26 = vor.u32 %v973_v12, %v970_v11  ;;  %v3957_v56 = vld [vmem:[%s5023_s1 + $0xb8] sm:$0xff]  ;;  %v1687_v61 = vpack.c.b16 %v1673_v49, %v1686_v50  ;;  %v1305_v63 = vrot.slane %v1303_v53, 1  ;;  %v3602_v42 = vld [vmem:[%s4253_s28 + $0x28] sm:$0xc]  ;;  %v3946_v53 = vld [vmem:[%s5023_s1 + $0x60] sm:$0xff] }
  0x32   : >> { %249 = vrot.lane.b32.xlu0 %v248_v6, %s4188_s30  ;;  %v1314_v6 = vpack.c.b16 %v4303_v36, %v4303_v36  ;;  %653 = vmatpush.bf16.msra.mxu0 %v3962_v17  ;;  %v1295_v36 = vpack.c.b16 %v1294_v25, %v1294_v25  ;;  %v1308_v1 = vrot.slane %v1306_v54, 2  ;;  %v1990_v11 = vunpack.c.l.b16 %v3599_v3  ;;  %v3955_v54 = vld [vmem:[%s5023_s1 + $0xa8] sm:$0xff] }
  0x33   : >> { %665 = vmatpush.bf16.msra.mxu1 %v3971_v15  ;;  %v1328_v23 = vor.u32 %v1327_v8, %v1324_v7  ;;  %v3947_v7 = vld [vmem:[%s5023_s1 + $0x68] sm:$0xff]  ;;  %v1688_v8 = vrot.slane %v1687_v61, 3  ;;  %v2040_v38 = vunpack.c.l.b16 %v3604_v33  ;;  %v3954_v61 = vld [vmem:[%s5023_s1 + $0xa0] sm:$0xff] }
  0x34   : >> { %v1315_v22 = vrot.slane %v1314_v6, 2  ;;  %v1296_v48 = vrot.slane %v1295_v36, 1  ;;  %679 = vmatpush.bf16.msra.mxu2 %v3978_v45  ;;  %v1309_v12 = vor.u32 %v1308_v1, %v1305_v63  ;;  %v3600_v15 = vld [vmem:[%s4253_s28 + $0x28] sm:$0x6]  ;;  %v1991_v19 = vpack.c.b16 %v1990_v11, %v1990_v11  ;;  %v3767_v63 = vld [vmem:[%s4253_s28 + $0x30] sm:$0xe] }
  0x35   : >> { %864 = vmatpush.bf16.msrb.mxu3 %v3941_v2  ;;  %v3936_v2 = vld [vmem:[%s5023_s1 + $0x10] sm:$0xff]  ;;  %v2027_v36 = vunpack.c.l.b16 %v4446_v32  ;;  %v2362_v1 = vunpack.c.l.b16 %v3767_v63 }
  0x36   : >> { %654 = vmatpush.bf16.msra.mxu0 %v3961_v30 }
  0x37   : >> { %243 = vrot.lane.b32.xlu2 %v242_v39, %s4191_s6  ;;  %666 = vmatpush.bf16.msra.mxu1 %v3970_v21  ;;  %v2002_v21 = vunpack.c.l.b16 %v3600_v15  ;;  %v3943_v15 = vld [vmem:[%s5023_s1 + $0x48] sm:$0xff] }
  0x38   : >> { %680 = vmatpush.bf16.msra.mxu2 %v3977_v57  ;;  %v3601_v57 = vld [vmem:[%s4253_s28 + $0x28] sm:$0xe] }
  0x39   : >> { %956 = vrot.lane.b32.xlu1 %v955_v35, %s4191_s6  ;;  %865 = vmatpush.bf16.msrb.mxu3 %v3940_v14  ;;  %v3969_v35 = vld [vmem:[%s5023_s1 + $0x11c] sm:$0xff]  ;;  %v3935_v14 = vld [vmem:[%s5023_s1 + $0x8] sm:$0xff]  ;;  %v2003_v28 = vpack.c.b16 %v2002_v21, %v2002_v21 }
  0x3a   : >> { %943 = vrot.lane.b32.xlu0 %v942_v27, %s4190_s5  ;;  %v1332_v27 = vunpack.c.l.b16 %v3272_v13  ;;  %655 = vmatpush.bf16.msra.mxu0 %v3960_v44  ;;  %v1648_v13 = vunpack.c.l.b16 %v3434_v4  ;;  %v805_v44 = vunpack.c.l.b16 %v344_v41 }
  0x3b   : >> { %667 = vmatpush.bf16.msra.mxu1 %v3969_v35  ;;  %v2004_v31 = vrot.slane %v2003_v28, 1  ;;  %v3942_v28 = vld [vmem:[%s5023_s1 + $0x40] sm:$0xff] }
  0x3c   : >> { %v1333_v39 = vpack.c.b16 %v1319_v37, %v1332_v27  ;;  %v1641_v37 = vshll.u32 %v1637_v34, 16  ;;  %v1649_v20 = vpack.c.b16 %v1648_v13, %v1648_v13 }
  0x3d   : >> { %866 = vmatpush.bf16.msrb.mxu3 %v3939_v29  ;;  %v1993_v29 = vshrl.u32 %v1991_v19, 16 }
  0x3e   : >> { %v1334_v52 = vrot.slane %v1333_v39, 3  ;;  %877 = vmatpush.bf16.msrb.mxu0 %v3949_v46  ;;  %v1650_v27 = vrot.slane %v1649_v20, 1  ;;  %v2021_v46 = vunpack.c.l.b16 %v3602_v42 }
  0x3f   : >> { %962 = vrot.lane.b32.xlu2 %v961_v62, %s4188_s30  ;;  %668 = vmatpush.bf16.msra.mxu1 %v3968_v47  ;;  %v1674_v62 = vpack.c.b16 %v1673_v49, %v1667_v51  ;;  %v832_v47 = vpack.c.b16 %v805_v44, %v805_v44 }
  0x40   : >> { %v2022_v50 = vpack.c.b16 %v2021_v46, %v2021_v46  ;;  %v2028_v20 = vpack.c.b16 %v2027_v36, %v2021_v46 }
  0x41   : >> { %981 = vrot.lane.b32.xlu1 %v980_v59, %s4187_s29  ;;  %867 = vmatpush.bf16.msrb.mxu3 %v3938_v43  ;;  %v1643_v59 = vrot.slane %v1641_v37, 1  ;;  %v1676_v9 = vshrl.u32 %v1674_v62, 16  ;;  %v1679_v10 = vshll.u32 %v1674_v62, 16  ;;  %v2041_v43 = vpack.c.b16 %v2027_v36, %v2040_v38  ;;  %v3976_v37 = vld [vmem:[%s5023_s1 + $0x154] sm:$0xff] }
  0x42   : >> { %937 = vrot.lane.b32.xlu0 %v936_v58, %s4192_s7  ;;  %v1639_v58 = vshrl.u32 %v1637_v34, 16  ;;  %878 = vmatpush.bf16.msrb.mxu0 %v3948_v60  ;;  %v3435_v34 = vld [vmem:[%s4253_s28 + $0x20] sm:$0xe]  ;;  %v3945_v60 = vld [vmem:[%s5023_s1 + $0x58] sm:$0xff] }
  0x43   : >> { %890 = vmatpush.bf16.msrb.mxu1 %v3957_v56  ;;  %v1678_v17 = vrot.slane %v1676_v9, 2  ;;  %v1681_v18 = vrot.slane %v1679_v10, 3  ;;  %v1654_v39 = vunpack.c.l.b16 %v3435_v34  ;;  %681 = vmatpush.bf16.msra.mxu2 %v3976_v37  ;;  %v2042_v51 = vrot.slane %v2041_v43, 3  ;;  %v3766_v10 = vld [vmem:[%s4253_s28 + $0x30] sm:$0x6] }
  0x44   : >> { %v1644_v6 = vor.u32 %v1643_v59, %v1639_v58  ;;  %v2023_v56 = vrot.slane %v2022_v50, 2  ;;  %v3959_v58 = vld [vmem:[%s5023_s1 + $0xc8] sm:$0xff]  ;;  %v2008_v59 = vunpack.c.l.b16 %v3601_v57  ;;  %v2356_v11 = vunpack.c.l.b16 %v3766_v10  ;;  %v3992_v57 = vld [vmem:[%s5023_s1 + $0x1d8] sm:$0xff] }
  0x45   : >> { %868 = vmatpush.bf16.msrb.mxu3 %v3937_v55  ;;  %v1682_v25 = vor.u32 %v1681_v18, %v1678_v17  ;;  %v1655_v40 = vpack.c.b16 %v1654_v39, %v1654_v39 }
  0x46   : >> { %879 = vmatpush.bf16.msrb.mxu0 %v3947_v7  ;;  %v2009_v62 = vpack.c.b16 %v2008_v59, %v2008_v59  ;;  %v2363_v7 = vpack.c.b16 %v2362_v1, %v2362_v1  ;;  %v2357_v17 = vpack.c.b16 %v2356_v11, %v2356_v11  ;;  %v2829_v59 = vld [vmem:[%s4253_s28 + $0x8] sm:$0x3]  ;;  %v3991_v1 = vld [vmem:[%s5023_s1 + $0x1d0] sm:$0xff] }
  0x47   : >> { %975 = vrot.lane.b32.xlu2 %v974_v26, %s4189_s4  ;;  %891 = vmatpush.bf16.msrb.mxu1 %v3956_v5  ;;  %v1995_v26 = vshll.u32 %v1991_v19, 16  ;;  %v1657_v45 = vshrl.u32 %v1655_v40, 16  ;;  %v3944_v5 = vld [vmem:[%s5023_s1 + $0x50] sm:$0xff] }
  0x48   : >> { %v2011_v3 = vshrl.u32 %v2009_v62, 16  ;;  %v2014_v4 = vshll.u32 %v2009_v62, 16  ;;  %v2368_v13 = vshll.u32 %v2363_v7, 16  ;;  %v2358_v21 = vrot.slane %v2357_v17, 1  ;;  %v4011_v17 = vld [vmem:[%s5023_s1 + $0x270] sm:$0xff] }
  0x49   : >> { %1329 = vrot.lane.b32.xlu1 %v1328_v23, %s4189_s4  ;;  %869 = vmatpush.bf16.msrb.mxu3 %v3936_v2  ;;  %v1669_v23 = vrot.slane %v1668_v16, 2  ;;  %v1997_v30 = vrot.slane %v1995_v26, 1  ;;  %v3958_v2 = vld [vmem:[%s5023_s1 + $0xc0] sm:$0xff]  ;;  %v3952_v16 = vld [vmem:[%s5023_s1 + $0x90] sm:$0xff] }
  0x4a   : >> { %1316 = vrot.lane.b32.xlu0 %v1315_v22, %s4188_s30  ;;  %v3934_v22 = vld [vmem:[%s5023_s1] sm:$0xff]  ;;  %880 = vmatpush.bf16.msrb.mxu0 %v3946_v53  ;;  %v2016_v9 = vrot.slane %v2014_v4, 2  ;;  %v2370_v19 = vrot.slane %v2368_v13, 2  ;;  %v3769_v26 = vld [vmem:[%s4253_s28 + $0x34] sm:$0x1]  ;;  %v3990_v13 = vld [vmem:[%s5023_s1 + $0x1c8] sm:$0xff] }
  0x4b   : >> { %v1998_v35 = vor.u32 %v1997_v30, %v1993_v29  ;;  %892 = vmatpush.bf16.msrb.mxu1 %v3955_v54  ;;  %v3951_v29 = vld [vmem:[%s5023_s1 + $0x88] sm:$0xff]  ;;  %v2381_v30 = vunpack.c.l.b16 %v3769_v26 }
  0x4c   : >> { %v4010_v26 = vld [vmem:[%s5023_s1 + $0x268] sm:$0xff] }
  0x4d   : >> { %870 = vmatpush.bf16.msrb.mxu3 %v3935_v14 }
  0x4e   : >> { %881 = vmatpush.bf16.msrb.mxu0 %v3945_v60 }
  0x4f   : >> { %1335 = vrot.lane.b32.xlu2 %v1334_v52, %s4187_s29  ;;  %v862_v52 = vsel %vm644_vm0, %v832_v47, 0  ;;  %893 = vmatpush.bf16.msrb.mxu1 %v3954_v61  ;;  %v3765_v47 = vld [vmem:[%s4253_s28 + $0x30] sm:$0x7] }
  0x50   : >> { %908 = vmatpush.bf16.msrb.mxu2 %v862_v52  ;;  %v2344_v50 = vunpack.c.l.b16 %v3765_v47  ;;  %v3159_v52 = vld [vmem:[%s5023_s1 + $0x278] sm:$0x3] }
  0x51   : >> { %1297 = vrot.lane.b32.xlu1 %v1296_v48, %s4190_s5  ;;  %871 = vmatpush.bf16.msrb.mxu3 %v3934_v22  ;;  %v1659_v48 = vrot.slane %v1657_v45, 1  ;;  %v4004_v47 = vld [vmem:[%s5023_s1 + $0x238] sm:$0xff] }
  0x52   : >> { %1291 = vrot.lane.b32.xlu0 %v1290_v24, %s4192_s7  ;;  %v1660_v24 = vshll.u32 %v1655_v40, 16  ;;  %882 = vmatpush.bf16.msrb.mxu0 %v3944_v5  ;;  %v3950_v40 = vld [vmem:[%s5023_s1 + $0x80] sm:$0xff]  ;;  %v2345_v53 = vpack.c.b16 %v2344_v50, %v2344_v50 }
  0x54   : >> { %v1662_v49 = vrot.slane %v1660_v24, 2  ;;  %909 = vmatpush.bf16.msrb.mxu2 %v3959_v58  ;;  %v1158_v58 = vunpack.c.l.b16 %v3159_v52  ;;  %v2347_v60 = vshrl.u32 %v2345_v53, 16 }
  0x56   : >> { %v1663_v55 = vor.u32 %v1662_v49, %v1659_v48  ;;  %883 = vmatpush.bf16.msrb.mxu0 %v3943_v15  ;;  %v4000_v15 = vld [vmem:[%s5023_s1 + $0x218] sm:$0xff] }
  0x57   : >> { %1310 = vrot.lane.b32.xlu2 %v1309_v12, %s4191_s6  ;;  %v2365_v12 = vshrl.u32 %v2363_v7, 16  ;;  %v4009_v7 = vld [vmem:[%s5023_s1 + $0x260] sm:$0xff] }
  0x58   : >> { %910 = vmatpush.bf16.msrb.mxu2 %v3958_v2  ;;  %v1185_v2 = vpack.c.b16 %v1158_v58, %v1158_v58  ;;  %v4024_v58 = vld [vmem:[%s5023_s1 + $0x2dc] sm:$0xff] }
  0x59   : >> { %1689 = vrot.lane.b32.xlu1 %v1688_v8, %s4187_s29  ;;  %v2013_v8 = vrot.slane %v2011_v3, 1  ;;  %v2367_v18 = vrot.slane %v2365_v12, 1 }
  0x5a   : >> { %1645 = vrot.lane.b32.xlu0 %v1644_v6, %s4192_s7  ;;  %v3953_v6 = vld [vmem:[%s5023_s1 + $0x98] sm:$0xff]  ;;  %884 = vmatpush.bf16.msrb.mxu0 %v3942_v28 }
  0x5b   : >> { %894 = vmatpush.bf16.msrb.mxu1 %v3953_v6  ;;  %v2017_v14 = vor.u32 %v2016_v9, %v2013_v8  ;;  %v2371_v22 = vor.u32 %v2370_v19, %v2367_v18  ;;  %v4001_v6 = vld [vmem:[%s5023_s1 + $0x220] sm:$0xff]  ;;  %v3988_v28 = vld [vmem:[%s5023_s1 + $0x1b8] sm:$0xff] }
  0x5c   : >> { %v207_v18 = vld [vmem:[%s4253_s28] sm:$0x3] }
  0x5d   : >> { %v3989_v19 = vld [vmem:[%s5023_s1 + $0x1c0] sm:$0xff] }
  0x5f   : >> { %1651 = vrot.lane.b32.xlu2 %v1650_v27, %s4190_s5  ;;  %895 = vmatpush.bf16.msrb.mxu1 %v3952_v16  ;;  %v3768_v27 = vld [vmem:[%s4253_s28 + $0x30] sm:$0xc]  ;;  %v4008_v16 = vld [vmem:[%s5023_s1 + $0x258] sm:$0xff] }
  0x61   : >> { %1683 = vrot.lane.b32.xlu1 %v1682_v25, %s4189_s4  ;;  %v2033_v25 = vshll.u32 %v2028_v20, 16 }
  0x62   : >> { %1670 = vrot.lane.b32.xlu0 %v1669_v23, %s4188_s30  ;;  %v2030_v23 = vshrl.u32 %v2028_v20, 16 }
  0x63   : >> { %v2035_v34 = vrot.slane %v2033_v25, 3  ;;  %896 = vmatpush.bf16.msrb.mxu1 %v3951_v29 }
  0x64   : >> { %v2032_v33 = vrot.slane %v2030_v23, 2  ;;  %v4007_v23 = vld [vmem:[%s5023_s1 + $0x250] sm:$0xff] }
  0x66   : >> { %v2036_v38 = vor.u32 %v2035_v34, %v2032_v33  ;;  %v3987_v33 = vld [vmem:[%s5023_s1 + $0x1b0] sm:$0xff] }
  0x67   : >> { %1664 = vrot.lane.b32.xlu2 %v1663_v55, %s4191_s6  ;;  %897 = vmatpush.bf16.msrb.mxu1 %v3950_v40 }
  0x69   : >> { %2005 = vrot.lane.b32.xlu1 %v2004_v31, %s4190_s5  ;;  %v2375_v31 = vunpack.c.l.b16 %v3768_v27 }
  0x6a   : >> { %1999 = vrot.lane.b32.xlu0 %v1998_v35, %s4192_s7  ;;  %v3770_v35 = vld [vmem:[%s4253_s28 + $0x30] sm:$0x8] }
  0x6b   : >> { %v2382_v36 = vpack.c.b16 %v2381_v30, %v2375_v31  ;;  %v2394_v39 = vunpack.c.l.b16 %v3770_v35  ;;  %v2376_v46 = vpack.c.b16 %v2375_v31, %v2375_v31  ;;  %v4006_v31 = vld [vmem:[%s5023_s1 + $0x248] sm:$0xff] }
  0x6d   : >> { %v2384_v41 = vshrl.u32 %v2382_v36, 16  ;;  %v2387_v42 = vshll.u32 %v2382_v36, 16  ;;  %v2395_v43 = vpack.c.b16 %v2381_v30, %v2394_v39  ;;  %v2377_v49 = vrot.slane %v2376_v46, 2  ;;  %v3998_v30 = vld [vmem:[%s5023_s1 + $0x208] sm:$0xff]  ;;  %v3997_v36 = vld [vmem:[%s5023_s1 + $0x200] sm:$0xff] }
  0x6e   : >> { %v3325_v46 = vld [vmem:[%s5023_s1 + $0x34c] sm:$0x3] }
  0x6f   : >> { %2018 = vrot.lane.b32.xlu2 %v2017_v14, %s4191_s6  ;;  %v2386_v44 = vrot.slane %v2384_v41, 2  ;;  %v2389_v45 = vrot.slane %v2387_v42, 3  ;;  %v2396_v24 = vrot.slane %v2395_v43, 3  ;;  %v1215_v14 = vsel %vm644_vm0, %v1185_v2, 0  ;;  %v4005_v41 = vld [vmem:[%s5023_s1 + $0x240] sm:$0xff]  ;;  %v3986_v43 = vld [vmem:[%s5023_s1 + $0x1a8] sm:$0xff] }
  0x71   : >> { %2043 = vrot.lane.b32.xlu1 %v2042_v51, %s4187_s29  ;;  %v2390_v37 = vor.u32 %v2389_v45, %v2386_v44  ;;  %v3993_v51 = vld [vmem:[%s5023_s1 + $0x1e0] sm:$0xff]  ;;  %v4019_v45 = vld [vmem:[%s5023_s1 + $0x2b4] sm:$0xff] }
  0x72   : >> { %2024 = vrot.lane.b32.xlu0 %v2023_v56, %s4188_s30  ;;  %v2349_v56 = vshll.u32 %v2345_v53, 16  ;;  %v4025_v53 = vld [vmem:[%s5023_s1 + $0x2e4] sm:$0xff] }
  0x74   : >> { %v2351_v61 = vrot.slane %v2349_v56, 1 }
  0x76   : >> { %v2352_v62 = vor.u32 %v2351_v61, %v2347_v60  ;;  %v4035_v60 = vld [vmem:[%s5023_s1 + $0x334] sm:$0xff] }
  0x77   : >> { %2037 = vrot.lane.b32.xlu2 %v2036_v38, %s4189_s4  ;;  %v4027_v38 = vld [vmem:[%s5023_s1 + $0x2f4] sm:$0xff] }
  0x79   : >> { %2372 = vrot.lane.b32.xlu1 %v2371_v22, %s4191_s6  ;;  %v386_v32 = vpop.permute.xlu2 %385  ;;  %v3999_v22 = vld [vmem:[%s5023_s1 + $0x210] sm:$0xff] }
  0x7a   : >> { %2359 = vrot.lane.b32.xlu0 %v2358_v21, %s4190_s5 }
  0x7f   : >> { %2378 = vrot.lane.b32.xlu2 %v2377_v49, %s4188_s30  ;;  %v1512_v49 = vunpack.c.l.b16 %v3325_v46  ;;  %v4029_v46 = vld [vmem:[%s5023_s1 + $0x304] sm:$0xff] }
  0x81   : >> { %2397 = vrot.lane.b32.xlu1 %v2396_v24, %s4187_s29  ;;  %v367_v48 = vpop.permute.xlu2 %366  ;;  %v3996_v24 = vld [vmem:[%s5023_s1 + $0x1f8] sm:$0xff]  ;;  %v1539_v56 = vpack.c.b16 %v1512_v49, %v1512_v49  ;;  %v4049_v49 = vld [vmem:[%s5023_s1 + $0x3a8] sm:$0xff] }
  0x82   : >> { %2391 = vrot.lane.b32.xlu0 %v2390_v37, %s4189_s4  ;;  %v414_v63 = vsel %vm270_vm2, %v2829_v59, %v367_v48  ;;  %v4026_v37 = vld [vmem:[%s5023_s1 + $0x2ec] sm:$0xff] }
  0x83   : >> { %v4018_v48 = vld [vmem:[%s5023_s1 + $0x2ac] sm:$0xff] }
  0x87   : >> { %2353 = vrot.lane.b32.xlu2 %v2352_v62, %s4192_s7  ;;  %v4002_v62 = vld [vmem:[%s5023_s1 + $0x228] sm:$0xff] }
  0x89   : >> { %v231_v3 = vpop.permute.xlu2 %230 }
  0x8b   : >> { %v411_v54 = vpop.permute.xlu1 %410 }
  0x8c   : >> { %v392_v55 = vpop.permute.xlu0 %391  ;;  %2993 = vmatmul.msk.bf16.vlgmr.msra.gmra.mxu3 %vm641_vm1, %v411_v54 }
  0x8d   : >> { %1217 = vmatpush.bf16.msra.mxu3 %v3993_v51  ;;  %v3995_v51 = vld [vmem:[%s5023_s1 + $0x1f0] sm:$0xff] }
  0x91   : >> { %1218 = vmatpush.bf16.msra.mxu3 %v3992_v57  ;;  %v244_v29 = vpop.permute.xlu2 %243  ;;  %v3994_v57 = vld [vmem:[%s5023_s1 + $0x1e8] sm:$0xff] }
  0x93   : >> { %v373_v5 = vpop.permute.xlu1 %372 }
  0x94   : >> { %v405_v4 = vpop.permute.xlu0 %404  ;;  %v419_v9 = vsel %vm278_vm4, %v373_v5, %v386_v32  ;;  %v416_v10 = vsel %vm274_vm5, %v414_v63, %v373_v5  ;;  %v280_v32 = vsel %vm278_vm4, %v231_v3, %v244_v29  ;;  %v3100_v63 = vld [vmem:[%s4253_s28 + $0x10] sm:$0x3]  ;;  %v4061_v29 = vld [vmem:[%s5023_s1 + $0x408] sm:$0xff] }
  0x95   : >> { %v424_v8 = vsel %vm285_vm3, %v392_v55, %v405_v4  ;;  %1219 = vmatpush.bf16.msra.mxu3 %v3991_v1  ;;  %656 = vmatmul.bf16.vlgmr.msra.gmra.mxu0 %v416_v10  ;;  %v421_v11 = vsel %vm281_vm6, %v419_v9, %v392_v55  ;;  %v4017_v55 = vld [vmem:[%s5023_s1 + $0x2a4] sm:$0xff]  ;;  %v4016_v1 = vld [vmem:[%s5023_s1 + $0x29c] sm:$0xff]  ;;  %v4034_v9 = vld [vmem:[%s5023_s1 + $0x32c] sm:$0xff] }
  0x96   : >> { %v426_v12 = vsel %vm288_vm7, %v424_v8, %v411_v54  ;;  %669 = vmatmul.bf16.vlgmr.msra.gmra.mxu1 %v421_v11  ;;  %1243 = vmatpush.bf16.msra.mxu0 %v4009_v7  ;;  %v4003_v54 = vld [vmem:[%s5023_s1 + $0x230] sm:$0xff] }
  0x97   : >> { %682 = vmatmul.bf16.vlgmr.msra.gmra.mxu2 %v426_v12  ;;  %1261 = vmatpush.bf16.msra.mxu1 %v1215_v14  ;;  %v4023_v7 = vld [vmem:[%s5023_s1 + $0x2d4] sm:$0xff]  ;;  %v4037_v12 = vld [vmem:[%s5023_s1 + $0x344] sm:$0xff]  ;;  %v4022_v14 = vld [vmem:[%s5023_s1 + $0x2cc] sm:$0xff] }
  0x98   : >> { %1230 = vmatpush.bf16.msra.mxu2 %v4001_v6 }
  0x99   : >> { %1220 = vmatpush.bf16.msra.mxu3 %v3990_v13  ;;  %v963_v44 = vpop.permute.xlu2 %962  ;;  %v4015_v13 = vld [vmem:[%s5023_s1 + $0x294] sm:$0xff] }
  0x9a   : >> { %1244 = vmatpush.bf16.msra.mxu0 %v4008_v16  ;;  %v4033_v16 = vld [vmem:[%s5023_s1 + $0x324] sm:$0xff] }
  0x9b   : >> { %v269_v21 = vpop.permute.xlu1 %268  ;;  %1262 = vmatpush.bf16.msra.mxu1 %v4011_v17  ;;  %v4036_v17 = vld [vmem:[%s5023_s1 + $0x33c] sm:$0xff] }
  0x9c   : >> { %1231 = vmatpush.bf16.msra.mxu2 %v4000_v15  ;;  %v225_v20 = vpop.permute.xlu0 %224 }
  0x9d   : >> { %v273_v25 = vsel %vm270_vm2, %v207_v18, %v225_v20  ;;  %1221 = vmatpush.bf16.msra.mxu3 %v3989_v19  ;;  %v4014_v18 = vld [vmem:[%s5023_s1 + $0x28c] sm:$0xff]  ;;  %v4021_v20 = vld [vmem:[%s5023_s1 + $0x2c4] sm:$0xff] }
  0x9e   : >> { %v276_v27 = vsel %vm274_vm5, %v273_v25, %v231_v3  ;;  %1245 = vmatpush.bf16.msra.mxu0 %v4007_v23  ;;  %v1569_v3 = vsel %vm644_vm0, %v1539_v56, 0  ;;  %v4053_v19 = vld [vmem:[%s5023_s1 + $0x3c8] sm:$0xff]  ;;  %v4032_v23 = vld [vmem:[%s5023_s1 + $0x31c] sm:$0xff] }
  0x9f   : >> { %872 = vmatmul.bf16.vlgmr.msrb.gmra.mxu3 %v276_v27  ;;  %1263 = vmatpush.bf16.msra.mxu1 %v4010_v26  ;;  %v4013_v25 = vld [vmem:[%s5023_s1 + $0x284] sm:$0xff]  ;;  %v4020_v27 = vld [vmem:[%s5023_s1 + $0x2bc] sm:$0xff] }
  0xa0   : >> { %1232 = vmatpush.bf16.msra.mxu2 %v3999_v22  ;;  %v4052_v26 = vld [vmem:[%s5023_s1 + $0x3c0] sm:$0xff] }
  0xa1   : >> { %1222 = vmatpush.bf16.msra.mxu3 %v3988_v28  ;;  %v976_v59 = vpop.permute.xlu2 %975  ;;  %v4031_v28 = vld [vmem:[%s5023_s1 + $0x314] sm:$0xff] }
  0xa2   : >> { %1246 = vmatpush.bf16.msra.mxu0 %v4006_v31  ;;  %v995_v2 = vsel %vm285_vm3, %v963_v44, %v976_v59 }
  0xa3   : >> { %v263_v35 = vpop.permute.xlu1 %262 }
  0xa4   : >> { %1233 = vmatpush.bf16.msra.mxu2 %v3998_v30  ;;  %v250_v34 = vpop.permute.xlu0 %249  ;;  %v3266_v30 = vld [vmem:[%s4253_s28 + $0x18] sm:$0x3] }
  0xa5   : >> { %v287_v39 = vsel %vm285_vm3, %v250_v34, %v263_v35  ;;  %v283_v40 = vsel %vm281_vm6, %v280_v32, %v250_v34  ;;  %1223 = vmatpush.bf16.msra.mxu3 %v3987_v33  ;;  %v4012_v32 = vld [vmem:[%s5023_s1 + $0x27c] sm:$0xff]  ;;  %v4045_v34 = vld [vmem:[%s5023_s1 + $0x388] sm:$0xff] }
  0xa6   : >> { %885 = vmatmul.bf16.vlgmr.msrb.gmra.mxu0 %v283_v40  ;;  %v290_v42 = vsel %vm288_vm7, %v287_v39, %v269_v21  ;;  %v4051_v33 = vld [vmem:[%s5023_s1 + $0x3b8] sm:$0xff]  ;;  %v4030_v39 = vld [vmem:[%s5023_s1 + $0x30c] sm:$0xff]  ;;  %v4060_v40 = vld [vmem:[%s5023_s1 + $0x400] sm:$0xff] }
  0xa7   : >> { %3098 = vmatmul.msk.bf16.vlgmr.msrb.gmra.mxu2 %vm641_vm1, %v269_v21  ;;  %898 = vmatmul.bf16.vlgmr.msrb.gmra.mxu1 %v290_v42 }
  0xa8   : >> { %1234 = vmatpush.bf16.msra.mxu2 %v3997_v36  ;;  %1584 = vmatpush.bf16.msrb.mxu1 %v4027_v38  ;;  %v3491_v38 = vld [vmem:[%s5023_s1 + $0x420] sm:$0x3] }
  0xa9   : >> { %1247 = vmatpush.bf16.msra.mxu0 %v4005_v41  ;;  %1224 = vmatpush.bf16.msra.mxu3 %v3986_v43  ;;  %v4673_v15 = vpop.permute.xlu2 %1335 }
  0xab   : >> { %v957_v52 = vpop.permute.xlu1 %956 }
  0xac   : >> { %1235 = vmatpush.bf16.msra.mxu2 %v3996_v24  ;;  %v944_v50 = vpop.permute.xlu0 %943  ;;  %1585 = vmatpush.bf16.msrb.mxu1 %v4026_v37  ;;  %v4050_v24 = vld [vmem:[%s5023_s1 + $0x3b0] sm:$0xff]  ;;  %v4044_v37 = vld [vmem:[%s5023_s1 + $0x380] sm:$0xff] }
  0xad   : >> { %1571 = vmatpush.bf16.msrb.mxu3 %v4019_v45  ;;  %1248 = vmatpush.bf16.msra.mxu0 %v4004_v47  ;;  %v990_v61 = vsel %vm278_vm4, %v944_v50, %v957_v52  ;;  %v4059_v47 = vld [vmem:[%s5023_s1 + $0x3f8] sm:$0xff] }
  0xae   : >> { %v992_v4 = vsel %vm281_vm6, %v990_v61, %v963_v44  ;;  %v1866_v44 = vunpack.c.l.b16 %v3491_v38  ;;  %v4028_v52 = vld [vmem:[%s5023_s1 + $0x2fc] sm:$0xff]  ;;  %v4084_v38 = vld [vmem:[%s5023_s1 + $0x4c4] sm:$0xff] }
  0xaf   : >> { %v4063_v61 = vld [vmem:[%s5023_s1 + $0x418] sm:$0xff] }
  0xb0   : >> { %1236 = vmatpush.bf16.msra.mxu2 %v3995_v51  ;;  %1586 = vmatpush.bf16.msrb.mxu1 %v4025_v53  ;;  %v4043_v51 = vld [vmem:[%s5023_s1 + $0x378] sm:$0xff]  ;;  %v4058_v53 = vld [vmem:[%s5023_s1 + $0x3f0] sm:$0xff] }
  0xb1   : >> { %1572 = vmatpush.bf16.msrb.mxu3 %v4018_v48  ;;  %1249 = vmatpush.bf16.msra.mxu0 %v4003_v54  ;;  %v1311_v31 = vpop.permute.xlu2 %1310  ;;  %v1893_v48 = vpack.c.b16 %v1866_v44, %v1866_v44  ;;  %v4066_v44 = vld [vmem:[%s5023_s1 + $0x434] sm:$0xff] }
  0xb3   : >> { %v982_v6 = vpop.permute.xlu1 %981  ;;  %v1923_v56 = vsel %vm644_vm0, %v1893_v48, 0  ;;  %v4082_v48 = vld [vmem:[%s5023_s1 + $0x4b4] sm:$0xff] }
  0xb4   : >> { %1237 = vmatpush.bf16.msra.mxu2 %v3994_v57  ;;  %v938_v5 = vpop.permute.xlu0 %937  ;;  %1587 = vmatpush.bf16.msrb.mxu1 %v4024_v58  ;;  %v997_v11 = vsel %vm288_vm7, %v995_v2, %v982_v6  ;;  %v4048_v57 = vld [vmem:[%s5023_s1 + $0x3a0] sm:$0xff]  ;;  %v4042_v58 = vld [vmem:[%s5023_s1 + $0x370] sm:$0xff] }
  0xb5   : >> { %1573 = vmatpush.bf16.msrb.mxu3 %v4017_v55  ;;  %v985_v8 = vsel %vm270_vm2, %v3100_v63, %v938_v5  ;;  %1250 = vmatpush.bf16.msra.mxu0 %v4002_v62  ;;  %v4047_v63 = vld [vmem:[%s5023_s1 + $0x398] sm:$0xff]  ;;  %v3657_v2 = vld [vmem:[%s5023_s1 + $0x4f4] sm:$0x3] }
  0xb6   : >> { %v987_v10 = vsel %vm274_vm5, %v985_v8, %v944_v50  ;;  %v4062_v5 = vld [vmem:[%s5023_s1 + $0x410] sm:$0xff]  ;;  %v2220_v8 = vunpack.c.l.b16 %v3657_v2 }
  0xb7   : >> { %1238 = vmatmul.bf16.vlgmr.msra.gmra.mxu2 %v992_v4  ;;  %1225 = vmatmul.bf16.vlgmr.msra.gmra.mxu3 %v987_v10  ;;  %v4087_v10 = vld [vmem:[%s5023_s1 + $0x4dc] sm:$0xff]  ;;  %v4093_v2 = vld [vmem:[%s5023_s1 + $0x510] sm:$0xff] }
  0xb8   : >> { %1597 = vmatpush.bf16.msrb.mxu2 %v4035_v60  ;;  %1588 = vmatpush.bf16.msrb.mxu1 %v4023_v7  ;;  %v4057_v60 = vld [vmem:[%s5023_s1 + $0x3e8] sm:$0xff]  ;;  %v4046_v7 = vld [vmem:[%s5023_s1 + $0x390] sm:$0xff] }
  0xb9   : >> { %1615 = vmatpush.bf16.msrb.mxu0 %v1569_v3  ;;  %1574 = vmatpush.bf16.msrb.mxu3 %v4016_v1  ;;  %v4747_v50 = vpop.permute.xlu2 %1651  ;;  %v4041_v1 = vld [vmem:[%s5023_s1 + $0x368] sm:$0xff]  ;;  %v4056_v3 = vld [vmem:[%s5023_s1 + $0x3e0] sm:$0xff] }
  0xba   : >> { %1251 = vmatmul.bf16.vlgmr.msra.gmra.mxu0 %v997_v11  ;;  %3264 = vmatmul.msk.bf16.vlgmr.msra.gmra.mxu1 %vm641_vm1, %v982_v6  ;;  %v4071_v6 = vld [vmem:[%s5023_s1 + $0x45c] sm:$0xff] }
  0xbb   : >> { %v1330_v22 = vpop.permute.xlu1 %1329 }
  0xbc   : >> { %1598 = vmatpush.bf16.msrb.mxu2 %v4034_v9  ;;  %1589 = vmatpush.bf16.msrb.mxu1 %v4022_v14  ;;  %v1317_v21 = vpop.permute.xlu0 %1316  ;;  %v4040_v9 = vld [vmem:[%s5023_s1 + $0x360] sm:$0xff]  ;;  %v4070_v14 = vld [vmem:[%s5023_s1 + $0x454] sm:$0xff] }
  0xbd   : >> { %1616 = vmatpush.bf16.msrb.mxu0 %v4037_v12  ;;  %1575 = vmatpush.bf16.msrb.mxu3 %v4015_v13  ;;  %v1349_v54 = vsel %vm285_vm3, %v1317_v21, %v1330_v22  ;;  %v4055_v13 = vld [vmem:[%s5023_s1 + $0x3d8] sm:$0xff]  ;;  %v4069_v22 = vld [vmem:[%s5023_s1 + $0x44c] sm:$0xff] }
  0xbe   : >> { %v1351_v59 = vsel %vm288_vm7, %v1349_v54, %v4673_v15 }
  0xc0   : >> { %1599 = vmatpush.bf16.msrb.mxu2 %v4033_v16  ;;  %1590 = vmatpush.bf16.msrb.mxu1 %v4021_v20  ;;  %v4054_v20 = vld [vmem:[%s5023_s1 + $0x3d0] sm:$0xff] }
  0xc1   : >> { %1617 = vmatpush.bf16.msrb.mxu0 %v4036_v17  ;;  %1576 = vmatpush.bf16.msrb.mxu3 %v4014_v18  ;;  %v1665_v4 = vpop.permute.xlu2 %1664  ;;  %v4039_v17 = vld [vmem:[%s5023_s1 + $0x358] sm:$0xff] }
  0xc2   : >> { %v1698_v11 = vsel %vm278_vm4, %v4747_v50, %v1665_v4 }
  0xc3   : >> { %v1298_v36 = vpop.permute.xlu1 %1297 }
  0xc4   : >> { %1600 = vmatpush.bf16.msrb.mxu2 %v4032_v23  ;;  %1591 = vmatpush.bf16.msrb.mxu1 %v4020_v27  ;;  %v1292_v35 = vpop.permute.xlu0 %1291  ;;  %v1344_v42 = vsel %vm278_vm4, %v1298_v36, %v1311_v31  ;;  %v4085_v31 = vld [vmem:[%s5023_s1 + $0x4cc] sm:$0xff] }
  0xc5   : >> { %1938 = vmatpush.bf16.msra.mxu0 %v4053_v19  ;;  %1577 = vmatpush.bf16.msrb.mxu3 %v4013_v25  ;;  %v1339_v41 = vsel %vm270_vm2, %v3266_v30, %v1292_v35  ;;  %v1346_v45 = vsel %vm281_vm6, %v1344_v42, %v1317_v21  ;;  %v4086_v19 = vld [vmem:[%s5023_s1 + $0x4d4] sm:$0xff]  ;;  %v3432_v21 = vld [vmem:[%s4253_s28 + $0x20] sm:$0x3]  ;;  %v4077_v42 = vld [vmem:[%s5023_s1 + $0x48c] sm:$0xff] }
  0xc6   : >> { %v1341_v43 = vsel %vm274_vm5, %v1339_v41, %v1298_v36  ;;  %v4078_v35 = vld [vmem:[%s5023_s1 + $0x494] sm:$0xff]  ;;  %v4088_v36 = vld [vmem:[%s5023_s1 + $0x4e4] sm:$0xff] }
  0xc8   : >> { %1601 = vmatpush.bf16.msrb.mxu2 %v4031_v28  ;;  %1951 = vmatpush.bf16.msra.mxu1 %v4061_v29  ;;  %v4079_v28 = vld [vmem:[%s5023_s1 + $0x49c] sm:$0xff]  ;;  %v4089_v29 = vld [vmem:[%s5023_s1 + $0x4ec] sm:$0xff] }
  0xc9   : >> { %1939 = vmatpush.bf16.msra.mxu0 %v4052_v26  ;;  %1578 = vmatpush.bf16.msrb.mxu3 %v4012_v32  ;;  %v4038_v26 = vld [vmem:[%s5023_s1 + $0x350] sm:$0xff]  ;;  %v4068_v32 = vld [vmem:[%s5023_s1 + $0x444] sm:$0xff] }
  0xca   : >> { %1592 = vmatmul.bf16.vlgmr.msrb.gmra.mxu1 %v1346_v45  ;;  %3430 = vmatmul.msk.bf16.vlgmr.msrb.gmra.mxu0 %vm641_vm1, %v4673_v15  ;;  %v2247_v15 = vpack.c.b16 %v2220_v8, %v2220_v8  ;;  %v4096_v45 = vld [vmem:[%s5023_s1 + $0x528] sm:$0xff] }
  0xcb   : >> { %v1690_v62 = vpop.permute.xlu1 %1689 }
  0xcc   : >> { %1602 = vmatpush.bf16.msrb.mxu2 %v4030_v39  ;;  %1952 = vmatpush.bf16.msra.mxu1 %v4060_v40  ;;  %v1646_v55 = vpop.permute.xlu0 %1645  ;;  %v2277_v23 = vsel %vm644_vm0, %v2247_v15, 0  ;;  %v4067_v39 = vld [vmem:[%s5023_s1 + $0x43c] sm:$0xff]  ;;  %v4097_v40 = vld [vmem:[%s5023_s1 + $0x530] sm:$0xff] }
  0xcd   : >> { %1940 = vmatpush.bf16.msra.mxu0 %v4051_v33  ;;  %1925 = vmatpush.bf16.msra.mxu3 %v4045_v34  ;;  %v1693_v27 = vsel %vm270_vm2, %v3432_v21, %v1646_v55  ;;  %v4844_v33 = vpop.permute.xlu2 %2018  ;;  %v4081_v55 = vld [vmem:[%s5023_s1 + $0x4ac] sm:$0xff]  ;;  %v4091_v15 = vld [vmem:[%s5023_s1 + $0x500] sm:$0xff] }
  0xce   : >> { %1579 = vmatmul.bf16.vlgmr.msrb.gmra.mxu3 %v1341_v43  ;;  %v1695_v34 = vsel %vm274_vm5, %v1693_v27, %v4747_v50  ;;  %v4083_v43 = vld [vmem:[%s5023_s1 + $0x4bc] sm:$0xff] }
  0xcf   : >> { %v4095_v50 = vld [vmem:[%s5023_s1 + $0x520] sm:$0xff] }
  0xd0   : >> { %1603 = vmatpush.bf16.msrb.mxu2 %v4029_v46  ;;  %1953 = vmatpush.bf16.msra.mxu1 %v4059_v47  ;;  %v3823_v47 = vld [vmem:[%s5023_s1 + $0x5c8] sm:$0x3] }
  0xd1   : >> { %1941 = vmatpush.bf16.msra.mxu0 %v4050_v24  ;;  %1926 = vmatpush.bf16.msra.mxu3 %v4044_v37  ;;  %v4076_v37 = vld [vmem:[%s5023_s1 + $0x484] sm:$0xff] }
  0xd3   : >> { %v1684_v18 = vpop.permute.xlu1 %1683 }
  0xd4   : >> { %1604 = vmatpush.bf16.msrb.mxu2 %v4028_v52  ;;  %1954 = vmatpush.bf16.msra.mxu1 %v4058_v53  ;;  %v1671_v12 = vpop.permute.xlu0 %1670  ;;  %v4075_v52 = vld [vmem:[%s5023_s1 + $0x47c] sm:$0xff]  ;;  %v3598_v53 = vld [vmem:[%s4253_s28 + $0x28] sm:$0x3] }
  0xd5   : >> { %1942 = vmatpush.bf16.msra.mxu0 %v4049_v49  ;;  %1927 = vmatpush.bf16.msra.mxu3 %v4043_v51  ;;  %v1700_v16 = vsel %vm281_vm6, %v1698_v11, %v1671_v12  ;;  %v1703_v25 = vsel %vm285_vm3, %v1671_v12, %v1684_v18  ;;  %v2038_v46 = vpop.permute.xlu2 %2037  ;;  %v4065_v49 = vld [vmem:[%s5023_s1 + $0x42c] sm:$0xff]  ;;  %v2574_v51 = vunpack.c.l.b16 %v3823_v47  ;;  %v4103_v11 = vld [vmem:[%s5023_s1 + $0x560] sm:$0xff] }
  0xd6   : >> { %v1705_v30 = vsel %vm288_vm7, %v1703_v25, %v1690_v62  ;;  %v4072_v12 = vld [vmem:[%s5023_s1 + $0x464] sm:$0xff]  ;;  %v4101_v25 = vld [vmem:[%s5023_s1 + $0x550] sm:$0xff] }
  0xd7   : >> { %1605 = vmatmul.bf16.vlgmr.msrb.gmra.mxu2 %v1351_v59 }
  0xd8   : >> { %1969 = vmatpush.bf16.msra.mxu2 %v1923_v56  ;;  %1955 = vmatpush.bf16.msra.mxu1 %v4057_v60  ;;  %v4064_v56 = vld [vmem:[%s5023_s1 + $0x424] sm:$0xff]  ;;  %v2601_v60 = vpack.c.b16 %v2574_v51, %v2574_v51 }
  0xd9   : >> { %1943 = vmatpush.bf16.msra.mxu0 %v4048_v57  ;;  %1928 = vmatpush.bf16.msra.mxu3 %v4042_v58  ;;  %v4094_v57 = vld [vmem:[%s5023_s1 + $0x518] sm:$0xff]  ;;  %v4105_v58 = vld [vmem:[%s5023_s1 + $0x570] sm:$0xff] }
  0xdb   : >> { %v4864_v41 = vpop.permute.xlu1 %2005 }
  0xdc   : >> { %1970 = vmatpush.bf16.msra.mxu2 %v4063_v61  ;;  %1956 = vmatpush.bf16.msra.mxu1 %v4056_v3  ;;  %v2000_v24 = vpop.permute.xlu0 %1999  ;;  %v4074_v61 = vld [vmem:[%s5023_s1 + $0x474] sm:$0xff] }
  0xdd   : >> { %1944 = vmatpush.bf16.msra.mxu0 %v4047_v63  ;;  %1929 = vmatpush.bf16.msra.mxu3 %v4041_v1  ;;  %v2047_v59 = vsel %vm270_vm2, %v3598_v53, %v2000_v24  ;;  %v4080_v63 = vld [vmem:[%s5023_s1 + $0x4a4] sm:$0xff]  ;;  %v4923_v4 = vpop.permute.xlu2 %2378 }
  0xde   : >> { %v2049_v1 = vsel %vm274_vm5, %v2047_v59, %v4864_v41 }
  0xe0   : >> { %1971 = vmatpush.bf16.msra.mxu2 %v4062_v5  ;;  %1957 = vmatpush.bf16.msra.mxu1 %v4055_v13  ;;  %v4104_v5 = vld [vmem:[%s5023_s1 + $0x568] sm:$0xff]  ;;  %v2052_v13 = vsel %vm278_vm4, %v4864_v41, %v4844_v33  ;;  %v4099_v33 = vld [vmem:[%s5023_s1 + $0x540] sm:$0xff] }
  0xe1   : >> { %1945 = vmatpush.bf16.msra.mxu0 %v4046_v7  ;;  %1930 = vmatpush.bf16.msra.mxu3 %v4040_v9  ;;  %v4073_v7 = vld [vmem:[%s5023_s1 + $0x46c] sm:$0xff] }
  0xe2   : >> { %v4092_v9 = vld [vmem:[%s5023_s1 + $0x508] sm:$0xff] }
  0xe3   : >> { %v2044_v54 = vpop.permute.xlu1 %2043 }
  0xe4   : >> { %2279 = vmatpush.bf16.msrb.mxu2 %v4071_v6  ;;  %1946 = vmatmul.bf16.vlgmr.msra.gmra.mxu0 %v1700_v16  ;;  %v2631_v6 = vsel %vm644_vm0, %v2601_v60, 0  ;;  %v4114_v16 = vld [vmem:[%s5023_s1 + $0x5b8] sm:$0xff] }
  0xe5   : >> { %2305 = vmatpush.bf16.msrb.mxu0 %v4087_v10  ;;  %1931 = vmatpush.bf16.msra.mxu3 %v4039_v17  ;;  %v4115_v10 = vld [vmem:[%s5023_s1 + $0x5c0] sm:$0xff]  ;;  %v4102_v17 = vld [vmem:[%s5023_s1 + $0x558] sm:$0xff]  ;;  %v2354_v21 = vpop.permute.xlu2 %2353 }
  0xe6   : >> { %1958 = vmatpush.bf16.msra.mxu1 %v4054_v20  ;;  %v3764_v20 = vld [vmem:[%s4253_s28 + $0x30] sm:$0x3] }
  0xe7   : >> { %3596 = vmatmul.msk.bf16.vlgmr.msra.gmra.mxu2 %vm641_vm1, %v1690_v62  ;;  %v2025_v62 = vpop.permute.xlu0 %2024 }
  0xe8   : >> { %2280 = vmatpush.bf16.msrb.mxu2 %v4070_v14  ;;  %v2057_v3 = vsel %vm285_vm3, %v2025_v62, %v2038_v46  ;;  %v4113_v14 = vld [vmem:[%s5023_s1 + $0x5b0] sm:$0xff]  ;;  %v4106_v46 = vld [vmem:[%s5023_s1 + $0x578] sm:$0xff] }
  0xe9   : >> { %2306 = vmatpush.bf16.msrb.mxu0 %v4086_v19  ;;  %1932 = vmatpush.bf16.msra.mxu3 %v4038_v26  ;;  %v2059_v8 = vsel %vm288_vm7, %v2057_v3, %v2044_v54  ;;  %v2054_v19 = vsel %vm281_vm6, %v2052_v13, %v2025_v62  ;;  %v2401_v26 = vsel %vm270_vm2, %v3764_v20, %v2354_v21 }
  0xea   : >> { %2323 = vmatpush.bf16.msrb.mxu1 %v2277_v23  ;;  %v4090_v23 = vld [vmem:[%s5023_s1 + $0x4f8] sm:$0xff] }
  0xeb   : >> { %1959 = vmatmul.bf16.vlgmr.msra.gmra.mxu1 %v1705_v30  ;;  %v2373_v18 = vpop.permute.xlu1 %2372  ;;  %v4100_v30 = vld [vmem:[%s5023_s1 + $0x548] sm:$0xff] }
  0xec   : >> { %2281 = vmatpush.bf16.msrb.mxu2 %v4069_v22  ;;  %1933 = vmatmul.bf16.vlgmr.msra.gmra.mxu3 %v1695_v34  ;;  %v4112_v22 = vld [vmem:[%s5023_s1 + $0x5a8] sm:$0xff]  ;;  %v4109_v34 = vld [vmem:[%s5023_s1 + $0x590] sm:$0xff] }
  0xed   : >> { %2292 = vmatpush.bf16.msrb.mxu3 %v4079_v28  ;;  %2307 = vmatpush.bf16.msrb.mxu0 %v4085_v31  ;;  %v4111_v28 = vld [vmem:[%s5023_s1 + $0x5a0] sm:$0xff]  ;;  %v4110_v31 = vld [vmem:[%s5023_s1 + $0x598] sm:$0xff] }
  0xee   : >> { %2324 = vmatpush.bf16.msrb.mxu1 %v4089_v29 }
  0xef   : >> { %v2360_v27 = vpop.permute.xlu0 %2359 }
  0xf0   : >> { %2282 = vmatpush.bf16.msrb.mxu2 %v4068_v32  ;;  %v2403_v29 = vsel %vm274_vm5, %v2401_v26, %v2360_v27 }
  0xf1   : >> { %2293 = vmatpush.bf16.msrb.mxu3 %v4078_v35  ;;  %2308 = vmatpush.bf16.msrb.mxu0 %v4084_v38  ;;  %v2406_v38 = vsel %vm278_vm4, %v2360_v27, %v2373_v18 }
  0xf2   : >> { %2325 = vmatpush.bf16.msrb.mxu1 %v4088_v36  ;;  %v4098_v36 = vld [vmem:[%s5023_s1 + $0x538] sm:$0xff] }
  0xf3   : >> { %v2398_v32 = vpop.permute.xlu1 %2397 }
  0xf4   : >> { %2283 = vmatpush.bf16.msrb.mxu2 %v4067_v39  ;;  %v4108_v39 = vld [vmem:[%s5023_s1 + $0x588] sm:$0xff] }
  0xf5   : >> { %2294 = vmatpush.bf16.msrb.mxu3 %v4077_v42  ;;  %2309 = vmatpush.bf16.msrb.mxu0 %v4083_v43  ;;  %v2408_v42 = vsel %vm281_vm6, %v2406_v38, %v4923_v4 }
  0xf6   : >> { %2633 = vmatpush.bf16.msra.mxu1 %v4097_v40 }
  0xf7   : >> { %v2392_v24 = vpop.permute.xlu0 %2391 }
  0xf8   : >> { %2284 = vmatpush.bf16.msrb.mxu2 %v4066_v44  ;;  %v4107_v44 = vld [vmem:[%s5023_s1 + $0x580] sm:$0xff] }
  0xf9   : >> { %2295 = vmatpush.bf16.msrb.mxu3 %v4076_v37  ;;  %2310 = vmatpush.bf16.msrb.mxu0 %v4082_v48 }
  0xfa   : >> { %2634 = vmatpush.bf16.msra.mxu1 %v4096_v45 }
  0xfb   : >> { %3762 = vmatmul.msk.bf16.vlgmr.msrb.gmra.mxu1 %vm641_vm1, %v2044_v54 }
  0xfc   : >> { %2285 = vmatpush.bf16.msrb.mxu2 %v4065_v49 }
  0xfd   : >> { %2296 = vmatpush.bf16.msrb.mxu3 %v4075_v52  ;;  %2311 = vmatpush.bf16.msrb.mxu0 %v4081_v55 }
  0xfe   : >> { %2635 = vmatpush.bf16.msra.mxu1 %v4095_v50  ;;  %v2411_v50 = vsel %vm285_vm3, %v4923_v4, %v2392_v24 }
  0xff   : >> { %v2413_v52 = vsel %vm288_vm7, %v2411_v50, %v2398_v32 }
 0x100   : >> { %2286 = vmatpush.bf16.msrb.mxu2 %v4064_v56 }
 0x101   : >> { %2297 = vmatpush.bf16.msrb.mxu3 %v4074_v61  ;;  %2312 = vmatpush.bf16.msrb.mxu0 %v4080_v63 }
 0x102   : >> { %2636 = vmatpush.bf16.msra.mxu1 %v4094_v57 }
 0x103   : >> { %2287 = vmatmul.bf16.vlgmr.msrb.gmra.mxu2 %v2049_v1 }
 0x104   : >> { %2646 = vmatpush.bf16.msra.mxu2 %v4105_v58  ;;  %2313 = vmatmul.bf16.vlgmr.msrb.gmra.mxu0 %v2059_v8 }
 0x105   : >> { %2677 = vmatpush.bf16.msra.mxu0 %v2631_v6  ;;  %2298 = vmatpush.bf16.msrb.mxu3 %v4073_v7 }
 0x106   : >> { %2637 = vmatpush.bf16.msra.mxu1 %v4093_v2 }
 0x108   : >> { %2647 = vmatpush.bf16.msra.mxu2 %v4104_v5 }
 0x109   : >> { %2678 = vmatpush.bf16.msra.mxu0 %v4115_v10  ;;  %2299 = vmatpush.bf16.msrb.mxu3 %v4072_v12 }
 0x10a   : >> { %2638 = vmatpush.bf16.msra.mxu1 %v4092_v9 }
 0x10c   : >> { %2648 = vmatpush.bf16.msra.mxu2 %v4103_v11  ;;  %2300 = vmatmul.bf16.vlgmr.msrb.gmra.mxu3 %v2054_v19 }
 0x10d   : >> { %2659 = vmatpush.bf16.msra.mxu3 %v4113_v14  ;;  %2679 = vmatpush.bf16.msra.mxu0 %v4114_v16 }
 0x10e   : >> { %2639 = vmatpush.bf16.msra.mxu1 %v4091_v15 }
 0x10f   : >> { %v696_v35 = vpop.f32.mrf.mxu3 }
 0x110   : >> { %2649 = vmatpush.bf16.msra.mxu2 %v4102_v17 }
 0x111   : >> { %2660 = vmatpush.bf16.msra.mxu3 %v4112_v22 }
 0x112   : >> { %2640 = vmatpush.bf16.msra.mxu1 %v4090_v23  ;;  %v657_v40 = vpop.f32.mrf.mxu0 }
 0x113   : >> { %v670_v41 = vpop.f32.mrf.mxu1 }
 0x114   : >> { %2650 = vmatpush.bf16.msra.mxu2 %v4101_v25  ;;  %3928 = vmatmul.msk.bf16.vlgmr.msra.gmra.mxu0 %vm641_vm1, %v2398_v32  ;;  %v671_v43 = vadd.f32 %v670_v41, %v657_v40 }
 0x115   : >> { %2661 = vmatpush.bf16.msra.mxu3 %v4111_v28  ;;  %2641 = vmatmul.bf16.vlgmr.msra.gmra.mxu1 %v2403_v29 }
 0x117   : >> { %v698_v45 = vpop.f32.mrf.mxu3 }
 0x118   : >> { %2651 = vmatpush.bf16.msra.mxu2 %v4100_v30 }
 0x119   : >> { %2662 = vmatpush.bf16.msra.mxu3 %v4110_v31 }
 0x11a   : >> { %v683_v37 = vpop.f32.mrf.mxu2  ;;  %v659_v48 = vpop.f32.mrf.mxu0 }
 0x11b   : >> { %v684_v47 = vadd.f32 %v683_v37, %v671_v43  ;;  %v672_v49 = vpop.f32.mrf.mxu1 }
 0x11c   : >> { %2652 = vmatpush.bf16.msra.mxu2 %v4099_v33 }
 0x11d   : >> { %2663 = vmatpush.bf16.msra.mxu3 %v4109_v34  ;;  %v697_v51 = vadd.f32 %v696_v35, %v684_v47 }
 0x120   : >> { %2653 = vmatpush.bf16.msra.mxu2 %v4098_v36 }
 0x121   : >> { %2664 = vmatpush.bf16.msra.mxu3 %v4108_v39 }
 0x122   : >> { %v685_v53 = vpop.f32.mrf.mxu2  ;;  %v873_v54 = vpop.f32.mrf.mxu3 }
 0x123   : >> { %2654 = vmatmul.bf16.vlgmr.msra.gmra.mxu2 %v2408_v42  ;;  %v874_v55 = vadd.f32 %v873_v54, %v697_v51  ;;  %v886_v56 = vpop.f32.mrf.mxu0 }
 0x124   : >> { %v899_v57 = vpop.f32.mrf.mxu1 }
 0x125   : >> { %2665 = vmatpush.bf16.msra.mxu3 %v4107_v44  ;;  %v887_v58 = vadd.f32 %v886_v56, %v874_v55 }
 0x127   : >> { %v900_v59 = vadd.f32 %v899_v57, %v887_v58 }
 0x129   : >> { %2666 = vmatpush.bf16.msra.mxu3 %v4106_v46 }
 0x12a   : >> { %v912_v60 = vpop.f32.mrf.mxu2  ;;  %v875_v61 = vpop.f32.mrf.mxu3 }
 0x12b   : >> { %v913_v62 = vadd.f32 %v912_v60, %v900_v59  ;;  %v888_v63 = vpop.f32.mrf.mxu0  ;;  %v2687_v61 = vperm.slane %v4234_v0, 0 }
 0x12c   : >> { %2667 = vmatmul.bf16.vlgmr.msra.gmra.mxu3 %v2413_v52  ;;  %v901_v1 = vpop.f32.mrf.mxu1 }
 0x132   : >> { %v914_v2 = vpop.f32.mrf.mxu2 }
 0x137   : >> { %v1252_v3 = vpop.f32.mrf.mxu0  ;;  %v1265_v4 = vpop.f32.mrf.mxu1 }
 0x13a   : >> { %v1239_v5 = vpop.f32.mrf.mxu2  ;;  %v1226_v6 = vpop.f32.mrf.mxu3 }
 0x13b   : >> { %v1240_v7 = vadd.f32 %v1239_v5, %v1226_v6 }
 0x13d   : >> { %v1253_v8 = vadd.f32 %v1252_v3, %v1240_v7 }
 0x13f   : >> { %v1254_v9 = vpop.f32.mrf.mxu0  ;;  %v1267_v10 = vpop.f32.mrf.mxu1  ;;  %v1266_v11 = vadd.f32 %v1265_v4, %v1253_v8 }
 0x141   : >> { %v1269_v12 = vadd.f32 %v1266_v11, %v913_v62 }
 0x142   : >> { %v1241_v13 = vpop.f32.mrf.mxu2  ;;  %v1228_v14 = vpop.f32.mrf.mxu3 }
 0x147   : >> { %v1593_v15 = vpop.f32.mrf.mxu1  ;;  %v1619_v16 = vpop.f32.mrf.mxu0 }
 0x14f   : >> { %v1595_v19 = vpop.f32.mrf.mxu1  ;;  %v1621_v20 = vpop.f32.mrf.mxu0 }
 0x151   : >> { %v1580_v17 = vpop.f32.mrf.mxu3 }
 0x152   : >> { %v1594_v18 = vadd.f32 %v1593_v15, %v1580_v17 }
 0x159   : >> { %v1582_v21 = vpop.f32.mrf.mxu3 }
 0x15a   : >> { %v1606_v22 = vpop.f32.mrf.mxu2 }
 0x15b   : >> { %v1607_v23 = vadd.f32 %v1606_v22, %v1594_v18 }
 0x15d   : >> { %v1620_v25 = vadd.f32 %v1619_v16, %v1607_v23 }
 0x15f   : >> { %v1623_v27 = vadd.f32 %v1620_v25, %v1269_v12 }
 0x161   : >> { %v1947_v26 = vpop.f32.mrf.mxu0 }
 0x162   : >> { %v1608_v28 = vpop.f32.mrf.mxu2 }
 0x168   : >> { %v1960_v29 = vpop.f32.mrf.mxu1 }
 0x169   : >> { %v1949_v30 = vpop.f32.mrf.mxu0 }
 0x16a   : >> { %v1973_v31 = vpop.f32.mrf.mxu2 }
 0x16f   : >> { %v1934_v32 = vpop.f32.mrf.mxu3 }
 0x170   : >> { %v1962_v33 = vpop.f32.mrf.mxu1  ;;  %v1948_v34 = vadd.f32 %v1947_v26, %v1934_v32 }
 0x172   : >> { %v1961_v35 = vadd.f32 %v1960_v29, %v1948_v34  ;;  %v1975_v38 = vpop.f32.mrf.mxu2 }
 0x174   : >> { %v1974_v36 = vadd.f32 %v1973_v31, %v1961_v35 }
 0x176   : >> { %v1977_v39 = vadd.f32 %v1974_v36, %v1623_v27 }
 0x177   : >> { %v1936_v40 = vpop.f32.mrf.mxu3 }
 0x178   : >> { %v2327_v41 = vpop.f32.mrf.mxu1 }
 0x180   : >> { %v2329_v43 = vpop.f32.mrf.mxu1 }
 0x181   : >> { %v2314_v42 = vpop.f32.mrf.mxu0 }
 0x186   : >> { %v2288_v44 = vpop.f32.mrf.mxu2 }
 0x189   : >> { %v2316_v45 = vpop.f32.mrf.mxu0 }
 0x18e   : >> { %v2290_v24 = vpop.f32.mrf.mxu2 }
 0x18f   : >> { %v2301_v37 = vpop.f32.mrf.mxu3 }
 0x190   : >> { %v2302_v52 = vadd.f32 %v2301_v37, %v2288_v44 }
 0x191   : >> { %v2681_v47 = vpop.f32.mrf.mxu0 }
 0x192   : >> { %v2642_v46 = vpop.f32.mrf.mxu1  ;;  %v2315_v53 = vadd.f32 %v2314_v42, %v2302_v52 }
 0x194   : >> { %v2328_v55 = vadd.f32 %v2327_v41, %v2315_v53 }
 0x196   : >> { %v2331_v59 = vadd.f32 %v2328_v55, %v1977_v39 }
 0x197   : >> { %v2303_v48 = vpop.f32.mrf.mxu3 }
 0x199   : >> { %v2683_v50 = vpop.f32.mrf.mxu0 }
 0x19a   : >> { %v2644_v49 = vpop.f32.mrf.mxu1 }
 0x1a6   : >> { %v2655_v51 = vpop.f32.mrf.mxu2 }
 0x1a7   : >> { %v2656_v56 = vadd.f32 %v2655_v51, %v2642_v46 }
 0x1ae   : >> { %v2657_v54 = vpop.f32.mrf.mxu2 }
 0x1af   : >> { %v2668_v57 = vpop.f32.mrf.mxu3 }
 0x1b0   : >> { %v2669_v58 = vadd.f32 %v2668_v57, %v2656_v56 }
 0x1b2   : >> { %v2682_v60 = vadd.f32 %v2681_v47, %v2669_v58 }
 0x1b4   : >> { %v2685_v62 = vadd.f32 %v2682_v60, %v2331_v59 }
 0x1b6   : >> { %v2689_v63 = vadd.f32 %v2687_v61, %v2685_v62 }
 0x1b7   : >> { %v2670_v1 = vpop.f32.mrf.mxu3 }
 0x1b8   : >> { %v2690_v2 = vmax.f32 %v2689_v63, 0.0  ;;  %201 = sbr.rel (!%p199_p5) target bundleno = 16 (0x10), region = 83 }
 0x1ba   : >> { %v2691_v3 = vpack.c.bf16 %v2690_v2, %v2690_v2 }
 0x1bc   : >> { %2695 = vst.msk [vmem:[%s2693_s9] sm:$0x3] %vm2694_vm8, %v2691_v3 }
 0x1bd PF: > { %s13_s14 = sadd.s32 1, %s4181_s14   ;;  %s5026_s12 = smov %s4177_s13 }
 0x1be   : > { %p10_p6 = scmp.ge.s32.totalorder %s13_s14, 4   ;;  %s5027_s13 = smov %s5029_s15 }
 0x1c0   :  { %12 = sbr.rel (!%p10_p6) target bundleno = 2 (0x2), region = 94 }

</bundles_post_ra>
